<compile_context>
chip_gen: v7x
topology: tpu7x:2x2x1
jax: 0.10.0
libtpu: 0.0.40
codegen_flags: <defaults>
</compile_context>

<pallas_src>
import functools

import jax
import jax.numpy as jnp
from jax.experimental import pallas as pl
from jax.experimental.pallas import tpu as pltpu

EMBEDDING_SIZE = 32
NUM_HEADS = 8
HEAD_SIZE = EMBEDDING_SIZE // NUM_HEADS
BLOCK_SIZE = 32
HIDDEN = 4 * EMBEDDING_SIZE
LN_EPS = 1e-5
NEG_BIG = -1e30

MAX_BT = 128                      # per-gen sweep: 32..128 (v7x), 32..256 (v5e/v6e)
VMEM_LIMIT_BYTES = 48 * 1024 * 1024


def _layernorm(x, gamma, beta):
    mean = jnp.mean(x, axis=-1, keepdims=True)
    var = jnp.mean((x - mean) ** 2, axis=-1, keepdims=True)
    return (x - mean) * jax.lax.rsqrt(var + LN_EPS) * gamma + beta


def _make_block_kernel(mm_dtype, approx_recip):
    """mm_dtype: dtype for MXU operands (f32 / bf16). Accumulation is always f32."""

    def block_kernel(x_ref, wqkv_ref, wprojh_ref, bproj_ref,
                     g1_ref, be1_ref, g2_ref, be2_ref,
                     w1_ref, bias1_ref, w2_ref, bias2_ref,
                     hmask_ref, negmask_ref, out_ref):
        Bt, T, C = x_ref.shape
        M = Bt * T
        H, D = NUM_HEADS, HEAD_SIZE

        x = x_ref[...].reshape(M, C)                      # (M, C) f32

        # ---- pre-LN multi-head self attention ----
        xn = _layernorm(x, g1_ref[...], be1_ref[...])
        qkv = jnp.dot(xn.astype(mm_dtype), wqkv_ref[...],
                      preferred_element_type=jnp.float32)             # (M, 3C)
        q = qkv[:, :C] * (D ** -0.5)                      # fold softmax scale once
        k = qkv[:, C:2 * C]
        v = qkv[:, 2 * C:]

        # cast once (hoisted out of the head loop)
        q3 = q.astype(mm_dtype).reshape(Bt, T, C)
        k3 = k.astype(mm_dtype).reshape(Bt, T, C)
        v_m = v.astype(mm_dtype)                          # (M, C)

        # per-head scores: contract over the full C with k head-masked
        # (cross-head terms vanish -> no width-4 lane slices)
        wei_list = []
        for h in range(H):                                # static unroll, 8 heads
            kh = k3 * hmask_ref[h]                        # (Bt, T, C) VPU mask mul
            wei_list.append(jnp.einsum("bqd,bkd->bqk", q3, kh,
                                       preferred_element_type=jnp.float32))
        wei = jnp.concatenate(wei_list, axis=0)           # (H*Bt, T, T)

        # batched softmax over all heads: one mask broadcast, one reduce chain
        wei = wei + negmask_ref[...]                      # additive causal mask
        wei = wei - jnp.max(wei, axis=-1, keepdims=True)
        e = jnp.exp(wei)
        denom = jnp.sum(e, axis=-1, keepdims=True)
        p = e * pl.reciprocal(denom, approx=approx_recip)
        p_m = p.astype(mm_dtype)
        # attention-weight dropout: identity (eval mode)

        # fused output projection: wprojh_ref[h] has rows outside head h zeroed,
        # so  v @ wprojh[h] == v_h @ Wproj[h*D:(h+1)*D, :]  (no activation slice)
        attn = jnp.zeros((Bt, T, C), jnp.float32)
        for h in range(H):
            vproj = jnp.dot(v_m, wprojh_ref[h],
                            preferred_element_type=jnp.float32)       # (M, C)
            attn = attn + jnp.einsum("bqk,bkc->bqc",
                                     p_m[h * Bt:(h + 1) * Bt],
                                     vproj.reshape(Bt, T, C).astype(mm_dtype),
                                     preferred_element_type=jnp.float32)
        # projection dropout: identity (eval mode)

        x1 = x + attn.reshape(M, C) + bproj_ref[...]

        # ---- pre-LN feed-forward ----
        x1n = _layernorm(x1, g2_ref[...], be2_ref[...])
        hmid = jnp.dot(x1n.astype(mm_dtype), w1_ref[...],
                       preferred_element_type=jnp.float32) + bias1_ref[...]
        hmid = jnp.maximum(hmid, 0.0)                     # ReLU (f32 VPU)
        ff = jnp.dot(hmid.astype(mm_dtype), w2_ref[...],
                     preferred_element_type=jnp.float32) + bias2_ref[...]
        # feed-forward dropout: identity (eval mode)

        out_ref[...] = (x1 + ff).reshape(Bt, T, C).astype(out_ref.dtype)

    return block_kernel


def _full_spec(shape):
    n = len(shape)
    return pl.BlockSpec(shape, lambda b, _n=n: (0,) * _n)


def _choose_tiling(B, requested_bt):
    """Pick the batch tile.  Guarantees >= 2 grid steps when B >= 2 (v7x has two
    TensorCores on the 'parallel' axis) and pads B up to a multiple of bt instead
    of degrading to tiny tiles for awkward batch sizes."""
    cap = requested_bt if requested_bt is not None else MAX_BT
    cap = max(1, min(cap, B, MAX_BT))
    if B >= 2:
        cap = min(cap, (B + 1) // 2)      # at least 2 grid steps
    grid_steps = (B + cap - 1) // cap
    return cap, grid_steps, grid_steps * cap


def _prepare_weights(params, mm_dtype):
    C, H, D = EMBEDDING_SIZE, NUM_HEADS, HEAD_SIZE
    # fused QKV weight (one MXU pass for all three projections)
    wqkv = jnp.concatenate([params["wq"], params["wk"], params["wv"]], axis=1)  # (C, 3C)
    # per-head zeroed-row projection weights (H, C, C) and per-head column masks
    row_head = jnp.arange(C) // D
    head_sel = row_head[None, :] == jnp.arange(H)[:, None]                      # (H, C)
    wproj_heads = jnp.where(head_sel[:, :, None], params["wproj"][None, :, :], 0.0)
    head_masks = head_sel.astype(jnp.float32)[:, None, :]                       # (H, 1, C)
    # additive causal bias (0 on/below diagonal, -1e30 above)
    neg_mask = jnp.where(params["tril"] == 0.0, NEG_BIG, 0.0).astype(jnp.float32)

    def mx(w):  # MXU-side operands in mm_dtype (halves weight DMA on the bf16 path)
        return w.astype(mm_dtype)

    return [
        mx(wqkv), mx(wproj_heads), params["bproj"],
        params["g1"], params["be1"], params["g2"], params["be2"],
        mx(params["w1"]), params["bias1"], mx(params["w2"]), params["bias2"],
        head_masks.astype(mm_dtype), neg_mask,
    ]


@functools.partial(jax.jit, static_argnames=("bt", "use_bf16"))
def block_forward(x, params, *, bt=None, use_bf16=True):
    B, T, C = x.shape
    assert T == BLOCK_SIZE and C == EMBEDDING_SIZE

    bt_eff, grid_steps, b_pad = _choose_tiling(B, bt)
    mm_dtype = jnp.bfloat16 if use_bf16 else jnp.float32

    weights = _prepare_weights(params, mm_dtype)

    x_in = x
    if b_pad != B:
        x_in = jnp.concatenate(
            [x, jnp.zeros((b_pad - B, T, C), x.dtype)], axis=0)

    in_specs = [pl.BlockSpec((bt_eff, T, C), lambda b: (b, 0, 0))]
    in_specs += [_full_spec(w.shape) for w in weights]

    kernel = _make_block_kernel(mm_dtype, approx_recip=use_bf16)
    out = pl.pallas_call(
        kernel,
        out_shape=jax.ShapeDtypeStruct((b_pad, T, C), x.dtype),
        grid=(grid_steps,),
        in_specs=in_specs,
        out_specs=pl.BlockSpec((bt_eff, T, C), lambda b: (b, 0, 0)),
        compiler_params=pltpu.CompilerParams(
            dimension_semantics=("parallel",),
            vmem_limit_bytes=VMEM_LIMIT_BYTES),
    )(x_in, *weights)

    return out[:B] if b_pad != B else out


def make_params(key):
    ks = jax.random.split(key, 10)
    s = 0.02
    f32 = jnp.float32
    return {
        # per-head q/k/v weights concatenated along the output axis -> (C, C),
        # stored so that q = x @ wq (transpose of the PyTorch layout).
        "wq": jax.random.normal(ks[0], (EMBEDDING_SIZE, EMBEDDING_SIZE), f32) * s,
        "wk": jax.random.normal(ks[1], (EMBEDDING_SIZE, EMBEDDING_SIZE), f32) * s,
        "wv": jax.random.normal(ks[2], (EMBEDDING_SIZE, EMBEDDING_SIZE), f32) * s,
        "wproj": jax.random.normal(ks[3], (EMBEDDING_SIZE, EMBEDDING_SIZE), f32) * s,
        "bproj": jax.random.normal(ks[4], (1, EMBEDDING_SIZE), f32) * s,
        "g1": jnp.ones((1, EMBEDDING_SIZE), f32),
        "be1": jnp.zeros((1, EMBEDDING_SIZE), f32),
        "g2": jnp.ones((1, EMBEDDING_SIZE), f32),
        "be2": jnp.zeros((1, EMBEDDING_SIZE), f32),
        "w1": jax.random.normal(ks[5], (EMBEDDING_SIZE, HIDDEN), f32) * s,
        "bias1": jax.random.normal(ks[6], (1, HIDDEN), f32) * s,
        "w2": jax.random.normal(ks[7], (HIDDEN, EMBEDDING_SIZE), f32) * s,
        "bias2": jax.random.normal(ks[8], (1, EMBEDDING_SIZE), f32) * s,
        "tril": jnp.tril(jnp.ones((BLOCK_SIZE, BLOCK_SIZE), f32)),
    }


def reference_forward(x, p):
    """Pure-JAX reference matching the PyTorch forward (eval mode)."""
    def ln(y, g, b):
        m = jnp.mean(y, axis=-1, keepdims=True)
        v = jnp.mean((y - m) ** 2, axis=-1, keepdims=True)
        return (y - m) / jnp.sqrt(v + LN_EPS) * g + b

    xn = ln(x, p["g1"], p["be1"])
    q = xn @ p["wq"]
    k = xn @ p["wk"]
    v = xn @ p["wv"]
    B, T, C = x.shape
    qh = q.reshape(B, T, NUM_HEADS, HEAD_SIZE).transpose(0, 2, 1, 3)
    kh = k.reshape(B, T, NUM_HEADS, HEAD_SIZE).transpose(0, 2, 1, 3)
    vh = v.reshape(B, T, NUM_HEADS, HEAD_SIZE).transpose(0, 2, 1, 3)
    wei = jnp.einsum("bhqd,bhkd->bhqk", qh, kh) * HEAD_SIZE ** -0.5
    wei = jnp.where(p["tril"][None, None] == 0.0, -jnp.inf, wei)
    wei = jax.nn.softmax(wei, axis=-1)
    out = jnp.einsum("bhqk,bhkd->bhqd", wei, vh)
    out = out.transpose(0, 2, 1, 3).reshape(B, T, C)
    attn = out @ p["wproj"] + p["bproj"]
    x1 = x + attn
    x1n = ln(x1, p["g2"], p["be2"])
    ff = jnp.maximum(x1n @ p["w1"] + p["bias1"], 0.0) @ p["w2"] + p["bias2"]
    return x1 + ff


if __name__ == "__main__":
    key = jax.random.PRNGKey(0)
    kx, kp = jax.random.split(key)

    B, T, C = 8, BLOCK_SIZE, EMBEDDING_SIZE       # T must equal BLOCK_SIZE (fixed tril)
    x = jax.random.normal(kx, (B, T, C), jnp.float32)
    params = make_params(kp)

    ref = reference_forward(x, params)

    # f32 path (exact reciprocal): bt=4 -> 2 grid steps, exercises batched tiling.
    out_f32 = jax.block_until_ready(block_forward(x, params, bt=4, use_bf16=False))
    assert out_f32.shape == (B, T, C)
    assert jnp.allclose(out_f32, ref, atol=2e-3, rtol=2e-3), "f32 mismatch vs reference"

    # Default path: bf16 at the MXU boundary (f32 accumulation), looser tolerance.
    out_bf16 = jax.block_until_ready(block_forward(x, params, bt=4))
    assert jnp.allclose(out_bf16, ref, atol=5e-2, rtol=5e-2), "bf16 mismatch vs reference"

    # Awkward batch size: exercises the padding path (B=5 -> bt=3, 2 grid steps).
    x_odd = jax.random.normal(jax.random.PRNGKey(1), (5, T, C), jnp.float32)
    ref_odd = reference_forward(x_odd, params)
    out_odd = jax.block_until_ready(block_forward(x_odd, params))
    assert out_odd.shape == (5, T, C)
    assert jnp.allclose(out_odd, ref_odd, atol=5e-2, rtol=5e-2), "padded-batch mismatch"

    print("KERNEL_OK")
</pallas_src>

<mosaic_0001>
module attributes {stable_mosaic.version = 11 : i64} {
  func.func @block_kernel(%arg0: i32, %arg1: memref<4x32x32xf32, #tpu.memory_space<vmem>>, %arg2: memref<32x96xf32, #tpu.memory_space<vmem>>, %arg3: memref<8x32x32xf32, #tpu.memory_space<vmem>>, %arg4: memref<1x32xf32, #tpu.memory_space<vmem>>, %arg5: memref<1x32xf32, #tpu.memory_space<vmem>>, %arg6: memref<1x32xf32, #tpu.memory_space<vmem>>, %arg7: memref<1x32xf32, #tpu.memory_space<vmem>>, %arg8: memref<1x32xf32, #tpu.memory_space<vmem>>, %arg9: memref<32x128xf32, #tpu.memory_space<vmem>>, %arg10: memref<1x128xf32, #tpu.memory_space<vmem>>, %arg11: memref<128x32xf32, #tpu.memory_space<vmem>>, %arg12: memref<1x32xf32, #tpu.memory_space<vmem>>, %arg13: memref<8x1x32xf32, #tpu.memory_space<vmem>>, %arg14: memref<32x32xf32, #tpu.memory_space<vmem>>, %arg15: memref<4x32x32xf32, #tpu.memory_space<vmem>>) attributes {dimension_semantics = [#tpu.dimension_semantics<parallel>], iteration_bounds = array<i64: 2>, scalar_prefetch = 0 : i64, scratch_operands = 0 : i64, tpu.core_type = #tpu.core_type<tc>, window_params = [{transform_indices = @transform_0, window_bounds = array<i64: 4, 32, 32>}, {pipeline_mode = #tpu.pipeline_mode<synchronous>, transform_indices = @transform_1, window_bounds = array<i64: 32, 96>}, {pipeline_mode = #tpu.pipeline_mode<synchronous>, transform_indices = @transform_2, window_bounds = array<i64: 8, 32, 32>}, {pipeline_mode = #tpu.pipeline_mode<synchronous>, transform_indices = @transform_3, window_bounds = array<i64: 1, 32>}, {pipeline_mode = #tpu.pipeline_mode<synchronous>, transform_indices = @transform_4, window_bounds = array<i64: 1, 32>}, {pipeline_mode = #tpu.pipeline_mode<synchronous>, transform_indices = @transform_5, window_bounds = array<i64: 1, 32>}, {pipeline_mode = #tpu.pipeline_mode<synchronous>, transform_indices = @transform_6, window_bounds = array<i64: 1, 32>}, {pipeline_mode = #tpu.pipeline_mode<synchronous>, transform_indices = @transform_7, window_bounds = array<i64: 1, 32>}, {pipeline_mode = #tpu.pipeline_mode<synchronous>, transform_indices = @transform_8, window_bounds = array<i64: 32, 128>}, {pipeline_mode = #tpu.pipeline_mode<synchronous>, transform_indices = @transform_9, window_bounds = array<i64: 1, 128>}, {pipeline_mode = #tpu.pipeline_mode<synchronous>, transform_indices = @transform_10, window_bounds = array<i64: 128, 32>}, {pipeline_mode = #tpu.pipeline_mode<synchronous>, transform_indices = @transform_11, window_bounds = array<i64: 1, 32>}, {pipeline_mode = #tpu.pipeline_mode<synchronous>, transform_indices = @transform_12, window_bounds = array<i64: 8, 1, 32>}, {pipeline_mode = #tpu.pipeline_mode<synchronous>, transform_indices = @transform_13, window_bounds = array<i64: 32, 32>}, {transform_indices = @transform_14, window_bounds = array<i64: 4, 32, 32>}]} {
    %c0 = arith.constant 0 : index
    %c0_0 = arith.constant 0 : index
    %c0_1 = arith.constant 0 : index
    %0 = vector.load %arg1[%c0, %c0_0, %c0_1] : memref<4x32x32xf32, #tpu.memory_space<vmem>>, vector<4x32x32xf32>
    %1 = vector.shape_cast %0 : vector<4x32x32xf32> to vector<128x32xf32>
    %c0_2 = arith.constant 0 : index
    %c0_3 = arith.constant 0 : index
    %2 = vector.load %arg5[%c0_2, %c0_3] : memref<1x32xf32, #tpu.memory_space<vmem>>, vector<1x32xf32>
    %c0_4 = arith.constant 0 : index
    %c0_5 = arith.constant 0 : index
    %3 = vector.load %arg6[%c0_4, %c0_5] : memref<1x32xf32, #tpu.memory_space<vmem>>, vector<1x32xf32>
    %cst = arith.constant dense<0.000000e+00> : vector<128xf32>
    %4 = vector.multi_reduction <add>, %1, %cst [1] : vector<128x32xf32> to vector<128xf32>
    %5 = vector.shape_cast %4 : vector<128xf32> to vector<128x1xf32>
    %cst_6 = arith.constant 3.200000e+01 : f32
    %6 = vector.broadcast %cst_6 : f32 to vector<128x1xf32>
    %7 = arith.divf %5, %6 : vector<128x1xf32>
    %8 = vector.broadcast %7 : vector<128x1xf32> to vector<128x32xf32>
    %9 = arith.subf %1, %8 : vector<128x32xf32>
    %10 = arith.mulf %9, %9 : vector<128x32xf32>
    %cst_7 = arith.constant dense<0.000000e+00> : vector<128xf32>
    %11 = vector.multi_reduction <add>, %10, %cst_7 [1] : vector<128x32xf32> to vector<128xf32>
    %12 = vector.shape_cast %11 : vector<128xf32> to vector<128x1xf32>
    %cst_8 = arith.constant 3.200000e+01 : f32
    %13 = vector.broadcast %cst_8 : f32 to vector<128x1xf32>
    %14 = arith.divf %12, %13 : vector<128x1xf32>
    %15 = vector.broadcast %7 : vector<128x1xf32> to vector<128x32xf32>
    %16 = arith.subf %1, %15 : vector<128x32xf32>
    %cst_9 = arith.constant 9.99999974E-6 : f32
    %17 = vector.broadcast %cst_9 : f32 to vector<128x1xf32>
    %18 = arith.addf %14, %17 : vector<128x1xf32>
    %19 = math.rsqrt %18 : vector<128x1xf32>
    %20 = vector.broadcast %19 : vector<128x1xf32> to vector<128x32xf32>
    %21 = arith.mulf %16, %20 : vector<128x32xf32>
    %22 = vector.broadcast %2 : vector<1x32xf32> to vector<128x32xf32>
    %23 = arith.mulf %21, %22 : vector<128x32xf32>
    %24 = vector.broadcast %3 : vector<1x32xf32> to vector<128x32xf32>
    %25 = arith.addf %23, %24 : vector<128x32xf32>
    %c0_10 = arith.constant 0 : index
    %c0_11 = arith.constant 0 : index
    %26 = vector.load %arg2[%c0_10, %c0_11] : memref<32x96xf32, #tpu.memory_space<vmem>>, vector<32x96xf32>
    %cst_12 = arith.constant dense<0.000000e+00> : vector<128x96xf32>
    %27 = tpu.matmul %25, %26, %cst_12 {dimension_numbers = #tpu.dot_dimension_numbers<[1], [0], [0], [1], [0, 0, 1, 1], [], []>} : vector<128x32xf32>, vector<32x96xf32>, vector<128x96xf32> -> vector<128x96xf32>
    %28 = vector.extract_strided_slice %27 {offsets = [0, 0], sizes = [128, 32], strides = [1, 1]} : vector<128x96xf32> to vector<128x32xf32>
    %cst_13 = arith.constant 5.000000e-01 : f32
    %29 = vector.broadcast %cst_13 : f32 to vector<128x32xf32>
    %30 = arith.mulf %28, %29 : vector<128x32xf32>
    %31 = vector.extract_strided_slice %27 {offsets = [0, 32], sizes = [128, 32], strides = [1, 1]} : vector<128x96xf32> to vector<128x32xf32>
    %32 = vector.extract_strided_slice %27 {offsets = [0, 64], sizes = [128, 32], strides = [1, 1]} : vector<128x96xf32> to vector<128x32xf32>
    %33 = vector.shape_cast %30 : vector<128x32xf32> to vector<4x32x32xf32>
    %34 = vector.shape_cast %31 : vector<128x32xf32> to vector<4x32x32xf32>
    %c0_14 = arith.constant 0 : index
    %c0_15 = arith.constant 0 : index
    %c0_16 = arith.constant 0 : index
    %35 = vector.load %arg13[%c0_14, %c0_15, %c0_16] : memref<8x1x32xf32, #tpu.memory_space<vmem>>, vector<1x1x32xf32>
    %36 = vector.shape_cast %35 : vector<1x1x32xf32> to vector<1x32xf32>
    %37 = vector.shape_cast %36 : vector<1x32xf32> to vector<1x1x32xf32>
    %38 = vector.broadcast %37 : vector<1x1x32xf32> to vector<4x32x32xf32>
    %39 = arith.mulf %34, %38 : vector<4x32x32xf32>
    "tpu.trace_start"() <{level = 10 : i32, message = "bqd,bkd->bqk"}> : () -> ()
    %cst_17 = arith.constant dense<0.000000e+00> : vector<4x32x32xf32>
    %40 = tpu.matmul %33, %39, %cst_17 {dimension_numbers = #tpu.dot_dimension_numbers<[2], [2], [1], [1], [0, 0, 0, 1, 1, 1], [0], [0]>} : vector<4x32x32xf32>, vector<4x32x32xf32>, vector<4x32x32xf32> -> vector<4x32x32xf32>
    "tpu.trace_stop"() : () -> ()
    %c1 = arith.constant 1 : index
    %c0_18 = arith.constant 0 : index
    %c0_19 = arith.constant 0 : index
    %41 = vector.load %arg13[%c1, %c0_18, %c0_19] : memref<8x1x32xf32, #tpu.memory_space<vmem>>, vector<1x1x32xf32>
    %42 = vector.shape_cast %41 : vector<1x1x32xf32> to vector<1x32xf32>
    %43 = vector.shape_cast %42 : vector<1x32xf32> to vector<1x1x32xf32>
    %44 = vector.broadcast %43 : vector<1x1x32xf32> to vector<4x32x32xf32>
    %45 = arith.mulf %34, %44 : vector<4x32x32xf32>
    "tpu.trace_start"() <{level = 10 : i32, message = "bqd,bkd->bqk"}> : () -> ()
    %cst_20 = arith.constant dense<0.000000e+00> : vector<4x32x32xf32>
    %46 = tpu.matmul %33, %45, %cst_20 {dimension_numbers = #tpu.dot_dimension_numbers<[2], [2], [1], [1], [0, 0, 0, 1, 1, 1], [0], [0]>} : vector<4x32x32xf32>, vector<4x32x32xf32>, vector<4x32x32xf32> -> vector<4x32x32xf32>
    "tpu.trace_stop"() : () -> ()
    %c2 = arith.constant 2 : index
    %c0_21 = arith.constant 0 : index
    %c0_22 = arith.constant 0 : index
    %47 = vector.load %arg13[%c2, %c0_21, %c0_22] : memref<8x1x32xf32, #tpu.memory_space<vmem>>, vector<1x1x32xf32>
    %48 = vector.shape_cast %47 : vector<1x1x32xf32> to vector<1x32xf32>
    %49 = vector.shape_cast %48 : vector<1x32xf32> to vector<1x1x32xf32>
    %50 = vector.broadcast %49 : vector<1x1x32xf32> to vector<4x32x32xf32>
    %51 = arith.mulf %34, %50 : vector<4x32x32xf32>
    "tpu.trace_start"() <{level = 10 : i32, message = "bqd,bkd->bqk"}> : () -> ()
    %cst_23 = arith.constant dense<0.000000e+00> : vector<4x32x32xf32>
    %52 = tpu.matmul %33, %51, %cst_23 {dimension_numbers = #tpu.dot_dimension_numbers<[2], [2], [1], [1], [0, 0, 0, 1, 1, 1], [0], [0]>} : vector<4x32x32xf32>, vector<4x32x32xf32>, vector<4x32x32xf32> -> vector<4x32x32xf32>
    "tpu.trace_stop"() : () -> ()
    %c3 = arith.constant 3 : index
    %c0_24 = arith.constant 0 : index
    %c0_25 = arith.constant 0 : index
    %53 = vector.load %arg13[%c3, %c0_24, %c0_25] : memref<8x1x32xf32, #tpu.memory_space<vmem>>, vector<1x1x32xf32>
    %54 = vector.shape_cast %53 : vector<1x1x32xf32> to vector<1x32xf32>
    %55 = vector.shape_cast %54 : vector<1x32xf32> to vector<1x1x32xf32>
    %56 = vector.broadcast %55 : vector<1x1x32xf32> to vector<4x32x32xf32>
    %57 = arith.mulf %34, %56 : vector<4x32x32xf32>
    "tpu.trace_start"() <{level = 10 : i32, message = "bqd,bkd->bqk"}> : () -> ()
    %cst_26 = arith.constant dense<0.000000e+00> : vector<4x32x32xf32>
    %58 = tpu.matmul %33, %57, %cst_26 {dimension_numbers = #tpu.dot_dimension_numbers<[2], [2], [1], [1], [0, 0, 0, 1, 1, 1], [0], [0]>} : vector<4x32x32xf32>, vector<4x32x32xf32>, vector<4x32x32xf32> -> vector<4x32x32xf32>
    "tpu.trace_stop"() : () -> ()
    %c4 = arith.constant 4 : index
    %c0_27 = arith.constant 0 : index
    %c0_28 = arith.constant 0 : index
    %59 = vector.load %arg13[%c4, %c0_27, %c0_28] : memref<8x1x32xf32, #tpu.memory_space<vmem>>, vector<1x1x32xf32>
    %60 = vector.shape_cast %59 : vector<1x1x32xf32> to vector<1x32xf32>
    %61 = vector.shape_cast %60 : vector<1x32xf32> to vector<1x1x32xf32>
    %62 = vector.broadcast %61 : vector<1x1x32xf32> to vector<4x32x32xf32>
    %63 = arith.mulf %34, %62 : vector<4x32x32xf32>
    "tpu.trace_start"() <{level = 10 : i32, message = "bqd,bkd->bqk"}> : () -> ()
    %cst_29 = arith.constant dense<0.000000e+00> : vector<4x32x32xf32>
    %64 = tpu.matmul %33, %63, %cst_29 {dimension_numbers = #tpu.dot_dimension_numbers<[2], [2], [1], [1], [0, 0, 0, 1, 1, 1], [0], [0]>} : vector<4x32x32xf32>, vector<4x32x32xf32>, vector<4x32x32xf32> -> vector<4x32x32xf32>
    "tpu.trace_stop"() : () -> ()
    %c5 = arith.constant 5 : index
    %c0_30 = arith.constant 0 : index
    %c0_31 = arith.constant 0 : index
    %65 = vector.load %arg13[%c5, %c0_30, %c0_31] : memref<8x1x32xf32, #tpu.memory_space<vmem>>, vector<1x1x32xf32>
    %66 = vector.shape_cast %65 : vector<1x1x32xf32> to vector<1x32xf32>
    %67 = vector.shape_cast %66 : vector<1x32xf32> to vector<1x1x32xf32>
    %68 = vector.broadcast %67 : vector<1x1x32xf32> to vector<4x32x32xf32>
    %69 = arith.mulf %34, %68 : vector<4x32x32xf32>
    "tpu.trace_start"() <{level = 10 : i32, message = "bqd,bkd->bqk"}> : () -> ()
    %cst_32 = arith.constant dense<0.000000e+00> : vector<4x32x32xf32>
    %70 = tpu.matmul %33, %69, %cst_32 {dimension_numbers = #tpu.dot_dimension_numbers<[2], [2], [1], [1], [0, 0, 0, 1, 1, 1], [0], [0]>} : vector<4x32x32xf32>, vector<4x32x32xf32>, vector<4x32x32xf32> -> vector<4x32x32xf32>
    "tpu.trace_stop"() : () -> ()
    %c6 = arith.constant 6 : index
    %c0_33 = arith.constant 0 : index
    %c0_34 = arith.constant 0 : index
    %71 = vector.load %arg13[%c6, %c0_33, %c0_34] : memref<8x1x32xf32, #tpu.memory_space<vmem>>, vector<1x1x32xf32>
    %72 = vector.shape_cast %71 : vector<1x1x32xf32> to vector<1x32xf32>
    %73 = vector.shape_cast %72 : vector<1x32xf32> to vector<1x1x32xf32>
    %74 = vector.broadcast %73 : vector<1x1x32xf32> to vector<4x32x32xf32>
    %75 = arith.mulf %34, %74 : vector<4x32x32xf32>
    "tpu.trace_start"() <{level = 10 : i32, message = "bqd,bkd->bqk"}> : () -> ()
    %cst_35 = arith.constant dense<0.000000e+00> : vector<4x32x32xf32>
    %76 = tpu.matmul %33, %75, %cst_35 {dimension_numbers = #tpu.dot_dimension_numbers<[2], [2], [1], [1], [0, 0, 0, 1, 1, 1], [0], [0]>} : vector<4x32x32xf32>, vector<4x32x32xf32>, vector<4x32x32xf32> -> vector<4x32x32xf32>
    "tpu.trace_stop"() : () -> ()
    %c7 = arith.constant 7 : index
    %c0_36 = arith.constant 0 : index
    %c0_37 = arith.constant 0 : index
    %77 = vector.load %arg13[%c7, %c0_36, %c0_37] : memref<8x1x32xf32, #tpu.memory_space<vmem>>, vector<1x1x32xf32>
    %78 = vector.shape_cast %77 : vector<1x1x32xf32> to vector<1x32xf32>
    %79 = vector.shape_cast %78 : vector<1x32xf32> to vector<1x1x32xf32>
    %80 = vector.broadcast %79 : vector<1x1x32xf32> to vector<4x32x32xf32>
    %81 = arith.mulf %34, %80 : vector<4x32x32xf32>
    "tpu.trace_start"() <{level = 10 : i32, message = "bqd,bkd->bqk"}> : () -> ()
    %cst_38 = arith.constant dense<0.000000e+00> : vector<4x32x32xf32>
    %82 = tpu.matmul %33, %81, %cst_38 {dimension_numbers = #tpu.dot_dimension_numbers<[2], [2], [1], [1], [0, 0, 0, 1, 1, 1], [0], [0]>} : vector<4x32x32xf32>, vector<4x32x32xf32>, vector<4x32x32xf32> -> vector<4x32x32xf32>
    "tpu.trace_stop"() : () -> ()
    %83 = tpu.concatenate %40, %46, %52, %58, %64, %70, %76, %82 in 0 : vector<4x32x32xf32>, vector<4x32x32xf32>, vector<4x32x32xf32>, vector<4x32x32xf32>, vector<4x32x32xf32>, vector<4x32x32xf32>, vector<4x32x32xf32>, vector<4x32x32xf32> -> vector<32x32x32xf32>
    %c0_39 = arith.constant 0 : index
    %c0_40 = arith.constant 0 : index
    %84 = vector.load %arg14[%c0_39, %c0_40] : memref<32x32xf32, #tpu.memory_space<vmem>>, vector<32x32xf32>
    %85 = vector.shape_cast %84 : vector<32x32xf32> to vector<1x32x32xf32>
    %86 = vector.broadcast %85 : vector<1x32x32xf32> to vector<32x32x32xf32>
    %87 = arith.addf %83, %86 : vector<32x32x32xf32>
    %cst_41 = arith.constant dense<0xFF800000> : vector<32x32xf32>
    %88 = vector.multi_reduction <maximumf>, %87, %cst_41 [2] : vector<32x32x32xf32> to vector<32x32xf32>
    %89 = vector.shape_cast %88 : vector<32x32xf32> to vector<32x32x1xf32>
    %90 = vector.broadcast %89 : vector<32x32x1xf32> to vector<32x32x32xf32>
    %91 = arith.subf %87, %90 : vector<32x32x32xf32>
    %92 = math.exp %91 : vector<32x32x32xf32>
    %cst_42 = arith.constant dense<0.000000e+00> : vector<32x32xf32>
    %93 = vector.multi_reduction <add>, %92, %cst_42 [2] : vector<32x32x32xf32> to vector<32x32xf32>
    %94 = vector.shape_cast %93 : vector<32x32xf32> to vector<32x32x1xf32>
    %95 = tpu.reciprocal %94 : vector<32x32x1xf32> -> vector<32x32x1xf32>
    %96 = vector.broadcast %95 : vector<32x32x1xf32> to vector<32x32x32xf32>
    %97 = arith.mulf %92, %96 : vector<32x32x32xf32>
    %cst_43 = arith.constant 0.000000e+00 : f32
    %98 = vector.broadcast %cst_43 : f32 to vector<4x32x32xf32>
    %c0_44 = arith.constant 0 : index
    %c0_45 = arith.constant 0 : index
    %c0_46 = arith.constant 0 : index
    %99 = vector.load %arg3[%c0_44, %c0_45, %c0_46] : memref<8x32x32xf32, #tpu.memory_space<vmem>>, vector<1x32x32xf32>
    %100 = vector.shape_cast %99 : vector<1x32x32xf32> to vector<32x32xf32>
    %cst_47 = arith.constant dense<0.000000e+00> : vector<128x32xf32>
    %101 = tpu.matmul %32, %100, %cst_47 {dimension_numbers = #tpu.dot_dimension_numbers<[1], [0], [0], [1], [0, 0, 1, 1], [], []>} : vector<128x32xf32>, vector<32x32xf32>, vector<128x32xf32> -> vector<128x32xf32>
    %102 = vector.extract_strided_slice %97 {offsets = [0, 0, 0], sizes = [4, 32, 32], strides = [1, 1, 1]} : vector<32x32x32xf32> to vector<4x32x32xf32>
    %103 = vector.shape_cast %101 : vector<128x32xf32> to vector<4x32x32xf32>
    "tpu.trace_start"() <{level = 10 : i32, message = "bqk,bkc->bqc"}> : () -> ()
    %cst_48 = arith.constant dense<0.000000e+00> : vector<4x32x32xf32>
    %104 = tpu.matmul %102, %103, %cst_48 {dimension_numbers = #tpu.dot_dimension_numbers<[2], [1], [1], [2], [0, 0, 0, 1, 1, 2], [0], [0]>} : vector<4x32x32xf32>, vector<4x32x32xf32>, vector<4x32x32xf32> -> vector<4x32x32xf32>
    "tpu.trace_stop"() : () -> ()
    %105 = arith.addf %98, %104 : vector<4x32x32xf32>
    %c1_49 = arith.constant 1 : index
    %c0_50 = arith.constant 0 : index
    %c0_51 = arith.constant 0 : index
    %106 = vector.load %arg3[%c1_49, %c0_50, %c0_51] : memref<8x32x32xf32, #tpu.memory_space<vmem>>, vector<1x32x32xf32>
    %107 = vector.shape_cast %106 : vector<1x32x32xf32> to vector<32x32xf32>
    %cst_52 = arith.constant dense<0.000000e+00> : vector<128x32xf32>
    %108 = tpu.matmul %32, %107, %cst_52 {dimension_numbers = #tpu.dot_dimension_numbers<[1], [0], [0], [1], [0, 0, 1, 1], [], []>} : vector<128x32xf32>, vector<32x32xf32>, vector<128x32xf32> -> vector<128x32xf32>
    %109 = vector.extract_strided_slice %97 {offsets = [4, 0, 0], sizes = [4, 32, 32], strides = [1, 1, 1]} : vector<32x32x32xf32> to vector<4x32x32xf32>
    %110 = vector.shape_cast %108 : vector<128x32xf32> to vector<4x32x32xf32>
    "tpu.trace_start"() <{level = 10 : i32, message = "bqk,bkc->bqc"}> : () -> ()
    %cst_53 = arith.constant dense<0.000000e+00> : vector<4x32x32xf32>
    %111 = tpu.matmul %109, %110, %cst_53 {dimension_numbers = #tpu.dot_dimension_numbers<[2], [1], [1], [2], [0, 0, 0, 1, 1, 2], [0], [0]>} : vector<4x32x32xf32>, vector<4x32x32xf32>, vector<4x32x32xf32> -> vector<4x32x32xf32>
    "tpu.trace_stop"() : () -> ()
    %112 = arith.addf %105, %111 : vector<4x32x32xf32>
    %c2_54 = arith.constant 2 : index
    %c0_55 = arith.constant 0 : index
    %c0_56 = arith.constant 0 : index
    %113 = vector.load %arg3[%c2_54, %c0_55, %c0_56] : memref<8x32x32xf32, #tpu.memory_space<vmem>>, vector<1x32x32xf32>
    %114 = vector.shape_cast %113 : vector<1x32x32xf32> to vector<32x32xf32>
    %cst_57 = arith.constant dense<0.000000e+00> : vector<128x32xf32>
    %115 = tpu.matmul %32, %114, %cst_57 {dimension_numbers = #tpu.dot_dimension_numbers<[1], [0], [0], [1], [0, 0, 1, 1], [], []>} : vector<128x32xf32>, vector<32x32xf32>, vector<128x32xf32> -> vector<128x32xf32>
    %116 = vector.extract_strided_slice %97 {offsets = [8, 0, 0], sizes = [4, 32, 32], strides = [1, 1, 1]} : vector<32x32x32xf32> to vector<4x32x32xf32>
    %117 = vector.shape_cast %115 : vector<128x32xf32> to vector<4x32x32xf32>
    "tpu.trace_start"() <{level = 10 : i32, message = "bqk,bkc->bqc"}> : () -> ()
    %cst_58 = arith.constant dense<0.000000e+00> : vector<4x32x32xf32>
    %118 = tpu.matmul %116, %117, %cst_58 {dimension_numbers = #tpu.dot_dimension_numbers<[2], [1], [1], [2], [0, 0, 0, 1, 1, 2], [0], [0]>} : vector<4x32x32xf32>, vector<4x32x32xf32>, vector<4x32x32xf32> -> vector<4x32x32xf32>
    "tpu.trace_stop"() : () -> ()
    %119 = arith.addf %112, %118 : vector<4x32x32xf32>
    %c3_59 = arith.constant 3 : index
    %c0_60 = arith.constant 0 : index
    %c0_61 = arith.constant 0 : index
    %120 = vector.load %arg3[%c3_59, %c0_60, %c0_61] : memref<8x32x32xf32, #tpu.memory_space<vmem>>, vector<1x32x32xf32>
    %121 = vector.shape_cast %120 : vector<1x32x32xf32> to vector<32x32xf32>
    %cst_62 = arith.constant dense<0.000000e+00> : vector<128x32xf32>
    %122 = tpu.matmul %32, %121, %cst_62 {dimension_numbers = #tpu.dot_dimension_numbers<[1], [0], [0], [1], [0, 0, 1, 1], [], []>} : vector<128x32xf32>, vector<32x32xf32>, vector<128x32xf32> -> vector<128x32xf32>
    %123 = vector.extract_strided_slice %97 {offsets = [12, 0, 0], sizes = [4, 32, 32], strides = [1, 1, 1]} : vector<32x32x32xf32> to vector<4x32x32xf32>
    %124 = vector.shape_cast %122 : vector<128x32xf32> to vector<4x32x32xf32>
    "tpu.trace_start"() <{level = 10 : i32, message = "bqk,bkc->bqc"}> : () -> ()
    %cst_63 = arith.constant dense<0.000000e+00> : vector<4x32x32xf32>
    %125 = tpu.matmul %123, %124, %cst_63 {dimension_numbers = #tpu.dot_dimension_numbers<[2], [1], [1], [2], [0, 0, 0, 1, 1, 2], [0], [0]>} : vector<4x32x32xf32>, vector<4x32x32xf32>, vector<4x32x32xf32> -> vector<4x32x32xf32>
    "tpu.trace_stop"() : () -> ()
    %126 = arith.addf %119, %125 : vector<4x32x32xf32>
    %c4_64 = arith.constant 4 : index
    %c0_65 = arith.constant 0 : index
    %c0_66 = arith.constant 0 : index
    %127 = vector.load %arg3[%c4_64, %c0_65, %c0_66] : memref<8x32x32xf32, #tpu.memory_space<vmem>>, vector<1x32x32xf32>
    %128 = vector.shape_cast %127 : vector<1x32x32xf32> to vector<32x32xf32>
    %cst_67 = arith.constant dense<0.000000e+00> : vector<128x32xf32>
    %129 = tpu.matmul %32, %128, %cst_67 {dimension_numbers = #tpu.dot_dimension_numbers<[1], [0], [0], [1], [0, 0, 1, 1], [], []>} : vector<128x32xf32>, vector<32x32xf32>, vector<128x32xf32> -> vector<128x32xf32>
    %130 = vector.extract_strided_slice %97 {offsets = [16, 0, 0], sizes = [4, 32, 32], strides = [1, 1, 1]} : vector<32x32x32xf32> to vector<4x32x32xf32>
    %131 = vector.shape_cast %129 : vector<128x32xf32> to vector<4x32x32xf32>
    "tpu.trace_start"() <{level = 10 : i32, message = "bqk,bkc->bqc"}> : () -> ()
    %cst_68 = arith.constant dense<0.000000e+00> : vector<4x32x32xf32>
    %132 = tpu.matmul %130, %131, %cst_68 {dimension_numbers = #tpu.dot_dimension_numbers<[2], [1], [1], [2], [0, 0, 0, 1, 1, 2], [0], [0]>} : vector<4x32x32xf32>, vector<4x32x32xf32>, vector<4x32x32xf32> -> vector<4x32x32xf32>
    "tpu.trace_stop"() : () -> ()
    %133 = arith.addf %126, %132 : vector<4x32x32xf32>
    %c5_69 = arith.constant 5 : index
    %c0_70 = arith.constant 0 : index
    %c0_71 = arith.constant 0 : index
    %134 = vector.load %arg3[%c5_69, %c0_70, %c0_71] : memref<8x32x32xf32, #tpu.memory_space<vmem>>, vector<1x32x32xf32>
    %135 = vector.shape_cast %134 : vector<1x32x32xf32> to vector<32x32xf32>
    %cst_72 = arith.constant dense<0.000000e+00> : vector<128x32xf32>
    %136 = tpu.matmul %32, %135, %cst_72 {dimension_numbers = #tpu.dot_dimension_numbers<[1], [0], [0], [1], [0, 0, 1, 1], [], []>} : vector<128x32xf32>, vector<32x32xf32>, vector<128x32xf32> -> vector<128x32xf32>
    %137 = vector.extract_strided_slice %97 {offsets = [20, 0, 0], sizes = [4, 32, 32], strides = [1, 1, 1]} : vector<32x32x32xf32> to vector<4x32x32xf32>
    %138 = vector.shape_cast %136 : vector<128x32xf32> to vector<4x32x32xf32>
    "tpu.trace_start"() <{level = 10 : i32, message = "bqk,bkc->bqc"}> : () -> ()
    %cst_73 = arith.constant dense<0.000000e+00> : vector<4x32x32xf32>
    %139 = tpu.matmul %137, %138, %cst_73 {dimension_numbers = #tpu.dot_dimension_numbers<[2], [1], [1], [2], [0, 0, 0, 1, 1, 2], [0], [0]>} : vector<4x32x32xf32>, vector<4x32x32xf32>, vector<4x32x32xf32> -> vector<4x32x32xf32>
    "tpu.trace_stop"() : () -> ()
    %140 = arith.addf %133, %139 : vector<4x32x32xf32>
    %c6_74 = arith.constant 6 : index
    %c0_75 = arith.constant 0 : index
    %c0_76 = arith.constant 0 : index
    %141 = vector.load %arg3[%c6_74, %c0_75, %c0_76] : memref<8x32x32xf32, #tpu.memory_space<vmem>>, vector<1x32x32xf32>
    %142 = vector.shape_cast %141 : vector<1x32x32xf32> to vector<32x32xf32>
    %cst_77 = arith.constant dense<0.000000e+00> : vector<128x32xf32>
    %143 = tpu.matmul %32, %142, %cst_77 {dimension_numbers = #tpu.dot_dimension_numbers<[1], [0], [0], [1], [0, 0, 1, 1], [], []>} : vector<128x32xf32>, vector<32x32xf32>, vector<128x32xf32> -> vector<128x32xf32>
    %144 = vector.extract_strided_slice %97 {offsets = [24, 0, 0], sizes = [4, 32, 32], strides = [1, 1, 1]} : vector<32x32x32xf32> to vector<4x32x32xf32>
    %145 = vector.shape_cast %143 : vector<128x32xf32> to vector<4x32x32xf32>
    "tpu.trace_start"() <{level = 10 : i32, message = "bqk,bkc->bqc"}> : () -> ()
    %cst_78 = arith.constant dense<0.000000e+00> : vector<4x32x32xf32>
    %146 = tpu.matmul %144, %145, %cst_78 {dimension_numbers = #tpu.dot_dimension_numbers<[2], [1], [1], [2], [0, 0, 0, 1, 1, 2], [0], [0]>} : vector<4x32x32xf32>, vector<4x32x32xf32>, vector<4x32x32xf32> -> vector<4x32x32xf32>
    "tpu.trace_stop"() : () -> ()
    %147 = arith.addf %140, %146 : vector<4x32x32xf32>
    %c7_79 = arith.constant 7 : index
    %c0_80 = arith.constant 0 : index
    %c0_81 = arith.constant 0 : index
    %148 = vector.load %arg3[%c7_79, %c0_80, %c0_81] : memref<8x32x32xf32, #tpu.memory_space<vmem>>, vector<1x32x32xf32>
    %149 = vector.shape_cast %148 : vector<1x32x32xf32> to vector<32x32xf32>
    %cst_82 = arith.constant dense<0.000000e+00> : vector<128x32xf32>
    %150 = tpu.matmul %32, %149, %cst_82 {dimension_numbers = #tpu.dot_dimension_numbers<[1], [0], [0], [1], [0, 0, 1, 1], [], []>} : vector<128x32xf32>, vector<32x32xf32>, vector<128x32xf32> -> vector<128x32xf32>
    %151 = vector.extract_strided_slice %97 {offsets = [28, 0, 0], sizes = [4, 32, 32], strides = [1, 1, 1]} : vector<32x32x32xf32> to vector<4x32x32xf32>
    %152 = vector.shape_cast %150 : vector<128x32xf32> to vector<4x32x32xf32>
    "tpu.trace_start"() <{level = 10 : i32, message = "bqk,bkc->bqc"}> : () -> ()
    %cst_83 = arith.constant dense<0.000000e+00> : vector<4x32x32xf32>
    %153 = tpu.matmul %151, %152, %cst_83 {dimension_numbers = #tpu.dot_dimension_numbers<[2], [1], [1], [2], [0, 0, 0, 1, 1, 2], [0], [0]>} : vector<4x32x32xf32>, vector<4x32x32xf32>, vector<4x32x32xf32> -> vector<4x32x32xf32>
    "tpu.trace_stop"() : () -> ()
    %154 = arith.addf %147, %153 : vector<4x32x32xf32>
    %155 = vector.shape_cast %154 : vector<4x32x32xf32> to vector<128x32xf32>
    %156 = arith.addf %1, %155 : vector<128x32xf32>
    %c0_84 = arith.constant 0 : index
    %c0_85 = arith.constant 0 : index
    %157 = vector.load %arg4[%c0_84, %c0_85] : memref<1x32xf32, #tpu.memory_space<vmem>>, vector<1x32xf32>
    %158 = vector.broadcast %157 : vector<1x32xf32> to vector<128x32xf32>
    %159 = arith.addf %156, %158 : vector<128x32xf32>
    %c0_86 = arith.constant 0 : index
    %c0_87 = arith.constant 0 : index
    %160 = vector.load %arg7[%c0_86, %c0_87] : memref<1x32xf32, #tpu.memory_space<vmem>>, vector<1x32xf32>
    %c0_88 = arith.constant 0 : index
    %c0_89 = arith.constant 0 : index
    %161 = vector.load %arg8[%c0_88, %c0_89] : memref<1x32xf32, #tpu.memory_space<vmem>>, vector<1x32xf32>
    %cst_90 = arith.constant dense<0.000000e+00> : vector<128xf32>
    %162 = vector.multi_reduction <add>, %159, %cst_90 [1] : vector<128x32xf32> to vector<128xf32>
    %163 = vector.shape_cast %162 : vector<128xf32> to vector<128x1xf32>
    %cst_91 = arith.constant 3.200000e+01 : f32
    %164 = vector.broadcast %cst_91 : f32 to vector<128x1xf32>
    %165 = arith.divf %163, %164 : vector<128x1xf32>
    %166 = vector.broadcast %165 : vector<128x1xf32> to vector<128x32xf32>
    %167 = arith.subf %159, %166 : vector<128x32xf32>
    %168 = arith.mulf %167, %167 : vector<128x32xf32>
    %cst_92 = arith.constant dense<0.000000e+00> : vector<128xf32>
    %169 = vector.multi_reduction <add>, %168, %cst_92 [1] : vector<128x32xf32> to vector<128xf32>
    %170 = vector.shape_cast %169 : vector<128xf32> to vector<128x1xf32>
    %cst_93 = arith.constant 3.200000e+01 : f32
    %171 = vector.broadcast %cst_93 : f32 to vector<128x1xf32>
    %172 = arith.divf %170, %171 : vector<128x1xf32>
    %173 = vector.broadcast %165 : vector<128x1xf32> to vector<128x32xf32>
    %174 = arith.subf %159, %173 : vector<128x32xf32>
    %cst_94 = arith.constant 9.99999974E-6 : f32
    %175 = vector.broadcast %cst_94 : f32 to vector<128x1xf32>
    %176 = arith.addf %172, %175 : vector<128x1xf32>
    %177 = math.rsqrt %176 : vector<128x1xf32>
    %178 = vector.broadcast %177 : vector<128x1xf32> to vector<128x32xf32>
    %179 = arith.mulf %174, %178 : vector<128x32xf32>
    %180 = vector.broadcast %160 : vector<1x32xf32> to vector<128x32xf32>
    %181 = arith.mulf %179, %180 : vector<128x32xf32>
    %182 = vector.broadcast %161 : vector<1x32xf32> to vector<128x32xf32>
    %183 = arith.addf %181, %182 : vector<128x32xf32>
    %c0_95 = arith.constant 0 : index
    %c0_96 = arith.constant 0 : index
    %184 = vector.load %arg9[%c0_95, %c0_96] : memref<32x128xf32, #tpu.memory_space<vmem>>, vector<32x128xf32>
    %cst_97 = arith.constant dense<0.000000e+00> : vector<128x128xf32>
    %185 = tpu.matmul %183, %184, %cst_97 {dimension_numbers = #tpu.dot_dimension_numbers<[1], [0], [0], [1], [0, 0, 1, 1], [], []>} : vector<128x32xf32>, vector<32x128xf32>, vector<128x128xf32> -> vector<128x128xf32>
    %c0_98 = arith.constant 0 : index
    %c0_99 = arith.constant 0 : index
    %186 = vector.load %arg10[%c0_98, %c0_99] : memref<1x128xf32, #tpu.memory_space<vmem>>, vector<1x128xf32>
    %187 = vector.broadcast %186 : vector<1x128xf32> to vector<128x128xf32>
    %188 = arith.addf %185, %187 : vector<128x128xf32>
    %cst_100 = arith.constant 0.000000e+00 : f32
    %189 = vector.broadcast %cst_100 : f32 to vector<128x128xf32>
    %190 = arith.maximumf %188, %189 : vector<128x128xf32>
    %c0_101 = arith.constant 0 : index
    %c0_102 = arith.constant 0 : index
    %191 = vector.load %arg11[%c0_101, %c0_102] : memref<128x32xf32, #tpu.memory_space<vmem>>, vector<128x32xf32>
    %cst_103 = arith.constant dense<0.000000e+00> : vector<128x32xf32>
    %192 = tpu.matmul %190, %191, %cst_103 {dimension_numbers = #tpu.dot_dimension_numbers<[1], [0], [0], [1], [0, 0, 1, 1], [], []>} : vector<128x128xf32>, vector<128x32xf32>, vector<128x32xf32> -> vector<128x32xf32>
    %c0_104 = arith.constant 0 : index
    %c0_105 = arith.constant 0 : index
    %193 = vector.load %arg12[%c0_104, %c0_105] : memref<1x32xf32, #tpu.memory_space<vmem>>, vector<1x32xf32>
    %194 = vector.broadcast %193 : vector<1x32xf32> to vector<128x32xf32>
    %195 = arith.addf %192, %194 : vector<128x32xf32>
    %196 = arith.addf %159, %195 : vector<128x32xf32>
    %197 = vector.shape_cast %196 : vector<128x32xf32> to vector<4x32x32xf32>
    %c0_106 = arith.constant 0 : index
    %c0_107 = arith.constant 0 : index
    %c0_108 = arith.constant 0 : index
    %198 = vector.load %arg15[%c0_106, %c0_107, %c0_108] : memref<4x32x32xf32, #tpu.memory_space<vmem>>, vector<4x32x32xf32>
    tpu.vector_store %arg15[%c0_106, %c0_107, %c0_108], %197 {strides = array<i32>} : memref<4x32x32xf32, #tpu.memory_space<vmem>>, vector<4x32x32xf32>,
    return
  }
  func.func @transform_0(%arg0: i32) -> (i32, i32, i32) {
    %c0_i32 = arith.constant 0 : i32
    %c0_i32_0 = arith.constant 0 : i32
    %c0_i32_1 = arith.constant 0 : i32
    return %arg0, %c0_i32, %c0_i32_0 : i32, i32, i32
  }
  func.func @transform_1(%arg0: i32) -> (i32, i32) {
    %c0_i32 = arith.constant 0 : i32
    %c0_i32_0 = arith.constant 0 : i32
    %c0_i32_1 = arith.constant 0 : i32
    return %c0_i32, %c0_i32_0 : i32, i32
  }
  func.func @transform_2(%arg0: i32) -> (i32, i32, i32) {
    %c0_i32 = arith.constant 0 : i32
    %c0_i32_0 = arith.constant 0 : i32
    %c0_i32_1 = arith.constant 0 : i32
    %c0_i32_2 = arith.constant 0 : i32
    return %c0_i32, %c0_i32_0, %c0_i32_1 : i32, i32, i32
  }
  func.func @transform_3(%arg0: i32) -> (i32, i32) {
    %c0_i32 = arith.constant 0 : i32
    %c0_i32_0 = arith.constant 0 : i32
    %c0_i32_1 = arith.constant 0 : i32
    return %c0_i32, %c0_i32_0 : i32, i32
  }
  func.func @transform_4(%arg0: i32) -> (i32, i32) {
    %c0_i32 = arith.constant 0 : i32
    %c0_i32_0 = arith.constant 0 : i32
    %c0_i32_1 = arith.constant 0 : i32
    return %c0_i32, %c0_i32_0 : i32, i32
  }
  func.func @transform_5(%arg0: i32) -> (i32, i32) {
    %c0_i32 = arith.constant 0 : i32
    %c0_i32_0 = arith.constant 0 : i32
    %c0_i32_1 = arith.constant 0 : i32
    return %c0_i32, %c0_i32_0 : i32, i32
  }
  func.func @transform_6(%arg0: i32) -> (i32, i32) {
    %c0_i32 = arith.constant 0 : i32
    %c0_i32_0 = arith.constant 0 : i32
    %c0_i32_1 = arith.constant 0 : i32
    return %c0_i32, %c0_i32_0 : i32, i32
  }
  func.func @transform_7(%arg0: i32) -> (i32, i32) {
    %c0_i32 = arith.constant 0 : i32
    %c0_i32_0 = arith.constant 0 : i32
    %c0_i32_1 = arith.constant 0 : i32
    return %c0_i32, %c0_i32_0 : i32, i32
  }
  func.func @transform_8(%arg0: i32) -> (i32, i32) {
    %c0_i32 = arith.constant 0 : i32
    %c0_i32_0 = arith.constant 0 : i32
    %c0_i32_1 = arith.constant 0 : i32
    return %c0_i32, %c0_i32_0 : i32, i32
  }
  func.func @transform_9(%arg0: i32) -> (i32, i32) {
    %c0_i32 = arith.constant 0 : i32
    %c0_i32_0 = arith.constant 0 : i32
    %c0_i32_1 = arith.constant 0 : i32
    return %c0_i32, %c0_i32_0 : i32, i32
  }
  func.func @transform_10(%arg0: i32) -> (i32, i32) {
    %c0_i32 = arith.constant 0 : i32
    %c0_i32_0 = arith.constant 0 : i32
    %c0_i32_1 = arith.constant 0 : i32
    return %c0_i32, %c0_i32_0 : i32, i32
  }
  func.func @transform_11(%arg0: i32) -> (i32, i32) {
    %c0_i32 = arith.constant 0 : i32
    %c0_i32_0 = arith.constant 0 : i32
    %c0_i32_1 = arith.constant 0 : i32
    return %c0_i32, %c0_i32_0 : i32, i32
  }
  func.func @transform_12(%arg0: i32) -> (i32, i32, i32) {
    %c0_i32 = arith.constant 0 : i32
    %c0_i32_0 = arith.constant 0 : i32
    %c0_i32_1 = arith.constant 0 : i32
    %c0_i32_2 = arith.constant 0 : i32
    return %c0_i32, %c0_i32_0, %c0_i32_1 : i32, i32, i32
  }
  func.func @transform_13(%arg0: i32) -> (i32, i32) {
    %c0_i32 = arith.constant 0 : i32
    %c0_i32_0 = arith.constant 0 : i32
    %c0_i32_1 = arith.constant 0 : i32
    return %c0_i32, %c0_i32_0 : i32, i32
  }
  func.func @transform_14(%arg0: i32) -> (i32, i32, i32) {
    %c0_i32 = arith.constant 0 : i32
    %c0_i32_0 = arith.constant 0 : i32
    %c0_i32_1 = arith.constant 0 : i32
    return %arg0, %c0_i32, %c0_i32_0 : i32, i32, i32
  }
}

</mosaic_0001>

<bundles_post_ra>
// kernel: block_forward.1
= control target key start
LH: loop header
LB: loop body
LE: loop exit
PB: predicated region body
PF: predicated region fallthrough
CT: control target
= control target key end

     0   :  { %s20200_s0 = inlined_call_operand.vmem [shape: f32[8,32,32], index: 0, kind: input, shape index: {}]   ;;  %s20201_s1 = inlined_call_operand.vmem [shape: f32[32,96], index: 1, kind: input, shape index: {}]   ;;  %s20202_s2 = inlined_call_operand.vmem [shape: f32[8,32,32], index: 2, kind: input, shape index: {}]   ;;  %s20203_s3 = inlined_call_operand.vmem [shape: f32[1,32], index: 3, kind: input, shape index: {}]   ;;  %s20204_s4 = inlined_call_operand.vmem [shape: f32[1,32], index: 4, kind: input, shape index: {}]   ;;  %s20205_s5 = inlined_call_operand.vmem [shape: f32[1,32], index: 5, kind: input, shape index: {}]   ;;  %s20206_s6 = inlined_call_operand.vmem [shape: f32[1,32], index: 6, kind: input, shape index: {}]   ;;  %s20207_s7 = inlined_call_operand.vmem [shape: f32[1,32], index: 7, kind: input, shape index: {}]   ;;  %s20208_s8 = inlined_call_operand.vmem [shape: f32[32,128], index: 8, kind: input, shape index: {}]   ;;  %s20209_s9 = inlined_call_operand.vmem [shape: f32[1,128], index: 9, kind: input, shape index: {}]   ;;  %s20210_s10 = inlined_call_operand.vmem [shape: f32[128,32], index: 10, kind: input, shape index: {}]   ;;  %s20211_s11 = inlined_call_operand.vmem [shape: f32[1,32], index: 11, kind: input, shape index: {}]   ;;  %s20212_s12 = inlined_call_operand.vmem [shape: f32[8,1,32], index: 12, kind: input, shape index: {}]   ;;  %s20213_s13 = inlined_call_operand.vmem [shape: f32[32,32], index: 13, kind: input, shape index: {}]   ;;  %s20214_s14 = inlined_call_operand.hbm [shape: f32[8,32,32], index: 14, kind: output, shape index: {}]  }
   0x1   :  { %20343 = sst [smem:[#allocation129_spill]] %s20200_s0 }
   0x2   :  { %19 = vsyncpa [#allocation3], 0 }
   0x3   :  { %21 = vsyncpa [#allocation3 + $0x1], 0  ;;  %s15985_s29 = smov 0   ;;  %s15987_s30 = smov 0  }
   0x4   :  { %s15989_s15 = smov 0   ;;  %s15991_s16 = smov 0  }
   0x5 LB: > { %20344 = sst [smem:[#allocation5_spill]] %s15898_s15  ;;  %s16006_s17 = sadd.s32 4294967295, %s15902_s16   ;;  %s15902_s16 = sphi %s15991_s16, %s20777_s16   ;;  %s15898_s15 = sphi %s15989_s15, %s20774_s15   ;;  %s15894_s30 = sphi %s15987_s30, %s20776_s30   ;;  %s15890_s29 = sphi %s15985_s29, %s20775_s29  }
   0x6   : > { %s11381_s18 = sadd.s32 4294967294, %s15902_s16   ;;  %s16010_s19 = sadd.s32 1, %s15902_s16  }
   0x7   : > { %s333_s20 = sadd.s32 1, %s15898_s15  ;;  %s330_s21 = ssub.s32 %s15902_s16, %s16010_s19 }
   0x8   : > { %p343_p0 = scmp.ne.s32.totalorder %s15898_s15, %s15894_s30  ;;  %p331_p1 = scmp.eq.s32.totalorder %s330_s21, 0 }
   0x9   : > { %p344_p2 = scmp.eq.s32.totalorder %s16006_s17, 1  ;;  %p349_p3 = scmp.ne.s32.totalorder %s15894_s30, %s15890_s29 }
   0xa   : > { %p350_p4 = scmp.eq.s32.totalorder %s11381_s18, 1  ;;  %p11384_p7 = scmp.ge.s32.totalorder %s15902_s16, 1 }
   0xb   : > { %s16021_s22 = scalar_select %p331_p1, %s15898_s15, %s333_s20  }
   0xc   : > { %p16023_p5 = por %p344_p2, %p343_p0  ;;  %p16027_p6 = por %p350_p4, %p349_p3 }
   0xd   : > { %20345 = sst [smem:[#allocation6_spill]] %s16021_s22  ;;  %p417_p8 = scmp.lt.s32.totalorder %s15902_s16, 3 }
   0xf   : > { %p418_p9 = pnand %p11384_p7, %p417_p8 }
  0x11   : > { %421 = sbr.rel (%p418_p9) target bundleno = 3802 (0xeda), region = 76 }
  0x18   : > { %s11386_s25 = sshll.u32 %s16006_s17, 2  ;;  %vm490_vm0 = vcmask 261120   ;;  %s20348_s0 = sld [smem:[#allocation129_spill]] }
  0x19   : > { %p465_p10 = scmp.lt.s32.totalorder %s11386_s25, 7  ;;  %s15904_s15 = smov 32   ;;  %vm16443_vm1 = vmpackc.low %vm490_vm0, %vm490_vm0 }
  0x1a   : > { %s15905_s20 = smov 96   ;;  %s11991_s27 = sshll.u32 %s16006_s17, 11 }
  0x1b   : > { %s20779_s25 = smov (!%p465_p10, %s11386_s25), 7 }
  0x1c   : > { %s11989_s26 = sshll.u32 %s20779_s25, 5 }
  0x1e   : > { %s16037_s18 = scalar_lea.vmem %s20348_s0, %s11989_s26  ;;  %s461_s0 = sand.u32 1, %s15894_s30  }
  0x1f   : > { %v472_v0 = vld [vmem:[%s16037_s18] sm:$0xff]  ;;  %v474_v1 = vld [vmem:[%s16037_s18 + $0x10] sm:$0xff]  ;;  %v473_v2 = vld [vmem:[%s16037_s18 + $0x8] sm:$0xff]  ;;  %s20148_s26 = scalar_lea.hbm %s20214_s14, %s11991_s27  ;;  %s20159_s17 = scalar_lea.sflag [#allocation3], %s461_s0 }
  0x20   : > { %v491_v3 = vsel %vm490_vm0, %v472_v0, 0.0  ;;  %v497_v4 = vsel %vm490_vm0, %v474_v1, 0.0  ;;  %v475_v5 = vld [vmem:[%s16037_s18 + $0x18] sm:$0xff]  ;;  %v494_v6 = vsel %vm490_vm0, %v473_v2, 0.0  ;;  %v476_v8 = vld [vmem:[%s16037_s18 + $0x20] sm:$0xff]  ;;  %v477_v9 = vld [vmem:[%s16037_s18 + $0x28] sm:$0xff] }
  0x21   : > { %492 = vadd.xlane.f32.xlu0 %v491_v3  ;;  %498 = vadd.xlane.f32.xlu1 %v497_v4  ;;  %v500_v7 = vsel %vm490_vm0, %v475_v5, 0.0  ;;  %v503_v10 = vsel %vm490_vm0, %v476_v8, 0.0  ;;  %v506_v11 = vsel %vm490_vm0, %v477_v9, 0.0  ;;  %v16052_v12 = vld [vmem:[%s16037_s18 + $0x30] sm:$0xff]  ;;  %v16055_v13 = vld [vmem:[%s16037_s18 + $0x38] sm:$0xff]  ;;  %v16062_v16 = vld [vmem:[%s16037_s18 + $0x40] sm:$0xff] }
  0x22   : > { %v509_v14 = vsel %vm490_vm0, %v16052_v12, 0.0  ;;  %v512_v15 = vsel %vm490_vm0, %v16055_v13, 0.0  ;;  %v16065_v17 = vld [vmem:[%s16037_s18 + $0x48] sm:$0xff]  ;;  %v515_v18 = vsel %vm490_vm0, %v16062_v16, 0.0  ;;  %v16072_v20 = vld [vmem:[%s16037_s18 + $0x50] sm:$0xff]  ;;  %v16075_v21 = vld [vmem:[%s16037_s18 + $0x58] sm:$0xff] }
  0x23   : > { %v518_v19 = vsel %vm490_vm0, %v16065_v17, 0.0  ;;  %v521_v22 = vsel %vm490_vm0, %v16072_v20, 0.0  ;;  %v524_v23 = vsel %vm490_vm0, %v16075_v21, 0.0  ;;  %v16082_v24 = vld [vmem:[%s16037_s18 + $0x60] sm:$0xff]  ;;  %v16085_v25 = vld [vmem:[%s16037_s18 + $0x68] sm:$0xff]  ;;  %v16092_v28 = vld [vmem:[%s16037_s18 + $0x70] sm:$0xff] }
  0x24   : > { %v527_v26 = vsel %vm490_vm0, %v16082_v24, 0.0  ;;  %v530_v27 = vsel %vm490_vm0, %v16085_v25, 0.0  ;;  %v16095_v29 = vld [vmem:[%s16037_s18 + $0x78] sm:$0xff]  ;;  %v533_v30 = vsel %vm490_vm0, %v16092_v28, 0.0 }
  0x25   : > { %495 = vadd.xlane.f32.xlu0 %v494_v6  ;;  %501 = vadd.xlane.f32.xlu1 %v500_v7  ;;  %v536_v31 = vsel %vm490_vm0, %v16095_v29, 0.0 }
  0x29   : > { %504 = vadd.xlane.f32.xlu0 %v503_v10  ;;  %507 = vadd.xlane.f32.xlu1 %v506_v11 }
  0x2d   : > { %510 = vadd.xlane.f32.xlu0 %v509_v14  ;;  %513 = vadd.xlane.f32.xlu1 %v512_v15 }
  0x31   : > { %516 = vadd.xlane.f32.xlu0 %v515_v18  ;;  %519 = vadd.xlane.f32.xlu1 %v518_v19 }
  0x35   : > { %522 = vadd.xlane.f32.xlu0 %v521_v22  ;;  %525 = vadd.xlane.f32.xlu1 %v524_v23 }
  0x39   : > { %528 = vadd.xlane.f32.xlu0 %v527_v26  ;;  %531 = vadd.xlane.f32.xlu1 %v530_v27 }
  0x3d   : > { %534 = vadd.xlane.f32.xlu0 %v533_v30  ;;  %537 = vadd.xlane.f32.xlu1 %v536_v31 }
  0xae   : > { %v493_v32 = vpop.xlane.xlu0 %492  ;;  %v499_v33 = vpop.xlane.xlu1 %498 }
  0xaf   : > { %v540_v34 = vmul.f32 0.03125, %v493_v32  ;;  %v542_v35 = vmul.f32 0.03125, %v499_v33 }
  0xb1   : > { %v16101_v36 = vsub.f32 %v472_v0, %v540_v34  ;;  %v16103_v37 = vsub.f32 %v474_v1, %v542_v35 }
  0xb2   : > { %v496_v38 = vpop.xlane.xlu0 %495  ;;  %v502_v39 = vpop.xlane.xlu1 %501 }
  0xb3   : > { %v541_v40 = vmul.f32 0.03125, %v496_v38  ;;  %v543_v41 = vmul.f32 0.03125, %v502_v39  ;;  %v572_v42 = vmul.f32 %v16101_v36, %v16101_v36  ;;  %v574_v43 = vmul.f32 %v16103_v37, %v16103_v37 }
  0xb5   : > { %v16109_v44 = vsub.f32 %v473_v2, %v541_v40  ;;  %v16111_v45 = vsub.f32 %v475_v5, %v543_v41  ;;  %v588_v46 = vsel %vm490_vm0, %v572_v42, 0.0  ;;  %v594_v49 = vsel %vm490_vm0, %v574_v43, 0.0 }
  0xb6   : > { %589 = vadd.xlane.f32.xlu0 %v588_v46  ;;  %v505_v47 = vpop.xlane.xlu0 %504  ;;  %v508_v48 = vpop.xlane.xlu1 %507 }
  0xb7   : > { %v544_v50 = vmul.f32 0.03125, %v505_v47  ;;  %v545_v51 = vmul.f32 0.03125, %v508_v48  ;;  %v573_v52 = vmul.f32 %v16109_v44, %v16109_v44  ;;  %v575_v53 = vmul.f32 %v16111_v45, %v16111_v45 }
  0xb9   : > { %v16119_v54 = vsub.f32 %v476_v8, %v544_v50  ;;  %v16121_v55 = vsub.f32 %v477_v9, %v545_v51  ;;  %v591_v56 = vsel %vm490_vm0, %v573_v52, 0.0  ;;  %v597_v59 = vsel %vm490_vm0, %v575_v53, 0.0  ;;  %v745_v53 = vld [vmem:[%s20201_s1 + $0x8] sm:$0xff] }
  0xba   : > { %595 = vadd.xlane.f32.xlu0 %v594_v49  ;;  %592 = vadd.xlane.f32.xlu1 %v591_v56  ;;  %v511_v57 = vpop.xlane.xlu0 %510  ;;  %v514_v58 = vpop.xlane.xlu1 %513 }
  0xbb   : > { %v546_v60 = vmul.f32 0.03125, %v511_v57  ;;  %v547_v61 = vmul.f32 0.03125, %v514_v58  ;;  %v576_v62 = vmul.f32 %v16119_v54, %v16119_v54  ;;  %v577_v63 = vmul.f32 %v16121_v55, %v16121_v55  ;;  %v746_v57 = vld [vmem:[%s20201_s1 + $0x10] sm:$0xff]  ;;  %v747_v58 = vld [vmem:[%s20201_s1 + $0x18] sm:$0xff] }
  0xbd   : > { %v16130_v0 = vsub.f32 %v16052_v12, %v546_v60  ;;  %v16133_v1 = vsub.f32 %v16055_v13, %v547_v61  ;;  %v600_v2 = vsel %vm490_vm0, %v576_v62, 0.0  ;;  %v603_v5 = vsel %vm490_vm0, %v577_v63, 0.0  ;;  %v11441_v60 = vld [vmem:[%s20212_s12 + $0x1] ss:$0 sm:$0xff]  ;;  %v11407_v61 = vld [vmem:[%s20212_s12] ss:$0 sm:$0xff] }
  0xbe   : > { %598 = vadd.xlane.f32.xlu1 %v597_v59  ;;  %601 = vadd.xlane.f32.xlu0 %v600_v2  ;;  %v517_v3 = vpop.xlane.xlu0 %516  ;;  %v520_v4 = vpop.xlane.xlu1 %519  ;;  %v14012_v59 = vpack.c.bf16 %v747_v58, %v746_v57 }
  0xbf   : > { %v548_v6 = vmul.f32 0.03125, %v517_v3  ;;  %v549_v7 = vmul.f32 0.03125, %v520_v4  ;;  %v578_v8 = vmul.f32 %v16130_v0, %v16130_v0  ;;  %v579_v9 = vmul.f32 %v16133_v1, %v16133_v1 }
  0xc1   : > { %v16142_v10 = vsub.f32 %v16062_v16, %v548_v6  ;;  %v16145_v11 = vsub.f32 %v16065_v17, %v549_v7  ;;  %v606_v12 = vsel %vm490_vm0, %v578_v8, 0.0  ;;  %v609_v15 = vsel %vm490_vm0, %v579_v9, 0.0 }
  0xc2   : > { %604 = vadd.xlane.f32.xlu1 %v603_v5  ;;  %607 = vadd.xlane.f32.xlu0 %v606_v12  ;;  %v523_v13 = vpop.xlane.xlu0 %522  ;;  %v526_v14 = vpop.xlane.xlu1 %525 }
  0xc3   : > { %v550_v18 = vmul.f32 0.03125, %v523_v13  ;;  %v551_v19 = vmul.f32 0.03125, %v526_v14  ;;  %v580_v22 = vmul.f32 %v16142_v10, %v16142_v10  ;;  %v581_v16 = vmul.f32 %v16145_v11, %v16145_v11 }
  0xc5   : > { %v16154_v23 = vsub.f32 %v16072_v20, %v550_v18  ;;  %v16157_v17 = vsub.f32 %v16075_v21, %v551_v19  ;;  %v612_v26 = vsel %vm490_vm0, %v580_v22, 0.0  ;;  %v615_v31 = vsel %vm490_vm0, %v581_v16, 0.0 }
  0xc6   : > { %610 = vadd.xlane.f32.xlu1 %v609_v15  ;;  %613 = vadd.xlane.f32.xlu0 %v612_v26  ;;  %v529_v27 = vpop.xlane.xlu0 %528  ;;  %v532_v30 = vpop.xlane.xlu1 %531 }
  0xc7   : > { %v552_v32 = vmul.f32 0.03125, %v529_v27  ;;  %v553_v33 = vmul.f32 0.03125, %v532_v30  ;;  %v582_v34 = vmul.f32 %v16154_v23, %v16154_v23  ;;  %v583_v20 = vmul.f32 %v16157_v17, %v16157_v17 }
  0xc9   : > { %v16166_v35 = vsub.f32 %v16082_v24, %v552_v32  ;;  %v16169_v21 = vsub.f32 %v16085_v25, %v553_v33  ;;  %v618_v38 = vsel %vm490_vm0, %v582_v34, 0.0  ;;  %v621_v41 = vsel %vm490_vm0, %v583_v20, 0.0  ;;  %v16214_v32 = vld [vmem:[%s20204_s4] ss:$0 sm:$0xff] }
  0xca   : > { %616 = vadd.xlane.f32.xlu1 %v615_v31  ;;  %619 = vadd.xlane.f32.xlu0 %v618_v38  ;;  %v535_v39 = vpop.xlane.xlu0 %534  ;;  %v538_v40 = vpop.xlane.xlu1 %537 }
  0xcb   : > { %v554_v42 = vmul.f32 0.03125, %v535_v39  ;;  %v555_v43 = vmul.f32 0.03125, %v538_v40  ;;  %v584_v46 = vmul.f32 %v16166_v35, %v16166_v35  ;;  %v585_v24 = vmul.f32 %v16169_v21, %v16169_v21  ;;  %v16220_v40 = vld [vmem:[%s20205_s5] ss:$0 sm:$0xff] }
  0xcd   : > { %v16178_v47 = vsub.f32 %v16092_v28, %v554_v42  ;;  %v16181_v25 = vsub.f32 %v16095_v29, %v555_v43  ;;  %v624_v48 = vsel %vm490_vm0, %v584_v46, 0.0  ;;  %v627_v49 = vsel %vm490_vm0, %v585_v24, 0.0  ;;  %v744_v29 = vld [vmem:[%s20201_s1] sm:$0xff] }
  0xce   : > { %622 = vadd.xlane.f32.xlu1 %v621_v41  ;;  %625 = vadd.xlane.f32.xlu0 %v624_v48  ;;  %v14008_v56 = vpack.c.bf16 %v745_v53, %v744_v29 }
  0xcf   : > { %v586_v50 = vmul.f32 %v16178_v47, %v16178_v47  ;;  %v587_v51 = vmul.f32 %v16181_v25, %v16181_v25 }
  0xd0   : > { %14009 = vmatprep.subr.bf16.mxu1 %v14008_v56 }
  0xd1   : > { %v630_v52 = vsel %vm490_vm0, %v586_v50, 0.0  ;;  %v633_v28 = vsel %vm490_vm0, %v587_v51, 0.0  ;;  %14011 = vmatpush3.bf16.msra.mxu1 %v14008_v56 }
  0xd2   : > { %628 = vadd.xlane.f32.xlu1 %v627_v49  ;;  %631 = vadd.xlane.f32.xlu0 %v630_v52 }
  0xd3   : > { %14013 = vmatprep.subr.bf16.mxu1 %v14012_v59 }
  0xd5   : > { %14015 = vmatpush3.bf16.msra.mxu1 %v14012_v59 }
  0xd6   : > { %634 = vadd.xlane.f32.xlu1 %v633_v28 }
  0xe7   : > { %1457 = vrot.lane.b32.xlu1 %v11441_v60, %s15904_s15 }
  0xe8   : > { %963 = vrot.lane.b32.xlu0 %v11407_v61, %s15904_s15 }
 0x143   : > { %v590_v62 = vpop.xlane.xlu0 %589 }
 0x144   : > { %v636_v63 = vmul.f32 0.03125, %v590_v62 }
 0x146   : > { %v652_v2 = vadd.f32 1e-05, %v636_v63 }
 0x147   : > { %v593_v3 = vpop.xlane.xlu1 %592  ;;  %v596_v4 = vpop.xlane.xlu0 %595 }
 0x148   : > { %15236 = vrsqrt.f32 %v652_v2  ;;  %v637_v5 = vmul.f32 0.03125, %v593_v3  ;;  %v638_v6 = vmul.f32 0.03125, %v596_v4 }
 0x14a   : > { %v653_v7 = vadd.f32 1e-05, %v637_v5  ;;  %v654_v8 = vadd.f32 1e-05, %v638_v6 }
 0x14b   : > { %v599_v9 = vpop.xlane.xlu1 %598  ;;  %v602_v12 = vpop.xlane.xlu0 %601 }
 0x14c   : > { %15238 = vrsqrt.f32 %v653_v7  ;;  %v639_v13 = vmul.f32 0.03125, %v599_v9  ;;  %v640_v14 = vmul.f32 0.03125, %v602_v12 }
 0x14d   : > { %15240 = vrsqrt.f32 %v654_v8 }
 0x14e   : > { %v655_v15 = vadd.f32 1e-05, %v639_v13  ;;  %v656_v18 = vadd.f32 1e-05, %v640_v14 }
 0x14f   : > { %v605_v19 = vpop.xlane.xlu1 %604  ;;  %v608_v22 = vpop.xlane.xlu0 %607 }
 0x150   : > { %15242 = vrsqrt.f32 %v655_v15  ;;  %v641_v16 = vmul.f32 0.03125, %v605_v19  ;;  %v642_v26 = vmul.f32 0.03125, %v608_v22 }
 0x151   : > { %15244 = vrsqrt.f32 %v656_v18 }
 0x152   : > { %v15237_v27 = vpop.eup %15236  ;;  %v657_v30 = vadd.f32 1e-05, %v641_v16  ;;  %v658_v31 = vadd.f32 1e-05, %v642_v26 }
 0x153   : > { %v611_v33 = vpop.xlane.xlu1 %610  ;;  %v614_v34 = vpop.xlane.xlu0 %613  ;;  %v684_v20 = vmul.f32 %v15237_v27, %v16101_v36 }
 0x154   : > { %15246 = vrsqrt.f32 %v657_v30  ;;  %v643_v38 = vmul.f32 0.03125, %v611_v33  ;;  %v644_v39 = vmul.f32 0.03125, %v614_v34 }
 0x155   : > { %15248 = vrsqrt.f32 %v658_v31  ;;  %v706_v41 = vmul.f32 %v16214_v32, %v684_v20 }
 0x156   : > { %v15239_v42 = vpop.eup %15238  ;;  %v659_v43 = vadd.f32 1e-05, %v643_v38  ;;  %v660_v46 = vadd.f32 1e-05, %v644_v39 }
 0x157   : > { %v15241_v24 = vpop.eup %15240  ;;  %v617_v48 = vpop.xlane.xlu1 %616  ;;  %v728_v50 = vadd.f32 %v16220_v40, %v706_v41  ;;  %v685_v36 = vmul.f32 %v15239_v42, %v16109_v44 }
 0x158   : > { %v620_v49 = vpop.xlane.xlu0 %619  ;;  %15250 = vrsqrt.f32 %v659_v43  ;;  %v645_v51 = vmul.f32 0.03125, %v617_v48  ;;  %v686_v28 = vmul.f32 %v15241_v24, %v16103_v37 }
 0x159   : > { %v646_v52 = vmul.f32 0.03125, %v620_v49  ;;  %15252 = vrsqrt.f32 %v660_v46  ;;  %12744 = vmatprep.mubr.msk.f32.mxu1 %vm490_vm0, %v728_v50  ;;  %v707_v29 = vmul.f32 %v16214_v32, %v685_v36 }
 0x15a   : > { %v15243_v53 = vpop.eup %15242  ;;  %v661_v56 = vadd.f32 1e-05, %v645_v51  ;;  %v708_v58 = vmul.f32 %v16214_v32, %v686_v28 }
 0x15b   : > { %v662_v57 = vadd.f32 1e-05, %v646_v52  ;;  %v15245_v59 = vpop.eup %15244  ;;  %v623_v60 = vpop.xlane.xlu1 %622  ;;  %v729_v44 = vadd.f32 %v16220_v40, %v707_v29  ;;  %v687_v62 = vmul.f32 %v15243_v53, %v16111_v45 }
 0x15c   : > { %v626_v61 = vpop.xlane.xlu0 %625  ;;  %15254 = vrsqrt.f32 %v661_v56  ;;  %v647_v63 = vmul.f32 0.03125, %v623_v60  ;;  %v730_v2 = vadd.f32 %v16220_v40, %v708_v58  ;;  %v688_v4 = vmul.f32 %v15245_v59, %v16119_v54 }
 0x15d   : > { %v648_v37 = vmul.f32 0.03125, %v626_v61  ;;  %15256 = vrsqrt.f32 %v662_v57  ;;  %12745 = vmatmul.mubr.msk.f32.vlgmr.msra.gmra.mrb[0].mxu1 %vm490_vm0, %v729_v44  ;;  %v709_v3 = vmul.f32 %v16214_v32, %v687_v62 }
 0x15e   : > { %v15247_v5 = vpop.eup %15246  ;;  %v663_v6 = vadd.f32 1e-05, %v647_v63  ;;  %12747 = vmatprep.mubr.msk.f32.mxu1 %vm490_vm0, %v730_v2  ;;  %v710_v13 = vmul.f32 %v16214_v32, %v688_v4 }
 0x15f   : > { %v664_v7 = vadd.f32 1e-05, %v648_v37  ;;  %v15249_v8 = vpop.eup %15248  ;;  %v629_v9 = vpop.xlane.xlu1 %628  ;;  %v731_v12 = vadd.f32 %v16220_v40, %v709_v3  ;;  %v689_v14 = vmul.f32 %v15247_v5, %v16121_v55 }
 0x160   : > { %v632_v45 = vpop.xlane.xlu0 %631  ;;  %15258 = vrsqrt.f32 %v663_v6  ;;  %v649_v15 = vmul.f32 0.03125, %v629_v9  ;;  %v690_v19 = vmul.f32 %v15249_v8, %v16130_v0  ;;  %v732_v54 = vadd.f32 %v16220_v40, %v710_v13 }
 0x161   : > { %v650_v18 = vmul.f32 0.03125, %v632_v45  ;;  %15260 = vrsqrt.f32 %v664_v7  ;;  %12748 = vmatmul.mubr.msk.f32.gmra.mrb[2].mxu1 %vm490_vm0, %v731_v12  ;;  %v711_v22 = vmul.f32 %v16214_v32, %v689_v14 }
 0x162   : > { %v15251_v16 = vpop.eup %15250  ;;  %v665_v26 = vadd.f32 1e-05, %v649_v15  ;;  %v712_v30 = vmul.f32 %v16214_v32, %v690_v19  ;;  %12750 = vmatprep.mubr.msk.f32.mxu1 %vm490_vm0, %v732_v54 }
 0x163   : > { %v666_v27 = vadd.f32 1e-05, %v650_v18  ;;  %v15253_v31 = vpop.eup %15252  ;;  %v635_v55 = vpop.xlane.xlu1 %634  ;;  %v733_v33 = vadd.f32 %v16220_v40, %v711_v22  ;;  %v691_v0 = vmul.f32 %v15251_v16, %v16133_v1 }
 0x164   : > { %15262 = vrsqrt.f32 %v665_v26  ;;  %v651_v34 = vmul.f32 0.03125, %v635_v55  ;;  %v734_v20 = vadd.f32 %v16220_v40, %v712_v30  ;;  %v692_v38 = vmul.f32 %v15253_v31, %v16142_v10  ;;  %v16287_v3 = vpop.permute.xlu0 %963  ;;  %v11475_v55 = vld [vmem:[%s20212_s12 + $0x2] ss:$0 sm:$0xff] }
 0x165   : > { %15264 = vrsqrt.f32 %v666_v27  ;;  %12751 = vmatmul.mubr.msk.f32.gmra.mrb[4].mxu1 %vm490_vm0, %v733_v33  ;;  %v713_v39 = vmul.f32 %v16214_v32, %v691_v0 }
 0x166   : > { %v15255_v41 = vpop.eup %15254  ;;  %v667_v42 = vadd.f32 1e-05, %v651_v34  ;;  %12753 = vmatprep.mubr.msk.f32.mxu1 %vm490_vm0, %v734_v20  ;;  %v714_v43 = vmul.f32 %v16214_v32, %v692_v38 }
 0x167   : > { %v15257_v46 = vpop.eup %15256  ;;  %v735_v1 = vadd.f32 %v16220_v40, %v713_v39  ;;  %v693_v24 = vmul.f32 %v15255_v41, %v16145_v11  ;;  %v16285_v2 = vpop.permute.xlu1 %1457 }
 0x168   : > { %15266 = vrsqrt.f32 %v667_v42  ;;  %v736_v48 = vadd.f32 %v16220_v40, %v714_v43  ;;  %v694_v10 = vmul.f32 %v15257_v46, %v16154_v23 }
 0x169   : > { %12754 = vmatmul.mubr.msk.f32.gmra.mrb[6].mxu1 %vm490_vm0, %v735_v1  ;;  %v715_v49 = vmul.f32 %v16214_v32, %v693_v24 }
 0x16a   : > { %v15259_v50 = vpop.eup %15258  ;;  %12756 = vmatprep.mubr.msk.f32.mxu1 %vm490_vm0, %v736_v48  ;;  %v716_v36 = vmul.f32 %v16214_v32, %v694_v10 }
 0x16b   : > { %v15261_v51 = vpop.eup %15260  ;;  %v737_v52 = vadd.f32 %v16220_v40, %v715_v49  ;;  %v695_v28 = vmul.f32 %v15259_v50, %v16157_v17 }
 0x16c   : > { %v738_v11 = vadd.f32 %v16220_v40, %v716_v36  ;;  %v696_v29 = vmul.f32 %v15261_v51, %v16166_v35 }
 0x16d   : > { %12757 = vmatmul.mubr.msk.f32.gmra.mrb[8].mxu1 %vm490_vm0, %v737_v52  ;;  %v717_v23 = vmul.f32 %v16214_v32, %v695_v28 }
 0x16e   : > { %v15263_v53 = vpop.eup %15262  ;;  %12759 = vmatprep.mubr.msk.f32.mxu1 %vm490_vm0, %v738_v11  ;;  %v718_v56 = vmul.f32 %v16214_v32, %v696_v29 }
 0x16f   : > { %v15265_v57 = vpop.eup %15264  ;;  %v739_v58 = vadd.f32 %v16220_v40, %v717_v23  ;;  %v697_v59 = vmul.f32 %v15263_v53, %v16169_v21 }
 0x170   : > { %v740_v17 = vadd.f32 %v16220_v40, %v718_v56  ;;  %v698_v60 = vmul.f32 %v15265_v57, %v16178_v47 }
 0x171   : > { %12760 = vmatmul.mubr.msk.f32.gmra.mrb[10].mxu1 %vm490_vm0, %v739_v58  ;;  %v719_v35 = vmul.f32 %v16214_v32, %v697_v59 }
 0x172   : > { %v15267_v61 = vpop.eup %15266  ;;  %12762 = vmatprep.mubr.msk.f32.mxu1 %vm490_vm0, %v740_v17  ;;  %v720_v44 = vmul.f32 %v16214_v32, %v698_v60 }
 0x173   : > { %v741_v62 = vadd.f32 %v16220_v40, %v719_v35  ;;  %v699_v63 = vmul.f32 %v15267_v61, %v16181_v25 }
 0x174   : > { %v742_v37 = vadd.f32 %v16220_v40, %v720_v44 }
 0x175   : > { %12763 = vmatmul.mubr.msk.f32.gmra.mrb[12].mxu1 %vm490_vm0, %v741_v62  ;;  %v721_v21 = vmul.f32 %v16214_v32, %v699_v63  ;;  %v11509_v62 = vld [vmem:[%s20212_s12 + $0x3] ss:$0 sm:$0xff] }
 0x176   : > { %12765 = vmatprep.mubr.msk.f32.mxu1 %vm490_vm0, %v742_v37 }
 0x177   : > { %v743_v47 = vadd.f32 %v16220_v40, %v721_v21 }
 0x179   : > { %12766 = vmatmul.mubr.msk.f32.gmra.mrb[14].mxu1 %vm490_vm0, %v743_v47 }
 0x230   : > { %v16289_v4 = vpop.f32.mrb[0].mxu1 }
 0x231   : > { %v16291_v5 = vpop.f32.mrb[1].mxu1  ;;  %v967_v25 = vmul.f32 %v16289_v4, %v16287_v3  ;;  %v16297_v32 = vmul.f32 %v16289_v4, %v16285_v2 }
 0x232   : > { %v16300_v6 = vmul.f32 0.5, %v16291_v5  ;;  %v966_v40 = vmul.f32 %v16287_v3, %v16291_v5  ;;  %v16306_v7 = vmul.f32 %v16285_v2, %v16291_v5 }
 0x234   : > { %v16308_v8 = vpop.f32.mrb[2].mxu1  ;;  %12776 = vmatprep.mubr.msk.f32.mxu1 %vm490_vm0, %v16300_v6  ;;  %v14916_v9 = vpack.i.bf16 %v967_v25, %v966_v40  ;;  %v14961_v45 = vpack.i.bf16 %v16297_v32, %v16306_v7 }
 0x235   : > { %v16314_v12 = vpop.f32.mrb[3].mxu1  ;;  %v969_v13 = vmul.f32 %v16308_v8, %v16287_v3  ;;  %v16320_v14 = vmul.f32 %v16308_v8, %v16285_v2 }
 0x236   : > { %14917 = vrot.lane.b32.xlu1 %v14916_v9, %s15905_s20  ;;  %v968_v15 = vmul.f32 %v16287_v3, %v16314_v12  ;;  %v16327_v18 = vmul.f32 %v16285_v2, %v16314_v12 }
 0x238   : > { %v16329_v19 = vpop.f32.mrb[4].mxu1  ;;  %v14921_v54 = vpack.i.bf16 %v969_v13, %v968_v15  ;;  %v14971_v22 = vpack.i.bf16 %v16320_v14, %v16327_v18 }
 0x239   : > { %v16333_v16 = vpop.f32.mrb[5].mxu1  ;;  %v971_v26 = vmul.f32 %v16329_v19, %v16287_v3  ;;  %v1465_v27 = vmul.f32 %v16329_v19, %v16285_v2 }
 0x23a   : > { %14922 = vrot.lane.b32.xlu1 %v14921_v54, %s15905_s20  ;;  %v970_v30 = vmul.f32 %v16287_v3, %v16333_v16  ;;  %v1464_v31 = vmul.f32 %v16285_v2, %v16333_v16 }
 0x23c   : > { %v16347_v33 = vpop.f32.mrb[6].mxu1  ;;  %v14926_v0 = vpack.i.bf16 %v971_v26, %v970_v30  ;;  %v14956_v34 = vpack.i.bf16 %v1465_v27, %v1464_v31 }
 0x23d   : > { %v16349_v20 = vpop.f32.mrb[7].mxu1  ;;  %v973_v38 = vmul.f32 %v16347_v33, %v16287_v3  ;;  %v1467_v39 = vmul.f32 %v16347_v33, %v16285_v2 }
 0x23e   : > { %14927 = vrot.lane.b32.xlu0 %v14926_v0, %s15905_s20  ;;  %1903 = vrot.lane.b32.xlu1 %v11475_v55, %s15904_s15  ;;  %v972_v41 = vmul.f32 %v16287_v3, %v16349_v20  ;;  %v1466_v42 = vmul.f32 %v16285_v2, %v16349_v20 }
 0x240   : > { %v16361_v43 = vpop.f32.mrb[8].mxu1  ;;  %v14931_v46 = vpack.i.bf16 %v973_v38, %v972_v41  ;;  %v14966_v1 = vpack.i.bf16 %v1467_v39, %v1466_v42 }
 0x241   : > { %v16363_v24 = vpop.f32.mrb[9].mxu1  ;;  %v975_v48 = vmul.f32 %v16361_v43, %v16287_v3  ;;  %v1469_v10 = vmul.f32 %v16361_v43, %v16285_v2 }
 0x242   : > { %v16370_v49 = vmul.f32 0.5, %v16363_v24  ;;  %14932 = vrot.lane.b32.xlu0 %v14931_v46, %s15905_s20  ;;  %v974_v50 = vmul.f32 %v16287_v3, %v16363_v24  ;;  %v1468_v36 = vmul.f32 %v16285_v2, %v16363_v24 }
 0x244   : > { %v16377_v51 = vpop.f32.mrb[10].mxu1  ;;  %12804 = vmatprep.mubr.msk.f32.mxu0 %vm490_vm0, %v16370_v49  ;;  %v14941_v52 = vpack.i.bf16 %v975_v48, %v974_v50  ;;  %v14981_v28 = vpack.i.bf16 %v1469_v10, %v1468_v36 }
 0x245   : > { %v16381_v11 = vpop.f32.mrb[11].mxu1  ;;  %v977_v29 = vmul.f32 %v16377_v51, %v16287_v3  ;;  %v1471_v23 = vmul.f32 %v16377_v51, %v16285_v2 }
 0x246   : > { %14942 = vrot.lane.b32.xlu0 %v14941_v52, %s15905_s20  ;;  %v976_v53 = vmul.f32 %v16287_v3, %v16381_v11  ;;  %v1470_v56 = vmul.f32 %v16285_v2, %v16381_v11 }
 0x248   : > { %v16392_v57 = vpop.f32.mrb[12].mxu1  ;;  %v14951_v58 = vpack.i.bf16 %v977_v29, %v976_v53  ;;  %v14991_v59 = vpack.i.bf16 %v1471_v23, %v1470_v56 }
 0x249   : > { %v16394_v17 = vpop.f32.mrb[13].mxu1  ;;  %v979_v60 = vmul.f32 %v16392_v57, %v16287_v3  ;;  %v1473_v35 = vmul.f32 %v16392_v57, %v16285_v2 }
 0x24a   : > { %14952 = vrot.lane.b32.xlu0 %v14951_v58, %s15905_s20  ;;  %v978_v61 = vmul.f32 %v16287_v3, %v16394_v17  ;;  %v1472_v44 = vmul.f32 %v16285_v2, %v16394_v17 }
 0x24c   : > { %v16408_v63 = vpop.f32.mrb[14].mxu1  ;;  %v14936_v37 = vpack.i.bf16 %v979_v60, %v978_v61  ;;  %v14976_v21 = vpack.i.bf16 %v1473_v35, %v1472_v44 }
 0x24d   : > { %v16410_v47 = vpop.f32.mrb[15].mxu1  ;;  %v981_v25 = vmul.f32 %v16408_v63, %v16287_v3  ;;  %v1475_v40 = vmul.f32 %v16408_v63, %v16285_v2 }
 0x24e   : > { %2349 = vrot.lane.b32.xlu0 %v11509_v62, %s15904_s15  ;;  %14937 = vrot.lane.b32.xlu1 %v14936_v37, %s15905_s20  ;;  %v980_v9 = vmul.f32 %v16287_v3, %v16410_v47  ;;  %v1474_v13 = vmul.f32 %v16285_v2, %v16410_v47  ;;  %v11543_v2 = vld [vmem:[%s20212_s12 + $0x4] ss:$0 sm:$0xff] }
 0x250   : > { %v14946_v15 = vpack.i.bf16 %v981_v25, %v980_v9  ;;  %v14986_v54 = vpack.i.bf16 %v1475_v40, %v1474_v13 }
 0x252   : > { %14967 = vrot.lane.b32.xlu0 %v14966_v1, %s15905_s20  ;;  %14947 = vrot.lane.b32.xlu1 %v14946_v15, %s15905_s20 }
 0x256   : > { %14977 = vrot.lane.b32.xlu0 %v14976_v21, %s15905_s20  ;;  %14957 = vrot.lane.b32.xlu1 %v14956_v34, %s15905_s20 }
 0x25a   : > { %14987 = vrot.lane.b32.xlu0 %v14986_v54, %s15905_s20  ;;  %14962 = vrot.lane.b32.xlu1 %v14961_v45, %s15905_s20 }
 0x25e   : > { %14972 = vrot.lane.b32.xlu1 %v14971_v22, %s15905_s20 }
 0x262   : > { %14982 = vrot.lane.b32.xlu1 %v14981_v28, %s15905_s20 }
 0x266   : > { %14992 = vrot.lane.b32.xlu1 %v14991_v59, %s15905_s20 }
 0x26a   : > { %2795 = vrot.lane.b32.xlu1 %v11543_v2, %s15904_s15  ;;  %v16478_v2 = vmul.f32 0.5, %v16289_v4 }
 0x2a8   : > { %v14918_v3 = vpop.permute.xlu1 %14917 }
 0x2a9   : > { %v14920_v26 = vunpack.i.h.bf16 %v14918_v3  ;;  %v14919_v27 = vunpack.i.l.bf16 %v14918_v3 }
 0x2ab   : > { %v14016_v7 = vpack.c.bf16 %v14920_v26, %v14919_v27  ;;  %v16481_v26 = vmul.f32 0.5, %v16314_v12 }
 0x2ac   : > { %v14923_v45 = vpop.permute.xlu1 %14922 }
 0x2ad   : > { %v14925_v14 = vunpack.i.h.bf16 %v14923_v45  ;;  %v14924_v18 = vunpack.i.l.bf16 %v14923_v45  ;;  %14018 = vmatprep.subr.msk.bf16.mxu1 %vm16443_vm1, %v14016_v7 }
 0x2ae   : > { %14021 = vmatpush3.bf16.xpose.msk.msra.mxu1 %vm16443_vm1, %v14016_v7 }
 0x2af   : > { %v14022_v22 = vpack.c.bf16 %v14925_v14, %v14924_v18  ;;  %v16494_v18 = vmul.f32 0.5, %v16308_v8 }
 0x2b0   : > { %v14928_v30 = vpop.permute.xlu0 %14927  ;;  %v1904_v31 = vpop.permute.xlu1 %1903 }
 0x2b1   : > { %v14930_v55 = vunpack.i.h.bf16 %v14928_v30  ;;  %v14929_v0 = vunpack.i.l.bf16 %v14928_v30  ;;  %14024 = vmatprep.subr.msk.bf16.mxu1 %vm16443_vm1, %v14022_v22  ;;  %v1912_v34 = vmul.f32 %v1904_v31, %v16349_v20  ;;  %v1913_v38 = vmul.f32 %v16347_v33, %v1904_v31 }
 0x2b2   : > { %v1910_v39 = vmul.f32 %v1904_v31, %v16333_v16  ;;  %v1911_v41 = vmul.f32 %v16329_v19, %v1904_v31  ;;  %v1918_v42 = vmul.f32 %v1904_v31, %v16394_v17  ;;  %v1919_v46 = vmul.f32 %v16392_v57, %v1904_v31 }
 0x2b3   : > { %v15006_v1 = vpack.i.bf16 %v1913_v38, %v1912_v34  ;;  %v1906_v48 = vmul.f32 %v1904_v31, %v16291_v5  ;;  %v1907_v10 = vmul.f32 %v16289_v4, %v1904_v31  ;;  %v1920_v28 = vmul.f32 %v1904_v31, %v16410_v47 }
 0x2b4   : > { %v14933_v50 = vpop.permute.xlu0 %14932  ;;  %v14996_v36 = vpack.i.bf16 %v1911_v41, %v1910_v39  ;;  %v15016_v52 = vpack.i.bf16 %v1919_v46, %v1918_v42  ;;  %v1921_v29 = vmul.f32 %v16408_v63, %v1904_v31  ;;  %v14028_v23 = vpack.c.bf16 %v14930_v55, %v14929_v0 }
 0x2b5   : > { %15007 = vrot.lane.b32.xlu1 %v15006_v1, %s15905_s20  ;;  %v15001_v53 = vpack.i.bf16 %v1907_v10, %v1906_v48  ;;  %v1908_v56 = vmul.f32 %v1904_v31, %v16314_v12  ;;  %v1909_v59 = vmul.f32 %v16308_v8, %v1904_v31  ;;  %v1914_v60 = vmul.f32 %v1904_v31, %v16363_v24 }
 0x2b6   : > { %14997 = vrot.lane.b32.xlu0 %v14996_v36, %s15905_s20  ;;  %14027 = vmatpush3.bf16.xpose.msk.msra.mxu1 %vm16443_vm1, %v14022_v22  ;;  %v15026_v58 = vpack.i.bf16 %v1921_v29, %v1920_v28  ;;  %v1915_v35 = vmul.f32 %v16361_v43, %v1904_v31  ;;  %v1916_v61 = vmul.f32 %v1904_v31, %v16381_v11  ;;  %v14935_v13 = vunpack.i.h.bf16 %v14933_v50 }
 0x2b7   : > { %14030 = vmatprep.subr.msk.bf16.mxu1 %vm16443_vm1, %v14028_v23  ;;  %v1917_v44 = vmul.f32 %v16377_v51, %v1904_v31  ;;  %v15011_v37 = vpack.i.bf16 %v1909_v59, %v1908_v56  ;;  %v14934_v15 = vunpack.i.l.bf16 %v14933_v50  ;;  %v16497_v22 = vmul.f32 0.5, %v16333_v16  ;;  %v11577_v59 = vld [vmem:[%s20212_s12 + $0x5] ss:$0 sm:$0xff] }
 0x2b8   : > { %v14943_v62 = vpop.permute.xlu0 %14942  ;;  %v15021_v40 = vpack.i.bf16 %v1915_v35, %v1914_v60 }
 0x2b9   : > { %15017 = vrot.lane.b32.xlu1 %v15016_v52, %s15905_s20  ;;  %v14945_v21 = vunpack.i.h.bf16 %v14943_v62  ;;  %v14944_v25 = vunpack.i.l.bf16 %v14943_v62  ;;  %v15031_v9 = vpack.i.bf16 %v1917_v44, %v1916_v61  ;;  %v14034_v45 = vpack.c.bf16 %v14935_v13, %v14934_v15 }
 0x2ba   : > { %15002 = vrot.lane.b32.xlu0 %v15001_v53, %s15905_s20  ;;  %v16540_v15 = vmul.f32 0.5, %v16329_v19 }
 0x2bb   : > { %v14040_v54 = vpack.c.bf16 %v14945_v21, %v14944_v25 }
 0x2bc   : > { %v14953_v3 = vpop.permute.xlu0 %14952 }
 0x2bd   : > { %v14955_v27 = vunpack.i.h.bf16 %v14953_v3  ;;  %v14954_v7 = vunpack.i.l.bf16 %v14953_v3  ;;  %14042 = vmatprep.subr.msk.bf16.mxu0 %vm16443_vm1, %v14040_v54  ;;  %15027 = vrot.lane.b32.xlu1 %v15026_v58, %s15905_s20  ;;  %v16543_v3 = vmul.f32 0.5, %v16349_v20 }
 0x2be   : > { %15012 = vrot.lane.b32.xlu0 %v15011_v37, %s15905_s20  ;;  %12777 = vmatmul.mubr.msk.f32.vlgmr.msra.gmra.mrb[16].mxu1 %vm490_vm0, %v16478_v2 }
 0x2bf   : > { %v14046_v14 = vpack.c.bf16 %v14955_v27, %v14954_v7  ;;  %12779 = vmatprep.mubr.msk.f32.mxu1 %vm490_vm0, %v16481_v26  ;;  %14033 = vmatpush3.bf16.xpose.msk.msra.mxu1 %vm16443_vm1, %v14028_v23  ;;  %v16546_v27 = vmul.f32 0.5, %v16361_v43 }
 0x2c0   : > { %14045 = vmatpush3.bf16.xpose.msk.msra.mxu0 %vm16443_vm1, %v14040_v54  ;;  %14036 = vmatprep.subr.msk.bf16.mxu1 %vm16443_vm1, %v14034_v45  ;;  %v2350_v30 = vpop.permute.xlu0 %2349  ;;  %v14938_v31 = vpop.permute.xlu1 %14937 }
 0x2c1   : > { %v14940_v55 = vunpack.i.h.bf16 %v14938_v31  ;;  %v14939_v0 = vunpack.i.l.bf16 %v14938_v31  ;;  %14048 = vmatprep.subr.msk.bf16.mxu0 %vm16443_vm1, %v14046_v14  ;;  %v2356_v34 = vmul.f32 %v2350_v30, %v16333_v16  ;;  %v2357_v38 = vmul.f32 %v16329_v19, %v2350_v30 }
 0x2c2   : > { %15022 = vrot.lane.b32.xlu0 %v15021_v40, %s15905_s20  ;;  %12780 = vmatmul.mubr.msk.f32.gmra.mrb[18].mxu1 %vm490_vm0, %v16494_v18  ;;  %v2352_v39 = vmul.f32 %v2350_v30, %v16291_v5  ;;  %v2353_v41 = vmul.f32 %v16289_v4, %v2350_v30  ;;  %v2354_v42 = vmul.f32 %v2350_v30, %v16314_v12 }
 0x2c3   : > { %12790 = vmatprep.mubr.msk.f32.mxu1 %vm490_vm0, %v16497_v22  ;;  %v15036_v46 = vpack.i.bf16 %v2357_v38, %v2356_v34  ;;  %v2355_v1 = vmul.f32 %v16308_v8, %v2350_v30  ;;  %v2358_v48 = vmul.f32 %v2350_v30, %v16349_v20  ;;  %v2359_v36 = vmul.f32 %v16347_v33, %v2350_v30 }
 0x2c4   : > { %v14948_v10 = vpop.permute.xlu1 %14947  ;;  %v15041_v50 = vpack.i.bf16 %v2353_v41, %v2352_v39  ;;  %v2360_v52 = vmul.f32 %v2350_v30, %v16363_v24  ;;  %v2361_v28 = vmul.f32 %v16361_v43, %v2350_v30  ;;  %v14052_v29 = vpack.c.bf16 %v14940_v55, %v14939_v0 }
 0x2c5   : > { %15037 = vrot.lane.b32.xlu1 %v15036_v46, %s15905_s20  ;;  %v15051_v23 = vpack.i.bf16 %v2355_v1, %v2354_v42  ;;  %v15046_v53 = vpack.i.bf16 %v2359_v36, %v2358_v48  ;;  %v2364_v58 = vmul.f32 %v2350_v30, %v16394_v17  ;;  %v2365_v60 = vmul.f32 %v16392_v57, %v2350_v30 }
 0x2c6   : > { %15032 = vrot.lane.b32.xlu0 %v15031_v9, %s15905_s20  ;;  %v15061_v56 = vpack.i.bf16 %v2361_v28, %v2360_v52  ;;  %v2362_v35 = vmul.f32 %v2350_v30, %v16381_v11  ;;  %v2363_v44 = vmul.f32 %v16377_v51, %v2350_v30  ;;  %v2366_v62 = vmul.f32 %v2350_v30, %v16410_v47 }
 0x2c7   : > { %14039 = vmatpush3.bf16.xpose.msk.msra.mxu1 %vm16443_vm1, %v14034_v45  ;;  %v2367_v37 = vmul.f32 %v16408_v63, %v2350_v30  ;;  %v15056_v21 = vpack.i.bf16 %v2365_v60, %v2364_v58  ;;  %v14950_v9 = vunpack.i.h.bf16 %v14948_v10  ;;  %v14949_v13 = vunpack.i.l.bf16 %v14948_v10  ;;  %v14968_v10 = vpop.permute.xlu0 %14967 }
 0x2c8   : > { %14051 = vmatpush3.bf16.xpose.msk.msra.mxu0 %vm16443_vm1, %v14046_v14  ;;  %14054 = vmatprep.subr.msk.bf16.mxu1 %vm16443_vm1, %v14052_v29  ;;  %v14958_v61 = vpop.permute.xlu1 %14957  ;;  %v15071_v25 = vpack.i.bf16 %v2363_v44, %v2362_v35  ;;  %v16550_v14 = vmul.f32 0.5, %v16381_v11  ;;  %v16560_v55 = vmul.f32 0.5, %v16347_v33  ;;  %v16567_v34 = vmul.f32 0.5, %v16377_v51 }
 0x2c9   : > { %15042 = vrot.lane.b32.xlu1 %v15041_v50, %s15905_s20  ;;  %v15066_v40 = vpack.i.bf16 %v2367_v37, %v2366_v62  ;;  %v14058_v30 = vpack.c.bf16 %v14950_v9, %v14949_v13  ;;  %v16573_v41 = vmul.f32 0.5, %v16394_v17  ;;  %v14960_v42 = vunpack.i.h.bf16 %v14958_v61  ;;  %v11611_v50 = vld [vmem:[%s20212_s12 + $0x6] ss:$0 sm:$0xff] }
 0x2ca   : > { %3241 = vrot.lane.b32.xlu0 %v11577_v59, %s15904_s15  ;;  %v14959_v46 = vunpack.i.l.bf16 %v14958_v61  ;;  %v16601_v58 = vmul.f32 0.5, %v16392_v57  ;;  %v16604_v59 = vmul.f32 0.5, %v16410_v47 }
 0x2cc   : > { %v14963_v54 = vpop.permute.xlu1 %14962  ;;  %v14076_v36 = vpack.c.bf16 %v14960_v42, %v14959_v46  ;;  %v16628_v46 = vmul.f32 0.5, %v16408_v63 }
 0x2cd   : > { %v14965_v7 = vunpack.i.h.bf16 %v14963_v54  ;;  %v14964_v45 = vunpack.i.l.bf16 %v14963_v54  ;;  %15052 = vrot.lane.b32.xlu1 %v15051_v23, %s15905_s20  ;;  %v14969_v23 = vunpack.i.l.bf16 %v14968_v10 }
 0x2ce   : > { %15047 = vrot.lane.b32.xlu0 %v15046_v53, %s15905_s20  ;;  %12791 = vmatmul.mubr.msk.f32.vlgmr.msra.gmra.mrb[20].mxu1 %vm490_vm0, %v16540_v15 }
 0x2cf   : > { %v14064_v31 = vpack.c.bf16 %v14965_v7, %v14964_v45  ;;  %12805 = vmatmul.mubr.msk.f32.vlgmr.msra.gmra.mrb[0].mxu0 %vm490_vm0, %v16546_v27  ;;  %12793 = vmatprep.mubr.msk.f32.mxu1 %vm490_vm0, %v16543_v3 }
 0x2d0   : > { %12807 = vmatprep.mubr.msk.f32.mxu0 %vm490_vm0, %v16550_v14  ;;  %14057 = vmatpush3.bf16.xpose.msk.msra.mxu1 %vm16443_vm1, %v14052_v29  ;;  %v14973_v0 = vpop.permute.xlu1 %14972  ;;  %v14970_v29 = vunpack.i.h.bf16 %v14968_v10 }
 0x2d1   : > { %14060 = vmatprep.subr.msk.bf16.mxu1 %vm16443_vm1, %v14058_v30  ;;  %v14975_v38 = vunpack.i.h.bf16 %v14973_v0  ;;  %v14974_v39 = vunpack.i.l.bf16 %v14973_v0  ;;  %15062 = vrot.lane.b32.xlu1 %v15061_v56, %s15905_s20 }
 0x2d2   : > { %15057 = vrot.lane.b32.xlu0 %v15056_v21, %s15905_s20  ;;  %12794 = vmatmul.mubr.msk.f32.gmra.mrb[22].mxu1 %vm490_vm0, %v16560_v55  ;;  %v14082_v60 = vpack.c.bf16 %v14970_v29, %v14969_v23 }
 0x2d3   : > { %v14070_v1 = vpack.c.bf16 %v14975_v38, %v14974_v39  ;;  %12808 = vmatmul.mubr.msk.f32.gmra.mrb[2].mxu0 %vm490_vm0, %v16567_v34  ;;  %14066 = vmatprep.subr.msk.bf16.mxu0 %vm16443_vm1, %v14064_v31 }
 0x2d4   : > { %12818 = vmatprep.mubr.msk.f32.mxu1 %vm490_vm0, %v16573_v41  ;;  %14069 = vmatpush3.bf16.xpose.msk.msra.mxu0 %vm16443_vm1, %v14064_v31  ;;  %v14983_v48 = vpop.permute.xlu1 %14982  ;;  %v14978_v31 = vpop.permute.xlu0 %14977 }
 0x2d5   : > { %12832 = vmatprep.mubr.msk.f32.mxu0 %vm490_vm0, %v16300_v6  ;;  %15072 = vrot.lane.b32.xlu1 %v15071_v25, %s15905_s20  ;;  %v14985_v52 = vunpack.i.h.bf16 %v14983_v48  ;;  %v14984_v28 = vunpack.i.l.bf16 %v14983_v48  ;;  %v14979_v29 = vunpack.i.l.bf16 %v14978_v31 }
 0x2d6   : > { %15067 = vrot.lane.b32.xlu0 %v15066_v40, %s15905_s20  ;;  %14072 = vmatprep.subr.msk.bf16.mxu0 %vm16443_vm1, %v14070_v1 }
 0x2d7   : > { %v14088_v56 = vpack.c.bf16 %v14985_v52, %v14984_v28  ;;  %v14980_v28 = vunpack.i.h.bf16 %v14978_v31 }
 0x2d8   : > { %14063 = vmatpush3.bf16.xpose.msk.msra.mxu1 %vm16443_vm1, %v14058_v30  ;;  %v14993_v53 = vpop.permute.xlu1 %14992 }
 0x2d9   : > { %14078 = vmatprep.subr.msk.bf16.mxu1 %vm16443_vm1, %v14076_v36  ;;  %3687 = vrot.lane.b32.xlu1 %v11611_v50, %s15904_s15  ;;  %v14995_v35 = vunpack.i.h.bf16 %v14993_v53  ;;  %v14994_v0 = vunpack.i.l.bf16 %v14993_v53 }
 0x2db   : > { %v14094_v53 = vpack.c.bf16 %v14995_v35, %v14994_v0  ;;  %v14988_v35 = vpop.permute.xlu0 %14987 }
 0x2dc   : > { %14075 = vmatpush3.bf16.xpose.msk.msra.mxu0 %vm16443_vm1, %v14070_v1  ;;  %v2796_v61 = vpop.permute.xlu1 %2795 }
 0x2dd   : > { %14090 = vmatprep.subr.msk.bf16.mxu0 %vm16443_vm1, %v14088_v56  ;;  %v2804_v44 = vmul.f32 %v2796_v61, %v16349_v20  ;;  %v2805_v62 = vmul.f32 %v16347_v33, %v2796_v61  ;;  %v2802_v37 = vmul.f32 %v2796_v61, %v16333_v16  ;;  %v2803_v21 = vmul.f32 %v16329_v19, %v2796_v61 }
 0x2de   : > { %v2810_v25 = vmul.f32 %v2796_v61, %v16394_v17  ;;  %v2811_v40 = vmul.f32 %v16392_v57, %v2796_v61  ;;  %v2798_v9 = vmul.f32 %v2796_v61, %v16291_v5  ;;  %v2799_v13 = vmul.f32 %v16289_v4, %v2796_v61 }
 0x2df   : > { %12819 = vmatmul.mubr.msk.f32.vlgmr.msra.gmra.mrb[24].mxu1 %vm490_vm0, %v16601_v58  ;;  %v15086_v54 = vpack.i.bf16 %v2805_v62, %v2804_v44  ;;  %v15076_v7 = vpack.i.bf16 %v2803_v21, %v2802_v37  ;;  %v2812_v45 = vmul.f32 %v2796_v61, %v16410_v47  ;;  %v2813_v30 = vmul.f32 %v16408_v63, %v2796_v61 }
 0x2e0   : > { %12821 = vmatprep.mubr.msk.f32.mxu1 %vm490_vm0, %v16604_v59  ;;  %14081 = vmatpush3.bf16.xpose.msk.msra.mxu1 %vm16443_vm1, %v14076_v36  ;;  %v15096_v38 = vpack.i.bf16 %v2811_v40, %v2810_v25  ;;  %v15081_v39 = vpack.i.bf16 %v2799_v13, %v2798_v9  ;;  %v2800_v42 = vmul.f32 %v2796_v61, %v16314_v12  ;;  %v14989_v37 = vunpack.i.l.bf16 %v14988_v35 }
 0x2e1   : > { %14084 = vmatprep.subr.msk.bf16.mxu1 %vm16443_vm1, %v14082_v60  ;;  %15087 = vrot.lane.b32.xlu1 %v15086_v54, %s15905_s20  ;;  %v15106_v1 = vpack.i.bf16 %v2813_v30, %v2812_v45  ;;  %v2801_v48 = vmul.f32 %v16308_v8, %v2796_v61  ;;  %v2806_v10 = vmul.f32 %v2796_v61, %v16363_v24 }
 0x2e2   : > { %15077 = vrot.lane.b32.xlu0 %v15076_v7, %s15905_s20  ;;  %v2807_v50 = vmul.f32 %v16361_v43, %v2796_v61  ;;  %v2808_v36 = vmul.f32 %v2796_v61, %v16381_v11  ;;  %v2809_v52 = vmul.f32 %v16377_v51, %v2796_v61  ;;  %v14100_v61 = vpack.c.bf16 %v14980_v28, %v14979_v29 }
 0x2e3   : > { %12822 = vmatmul.mubr.msk.f32.gmra.mrb[26].mxu1 %vm490_vm0, %v16628_v46  ;;  %12833 = vmatmul.mubr.msk.f32.vlgmr.msra.gmra.mrb[4].mxu0 %vm490_vm0, %v16478_v2  ;;  %v15091_v23 = vpack.i.bf16 %v2801_v48, %v2800_v42 }
 0x2e4   : > { %12835 = vmatprep.mubr.msk.f32.mxu0 %vm490_vm0, %v16481_v26  ;;  %12846 = vmatprep.mubr.msk.f32.mxu1 %vm490_vm0, %v16497_v22  ;;  %v15101_v44 = vpack.i.bf16 %v2807_v50, %v2806_v10  ;;  %v15111_v62 = vpack.i.bf16 %v2809_v52, %v2808_v36 }
 0x2e5   : > { %14093 = vmatpush3.bf16.xpose.msk.msra.mxu0 %vm16443_vm1, %v14088_v56  ;;  %15097 = vrot.lane.b32.xlu1 %v15096_v38, %s15905_s20  ;;  %v14990_v56 = vunpack.i.h.bf16 %v14988_v35 }
 0x2e6   : > { %14096 = vmatprep.subr.msk.bf16.mxu0 %vm16443_vm1, %v14094_v53  ;;  %15082 = vrot.lane.b32.xlu0 %v15081_v39, %s15905_s20 }
 0x2e7   : > { %12836 = vmatmul.mubr.msk.f32.gmra.mrb[6].mxu0 %vm490_vm0, %v16494_v18  ;;  %v14106_v21 = vpack.c.bf16 %v14990_v56, %v14989_v37 }
 0x2e8   : > { %14087 = vmatpush3.bf16.xpose.msk.msra.mxu1 %vm16443_vm1, %v14082_v60  ;;  %12860 = vmatprep.mubr.msk.f32.mxu0 %vm490_vm0, %v16370_v49  ;;  %v11645_v60 = vld [vmem:[%s20212_s12 + $0x7] ss:$0 sm:$0xff] }
 0x2e9   : > { %14102 = vmatprep.subr.msk.bf16.mxu1 %vm16443_vm1, %v14100_v61  ;;  %15107 = vrot.lane.b32.xlu1 %v15106_v1, %s15905_s20 }
 0x2ea   : > { %15092 = vrot.lane.b32.xlu0 %v15091_v23, %s15905_s20 }
 0x2ed   : > { %14099 = vmatpush3.bf16.xpose.msk.msra.mxu0 %vm16443_vm1, %v14094_v53 }
 0x2ee   : > { %15102 = vrot.lane.b32.xlu0 %v15101_v44, %s15905_s20 }
 0x2ef   : > { %12847 = vmatmul.mubr.msk.f32.vlgmr.msra.gmra.mrb[28].mxu1 %vm490_vm0, %v16540_v15 }
 0x2f0   : > { %12849 = vmatprep.mubr.msk.f32.mxu1 %vm490_vm0, %v16543_v3  ;;  %14105 = vmatpush3.bf16.xpose.msk.msra.mxu1 %vm16443_vm1, %v14100_v61 }
 0x2f1   : > { %14108 = vmatprep.subr.msk.bf16.mxu1 %vm16443_vm1, %v14106_v21 }
 0x2f2   : > { %15112 = vrot.lane.b32.xlu0 %v15111_v62, %s15905_s20 }
 0x2f3   : > { %12850 = vmatmul.mubr.msk.f32.gmra.mrb[30].mxu1 %vm490_vm0, %v16560_v55 }
 0x2f4   : > { %12861 = vmatmul.mubr.msk.f32.vlgmr.msra.gmra.mrb[8].mxu0 %vm490_vm0, %v16546_v27  ;;  %12874 = vmatprep.mubr.msk.f32.mxu1 %vm490_vm0, %v16573_v41 }
 0x2f5   : > { %12863 = vmatprep.mubr.msk.f32.mxu0 %vm490_vm0, %v16550_v14 }
 0x2f6   : > { %4133 = vrot.lane.b32.xlu0 %v11645_v60, %s15904_s15  ;;  %s15906_s15 = smov 64  }
 0x2f8   : > { %12864 = vmatmul.mubr.msk.f32.gmra.mrb[10].mxu0 %vm490_vm0, %v16567_v34  ;;  %14111 = vmatpush3.bf16.xpose.msk.msra.mxu1 %vm16443_vm1, %v14106_v21 }
 0x2f9   : > { %12888 = vmatprep.mubr.msk.f32.mxu0 %vm490_vm0, %v16300_v6 }
 0x2ff   : > { %12875 = vmatmul.mubr.msk.f32.vlgmr.msra.gmra.mrb[32].mxu1 %vm490_vm0, %v16601_v58 }
 0x300   : > { %12877 = vmatprep.mubr.msk.f32.mxu1 %vm490_vm0, %v16604_v59 }
 0x303   : > { %12878 = vmatmul.mubr.msk.f32.gmra.mrb[34].mxu1 %vm490_vm0, %v16628_v46 }
 0x304   : > { %12902 = vmatprep.mubr.msk.f32.mxu1 %vm490_vm0, %v16497_v22 }
 0x327   : > { %v15008_v25 = vpop.permute.xlu1 %15007 }
 0x328   : > { %v14998_v40 = vpop.permute.xlu0 %14997  ;;  %v15010_v54 = vunpack.i.h.bf16 %v15008_v25  ;;  %v15009_v7 = vunpack.i.l.bf16 %v15008_v25 }
 0x329   : > { %v15000_v9 = vunpack.i.h.bf16 %v14998_v40  ;;  %v14999_v13 = vunpack.i.l.bf16 %v14998_v40 }
 0x32a   : > { %v14130_v31 = vpack.c.bf16 %v15010_v54, %v15009_v7 }
 0x32b   : > { %v14124_v45 = vpack.c.bf16 %v15000_v9, %v14999_v13  ;;  %v15018_v39 = vpop.permute.xlu1 %15017 }
 0x32c   : > { %v15003_v30 = vpop.permute.xlu0 %15002  ;;  %v15020_v48 = vunpack.i.h.bf16 %v15018_v39  ;;  %v15019_v10 = vunpack.i.l.bf16 %v15018_v39 }
 0x32d   : > { %v15005_v0 = vunpack.i.h.bf16 %v15003_v30  ;;  %v15004_v38 = vunpack.i.l.bf16 %v15003_v30  ;;  %14126 = vmatprep.subr.msk.bf16.mxu1 %vm16443_vm1, %v14124_v45 }
 0x32e   : > { %14129 = vmatpush3.bf16.xpose.msk.msra.mxu1 %vm16443_vm1, %v14124_v45  ;;  %v14148_v23 = vpack.c.bf16 %v15020_v48, %v15019_v10 }
 0x32f   : > { %v14112_v42 = vpack.c.bf16 %v15005_v0, %v15004_v38  ;;  %14132 = vmatprep.subr.msk.bf16.mxu1 %vm16443_vm1, %v14130_v31  ;;  %v15028_v28 = vpop.permute.xlu1 %15027 }
 0x330   : > { %v15013_v1 = vpop.permute.xlu0 %15012  ;;  %v15030_v61 = vunpack.i.h.bf16 %v15028_v28  ;;  %v15029_v35 = vunpack.i.l.bf16 %v15028_v28 }
 0x331   : > { %v15015_v50 = vunpack.i.h.bf16 %v15013_v1  ;;  %v15014_v36 = vunpack.i.l.bf16 %v15013_v1  ;;  %14114 = vmatprep.subr.msk.bf16.mxu0 %vm16443_vm1, %v14112_v42 }
 0x332   : > { %14117 = vmatpush3.bf16.xpose.msk.msra.mxu0 %vm16443_vm1, %v14112_v42  ;;  %v14154_v60 = vpack.c.bf16 %v15030_v61, %v15029_v35 }
 0x333   : > { %v14118_v52 = vpack.c.bf16 %v15015_v50, %v15014_v36 }
 0x334   : > { %v15023_v29 = vpop.permute.xlu0 %15022 }
 0x335   : > { %v15025_v53 = vunpack.i.h.bf16 %v15023_v29  ;;  %v15024_v44 = vunpack.i.l.bf16 %v15023_v29  ;;  %14120 = vmatprep.subr.msk.bf16.mxu0 %vm16443_vm1, %v14118_v52 }
 0x336   : > { %14135 = vmatpush3.bf16.xpose.msk.msra.mxu1 %vm16443_vm1, %v14130_v31 }
 0x337   : > { %14150 = vmatprep.subr.msk.bf16.mxu1 %vm16443_vm1, %v14148_v23  ;;  %v15038_v62 = vpop.permute.xlu1 %15037  ;;  %v14136_v37 = vpack.c.bf16 %v15025_v53, %v15024_v44 }
 0x338   : > { %v15033_v56 = vpop.permute.xlu0 %15032  ;;  %v15040_v50 = vunpack.i.h.bf16 %v15038_v62  ;;  %v15039_v36 = vunpack.i.l.bf16 %v15038_v62 }
 0x339   : > { %v15035_v7 = vunpack.i.h.bf16 %v15033_v56  ;;  %v15034_v45 = vunpack.i.l.bf16 %v15033_v56 }
 0x33a   : > { %14123 = vmatpush3.bf16.xpose.msk.msra.mxu0 %vm16443_vm1, %v14118_v52 }
 0x33b   : > { %14138 = vmatprep.subr.msk.bf16.mxu0 %vm16443_vm1, %v14136_v37  ;;  %v15043_v21 = vpop.permute.xlu1 %15042  ;;  %v14142_v29 = vpack.c.bf16 %v15035_v7, %v15034_v45 }
 0x33c   : > { %v3242_v25 = vpop.permute.xlu0 %3241  ;;  %v15044_v7 = vunpack.i.l.bf16 %v15043_v21 }
 0x33d   : > { %12903 = vmatmul.mubr.msk.f32.vlgmr.msra.gmra.mrb[36].mxu1 %vm490_vm0, %v16540_v15  ;;  %v3248_v40 = vmul.f32 %v3242_v25, %v16333_v16  ;;  %v3249_v9 = vmul.f32 %v16329_v19, %v3242_v25  ;;  %v3250_v13 = vmul.f32 %v3242_v25, %v16349_v20  ;;  %v3251_v54 = vmul.f32 %v16347_v33, %v3242_v25 }
 0x33e   : > { %12905 = vmatprep.mubr.msk.f32.mxu1 %vm490_vm0, %v16543_v3  ;;  %14153 = vmatpush3.bf16.xpose.msk.msra.mxu1 %vm16443_vm1, %v14148_v23  ;;  %v3244_v30 = vmul.f32 %v3242_v25, %v16291_v5  ;;  %v3245_v31 = vmul.f32 %v16289_v4, %v3242_v25  ;;  %v3256_v42 = vmul.f32 %v3242_v25, %v16394_v17 }
 0x33f   : > { %14156 = vmatprep.subr.msk.bf16.mxu1 %vm16443_vm1, %v14154_v60  ;;  %v16735_v0 = vpop.permute.xlu1 %15052  ;;  %v15116_v38 = vpack.i.bf16 %v3249_v9, %v3248_v40  ;;  %v15126_v39 = vpack.i.bf16 %v3251_v54, %v3250_v13  ;;  %v3257_v1 = vmul.f32 %v16392_v57, %v3242_v25  ;;  %v3246_v10 = vmul.f32 %v3242_v25, %v16314_v12 }
 0x340   : > { %v15121_v48 = vpack.i.bf16 %v3245_v31, %v3244_v30  ;;  %v3247_v28 = vmul.f32 %v16308_v8, %v3242_v25  ;;  %v3258_v23 = vmul.f32 %v3242_v25, %v16410_v47  ;;  %v3259_v53 = vmul.f32 %v16408_v63, %v3242_v25  ;;  %v15048_v35 = vpop.permute.xlu0 %15047 }
 0x341   : > { %15117 = vrot.lane.b32.xlu1 %v15116_v38, %s15905_s20  ;;  %15127 = vrot.lane.b32.xlu0 %v15126_v39, %s15905_s20  ;;  %v15136_v52 = vpack.i.bf16 %v3257_v1, %v3256_v42  ;;  %v3252_v61 = vmul.f32 %v3242_v25, %v16363_v24  ;;  %v3253_v40 = vmul.f32 %v16361_v43, %v3242_v25  ;;  %v15045_v54 = vunpack.i.h.bf16 %v15043_v21 }
 0x342   : > { %12889 = vmatmul.mubr.msk.f32.vlgmr.msra.gmra.mrb[12].mxu0 %vm490_vm0, %v16478_v2  ;;  %12906 = vmatmul.mubr.msk.f32.gmra.mrb[38].mxu1 %vm490_vm0, %v16560_v55  ;;  %v15131_v62 = vpack.i.bf16 %v3247_v28, %v3246_v10  ;;  %v15146_v56 = vpack.i.bf16 %v3259_v53, %v3258_v23  ;;  %v14172_v9 = vpack.c.bf16 %v15040_v50, %v15039_v36  ;;  %v15050_v30 = vunpack.i.h.bf16 %v15048_v35 }
 0x343   : > { %12891 = vmatprep.mubr.msk.f32.mxu0 %vm490_vm0, %v16481_v26  ;;  %14141 = vmatpush3.bf16.xpose.msk.msra.mxu0 %vm16443_vm1, %v14136_v37  ;;  %v16753_v44 = vpop.permute.xlu1 %15062  ;;  %v3254_v37 = vmul.f32 %v3242_v25, %v16381_v11  ;;  %v3255_v13 = vmul.f32 %v16377_v51, %v3242_v25  ;;  %v15141_v45 = vpack.i.bf16 %v3253_v40, %v3252_v61  ;;  %v15049_v31 = vunpack.i.l.bf16 %v15048_v35 }
 0x344   : > { %12930 = vmatprep.mubr.msk.f32.mxu1 %vm490_vm0, %v16573_v41  ;;  %14144 = vmatprep.subr.msk.bf16.mxu0 %vm16443_vm1, %v14142_v29  ;;  %v14160_v21 = vpack.c.bf16 %v15045_v54, %v15044_v7  ;;  %v15058_v39 = vpop.permute.xlu0 %15057 }
 0x345   : > { %15122 = vrot.lane.b32.xlu1 %v15121_v48, %s15905_s20  ;;  %15137 = vrot.lane.b32.xlu0 %v15136_v52, %s15905_s20  ;;  %v15151_v25 = vpack.i.bf16 %v3255_v13, %v3254_v37  ;;  %v14178_v42 = vpack.c.bf16 %v15050_v30, %v15049_v31  ;;  %v15054_v52 = vunpack.i.l.bf16 %v16735_v0  ;;  %v15060_v53 = vunpack.i.h.bf16 %v15058_v39 }
 0x346   : > { %12892 = vmatmul.mubr.msk.f32.gmra.mrb[14].mxu0 %vm490_vm0, %v16494_v18  ;;  %14159 = vmatpush3.bf16.xpose.msk.msra.mxu1 %vm16443_vm1, %v14154_v60  ;;  %v15055_v60 = vunpack.i.h.bf16 %v16735_v0  ;;  %v15059_v30 = vunpack.i.l.bf16 %v15058_v39 }
 0x347   : > { %12916 = vmatprep.mubr.msk.f32.mxu0 %vm490_vm0, %v16370_v49  ;;  %14174 = vmatprep.subr.msk.bf16.mxu1 %vm16443_vm1, %v14172_v9  ;;  %v16773_v38 = vpop.permute.xlu1 %15072 }
 0x348   : > { %v15068_v13 = vpop.permute.xlu0 %15067 }
 0x349   : > { %15132 = vrot.lane.b32.xlu1 %v15131_v62, %s15905_s20  ;;  %15147 = vrot.lane.b32.xlu0 %v15146_v56, %s15905_s20 }
 0x34b   : > { %14147 = vmatpush3.bf16.xpose.msk.msra.mxu0 %vm16443_vm1, %v14142_v29  ;;  %v3688_v1 = vpop.permute.xlu1 %3687 }
 0x34c   : > { %14162 = vmatprep.subr.msk.bf16.mxu0 %vm16443_vm1, %v14160_v21  ;;  %v3694_v48 = vmul.f32 %v3688_v1, %v16333_v16  ;;  %v3695_v10 = vmul.f32 %v16329_v19, %v3688_v1  ;;  %v3696_v50 = vmul.f32 %v3688_v1, %v16349_v20  ;;  %v3697_v36 = vmul.f32 %v16347_v33, %v3688_v1 }
 0x34d   : > { %15142 = vrot.lane.b32.xlu1 %v15141_v45, %s15905_s20  ;;  %12931 = vmatmul.mubr.msk.f32.vlgmr.msra.gmra.mrb[40].mxu1 %vm490_vm0, %v16601_v58  ;;  %v3690_v28 = vmul.f32 %v3688_v1, %v16291_v5  ;;  %v3691_v29 = vmul.f32 %v16289_v4, %v3688_v1  ;;  %v3702_v23 = vmul.f32 %v3688_v1, %v16394_v17 }
 0x34e   : > { %12933 = vmatprep.mubr.msk.f32.mxu1 %vm490_vm0, %v16604_v59  ;;  %14177 = vmatpush3.bf16.xpose.msk.msra.mxu1 %vm16443_vm1, %v14172_v9  ;;  %v15156_v62 = vpack.i.bf16 %v3695_v10, %v3694_v48  ;;  %v15166_v0 = vpack.i.bf16 %v3697_v36, %v3696_v50  ;;  %v3703_v61 = vmul.f32 %v16392_v57, %v3688_v1 }
 0x34f   : > { %14180 = vmatprep.subr.msk.bf16.mxu1 %vm16443_vm1, %v14178_v42  ;;  %v15161_v35 = vpack.i.bf16 %v3691_v29, %v3690_v28  ;;  %v3692_v56 = vmul.f32 %v3688_v1, %v16314_v12  ;;  %v3693_v40 = vmul.f32 %v16308_v8, %v3688_v1  ;;  %v3704_v37 = vmul.f32 %v3688_v1, %v16410_v47 }
 0x350   : > { %15157 = vrot.lane.b32.xlu0 %v15156_v62, %s15905_s20  ;;  %v15176_v54 = vpack.i.bf16 %v3703_v61, %v3702_v23  ;;  %v3705_v9 = vmul.f32 %v16408_v63, %v3688_v1  ;;  %v3698_v7 = vmul.f32 %v3688_v1, %v16363_v24  ;;  %v3699_v45 = vmul.f32 %v16361_v43, %v3688_v1 }
 0x351   : > { %15152 = vrot.lane.b32.xlu1 %v15151_v25, %s15905_s20  ;;  %12934 = vmatmul.mubr.msk.f32.gmra.mrb[42].mxu1 %vm490_vm0, %v16628_v46  ;;  %v15171_v31 = vpack.i.bf16 %v3693_v40, %v3692_v56  ;;  %v3700_v48 = vmul.f32 %v3688_v1, %v16381_v11  ;;  %v3701_v10 = vmul.f32 %v16377_v51, %v3688_v1  ;;  %v15065_v1 = vunpack.i.h.bf16 %v16753_v44 }
 0x352   : > { %v14166_v50 = vpack.c.bf16 %v15055_v60, %v15054_v52  ;;  %12917 = vmatmul.mubr.msk.f32.vlgmr.msra.gmra.mrb[16].mxu0 %vm490_vm0, %v16546_v27  ;;  %12958 = vmatprep.mubr.msk.f32.mxu1 %vm490_vm0, %v16497_v22  ;;  %v15186_v36 = vpack.i.bf16 %v3705_v9, %v3704_v37  ;;  %v15181_v28 = vpack.i.bf16 %v3699_v45, %v3698_v7  ;;  %v15064_v52 = vunpack.i.l.bf16 %v16753_v44 }
 0x353   : > { %12919 = vmatprep.mubr.msk.f32.mxu0 %vm490_vm0, %v16550_v14  ;;  %14165 = vmatpush3.bf16.xpose.msk.msra.mxu0 %vm16443_vm1, %v14160_v21  ;;  %v15191_v25 = vpack.i.bf16 %v3701_v10, %v3700_v48  ;;  %v14196_v60 = vpack.c.bf16 %v15060_v53, %v15059_v30  ;;  %v15070_v29 = vunpack.i.h.bf16 %v15068_v13  ;;  %v15069_v23 = vunpack.i.l.bf16 %v15068_v13  ;;  %v15088_v40 = vpop.permute.xlu1 %15087 }
 0x354   : > { %14168 = vmatprep.subr.msk.bf16.mxu0 %vm16443_vm1, %v14166_v50  ;;  %v15078_v39 = vpop.permute.xlu0 %15077  ;;  %15167 = vrot.lane.b32.xlu0 %v15166_v0, %s15905_s20  ;;  %v14184_v44 = vpack.c.bf16 %v15065_v1, %v15064_v52  ;;  %v15075_v62 = vunpack.i.h.bf16 %v16773_v38  ;;  %v15074_v0 = vunpack.i.l.bf16 %v16773_v38  ;;  %v15090_v37 = vunpack.i.h.bf16 %v15088_v40 }
 0x355   : > { %15162 = vrot.lane.b32.xlu1 %v15161_v35, %s15905_s20  ;;  %v14202_v53 = vpack.c.bf16 %v15070_v29, %v15069_v23  ;;  %v15080_v35 = vunpack.i.h.bf16 %v15078_v39  ;;  %v15079_v56 = vunpack.i.l.bf16 %v15078_v39  ;;  %v15089_v13 = vunpack.i.l.bf16 %v15088_v40 }
 0x356   : > { %12920 = vmatmul.mubr.msk.f32.gmra.mrb[18].mxu0 %vm490_vm0, %v16567_v34  ;;  %14183 = vmatpush3.bf16.xpose.msk.msra.mxu1 %vm16443_vm1, %v14178_v42  ;;  %v14190_v38 = vpack.c.bf16 %v15075_v62, %v15074_v0 }
 0x357   : > { %12944 = vmatprep.mubr.msk.f32.mxu0 %vm490_vm0, %v16300_v6  ;;  %14198 = vmatprep.subr.msk.bf16.mxu1 %vm16443_vm1, %v14196_v60  ;;  %v14220_v45 = vpack.c.bf16 %v15080_v35, %v15079_v56  ;;  %v14226_v30 = vpack.c.bf16 %v15090_v37, %v15089_v13 }
 0x358   : > { %v15083_v21 = vpop.permute.xlu0 %15082  ;;  %15177 = vrot.lane.b32.xlu0 %v15176_v54, %s15905_s20 }
 0x359   : > { %15172 = vrot.lane.b32.xlu1 %v15171_v31, %s15905_s20  ;;  %v15085_v54 = vunpack.i.h.bf16 %v15083_v21  ;;  %v15084_v9 = vunpack.i.l.bf16 %v15083_v21 }
 0x35b   : > { %14171 = vmatpush3.bf16.xpose.msk.msra.mxu0 %vm16443_vm1, %v14166_v50  ;;  %v14208_v31 = vpack.c.bf16 %v15085_v54, %v15084_v9 }
 0x35c   : > { %14186 = vmatprep.subr.msk.bf16.mxu0 %vm16443_vm1, %v14184_v44  ;;  %v16840_v42 = vpop.permute.xlu0 %15092  ;;  %15187 = vrot.lane.b32.xlu0 %v15186_v36, %s15905_s20 }
 0x35d   : > { %15182 = vrot.lane.b32.xlu1 %v15181_v28, %s15905_s20  ;;  %12959 = vmatmul.mubr.msk.f32.vlgmr.msra.gmra.mrb[44].mxu1 %vm490_vm0, %v16540_v15  ;;  %v15095_v35 = vunpack.i.h.bf16 %v16840_v42  ;;  %v15094_v37 = vunpack.i.l.bf16 %v16840_v42 }
 0x35e   : > { %12961 = vmatprep.mubr.msk.f32.mxu1 %vm490_vm0, %v16543_v3  ;;  %14201 = vmatpush3.bf16.xpose.msk.msra.mxu1 %vm16443_vm1, %v14196_v60 }
 0x35f   : > { %14204 = vmatprep.subr.msk.bf16.mxu1 %vm16443_vm1, %v14202_v53 }
 0x360   : > { %v16854_v61 = vpop.permute.xlu0 %15102 }
 0x361   : > { %15192 = vrot.lane.b32.xlu1 %v15191_v25, %s15905_s20  ;;  %12962 = vmatmul.mubr.msk.f32.gmra.mrb[46].mxu1 %vm490_vm0, %v16560_v55 }
 0x362   : > { %12945 = vmatmul.mubr.msk.f32.vlgmr.msra.gmra.mrb[20].mxu0 %vm490_vm0, %v16478_v2  ;;  %12986 = vmatprep.mubr.msk.f32.mxu1 %vm490_vm0, %v16573_v41 }
 0x363   : > { %12947 = vmatprep.mubr.msk.f32.mxu0 %vm490_vm0, %v16481_v26  ;;  %14189 = vmatpush3.bf16.xpose.msk.msra.mxu0 %vm16443_vm1, %v14184_v44 }
 0x364   : > { %14192 = vmatprep.subr.msk.bf16.mxu0 %vm16443_vm1, %v14190_v38  ;;  %v16869_v7 = vpop.permute.xlu0 %15112 }
 0x366   : > { %12948 = vmatmul.mubr.msk.f32.gmra.mrb[22].mxu0 %vm490_vm0, %v16494_v18  ;;  %14207 = vmatpush3.bf16.xpose.msk.msra.mxu1 %vm16443_vm1, %v14202_v53 }
 0x367   : > { %12972 = vmatprep.mubr.msk.f32.mxu0 %vm490_vm0, %v16370_v49  ;;  %14222 = vmatprep.subr.msk.bf16.mxu1 %vm16443_vm1, %v14220_v45 }
 0x368   : > { %v4134_v48 = vpop.permute.xlu0 %4133 }
 0x369   : > { %v4140_v10 = vmul.f32 %v4134_v48, %v16333_v16  ;;  %v4141_v50 = vmul.f32 %v16329_v19, %v4134_v48  ;;  %v4136_v36 = vmul.f32 %v4134_v48, %v16291_v5  ;;  %v4137_v28 = vmul.f32 %v16289_v4, %v4134_v48 }
 0x36a   : > { %v4142_v25 = vmul.f32 %v4134_v48, %v16349_v20  ;;  %v4143_v39 = vmul.f32 %v16347_v33, %v4134_v48  ;;  %v4138_v60 = vmul.f32 %v4134_v48, %v16314_v12  ;;  %v4139_v1 = vmul.f32 %v16308_v8, %v4134_v48 }
 0x36b   : > { %14195 = vmatpush3.bf16.xpose.msk.msra.mxu0 %vm16443_vm1, %v14190_v38  ;;  %v15196_v52 = vpack.i.bf16 %v4141_v50, %v4140_v10  ;;  %v15201_v21 = vpack.i.bf16 %v4137_v28, %v4136_v36  ;;  %v4148_v29 = vmul.f32 %v4134_v48, %v16394_v17  ;;  %v4149_v23 = vmul.f32 %v16392_v57, %v4134_v48  ;;  %v15098_v10 = vpop.permute.xlu1 %15097 }
 0x36c   : > { %14210 = vmatprep.subr.msk.bf16.mxu0 %vm16443_vm1, %v14208_v31  ;;  %v15206_v44 = vpack.i.bf16 %v4143_v39, %v4142_v25  ;;  %v15211_v53 = vpack.i.bf16 %v4139_v1, %v4138_v60  ;;  %v4144_v62 = vmul.f32 %v4134_v48, %v16363_v24  ;;  %v4145_v0 = vmul.f32 %v16361_v43, %v4134_v48 }
 0x36d   : > { %15197 = vrot.lane.b32.xlu0 %v15196_v52, %s15905_s20  ;;  %15202 = vrot.lane.b32.xlu1 %v15201_v21, %s15905_s20  ;;  %v15216_v56 = vpack.i.bf16 %v4149_v23, %v4148_v29  ;;  %v4150_v40 = vmul.f32 %v4134_v48, %v16410_v47  ;;  %v4151_v38 = vmul.f32 %v16408_v63, %v4134_v48  ;;  %v15100_v36 = vunpack.i.h.bf16 %v15098_v10 }
 0x36e   : > { %12987 = vmatmul.mubr.msk.f32.vlgmr.msra.gmra.mrb[48].mxu1 %vm490_vm0, %v16601_v58  ;;  %v15221_v13 = vpack.i.bf16 %v4145_v0, %v4144_v62  ;;  %v4146_v54 = vmul.f32 %v4134_v48, %v16381_v11  ;;  %v4147_v9 = vmul.f32 %v16377_v51, %v4134_v48  ;;  %v15099_v28 = vunpack.i.l.bf16 %v15098_v10 }
 0x36f   : > { %12989 = vmatprep.mubr.msk.f32.mxu1 %vm490_vm0, %v16604_v59  ;;  %14225 = vmatpush3.bf16.xpose.msk.msra.mxu1 %vm16443_vm1, %v14220_v45  ;;  %v15226_v50 = vpack.i.bf16 %v4151_v38, %v4150_v40  ;;  %v14214_v25 = vpack.c.bf16 %v15095_v35, %v15094_v37  ;;  %v15105_v48 = vunpack.i.h.bf16 %v16854_v61  ;;  %v15104_v39 = vunpack.i.l.bf16 %v16854_v61  ;;  %v15108_v60 = vpop.permute.xlu1 %15107 }
 0x370   : > { %14228 = vmatprep.subr.msk.bf16.mxu1 %vm16443_vm1, %v14226_v30  ;;  %v15231_v42 = vpack.i.bf16 %v4147_v9, %v4146_v54  ;;  %v14244_v45 = vpack.c.bf16 %v15100_v36, %v15099_v28  ;;  %v15109_v1 = vunpack.i.l.bf16 %v15108_v60  ;;  %v15115_v52 = vunpack.i.h.bf16 %v16869_v7 }
 0x371   : > { %15207 = vrot.lane.b32.xlu0 %v15206_v44, %s15905_s20  ;;  %15212 = vrot.lane.b32.xlu1 %v15211_v53, %s15905_s20  ;;  %v14232_v61 = vpack.c.bf16 %v15105_v48, %v15104_v39  ;;  %v15114_v21 = vunpack.i.l.bf16 %v16869_v7 }
 0x372   : > { %12973 = vmatmul.mubr.msk.f32.vlgmr.msra.gmra.mrb[24].mxu0 %vm490_vm0, %v16546_v27  ;;  %12990 = vmatmul.mubr.msk.f32.gmra.mrb[50].mxu1 %vm490_vm0, %v16628_v46 }
 0x373   : > { %12975 = vmatprep.mubr.msk.f32.mxu0 %vm490_vm0, %v16550_v14  ;;  %14213 = vmatpush3.bf16.xpose.msk.msra.mxu0 %vm16443_vm1, %v14208_v31  ;;  %v15110_v31 = vunpack.i.h.bf16 %v15108_v60 }
 0x374   : > { %13014 = vmatprep.mubr.msk.f32.mxu1 %vm490_vm0, %v16497_v22  ;;  %14216 = vmatprep.subr.msk.bf16.mxu0 %vm16443_vm1, %v14214_v25 }
 0x375   : > { %15217 = vrot.lane.b32.xlu0 %v15216_v56, %s15905_s20  ;;  %15222 = vrot.lane.b32.xlu1 %v15221_v13, %s15905_s20 }
 0x376   : > { %12976 = vmatmul.mubr.msk.f32.gmra.mrb[26].mxu0 %vm490_vm0, %v16567_v34 }
 0x377   : > { %13000 = vmatprep.mubr.msk.f32.mxu0 %vm490_vm0, %v16300_v6  ;;  %14231 = vmatpush3.bf16.xpose.msk.msra.mxu1 %vm16443_vm1, %v14226_v30  ;;  %v14250_v30 = vpack.c.bf16 %v15110_v31, %v15109_v1 }
 0x378   : > { %14246 = vmatprep.subr.msk.bf16.mxu1 %vm16443_vm1, %v14244_v45 }
 0x379   : > { %15227 = vrot.lane.b32.xlu0 %v15226_v50, %s15905_s20  ;;  %15232 = vrot.lane.b32.xlu1 %v15231_v42, %s15905_s20  ;;  %s11385_s20 = sshll.u32 %s461_s0, 7 }
 0x37b   : > { %14219 = vmatpush3.bf16.xpose.msk.msra.mxu0 %vm16443_vm1, %v14214_v25 }
 0x37c   : > { %14234 = vmatprep.subr.msk.bf16.mxu0 %vm16443_vm1, %v14232_v61 }
 0x37d   : > { %6132 = vrot.lane.b32.xlu0 %v16291_v5, %s15906_s15  ;;  %6134 = vrot.lane.b32.xlu1 %v16289_v4, %s15906_s15  ;;  %v14238_v4 = vpack.c.bf16 %v15115_v52, %v15114_v21 }
 0x37e   : > { %13015 = vmatmul.mubr.msk.f32.vlgmr.msra.gmra.mrb[52].mxu1 %vm490_vm0, %v16540_v15 }
 0x37f   : > { %13017 = vmatprep.mubr.msk.f32.mxu1 %vm490_vm0, %v16543_v3  ;;  %14249 = vmatpush3.bf16.xpose.msk.msra.mxu1 %vm16443_vm1, %v14244_v45 }
 0x380   : > { %14252 = vmatprep.subr.msk.bf16.mxu1 %vm16443_vm1, %v14250_v30 }
 0x381   : > { %6136 = vrot.lane.b32.xlu0 %v16314_v12, %s15906_s15  ;;  %6138 = vrot.lane.b32.xlu1 %v16308_v8, %s15906_s15 }
 0x382   : > { %13001 = vmatmul.mubr.msk.f32.vlgmr.msra.gmra.mrb[28].mxu0 %vm490_vm0, %v16478_v2  ;;  %13018 = vmatmul.mubr.msk.f32.gmra.mrb[54].mxu1 %vm490_vm0, %v16560_v55 }
 0x383   : > { %13003 = vmatprep.mubr.msk.f32.mxu0 %vm490_vm0, %v16481_v26  ;;  %14237 = vmatpush3.bf16.xpose.msk.msra.mxu0 %vm16443_vm1, %v14232_v61 }
 0x384   : > { %13042 = vmatprep.mubr.msk.f32.mxu1 %vm490_vm0, %v16573_v41  ;;  %14240 = vmatprep.subr.msk.bf16.mxu0 %vm16443_vm1, %v14238_v4 }
 0x385   : > { %6140 = vrot.lane.b32.xlu0 %v16333_v16, %s15906_s15  ;;  %6142 = vrot.lane.b32.xlu1 %v16329_v19, %s15906_s15 }
 0x386   : > { %13004 = vmatmul.mubr.msk.f32.gmra.mrb[30].mxu0 %vm490_vm0, %v16494_v18 }
 0x387   : > { %13028 = vmatprep.mubr.msk.f32.mxu0 %vm490_vm0, %v16370_v49  ;;  %14255 = vmatpush3.bf16.xpose.msk.msra.mxu1 %vm16443_vm1, %v14250_v30 }
 0x389   : > { %6144 = vrot.lane.b32.xlu0 %v16349_v20, %s15906_s15  ;;  %6146 = vrot.lane.b32.xlu1 %v16347_v33, %s15906_s15 }
 0x38b   : > { %14243 = vmatpush3.bf16.xpose.msk.msra.mxu0 %vm16443_vm1, %v14238_v4 }
 0x38d   : > { %6148 = vrot.lane.b32.xlu0 %v16363_v24, %s15906_s15  ;;  %6150 = vrot.lane.b32.xlu1 %v16361_v43, %s15906_s15 }
 0x38e   : > { %13043 = vmatmul.mubr.msk.f32.vlgmr.msra.gmra.mrb[56].mxu1 %vm490_vm0, %v16601_v58 }
 0x38f   : > { %13045 = vmatprep.mubr.msk.f32.mxu1 %vm490_vm0, %v16604_v59 }
 0x391   : > { %6152 = vrot.lane.b32.xlu0 %v16381_v11, %s15906_s15  ;;  %6154 = vrot.lane.b32.xlu1 %v16377_v51, %s15906_s15  ;;  %v17001_v5 = vpop.f32.mrb[16].mxu1 }
 0x392   : > { %13029 = vmatmul.mubr.msk.f32.vlgmr.msra.gmra.mrb[32].mxu0 %vm490_vm0, %v16546_v27  ;;  %13046 = vmatmul.mubr.msk.f32.gmra.mrb[58].mxu1 %vm490_vm0, %v16628_v46  ;;  %v17007_v8 = vpop.f32.mrb[17].mxu1 }
 0x393   : > { %13031 = vmatprep.mubr.msk.f32.mxu0 %vm490_vm0, %v16550_v14  ;;  %13070 = vmatprep.mubr.msk.f32.mxu1 %vm490_vm0, %v16497_v22 }
 0x395   : > { %v17013_v12 = vpop.f32.mrb[18].mxu1 }
 0x396   : > { %13032 = vmatmul.mubr.msk.f32.gmra.mrb[34].mxu0 %vm490_vm0, %v16567_v34  ;;  %v17017_v19 = vpop.f32.mrb[19].mxu1 }
 0x397   : > { %13056 = vmatprep.mubr.msk.f32.mxu0 %vm490_vm0, %v16300_v6 }
 0x3a1   : > { %v17021_v16 = vpop.f32.mrb[20].mxu1 }
 0x3a2   : > { %20351 = vst [vmem:[#allocation7_spill] sm:$0xff] %v17021_v16  ;;  %v17023_v33 = vpop.f32.mrb[0].mxu0  ;;  %v17025_v20 = vpop.f32.mrb[21].mxu1 }
 0x3a3   : > { %20352 = vst [vmem:[#allocation8_spill] sm:$0xff] %v17025_v20  ;;  %v17027_v43 = vpop.f32.mrb[1].mxu0 }
 0x3a5   : > { %v17029_v24 = vpop.f32.mrb[22].mxu1 }
 0x3a6   : > { %20353 = vst [vmem:[#allocation9_spill] sm:$0xff] %v17029_v24  ;;  %v17031_v51 = vpop.f32.mrb[2].mxu0  ;;  %v17033_v11 = vpop.f32.mrb[23].mxu1 }
 0x3a7   : > { %20354 = vst [vmem:[#allocation10_spill] sm:$0xff] %v17033_v11  ;;  %v17035_v7 = vpop.f32.mrb[3].mxu0 }
 0x3b2   : > { %v17037_v29 = vpop.f32.mrb[24].mxu1 }
 0x3b3   : > { %20355 = vst [vmem:[#allocation11_spill] sm:$0xff] %v17037_v29  ;;  %v17039_v23 = vpop.f32.mrb[25].mxu1  ;;  %v15128_v44 = vpop.permute.xlu0 %15127 }
 0x3b4   : > { %20356 = vst [vmem:[#allocation12_spill] sm:$0xff] %v17039_v23  ;;  %v15118_v53 = vpop.permute.xlu1 %15117  ;;  %v15130_v62 = vunpack.i.h.bf16 %v15128_v44  ;;  %v15129_v0 = vunpack.i.l.bf16 %v15128_v44 }
 0x3b5   : > { %v15120_v35 = vunpack.i.h.bf16 %v15118_v53  ;;  %v15119_v56 = vunpack.i.l.bf16 %v15118_v53 }
 0x3b6   : > { %v17041_v40 = vpop.f32.mrb[26].mxu1  ;;  %v17043_v38 = vpop.f32.mrb[4].mxu0  ;;  %v14274_v10 = vpack.c.bf16 %v15130_v62, %v15129_v0 }
 0x3b7   : > { %20357 = vst [vmem:[#allocation13_spill] sm:$0xff] %v17041_v40  ;;  %v14268_v37 = vpack.c.bf16 %v15120_v35, %v15119_v56  ;;  %v17045_v13 = vpop.f32.mrb[27].mxu1  ;;  %v17047_v54 = vpop.f32.mrb[5].mxu0 }
 0x3b8   : > { %20358 = vst [vmem:[#allocation14_spill] sm:$0xff] %v17045_v13  ;;  %v15123_v9 = vpop.permute.xlu1 %15122  ;;  %v15138_v36 = vpop.permute.xlu0 %15137 }
 0x3b9   : > { %v15125_v50 = vunpack.i.h.bf16 %v15123_v9  ;;  %v15124_v42 = vunpack.i.l.bf16 %v15123_v9  ;;  %14270 = vmatprep.subr.msk.bf16.mxu1 %vm16443_vm1, %v14268_v37  ;;  %v15140_v39 = vunpack.i.h.bf16 %v15138_v36  ;;  %v15139_v60 = vunpack.i.l.bf16 %v15138_v36  ;;  %v17089_v36 = vld [vmem:[%s20213_s13] sm:$0xff] }
 0x3ba   : > { %v17051_v28 = vpop.f32.mrb[6].mxu0  ;;  %14273 = vmatpush3.bf16.xpose.msk.msra.mxu1 %vm16443_vm1, %v14268_v37 }
 0x3bb   : > { %v14256_v25 = vpack.c.bf16 %v15125_v50, %v15124_v42  ;;  %v17055_v45 = vpop.f32.mrb[7].mxu0  ;;  %14276 = vmatprep.subr.msk.bf16.mxu1 %vm16443_vm1, %v14274_v10  ;;  %v14292_v52 = vpack.c.bf16 %v15140_v39, %v15139_v60  ;;  %v17080_v50 = vld [vmem:[%s20213_s13 + $0x8] sm:$0xff] }
 0x3bc   : > { %v15133_v48 = vpop.permute.xlu1 %15132  ;;  %v15148_v44 = vpop.permute.xlu0 %15147 }
 0x3bd   : > { %v15135_v31 = vunpack.i.h.bf16 %v15133_v48  ;;  %v15134_v1 = vunpack.i.l.bf16 %v15133_v48  ;;  %14258 = vmatprep.subr.msk.bf16.mxu0 %vm16443_vm1, %v14256_v25  ;;  %v15150_v0 = vunpack.i.h.bf16 %v15148_v44  ;;  %v15149_v35 = vunpack.i.l.bf16 %v15148_v44 }
 0x3be   : > { %14261 = vmatpush3.bf16.xpose.msk.msra.mxu0 %vm16443_vm1, %v14256_v25 }
 0x3bf   : > { %v14262_v61 = vpack.c.bf16 %v15135_v31, %v15134_v1  ;;  %v14298_v39 = vpack.c.bf16 %v15150_v0, %v15149_v35  ;;  %v17101_v31 = vadd.f32 %v17023_v33, %v17080_v50 }
 0x3c0   : > { %v15143_v30 = vpop.permute.xlu1 %15142 }
 0x3c1   : > { %v15145_v21 = vunpack.i.h.bf16 %v15143_v30  ;;  %v15144_v4 = vunpack.i.l.bf16 %v15143_v30  ;;  %14264 = vmatprep.subr.msk.bf16.mxu0 %vm16443_vm1, %v14262_v61 }
 0x3c2   : > { %v17065_v53 = vpop.f32.mrb[28].mxu1  ;;  %14279 = vmatpush3.bf16.xpose.msk.msra.mxu1 %vm16443_vm1, %v14274_v10  ;;  %v15158_v1 = vpop.permute.xlu0 %15157 }
 0x3c3   : > { %v17069_v62 = vpop.f32.mrb[29].mxu1  ;;  %14294 = vmatprep.subr.msk.bf16.mxu1 %vm16443_vm1, %v14292_v52  ;;  %v14280_v56 = vpack.c.bf16 %v15145_v21, %v15144_v4  ;;  %v17112_v4 = vld [vmem:[%s20213_s13 + $0x18] sm:$0xff] }
 0x3c4   : > { %v15153_v37 = vpop.permute.xlu1 %15152 }
 0x3c5   : > { %v15154_v30 = vunpack.i.l.bf16 %v15153_v37 }
 0x3c6   : > { %v17073_v9 = vpop.f32.mrb[30].mxu1  ;;  %14267 = vmatpush3.bf16.xpose.msk.msra.mxu0 %vm16443_vm1, %v14262_v61  ;;  %v15155_v61 = vunpack.i.h.bf16 %v15153_v37  ;;  %v15160_v37 = vunpack.i.h.bf16 %v15158_v1 }
 0x3c7   : > { %v12862_v10 = vpop.f32.mrb[8].mxu0  ;;  %v17082_v42 = vpop.f32.mrb[31].mxu1  ;;  %14282 = vmatprep.subr.msk.bf16.mxu0 %vm16443_vm1, %v14280_v56 }
 0x3c8   : > { %v17092_v25 = vadd.f32 %v12862_v10, %v17080_v50  ;;  %v1772_v48 = vpop.f32.mrb[9].mxu0  ;;  %v17128_v10 = vld [vmem:[%s20213_s13 + $0x10] sm:$0xff] }
 0x3c9   : > { %v17095_v60 = vadd.f32 %v17089_v36, %v1772_v48  ;;  %13071 = vmatmul.mubr.msk.f32.vlgmr.msra.gmra.mrb[60].mxu1 %vm490_vm0, %v16540_v15  ;;  %v17132_v48 = vadd.f32 %v17031_v51, %v17112_v4 }
 0x3ca   : > { %v4779_v21 = vsel %vm490_vm0, %v17092_v25, -inf  ;;  %13073 = vmatprep.mubr.msk.f32.mxu1 %vm490_vm0, %v16543_v3  ;;  %14297 = vmatpush3.bf16.xpose.msk.msra.mxu1 %vm16443_vm1, %v14292_v52  ;;  %v15159_v52 = vunpack.i.l.bf16 %v15158_v1  ;;  %v4731_v1 = vsel %vm490_vm0, %v17101_v31, -inf }
 0x3cb   : > { %4780 = vmax.xlane.f32.xlu1 %v4779_v21  ;;  %v12865_v33 = vpop.f32.mrb[10].mxu0  ;;  %v4776_v44 = vsel %vm490_vm0, %v17095_v60, -inf  ;;  %14300 = vmatprep.subr.msk.bf16.mxu1 %vm16443_vm1, %v14298_v39  ;;  %v14286_v21 = vpack.c.bf16 %v15155_v61, %v15154_v30  ;;  %v15168_v30 = vpop.permute.xlu0 %15167 }
 0x3cc   : > { %v17119_v0 = vadd.f32 %v12865_v33, %v17112_v4  ;;  %4777 = vmax.xlane.f32.xlu0 %v4776_v44  ;;  %v1782_v35 = vpop.f32.mrb[11].mxu0  ;;  %v15163_v33 = vpop.permute.xlu1 %15162  ;;  %v14316_v51 = vpack.c.bf16 %v15160_v37, %v15159_v52  ;;  %v17161_v37 = vadd.f32 %v17089_v36, %v17027_v43  ;;  %v15169_v13 = vunpack.i.l.bf16 %v15168_v30 }
 0x3cd   : > { %13057 = vmatmul.mubr.msk.f32.vlgmr.msra.gmra.mrb[36].mxu0 %vm490_vm0, %v16478_v2  ;;  %13074 = vmatmul.mubr.msk.f32.gmra.mrb[62].mxu1 %vm490_vm0, %v16560_v55  ;;  %v17143_v40 = vadd.f32 %v17128_v10, %v1782_v35  ;;  %v15165_v61 = vunpack.i.h.bf16 %v15163_v33  ;;  %v4737_v35 = vsel %vm490_vm0, %v17132_v48, -inf  ;;  %v17175_v43 = vadd.f32 %v17128_v10, %v17035_v7 }
 0x3ce   : > { %13059 = vmatprep.mubr.msk.f32.mxu0 %vm490_vm0, %v16481_v26  ;;  %14285 = vmatpush3.bf16.xpose.msk.msra.mxu0 %vm16443_vm1, %v14280_v56  ;;  %v4785_v44 = vsel %vm490_vm0, %v17119_v0, -inf  ;;  %v15164_v56 = vunpack.i.l.bf16 %v15163_v33 }
 0x3cf   : > { %4732 = vmax.xlane.f32.xlu1 %v4731_v1  ;;  %13098 = vmatprep.mubr.msk.f32.mxu1 %vm490_vm0, %v16573_v41  ;;  %v4782_v52 = vsel %vm490_vm0, %v17143_v40, -inf  ;;  %v4734_v7 = vsel %vm490_vm0, %v17175_v43, -inf }
 0x3d0   : > { %14288 = vmatprep.subr.msk.bf16.mxu0 %vm16443_vm1, %v14286_v21  ;;  %4786 = vmax.xlane.f32.xlu0 %v4785_v44  ;;  %v15170_v44 = vunpack.i.h.bf16 %v15168_v30  ;;  %v14304_v29 = vpack.c.bf16 %v15165_v61, %v15164_v56  ;;  %v15173_v23 = vpop.permute.xlu1 %15172 }
 0x3d1   : > { %13060 = vmatmul.mubr.msk.f32.gmra.mrb[38].mxu0 %vm490_vm0, %v16494_v18  ;;  %v15175_v56 = vunpack.i.h.bf16 %v15173_v23  ;;  %v15174_v30 = vunpack.i.l.bf16 %v15173_v23 }
 0x3d2   : > { %13084 = vmatprep.mubr.msk.f32.mxu0 %vm490_vm0, %v16370_v49  ;;  %v17155_v1 = vpop.f32.mrb[32].mxu1  ;;  %14303 = vmatpush3.bf16.xpose.msk.msra.mxu1 %vm16443_vm1, %v14298_v39  ;;  %v4728_v39 = vsel %vm490_vm0, %v17161_v37, -inf  ;;  %v14322_v61 = vpack.c.bf16 %v15170_v44, %v15169_v13 }
 0x3d3   : > { %4738 = vmax.xlane.f32.xlu1 %v4737_v35  ;;  %v17165_v33 = vpop.f32.mrb[33].mxu1  ;;  %14318 = vmatprep.subr.msk.bf16.mxu1 %vm16443_vm1, %v14316_v51  ;;  %v14310_v23 = vpack.c.bf16 %v15175_v56, %v15174_v30 }
 0x3d4   : > { %4783 = vmax.xlane.f32.xlu0 %v4782_v52  ;;  %v15183_v44 = vpop.permute.xlu1 %15182 }
 0x3d5   : > { %v15184_v56 = vunpack.i.l.bf16 %v15183_v44 }
 0x3d6   : > { %v17169_v24 = vpop.f32.mrb[34].mxu1  ;;  %14291 = vmatpush3.bf16.xpose.msk.msra.mxu0 %vm16443_vm1, %v14286_v21  ;;  %v15178_v21 = vpop.permute.xlu0 %15177 }
 0x3d7   : > { %14306 = vmatprep.subr.msk.bf16.mxu0 %vm16443_vm1, %v14304_v29  ;;  %v17181_v35 = vpop.f32.mrb[35].mxu1  ;;  %v15180_v13 = vunpack.i.h.bf16 %v15178_v21  ;;  %v15179_v52 = vunpack.i.l.bf16 %v15178_v21 }
 0x3d8   : > { %4729 = vmax.xlane.f32.xlu0 %v4728_v39  ;;  %v15185_v39 = vunpack.i.h.bf16 %v15183_v44  ;;  %v15193_v11 = vpop.permute.xlu1 %15192 }
 0x3d9   : > { %13099 = vmatmul.mubr.msk.f32.vlgmr.msra.gmra.mrb[64].mxu1 %vm490_vm0, %v16601_v58  ;;  %v15194_v44 = vunpack.i.l.bf16 %v15193_v11 }
 0x3da   : > { %13101 = vmatprep.mubr.msk.f32.mxu1 %vm490_vm0, %v16604_v59  ;;  %14321 = vmatpush3.bf16.xpose.msk.msra.mxu1 %vm16443_vm1, %v14316_v51  ;;  %v14340_v51 = vpack.c.bf16 %v15180_v13, %v15179_v52  ;;  %v15188_v30 = vpop.permute.xlu0 %15187  ;;  %v15195_v52 = vunpack.i.h.bf16 %v15193_v11 }
 0x3db   : > { %14324 = vmatprep.subr.msk.bf16.mxu1 %vm16443_vm1, %v14322_v61  ;;  %v15189_v21 = vunpack.i.l.bf16 %v15188_v30 }
 0x3dc   : > { %4735 = vmax.xlane.f32.xlu0 %v4734_v7  ;;  %v14328_v7 = vpack.c.bf16 %v15185_v39, %v15184_v56 }
 0x3dd   : > { %13085 = vmatmul.mubr.msk.f32.vlgmr.msra.gmra.mrb[40].mxu0 %vm490_vm0, %v16546_v27  ;;  %13102 = vmatmul.mubr.msk.f32.gmra.mrb[66].mxu1 %vm490_vm0, %v16628_v46 }
 0x3de   : > { %13087 = vmatprep.mubr.msk.f32.mxu0 %vm490_vm0, %v16550_v14  ;;  %14309 = vmatpush3.bf16.xpose.msk.msra.mxu0 %vm16443_vm1, %v14304_v29  ;;  %v15190_v29 = vunpack.i.h.bf16 %v15188_v30 }
 0x3df   : > { %13126 = vmatprep.mubr.msk.f32.mxu1 %vm490_vm0, %v16497_v22  ;;  %14312 = vmatprep.subr.msk.bf16.mxu0 %vm16443_vm1, %v14310_v23  ;;  %v15203_v11 = vpop.permute.xlu1 %15202 }
 0x3e0   : > { %v14346_v13 = vpack.c.bf16 %v15190_v29, %v15189_v21  ;;  %v15205_v30 = vunpack.i.h.bf16 %v15203_v11  ;;  %v15204_v29 = vunpack.i.l.bf16 %v15203_v11 }
 0x3e1   : > { %13088 = vmatmul.mubr.msk.f32.gmra.mrb[42].mxu0 %vm490_vm0, %v16567_v34 }
 0x3e2   : > { %13112 = vmatprep.mubr.msk.f32.mxu0 %vm490_vm0, %v16300_v6  ;;  %14327 = vmatpush3.bf16.xpose.msk.msra.mxu1 %vm16443_vm1, %v14322_v61  ;;  %v15198_v61 = vpop.permute.xlu0 %15197 }
 0x3e3   : > { %14342 = vmatprep.subr.msk.bf16.mxu1 %vm16443_vm1, %v14340_v51  ;;  %v15200_v39 = vunpack.i.h.bf16 %v15198_v61  ;;  %v15199_v56 = vunpack.i.l.bf16 %v15198_v61  ;;  %v15213_v61 = vpop.permute.xlu1 %15212 }
 0x3e4   : > { %v15214_v11 = vunpack.i.l.bf16 %v15213_v61 }
 0x3e6   : > { %14315 = vmatpush3.bf16.xpose.msk.msra.mxu0 %vm16443_vm1, %v14310_v23  ;;  %v14334_v23 = vpack.c.bf16 %v15195_v52, %v15194_v44  ;;  %v15208_v21 = vpop.permute.xlu0 %15207 }
 0x3e7   : > { %14330 = vmatprep.subr.msk.bf16.mxu0 %vm16443_vm1, %v14328_v7  ;;  %v15210_v52 = vunpack.i.h.bf16 %v15208_v21  ;;  %v15209_v44 = vunpack.i.l.bf16 %v15208_v21  ;;  %v15223_v21 = vpop.permute.xlu1 %15222 }
 0x3e9   : > { %13127 = vmatmul.mubr.msk.f32.vlgmr.msra.gmra.mrb[68].mxu1 %vm490_vm0, %v16540_v15 }
 0x3ea   : > { %13129 = vmatprep.mubr.msk.f32.mxu1 %vm490_vm0, %v16543_v3  ;;  %14345 = vmatpush3.bf16.xpose.msk.msra.mxu1 %vm16443_vm1, %v14340_v51  ;;  %v14364_v51 = vpack.c.bf16 %v15200_v39, %v15199_v56  ;;  %v14370_v39 = vpack.c.bf16 %v15210_v52, %v15209_v44  ;;  %v15215_v56 = vunpack.i.h.bf16 %v15213_v61  ;;  %v15225_v52 = vunpack.i.h.bf16 %v15223_v21 }
 0x3eb   : > { %14348 = vmatprep.subr.msk.bf16.mxu1 %vm16443_vm1, %v14346_v13  ;;  %v15224_v44 = vunpack.i.l.bf16 %v15223_v21 }
 0x3ed   : > { %13113 = vmatmul.mubr.msk.f32.vlgmr.msra.gmra.mrb[44].mxu0 %vm490_vm0, %v16478_v2  ;;  %13130 = vmatmul.mubr.msk.f32.gmra.mrb[70].mxu1 %vm490_vm0, %v16560_v55 }
 0x3ee   : > { %13115 = vmatprep.mubr.msk.f32.mxu0 %vm490_vm0, %v16481_v26  ;;  %14333 = vmatpush3.bf16.xpose.msk.msra.mxu0 %vm16443_vm1, %v14328_v7  ;;  %v14352_v7 = vpack.c.bf16 %v15205_v30, %v15204_v29 }
 0x3ef   : > { %13154 = vmatprep.mubr.msk.f32.mxu1 %vm490_vm0, %v16573_v41  ;;  %14336 = vmatprep.subr.msk.bf16.mxu0 %vm16443_vm1, %v14334_v23 }
 0x3f1   : > { %13116 = vmatmul.mubr.msk.f32.gmra.mrb[46].mxu0 %vm490_vm0, %v16494_v18 }
 0x3f2   : > { %13140 = vmatprep.mubr.msk.f32.mxu0 %vm490_vm0, %v16370_v49  ;;  %14351 = vmatpush3.bf16.xpose.msk.msra.mxu1 %vm16443_vm1, %v14346_v13  ;;  %v15218_v13 = vpop.permute.xlu0 %15217 }
 0x3f3   : > { %14366 = vmatprep.subr.msk.bf16.mxu1 %vm16443_vm1, %v14364_v51  ;;  %v15220_v30 = vunpack.i.h.bf16 %v15218_v13  ;;  %v15219_v29 = vunpack.i.l.bf16 %v15218_v13 }
 0x3f6   : > { %14339 = vmatpush3.bf16.xpose.msk.msra.mxu0 %vm16443_vm1, %v14334_v23  ;;  %v14358_v23 = vpack.c.bf16 %v15215_v56, %v15214_v11  ;;  %v15228_v61 = vpop.permute.xlu0 %15227  ;;  %v15233_v11 = vpop.permute.xlu1 %15232 }
 0x3f7   : > { %14354 = vmatprep.subr.msk.bf16.mxu0 %vm16443_vm1, %v14352_v7  ;;  %v15229_v56 = vunpack.i.l.bf16 %v15228_v61 }
 0x3f9   : > { %13155 = vmatmul.mubr.msk.f32.vlgmr.msra.gmra.mrb[72].mxu1 %vm490_vm0, %v16601_v58 }
 0x3fa   : > { %13157 = vmatprep.mubr.msk.f32.mxu1 %vm490_vm0, %v16604_v59  ;;  %14369 = vmatpush3.bf16.xpose.msk.msra.mxu1 %vm16443_vm1, %v14364_v51  ;;  %v14388_v51 = vpack.c.bf16 %v15220_v30, %v15219_v29  ;;  %v15235_v30 = vunpack.i.h.bf16 %v15233_v11  ;;  %v15234_v29 = vunpack.i.l.bf16 %v15233_v11  ;;  %v17323_v21 = vpop.permute.xlu0 %6132  ;;  %v6114_v11 = vld [vmem:[%s20202_s2 + $0x10] sm:$0xff] }
 0x3fb   : > { %14372 = vmatprep.subr.msk.bf16.mxu1 %vm16443_vm1, %v14370_v39  ;;  %20361 = vst [vmem:[#allocation17_spill] sm:$0xff] %v17323_v21 }
 0x3fd   : > { %13141 = vmatmul.mubr.msk.f32.vlgmr.msra.gmra.mrb[48].mxu0 %vm490_vm0, %v16546_v27  ;;  %13158 = vmatmul.mubr.msk.f32.gmra.mrb[74].mxu1 %vm490_vm0, %v16628_v46 }
 0x3fe   : > { %13143 = vmatprep.mubr.msk.f32.mxu0 %vm490_vm0, %v16550_v14  ;;  %14357 = vmatpush3.bf16.xpose.msk.msra.mxu0 %vm16443_vm1, %v14352_v7  ;;  %v15230_v7 = vunpack.i.h.bf16 %v15228_v61 }
 0x3ff   : > { %13182 = vmatprep.mubr.msk.f32.mxu1 %vm490_vm0, %v16497_v22  ;;  %14360 = vmatprep.subr.msk.bf16.mxu0 %vm16443_vm1, %v14358_v23  ;;  %v14376_v22 = vpack.c.bf16 %v15225_v52, %v15224_v44  ;;  %v11696_v52 = vld [vmem:[%s20202_s2 + $0x30] sm:$0xff] }
 0x400   : > { %v14394_v13 = vpack.c.bf16 %v15230_v7, %v15229_v56 }
 0x401   : > { %13144 = vmatmul.mubr.msk.f32.gmra.mrb[50].mxu0 %vm490_vm0, %v16567_v34 }
 0x402   : > { %13168 = vmatprep.mubr.msk.f32.mxu0 %vm490_vm0, %v16300_v6  ;;  %14375 = vmatpush3.bf16.xpose.msk.msra.mxu1 %vm16443_vm1, %v14370_v39  ;;  %v11694_v6 = vld [vmem:[%s20202_s2 + $0x20] sm:$0xff]  ;;  %v11695_v39 = vld [vmem:[%s20202_s2 + $0x28] sm:$0xff] }
 0x403   : > { %14390 = vmatprep.subr.msk.bf16.mxu1 %vm16443_vm1, %v14388_v51 }
 0x406   : > { %14363 = vmatpush3.bf16.xpose.msk.msra.mxu0 %vm16443_vm1, %v14358_v23  ;;  %v14382_v23 = vpack.c.bf16 %v15235_v30, %v15234_v29  ;;  %v17353_v30 = vpop.permute.xlu0 %6136 }
 0x407   : > { %14378 = vmatprep.subr.msk.bf16.mxu0 %vm16443_vm1, %v14376_v22  ;;  %20368 = vst [vmem:[#allocation24_spill] sm:$0xff] %v17353_v30 }
 0x409   : > { %13183 = vmatmul.mubr.msk.f32.vlgmr.msra.gmra.mrb[76].mxu1 %vm490_vm0, %v16540_v15  ;;  %v14408_v15 = vpack.c.bf16 %v11695_v39, %v11694_v6 }
 0x40a   : > { %13185 = vmatprep.mubr.msk.f32.mxu1 %vm490_vm0, %v16543_v3  ;;  %14393 = vmatpush3.bf16.xpose.msk.msra.mxu1 %vm16443_vm1, %v14388_v51  ;;  %v17325_v51 = vpop.permute.xlu1 %6134 }
 0x40b   : > { %14396 = vmatprep.subr.msk.bf16.mxu1 %vm16443_vm1, %v14394_v13  ;;  %20362 = vst [vmem:[#allocation18_spill] sm:$0xff] %v17325_v51 }
 0x40d   : > { %13169 = vmatmul.mubr.msk.f32.vlgmr.msra.gmra.mrb[52].mxu0 %vm490_vm0, %v16478_v2  ;;  %13186 = vmatmul.mubr.msk.f32.gmra.mrb[78].mxu1 %vm490_vm0, %v16560_v55  ;;  %v6112_v2 = vld [vmem:[%s20202_s2] sm:$0xff] }
 0x40e   : > { %13171 = vmatprep.mubr.msk.f32.mxu0 %vm490_vm0, %v16481_v26  ;;  %14381 = vmatpush3.bf16.xpose.msk.msra.mxu0 %vm16443_vm1, %v14376_v22  ;;  %v6113_v26 = vld [vmem:[%s20202_s2 + $0x8] sm:$0xff]  ;;  %v17359_v32 = vpop.permute.xlu1 %6138 }
 0x40f   : > { %13210 = vmatprep.mubr.msk.f32.mxu1 %vm490_vm0, %v16573_v41  ;;  %14384 = vmatprep.subr.msk.bf16.mxu0 %vm16443_vm1, %v14382_v23  ;;  %v14400_v41 = vpack.c.bf16 %v6113_v26, %v6112_v2  ;;  %20370 = vst [vmem:[#allocation26_spill] sm:$0xff] %v17359_v32 }
 0x410   : > { %v17307_v3 = vpop.f32.mrb[36].mxu1 }
 0x411   : > { %20359 = vst [vmem:[#allocation15_spill] sm:$0xff] %v17307_v3  ;;  %13172 = vmatmul.mubr.msk.f32.gmra.mrb[54].mxu0 %vm490_vm0, %v16494_v18  ;;  %v17317_v55 = vpop.f32.mrb[37].mxu1  ;;  %v11697_v18 = vld [vmem:[%s20202_s2 + $0x38] sm:$0xff] }
 0x412   : > { %20360 = vst [vmem:[#allocation16_spill] sm:$0xff] %v17317_v55  ;;  %13196 = vmatprep.mubr.msk.f32.mxu0 %vm490_vm0, %v16370_v49  ;;  %14399 = vmatpush3.bf16.xpose.msk.msra.mxu1 %vm16443_vm1, %v14394_v13  ;;  %v14412_v7 = vpack.c.bf16 %v11697_v18, %v11696_v52  ;;  %v6115_v13 = vld [vmem:[%s20202_s2 + $0x18] sm:$0xff]  ;;  %v17377_v39 = vpop.permute.xlu1 %6142 }
 0x413   : > { %14409 = vmatprep.subr.bf16.mxu1 %v14408_v15  ;;  %20374 = vst [vmem:[#allocation30_spill] sm:$0xff] %v17377_v39 }
 0x415   : > { %v17333_v44 = vpop.f32.mrb[12].mxu0  ;;  %v17335_v49 = vpop.f32.mrb[38].mxu1 }
 0x416   : > { %20363 = vst [vmem:[#allocation19_spill] sm:$0xff] %v17333_v44  ;;  %20364 = vst [vmem:[#allocation20_spill] sm:$0xff] %v17335_v49  ;;  %v17337_v61 = vpop.f32.mrb[13].mxu0  ;;  %v17339_v22 = vpop.f32.mrb[39].mxu1  ;;  %14387 = vmatpush3.bf16.xpose.msk.msra.mxu0 %vm16443_vm1, %v14382_v23 }
 0x417   : > { %20365 = vst [vmem:[#allocation21_spill] sm:$0xff] %v17337_v61  ;;  %20366 = vst [vmem:[#allocation22_spill] sm:$0xff] %v17339_v22  ;;  %14401 = vmatprep.subr.bf16.mxu0 %v14400_v41  ;;  %v17403_v2 = vpop.permute.xlu1 %6146 }
 0x418   : > { %20378 = vst [vmem:[#allocation34_spill] sm:$0xff] %v17403_v2 }
 0x419   : > { %v17343_v56 = vpop.f32.mrb[14].mxu0  ;;  %13211 = vmatmul.mubr.msk.f32.vlgmr.msra.gmra.mrb[80].mxu1 %vm490_vm0, %v16601_v58  ;;  %v14404_v58 = vpack.c.bf16 %v6115_v13, %v6114_v11 }
 0x41a   : > { %20367 = vst [vmem:[#allocation23_spill] sm:$0xff] %v17343_v56  ;;  %v17355_v29 = vpop.f32.mrb[15].mxu0  ;;  %13213 = vmatprep.mubr.msk.f32.mxu1 %vm490_vm0, %v16604_v59  ;;  %14411 = vmatpush3.bf16.msra.mxu1 %v14408_v15  ;;  %v17369_v59 = vpop.permute.xlu0 %6140 }
 0x41b   : > { %20369 = vst [vmem:[#allocation25_spill] sm:$0xff] %v17355_v29  ;;  %14413 = vmatprep.subr.bf16.mxu1 %v14412_v7  ;;  %20371 = vst [vmem:[#allocation27_spill] sm:$0xff] %v17369_v59  ;;  %v17421_v18 = vpop.permute.xlu1 %6150 }
 0x41c   : > { %20380 = vst [vmem:[#allocation36_spill] sm:$0xff] %v17421_v18 }
 0x41d   : > { %13197 = vmatmul.mubr.msk.f32.vlgmr.msra.gmra.mrb[56].mxu0 %vm490_vm0, %v16546_v27  ;;  %13214 = vmatmul.mubr.msk.f32.gmra.mrb[82].mxu1 %vm490_vm0, %v16628_v46 }
 0x41e   : > { %13199 = vmatprep.mubr.msk.f32.mxu0 %vm490_vm0, %v16550_v14  ;;  %14403 = vmatpush3.bf16.msra.mxu0 %v14400_v41  ;;  %v17393_v23 = vpop.permute.xlu0 %6144 }
 0x41f   : > { %14415 = vmatpush3.bf16.msra.mxu1 %v14412_v7  ;;  %13256 = vmatprep.mubr.msk.f32.mxu1 %vm490_vm0, %v17323_v21  ;;  %20377 = vst [vmem:[#allocation33_spill] sm:$0xff] %v17393_v23 }
 0x420   : > { %v17371_v6 = vpop.f32.mrb[40].mxu1  ;;  %14405 = vmatprep.subr.bf16.mxu0 %v14404_v58 }
 0x421   : > { %20372 = vst [vmem:[#allocation28_spill] sm:$0xff] %v17371_v6  ;;  %13200 = vmatmul.mubr.msk.f32.gmra.mrb[58].mxu0 %vm490_vm0, %v16567_v34  ;;  %v17375_v27 = vpop.f32.mrb[41].mxu1 }
 0x422   : > { %20373 = vst [vmem:[#allocation29_spill] sm:$0xff] %v17375_v27  ;;  %13257 = vmatmul.mubr.msk.f32.vlgmr.msra.gmra.mrb[84].mxu1 %vm490_vm0, %v17325_v51  ;;  %14407 = vmatpush3.bf16.msra.mxu0 %v14404_v58  ;;  %v17417_v52 = vpop.permute.xlu0 %6148  ;;  %v17443_v58 = vpop.permute.xlu1 %6154 }
 0x423   : > { %13224 = vmatprep.mubr.msk.f32.mxu0 %vm490_vm0, %v17323_v21  ;;  %13259 = vmatprep.mubr.msk.f32.mxu1 %vm490_vm0, %v17353_v30  ;;  %20379 = vst [vmem:[#allocation35_spill] sm:$0xff] %v17417_v52  ;;  %20384 = vst [vmem:[#allocation40_spill] sm:$0xff] %v17443_v58 }
 0x424   : > { %v17385_v14 = vpop.f32.mrb[42].mxu1 }
 0x425   : > { %20375 = vst [vmem:[#allocation31_spill] sm:$0xff] %v17385_v14  ;;  %v17387_v46 = vpop.f32.mrb[16].mxu0  ;;  %13225 = vmatmul.mubr.msk.f32.vlgmr.msra.gmra.mrb[60].mxu0 %vm490_vm0, %v17325_v51  ;;  %v17391_v34 = vpop.f32.mrb[43].mxu1 }
 0x426   : > { %20376 = vst [vmem:[#allocation32_spill] sm:$0xff] %v17391_v34  ;;  %13260 = vmatmul.mubr.msk.f32.gmra.mrb[86].mxu1 %vm490_vm0, %v17359_v32  ;;  %v17397_v15 = vpop.f32.mrb[17].mxu0  ;;  %13227 = vmatprep.mubr.msk.f32.mxu0 %vm490_vm0, %v17353_v30  ;;  %v17435_v13 = vpop.permute.xlu0 %6152 }
 0x427   : > { %13262 = vmatprep.mubr.msk.f32.mxu1 %vm490_vm0, %v17369_v59  ;;  %20383 = vst [vmem:[#allocation39_spill] sm:$0xff] %v17435_v13 }
 0x429   : > { %v17405_v26 = vpop.f32.mrb[18].mxu0  ;;  %13228 = vmatmul.mubr.msk.f32.gmra.mrb[62].mxu0 %vm490_vm0, %v17359_v32 }
 0x42a   : > { %13263 = vmatmul.mubr.msk.f32.gmra.mrb[88].mxu1 %vm490_vm0, %v17377_v39  ;;  %v17411_v41 = vpop.f32.mrb[19].mxu0  ;;  %13230 = vmatprep.mubr.msk.f32.mxu0 %vm490_vm0, %v17369_v59 }
 0x42b   : > { %13265 = vmatprep.mubr.msk.f32.mxu1 %vm490_vm0, %v17393_v23 }
 0x42d   : > { %13231 = vmatmul.mubr.msk.f32.gmra.mrb[64].mxu0 %vm490_vm0, %v17377_v39 }
 0x42e   : > { %13266 = vmatmul.mubr.msk.f32.gmra.mrb[90].mxu1 %vm490_vm0, %v17403_v2  ;;  %13233 = vmatprep.mubr.msk.f32.mxu0 %vm490_vm0, %v17393_v23 }
 0x42f   : > { %13268 = vmatprep.mubr.msk.f32.mxu1 %vm490_vm0, %v17417_v52 }
 0x430   : > { %v17429_v7 = vpop.f32.mrb[44].mxu1 }
 0x431   : > { %20381 = vst [vmem:[#allocation37_spill] sm:$0xff] %v17429_v7  ;;  %13234 = vmatmul.mubr.msk.f32.gmra.mrb[66].mxu0 %vm490_vm0, %v17403_v2  ;;  %v17433_v11 = vpop.f32.mrb[45].mxu1 }
 0x432   : > { %20382 = vst [vmem:[#allocation38_spill] sm:$0xff] %v17433_v11  ;;  %13269 = vmatmul.mubr.msk.f32.gmra.mrb[92].mxu1 %vm490_vm0, %v17421_v18  ;;  %13236 = vmatprep.mubr.msk.f32.mxu0 %vm490_vm0, %v17417_v52 }
 0x433   : > { %13271 = vmatprep.mubr.msk.f32.mxu1 %vm490_vm0, %v17435_v13 }
 0x434   : > { %v17445_v14 = vpop.f32.mrb[46].mxu1 }
 0x435   : > { %20385 = vst [vmem:[#allocation41_spill] sm:$0xff] %v17445_v14  ;;  %v17447_v7 = vpop.f32.mrb[20].mxu0  ;;  %13237 = vmatmul.mubr.msk.f32.gmra.mrb[68].mxu0 %vm490_vm0, %v17421_v18  ;;  %v17451_v11 = vpop.f32.mrb[47].mxu1 }
 0x436   : > { %20386 = vst [vmem:[#allocation42_spill] sm:$0xff] %v17447_v7  ;;  %20387 = vst [vmem:[#allocation43_spill] sm:$0xff] %v17451_v11  ;;  %13272 = vmatmul.mubr.msk.f32.gmra.mrb[94].mxu1 %vm490_vm0, %v17443_v58  ;;  %v17455_v34 = vpop.f32.mrb[21].mxu0  ;;  %13239 = vmatprep.mubr.msk.f32.mxu0 %vm490_vm0, %v17435_v13 }
 0x437   : > { %20388 = vst [vmem:[#allocation44_spill] sm:$0xff] %v17455_v34 }
 0x439   : > { %v17459_v6 = vpop.f32.mrb[22].mxu0  ;;  %13240 = vmatmul.mubr.msk.f32.gmra.mrb[70].mxu0 %vm490_vm0, %v17443_v58 }
 0x43a   : > { %20389 = vst [vmem:[#allocation45_spill] sm:$0xff] %v17459_v6  ;;  %v17463_v14 = vpop.f32.mrb[23].mxu0 }
 0x43b   : > { %20390 = vst [vmem:[#allocation46_spill] sm:$0xff] %v17463_v14 }
 0x441   : > { %v17465_v7 = vpop.f32.mrb[48].mxu1 }
 0x442   : > { %20391 = vst [vmem:[#allocation47_spill] sm:$0xff] %v17465_v7  ;;  %v17467_v27 = vpop.f32.mrb[49].mxu1 }
 0x443   : > { %20392 = vst [vmem:[#allocation48_spill] sm:$0xff] %v17467_v27 }
 0x445   : > { %v17469_v11 = vpop.f32.mrb[24].mxu0  ;;  %v17471_v49 = vpop.f32.mrb[50].mxu1 }
 0x446   : > { %20393 = vst [vmem:[#allocation49_spill] sm:$0xff] %v17469_v11  ;;  %20394 = vst [vmem:[#allocation50_spill] sm:$0xff] %v17471_v49  ;;  %v17473_v22 = vpop.f32.mrb[25].mxu0  ;;  %v17475_v34 = vpop.f32.mrb[51].mxu1 }
 0x447   : > { %20395 = vst [vmem:[#allocation51_spill] sm:$0xff] %v17473_v22  ;;  %20396 = vst [vmem:[#allocation52_spill] sm:$0xff] %v17475_v34 }
 0x449   : > { %v17477_v3 = vpop.f32.mrb[26].mxu0 }
 0x44a   : > { %20397 = vst [vmem:[#allocation53_spill] sm:$0xff] %v17477_v3  ;;  %v17479_v6 = vpop.f32.mrb[27].mxu0 }
 0x44b   : > { %20398 = vst [vmem:[#allocation54_spill] sm:$0xff] %v17479_v6 }
 0x451   : > { %v17481_v56 = vpop.f32.mrb[52].mxu1 }
 0x452   : > { %20399 = vst [vmem:[#allocation55_spill] sm:$0xff] %v17481_v56  ;;  %v17483_v55 = vpop.f32.mrb[53].mxu1 }
 0x453   : > { %20400 = vst [vmem:[#allocation56_spill] sm:$0xff] %v17483_v55 }
 0x455   : > { %v17485_v14 = vpop.f32.mrb[28].mxu0  ;;  %v17487_v7 = vpop.f32.mrb[54].mxu1 }
 0x456   : > { %20401 = vst [vmem:[#allocation57_spill] sm:$0xff] %v17485_v14  ;;  %20402 = vst [vmem:[#allocation58_spill] sm:$0xff] %v17487_v7  ;;  %v17489_v27 = vpop.f32.mrb[29].mxu0  ;;  %v17491_v11 = vpop.f32.mrb[55].mxu1 }
 0x457   : > { %20403 = vst [vmem:[#allocation59_spill] sm:$0xff] %v17489_v27  ;;  %20404 = vst [vmem:[#allocation60_spill] sm:$0xff] %v17491_v11 }
 0x458   : > { %v4781_v49 = vpop.xlane.xlu1 %4780 }
 0x459   : > { %v4778_v22 = vpop.xlane.xlu0 %4777  ;;  %v17493_v29 = vpop.f32.mrb[30].mxu0  ;;  %v5113_v55 = vsub.f32 %v17092_v25, %v4781_v49 }
 0x45a   : > { %20405 = vst [vmem:[#allocation61_spill] sm:$0xff] %v17493_v29  ;;  %v17495_v34 = vpop.f32.mrb[31].mxu0 }
 0x45b   : > { %20406 = vst [vmem:[#allocation62_spill] sm:$0xff] %v17495_v34  ;;  %v5266_v16 = vmul.f32 1.442695, %v5113_v55 }
 0x45c   : > { %v4733_v3 = vpop.xlane.xlu1 %4732 }
 0x45d   : > { %v5097_v6 = vsub.f32 %v17101_v31, %v4733_v3  ;;  %v4787_v56 = vpop.xlane.xlu0 %4786 }
 0x45e   : > { %v5115_v29 = vsub.f32 %v17119_v0, %v4787_v56 }
 0x45f   : > { %v5234_v44 = vmul.f32 1.442695, %v5097_v6  ;;  %v5112_v6 = vsub.f32 %v17095_v60, %v4778_v22 }
 0x460   : > { %v4739_v14 = vpop.xlane.xlu1 %4738 }
 0x461   : > { %15268 = vpow2.f32 %v5234_v44  ;;  %v5099_v7 = vsub.f32 %v17132_v48, %v4739_v14  ;;  %v4784_v27 = vpop.xlane.xlu0 %4783  ;;  %v17500_v61 = vpop.f32.mrb[56].mxu1  ;;  %v5270_v48 = vmul.f32 1.442695, %v5115_v29 }
 0x462   : > { %20407 = vst [vmem:[#allocation63_spill] sm:$0xff] %v17500_v61  ;;  %v17502_v11 = vpop.f32.mrb[57].mxu1 }
 0x463   : > { %20408 = vst [vmem:[#allocation64_spill] sm:$0xff] %v17502_v11  ;;  %v5238_v34 = vmul.f32 1.442695, %v5099_v7 }
 0x465   : > { %15270 = vpow2.f32 %v5238_v34  ;;  %v4730_v20 = vpop.xlane.xlu0 %4729  ;;  %v17505_v31 = vpop.f32.mrb[32].mxu0 }
 0x466   : > { %20409 = vst [vmem:[#allocation65_spill] sm:$0xff] %v17505_v31  ;;  %v5096_v25 = vsub.f32 %v17161_v37, %v4730_v20  ;;  %v17508_v3 = vpop.f32.mrb[58].mxu1  ;;  %v17510_v44 = vpop.f32.mrb[33].mxu0  ;;  %15272 = vpow2.f32 %v5266_v16  ;;  %v5264_v37 = vmul.f32 1.442695, %v5112_v6  ;;  %v5114_v16 = vsub.f32 %v17143_v40, %v4784_v27 }
 0x467   : > { %20410 = vst [vmem:[#allocation66_spill] sm:$0xff] %v17508_v3  ;;  %20411 = vst [vmem:[#allocation67_spill] sm:$0xff] %v17510_v44  ;;  %v17512_v49 = vpop.f32.mrb[59].mxu1  ;;  %v20490_v44 = vld [vmem:[#allocation28_spill] sm:$0xff] }
 0x468   : > { %20412 = vst [vmem:[#allocation68_spill] sm:$0xff] %v17512_v49  ;;  %v5232_v55 = vmul.f32 1.442695, %v5096_v25  ;;  %v5268_v22 = vmul.f32 1.442695, %v5114_v16 }
 0x469   : > { %v4736_v14 = vpop.xlane.xlu0 %4735  ;;  %v17515_v0 = vpop.f32.mrb[34].mxu0 }
 0x46a   : > { %20413 = vst [vmem:[#allocation69_spill] sm:$0xff] %v17515_v0  ;;  %15274 = vpow2.f32 %v5232_v55  ;;  %v5098_v56 = vsub.f32 %v17175_v43, %v4736_v14  ;;  %v17518_v34 = vpop.f32.mrb[35].mxu0 }
 0x46b   : > { %20414 = vst [vmem:[#allocation70_spill] sm:$0xff] %v17518_v34  ;;  %v17520_v20 = vpop.eup %15268  ;;  %15276 = vpow2.f32 %v5270_v48 }
 0x46c   : > { %v5236_v29 = vmul.f32 1.442695, %v5098_v56  ;;  %v5499_v7 = vsel %vm490_vm0, %v17520_v20, 0.0 }
 0x46d   : > { %5500 = vadd.xlane.f32.xlu1 %v5499_v7 }
 0x46e   : > { %15278 = vpow2.f32 %v5236_v29 }
 0x46f   : > { %v17525_v60 = vpop.eup %15270  ;;  %15280 = vpow2.f32 %v5264_v37 }
 0x470   : > { %v5505_v43 = vsel %vm490_vm0, %v17525_v60, 0.0  ;;  %v17529_v25 = vpop.eup %15272  ;;  %15282 = vpow2.f32 %v5268_v22 }
 0x471   : > { %5506 = vadd.xlane.f32.xlu1 %v5505_v43  ;;  %v5547_v40 = vsel %vm490_vm0, %v17529_v25, 0.0 }
 0x474   : > { %v17531_v48 = vpop.eup %15274 }
 0x475   : > { %v17535_v27 = vpop.eup %15276  ;;  %5548 = vadd.xlane.f32.xlu1 %v5547_v40  ;;  %v5496_v6 = vsel %vm490_vm0, %v17531_v48, 0.0 }
 0x476   : > { %5497 = vadd.xlane.f32.xlu0 %v5496_v6  ;;  %v5553_v14 = vsel %vm490_vm0, %v17535_v27, 0.0 }
 0x478   : > { %v17539_v55 = vpop.eup %15278 }
 0x479   : > { %5554 = vadd.xlane.f32.xlu1 %v5553_v14  ;;  %v5502_v56 = vsel %vm490_vm0, %v17539_v55, 0.0  ;;  %v17545_v37 = vpop.eup %15280 }
 0x47a   : > { %5503 = vadd.xlane.f32.xlu0 %v5502_v56  ;;  %v5544_v16 = vsel %vm490_vm0, %v17545_v37, 0.0  ;;  %v17549_v29 = vpop.eup %15282 }
 0x47b   : > { %v5550_v7 = vsel %vm490_vm0, %v17549_v29, 0.0 }
 0x47e   : > { %5545 = vadd.xlane.f32.xlu0 %v5544_v16 }
 0x482   : > { %5551 = vadd.xlane.f32.xlu0 %v5550_v7 }
 0x48a   : > { %6158 = vrot.lane.b32.xlu1 %v16392_v57, %s15906_s15 }
 0x48e   : > { %6160 = vrot.lane.b32.xlu1 %v16410_v47, %s15906_s15 }
 0x492   : > { %6162 = vrot.lane.b32.xlu1 %v16408_v63, %s15906_s15 }
 0x498   : > { %6156 = vrot.lane.b32.xlu0 %v16394_v17, %s15906_s15  ;;  %s15907_s15 = smov [#allocation2]  }
 0x49c   : > { %v17561_v22 = vpop.f32.mrb[60].mxu1 }
 0x49d   : > { %20415 = vst [vmem:[#allocation71_spill] sm:$0xff] %v17561_v22  ;;  %v17563_v43 = vpop.f32.mrb[61].mxu1  ;;  %v17587_v22 = vadd.f32 %v17387_v46, %v17080_v50 }
 0x49e   : > { %20416 = vst [vmem:[#allocation72_spill] sm:$0xff] %v17563_v43 }
 0x4a0   : > { %v17565_v40 = vpop.f32.mrb[36].mxu0  ;;  %v17567_v6 = vpop.f32.mrb[62].mxu1 }
 0x4a1   : > { %20417 = vst [vmem:[#allocation73_spill] sm:$0xff] %v17565_v40  ;;  %20418 = vst [vmem:[#allocation74_spill] sm:$0xff] %v17567_v6  ;;  %v17569_v14 = vpop.f32.mrb[37].mxu0  ;;  %v17571_v57 = vpop.f32.mrb[63].mxu1 }
 0x4a2   : > { %20419 = vst [vmem:[#allocation75_spill] sm:$0xff] %v17569_v14  ;;  %20420 = vst [vmem:[#allocation76_spill] sm:$0xff] %v17571_v57  ;;  %v17595_v57 = vadd.f32 %v17089_v36, %v17397_v15  ;;  %v17611_v36 = vadd.f32 %v17405_v26, %v17112_v4 }
 0x4a4   : > { %v17573_v56 = vpop.f32.mrb[38].mxu0  ;;  %v4824_v50 = vsel %vm490_vm0, %v17595_v57, -inf }
 0x4a5   : > { %20421 = vst [vmem:[#allocation77_spill] sm:$0xff] %v17573_v56  ;;  %v17575_v47 = vpop.f32.mrb[39].mxu0 }
 0x4a6   : > { %20422 = vst [vmem:[#allocation78_spill] sm:$0xff] %v17575_v47 }
 0x4ac   : > { %v17577_v63 = vpop.f32.mrb[64].mxu1 }
 0x4ad   : > { %20423 = vst [vmem:[#allocation79_spill] sm:$0xff] %v17577_v63  ;;  %v17579_v16 = vpop.f32.mrb[65].mxu1  ;;  %v4827_v63 = vsel %vm490_vm0, %v17587_v22, -inf }
 0x4ae   : > { %20424 = vst [vmem:[#allocation80_spill] sm:$0xff] %v17579_v16 }
 0x4b0   : > { %v17581_v17 = vpop.f32.mrb[40].mxu0  ;;  %v17583_v7 = vpop.f32.mrb[66].mxu1 }
 0x4b1   : > { %20425 = vst [vmem:[#allocation81_spill] sm:$0xff] %v17581_v17  ;;  %20426 = vst [vmem:[#allocation82_spill] sm:$0xff] %v17583_v7  ;;  %v17589_v6 = vpop.f32.mrb[41].mxu0  ;;  %v17591_v43 = vpop.f32.mrb[67].mxu1  ;;  %v17605_v7 = vadd.f32 %v17128_v10, %v17411_v41  ;;  %v4833_v10 = vsel %vm490_vm0, %v17611_v36, -inf }
 0x4b2   : > { %20427 = vst [vmem:[#allocation83_spill] sm:$0xff] %v17589_v6  ;;  %20428 = vst [vmem:[#allocation84_spill] sm:$0xff] %v17591_v43 }
 0x4b3   : > { %v4830_v46 = vsel %vm490_vm0, %v17605_v7, -inf }
 0x4b4   : > { %v17597_v56 = vpop.f32.mrb[42].mxu0 }
 0x4b5   : > { %20429 = vst [vmem:[#allocation85_spill] sm:$0xff] %v17597_v56  ;;  %v17601_v16 = vpop.f32.mrb[43].mxu0 }
 0x4b6   : > { %20430 = vst [vmem:[#allocation86_spill] sm:$0xff] %v17601_v16  ;;  %4828 = vmax.xlane.f32.xlu1 %v4827_v63 }
 0x4b7   : > { %4825 = vmax.xlane.f32.xlu0 %v4824_v50 }
 0x4bb   : > { %4831 = vmax.xlane.f32.xlu0 %v4830_v46 }
 0x4bc   : > { %v17615_v15 = vpop.f32.mrb[68].mxu1 }
 0x4bd   : > { %20431 = vst [vmem:[#allocation87_spill] sm:$0xff] %v17615_v15  ;;  %v17617_v43 = vpop.f32.mrb[69].mxu1 }
 0x4be   : > { %20432 = vst [vmem:[#allocation88_spill] sm:$0xff] %v17617_v43 }
 0x4bf   : > { %4834 = vmax.xlane.f32.xlu0 %v4833_v10 }
 0x4c0   : > { %v17621_v41 = vpop.f32.mrb[44].mxu0  ;;  %v17623_v63 = vpop.f32.mrb[70].mxu1 }
 0x4c1   : > { %20433 = vst [vmem:[#allocation89_spill] sm:$0xff] %v17621_v41  ;;  %20434 = vst [vmem:[#allocation90_spill] sm:$0xff] %v17623_v63  ;;  %v17625_v50 = vpop.f32.mrb[45].mxu0  ;;  %v17627_v4 = vpop.f32.mrb[71].mxu1 }
 0x4c2   : > { %20435 = vst [vmem:[#allocation91_spill] sm:$0xff] %v17625_v50  ;;  %20436 = vst [vmem:[#allocation92_spill] sm:$0xff] %v17627_v4 }
 0x4c4   : > { %v17629_v26 = vpop.f32.mrb[46].mxu0 }
 0x4c5   : > { %20437 = vst [vmem:[#allocation93_spill] sm:$0xff] %v17629_v26  ;;  %v17631_v47 = vpop.f32.mrb[47].mxu0 }
 0x4c6   : > { %20438 = vst [vmem:[#allocation94_spill] sm:$0xff] %v17631_v47 }
 0x4cc   : > { %v17633_v46 = vpop.f32.mrb[72].mxu1 }
 0x4cd   : > { %20439 = vst [vmem:[#allocation95_spill] sm:$0xff] %v17633_v46  ;;  %v17635_v15 = vpop.f32.mrb[73].mxu1 }
 0x4ce   : > { %20440 = vst [vmem:[#allocation96_spill] sm:$0xff] %v17635_v15 }
 0x4d0   : > { %v17637_v43 = vpop.f32.mrb[48].mxu0  ;;  %v17639_v40 = vpop.f32.mrb[74].mxu1 }
 0x4d1   : > { %20441 = vst [vmem:[#allocation97_spill] sm:$0xff] %v17637_v43  ;;  %20442 = vst [vmem:[#allocation98_spill] sm:$0xff] %v17639_v40  ;;  %v17641_v10 = vpop.f32.mrb[49].mxu0  ;;  %v17643_v41 = vpop.f32.mrb[75].mxu1 }
 0x4d2   : > { %20443 = vst [vmem:[#allocation99_spill] sm:$0xff] %v17641_v10  ;;  %20444 = vst [vmem:[#allocation100_spill] sm:$0xff] %v17643_v41 }
 0x4d4   : > { %v17645_v63 = vpop.f32.mrb[50].mxu0 }
 0x4d5   : > { %20445 = vst [vmem:[#allocation101_spill] sm:$0xff] %v17645_v63  ;;  %v17647_v50 = vpop.f32.mrb[51].mxu0 }
 0x4d6   : > { %20446 = vst [vmem:[#allocation102_spill] sm:$0xff] %v17647_v50 }
 0x4dc   : > { %v17649_v4 = vpop.f32.mrb[76].mxu1 }
 0x4dd   : > { %20447 = vst [vmem:[#allocation103_spill] sm:$0xff] %v17649_v4  ;;  %v17651_v26 = vpop.f32.mrb[77].mxu1 }
 0x4de   : > { %20448 = vst [vmem:[#allocation104_spill] sm:$0xff] %v17651_v26 }
 0x4e0   : > { %v17653_v47 = vpop.f32.mrb[52].mxu0  ;;  %v17655_v46 = vpop.f32.mrb[78].mxu1 }
 0x4e1   : > { %20449 = vst [vmem:[#allocation105_spill] sm:$0xff] %v17653_v47  ;;  %20450 = vst [vmem:[#allocation106_spill] sm:$0xff] %v17655_v46  ;;  %v17657_v15 = vpop.f32.mrb[53].mxu0  ;;  %v17659_v14 = vpop.f32.mrb[79].mxu1 }
 0x4e2   : > { %20451 = vst [vmem:[#allocation107_spill] sm:$0xff] %v17657_v15  ;;  %20452 = vst [vmem:[#allocation108_spill] sm:$0xff] %v17659_v14 }
 0x4e4   : > { %v17661_v40 = vpop.f32.mrb[54].mxu0 }
 0x4e5   : > { %20453 = vst [vmem:[#allocation109_spill] sm:$0xff] %v17661_v40  ;;  %v17663_v3 = vpop.f32.mrb[55].mxu0 }
 0x4e6   : > { %20454 = vst [vmem:[#allocation110_spill] sm:$0xff] %v17663_v3 }
 0x4ec   : > { %v17665_v41 = vpop.f32.mrb[80].mxu1 }
 0x4ed   : > { %20455 = vst [vmem:[#allocation111_spill] sm:$0xff] %v17665_v41  ;;  %v17667_v49 = vpop.f32.mrb[81].mxu1 }
 0x4ee   : > { %20456 = vst [vmem:[#allocation112_spill] sm:$0xff] %v17667_v49 }
 0x4f0   : > { %v17669_v61 = vpop.f32.mrb[56].mxu0  ;;  %v17671_v4 = vpop.f32.mrb[82].mxu1 }
 0x4f1   : > { %20457 = vst [vmem:[#allocation113_spill] sm:$0xff] %v17669_v61  ;;  %20458 = vst [vmem:[#allocation114_spill] sm:$0xff] %v17671_v4  ;;  %v17673_v26 = vpop.f32.mrb[57].mxu0  ;;  %v17675_v47 = vpop.f32.mrb[83].mxu1 }
 0x4f2   : > { %20459 = vst [vmem:[#allocation115_spill] sm:$0xff] %v17673_v26  ;;  %20460 = vst [vmem:[#allocation116_spill] sm:$0xff] %v17675_v47 }
 0x4f4   : > { %v17677_v46 = vpop.f32.mrb[58].mxu0 }
 0x4f5   : > { %20461 = vst [vmem:[#allocation117_spill] sm:$0xff] %v17677_v46  ;;  %v13258_v15 = vpop.f32.mrb[84].mxu1  ;;  %v17679_v14 = vpop.f32.mrb[59].mxu0 }
 0x4f6   : > { %20462 = vst [vmem:[#allocation118_spill] sm:$0xff] %v17679_v14  ;;  %v6412_v40 = vpop.f32.mrb[85].mxu1 }
 0x4f7   : > { %v14416_v11 = vpack.c.bf16 %v13258_v15, %v6412_v40 }
 0x4f8   : > { %v13226_v3 = vpop.f32.mrb[60].mxu0 }
 0x4f9   : > { %v13261_v63 = vpop.f32.mrb[86].mxu1  ;;  %14417 = vmatprep.subr.bf16.mxu0 %v14416_v11  ;;  %v6262_v41 = vpop.f32.mrb[61].mxu0 }
 0x4fa   : > { %v5501_v49 = vpop.xlane.xlu1 %5500  ;;  %v17681_v50 = vpack.c.bf16 %v13226_v3, %v6262_v41  ;;  %v6422_v61 = vpop.f32.mrb[87].mxu1  ;;  %14419 = vmatpush3.bf16.msra.mxu0 %v14416_v11 }
 0x4fb   : > { %v14420_v4 = vpack.c.bf16 %v13261_v63, %v6422_v61 }
 0x4fc   : > { %20463 = vst [vmem:[#allocation119_spill] sm:$0xff] %v17681_v50  ;;  %v13229_v26 = vpop.f32.mrb[62].mxu0 }
 0x4fd   : > { %v13264_v43 = vpop.f32.mrb[88].mxu1  ;;  %14421 = vmatprep.subr.bf16.mxu0 %v14420_v4  ;;  %v6272_v47 = vpop.f32.mrb[63].mxu0 }
 0x4fe   : > { %v5507_v46 = vpop.xlane.xlu1 %5506  ;;  %v17683_v10 = vpack.c.bf16 %v13229_v26, %v6272_v47  ;;  %v6432_v14 = vpop.f32.mrb[89].mxu1  ;;  %14423 = vmatpush3.bf16.msra.mxu0 %v14420_v4 }
 0x4ff   : > { %v17685_v40 = vpack.c.bf16 %v13264_v43, %v6432_v14 }
 0x500   : > { %20464 = vst [vmem:[#allocation120_spill] sm:$0xff] %v17683_v10  ;;  %v13232_v15 = vpop.f32.mrb[64].mxu0 }
 0x501   : > { %20465 = vst [vmem:[#allocation121_spill] sm:$0xff] %v17685_v40  ;;  %v13267_v56 = vpop.f32.mrb[90].mxu1  ;;  %14425 = vmatprep.subr.bf16.mxu0 %v17685_v40  ;;  %v6282_v3 = vpop.f32.mrb[65].mxu0 }
 0x502   : > { %v5549_v41 = vpop.xlane.xlu1 %5548  ;;  %v17688_v16 = vpack.c.bf16 %v13232_v15, %v6282_v3  ;;  %v6442_v61 = vpop.f32.mrb[91].mxu1 }
 0x503   : > { %v17690_v11 = vpack.c.bf16 %v13267_v56, %v6442_v61  ;;  %v5498_v63 = vpop.xlane.xlu0 %5497 }
 0x504   : > { %20466 = vst [vmem:[#allocation122_spill] sm:$0xff] %v17688_v16  ;;  %v13235_v17 = vpop.f32.mrb[66].mxu0 }
 0x505   : > { %20467 = vst [vmem:[#allocation123_spill] sm:$0xff] %v17690_v11  ;;  %v13270_v6 = vpop.f32.mrb[92].mxu1  ;;  %v6292_v47 = vpop.f32.mrb[67].mxu0 }
 0x506   : > { %v5555_v26 = vpop.xlane.xlu1 %5554  ;;  %v17692_v10 = vpack.c.bf16 %v13235_v17, %v6292_v47  ;;  %v6452_v43 = vpop.f32.mrb[93].mxu1 }
 0x507   : > { %v14432_v14 = vpack.c.bf16 %v13270_v6, %v6452_v43  ;;  %v5504_v4 = vpop.xlane.xlu0 %5503  ;;  %v11747_v43 = vld [vmem:[%s20202_s2 + $0x48] sm:$0xff] }
 0x508   : > { %20468 = vst [vmem:[#allocation124_spill] sm:$0xff] %v17692_v10  ;;  %v13238_v50 = vpop.f32.mrb[68].mxu0  ;;  %v20488_v10 = vld [vmem:[#allocation20_spill] sm:$0xff] }
 0x509   : > { %v13273_v0 = vpop.f32.mrb[94].mxu1  ;;  %14433 = vmatprep.subr.bf16.mxu1 %v14432_v14  ;;  %v6302_v40 = vpop.f32.mrb[69].mxu0 }
 0x50a   : > { %v14464_v34 = vpack.c.bf16 %v13238_v50, %v6302_v40  ;;  %v6462_v15 = vpop.f32.mrb[95].mxu1  ;;  %14435 = vmatpush3.bf16.msra.mxu1 %v14432_v14  ;;  %v17694_v61 = vpop.permute.xlu1 %6158 }
 0x50b   : > { %v14436_v3 = vpack.c.bf16 %v13273_v0, %v6462_v15  ;;  %v5546_v56 = vpop.xlane.xlu0 %5545  ;;  %20469 = vst [vmem:[#allocation125_spill] sm:$0xff] %v17694_v61  ;;  %v11748_v15 = vld [vmem:[%s20202_s2 + $0x50] sm:$0xff] }
 0x50c   : > { %15284 = vrcp.f32 %v5546_v56  ;;  %v13241_v16 = vpop.f32.mrb[70].mxu0 }
 0x50d   : > { %14437 = vmatprep.subr.bf16.mxu1 %v14436_v3  ;;  %v6312_v11 = vpop.f32.mrb[71].mxu0  ;;  %15286 = vrcp.f32 %v5549_v41 }
 0x50e   : > { %v14468_v17 = vpack.c.bf16 %v13241_v16, %v6312_v11  ;;  %14439 = vmatpush3.bf16.msra.mxu1 %v14436_v3  ;;  %v17696_v47 = vpop.permute.xlu1 %6160  ;;  %v11749_v3 = vld [vmem:[%s20202_s2 + $0x58] sm:$0xff] }
 0x50f   : > { %v5552_v6 = vpop.xlane.xlu0 %5551  ;;  %14465 = vmatprep.subr.bf16.mxu1 %v14464_v34  ;;  %20470 = vst [vmem:[#allocation126_spill] sm:$0xff] %v17696_v47 }
 0x510   : > { %15288 = vrcp.f32 %v5552_v6 }
 0x511   : > { %15290 = vrcp.f32 %v5555_v26 }
 0x512   : > { %15292 = vrcp.f32 %v5498_v63  ;;  %v17713_v41 = vpop.permute.xlu1 %6162 }
 0x513   : > { %v17698_v50 = vpop.permute.xlu0 %6156  ;;  %15294 = vrcp.f32 %v5501_v49  ;;  %20472 = vst [vmem:[#allocation128_spill] sm:$0xff] %v17713_v41 }
 0x514   : > { %20471 = vst [vmem:[#allocation127_spill] sm:$0xff] %v17698_v50  ;;  %13242 = vmatprep.mubr.msk.f32.mxu0 %vm490_vm0, %v17698_v50  ;;  %13274 = vmatprep.mubr.msk.f32.mxu1 %vm490_vm0, %v17698_v50  ;;  %15296 = vrcp.f32 %v5504_v4 }
 0x515   : > { %13243 = vmatmul.mubr.msk.f32.gmra.mrb[72].mxu0 %vm490_vm0, %v17694_v61  ;;  %13275 = vmatmul.mubr.msk.f32.gmra.mrb[96].mxu1 %vm490_vm0, %v17694_v61  ;;  %15298 = vrcp.f32 %v5507_v46 }
 0x516   : > { %v15285_v0 = vpop.eup %15284  ;;  %13245 = vmatprep.mubr.msk.f32.mxu0 %vm490_vm0, %v17696_v47  ;;  %13277 = vmatprep.mubr.msk.f32.mxu1 %vm490_vm0, %v17696_v47 }
 0x517   : > { %v6008_v16 = vmul.f32 %v15285_v0, %v17545_v37  ;;  %v15287_v40 = vpop.eup %15286  ;;  %v11746_v37 = vld [vmem:[%s20202_s2 + $0x40] sm:$0xff] }
 0x518   : > { %v6009_v49 = vmul.f32 %v15287_v40, %v17529_v25  ;;  %v14480_v46 = vpack.c.bf16 %v11747_v43, %v11746_v37 }
 0x519   : > { %13246 = vmatmul.mubr.msk.f32.gmra.mrb[74].mxu0 %vm490_vm0, %v17713_v41  ;;  %13278 = vmatmul.mubr.msk.f32.gmra.mrb[98].mxu1 %vm490_vm0, %v17713_v41 }
 0x51a   : > { %v15289_v11 = vpop.eup %15288  ;;  %13316 = vmatprep.mubr.msk.f32.mxu1 %vm490_vm0, %v6008_v16 }
 0x51b   : > { %v6010_v63 = vmul.f32 %v15289_v11, %v17549_v29  ;;  %v15291_v26 = vpop.eup %15290 }
 0x51c   : > { %v15293_v14 = vpop.eup %15292  ;;  %v6011_v25 = vmul.f32 %v15291_v26, %v17535_v27  ;;  %v14484_v27 = vpack.c.bf16 %v11749_v3, %v11748_v15  ;;  %v17808_v15 = vld [vmem:[%s20213_s13 + $0x8] sm:$0xff] }
 0x51d   : > { %13317 = vmatmul.mubr.msk.f32.vlgmr.msra.gmra.mrb[100].mxu1 %vm490_vm0, %v6009_v49  ;;  %v15295_v29 = vpop.eup %15294  ;;  %v5992_v4 = vmul.f32 %v15293_v14, %v17531_v48  ;;  %v17812_v3 = vadd.f32 %v17808_v15, %v17043_v38  ;;  %v17830_v38 = vld [vmem:[%s20213_s13 + $0x18] sm:$0xff] }
 0x51e   : > { %14467 = vmatpush3.bf16.msra.mxu1 %v14464_v34  ;;  %13319 = vmatprep.mubr.msk.f32.mxu1 %vm490_vm0, %v6010_v63  ;;  %v15297_v56 = vpop.eup %15296  ;;  %v5993_v34 = vmul.f32 %v15295_v29, %v17520_v20 }
 0x51f   : > { %14469 = vmatprep.subr.bf16.mxu1 %v14468_v17  ;;  %v15299_v6 = vpop.eup %15298  ;;  %v5994_v48 = vmul.f32 %v15297_v56, %v17539_v55 }
 0x520   : > { %v5995_v0 = vmul.f32 %v15299_v6, %v17525_v60  ;;  %v17834_v6 = vadd.f32 %v17830_v38, %v17051_v28 }
 0x521   : > { %13320 = vmatmul.mubr.msk.f32.gmra.mrb[102].mxu1 %vm490_vm0, %v6011_v25 }
 0x522   : > { %14471 = vmatpush3.bf16.msra.mxu1 %v14468_v17  ;;  %13372 = vmatprep.mubr.msk.f32.mxu1 %vm490_vm0, %v5992_v4 }
 0x523   : > { %14481 = vmatprep.subr.bf16.mxu1 %v14480_v46 }
 0x525   : > { %13373 = vmatmul.mubr.msk.f32.vlgmr.msra.gmra.mrb[100].mxu1 %vm490_vm0, %v5993_v34 }
 0x526   : > { %13375 = vmatprep.mubr.msk.f32.mxu1 %vm490_vm0, %v5994_v48  ;;  %14483 = vmatpush3.bf16.msra.mxu1 %v14480_v46 }
 0x527   : > { %14485 = vmatprep.subr.bf16.mxu1 %v14484_v27 }
 0x529   : > { %13376 = vmatmul.mubr.msk.f32.gmra.mrb[102].mxu1 %vm490_vm0, %v5995_v0  ;;  %v4755_v0 = vsel %vm490_vm0, %v17812_v3, -inf }
 0x52a   : > { %14487 = vmatpush3.bf16.msra.mxu1 %v14484_v27  ;;  %13400 = vmatprep.mubr.msk.f32.mxu1 %vm490_vm0, %v17323_v21 }
 0x52d   : > { %13401 = vmatmul.mubr.msk.f32.vlgmr.msra.gmra.mrb[104].mxu1 %vm490_vm0, %v17325_v51 }
 0x52e   : > { %13403 = vmatprep.mubr.msk.f32.mxu1 %vm490_vm0, %v17353_v30 }
 0x531   : > { %13404 = vmatmul.mubr.msk.f32.gmra.mrb[106].mxu1 %vm490_vm0, %v17359_v32 }
 0x532   : > { %13406 = vmatprep.mubr.msk.f32.mxu1 %vm490_vm0, %v17369_v59 }
 0x535   : > { %13407 = vmatmul.mubr.msk.f32.gmra.mrb[108].mxu1 %vm490_vm0, %v17377_v39 }
 0x536   : > { %13409 = vmatprep.mubr.msk.f32.mxu1 %vm490_vm0, %v17393_v23 }
 0x539   : > { %13410 = vmatmul.mubr.msk.f32.gmra.mrb[110].mxu1 %vm490_vm0, %v17403_v2 }
 0x53a   : > { %13412 = vmatprep.mubr.msk.f32.mxu1 %vm490_vm0, %v17417_v52 }
 0x53d   : > { %13413 = vmatmul.mubr.msk.f32.gmra.mrb[112].mxu1 %vm490_vm0, %v17421_v18 }
 0x53e   : > { %13415 = vmatprep.mubr.msk.f32.mxu1 %vm490_vm0, %v17435_v13  ;;  %v20502_v13 = vld [vmem:[#allocation38_spill] sm:$0xff] }
 0x541   : > { %13416 = vmatmul.mubr.msk.f32.gmra.mrb[114].mxu1 %vm490_vm0, %v17443_v58 }
 0x542   : > { %13418 = vmatprep.mubr.msk.f32.mxu1 %vm490_vm0, %v17698_v50  ;;  %v20498_v50 = vld [vmem:[#allocation42_spill] sm:$0xff] }
 0x543   : > { %v4829_v20 = vpop.xlane.xlu1 %4828 }
 0x544   : > { %v5129_v60 = vsub.f32 %v17587_v22, %v4829_v20  ;;  %v4826_v55 = vpop.xlane.xlu0 %4825  ;;  %v17846_v20 = vadd.f32 %v17808_v15, %v17065_v53 }
 0x545   : > { %v5128_v17 = vsub.f32 %v17595_v57, %v4826_v55  ;;  %13419 = vmatmul.mubr.msk.f32.gmra.mrb[116].mxu1 %vm490_vm0, %v17694_v61  ;;  %v17858_v55 = vadd.f32 %v17830_v38, %v17073_v9 }
 0x546   : > { %v5298_v16 = vmul.f32 1.442695, %v5129_v60  ;;  %13421 = vmatprep.mubr.msk.f32.mxu1 %vm490_vm0, %v17696_v47  ;;  %v20494_v47 = vld [vmem:[#allocation31_spill] sm:$0xff] }
 0x547   : > { %v5296_v40 = vmul.f32 1.442695, %v5128_v17 }
 0x548   : > { %15300 = vpow2.f32 %v5298_v16  ;;  %v4832_v11 = vpop.xlane.xlu0 %4831  ;;  %v17870_v16 = vadd.f32 %v17808_v15, %v17155_v1  ;;  %v17886_v1 = vadd.f32 %v17830_v38, %v17169_v24 }
 0x549   : > { %15302 = vpow2.f32 %v5296_v40  ;;  %v5130_v49 = vsub.f32 %v17605_v7, %v4832_v11  ;;  %13422 = vmatmul.mubr.msk.f32.gmra.mrb[118].mxu1 %vm490_vm0, %v17713_v41 }
 0x54a   : > { %v4797_v24 = vsel %vm490_vm0, %v17886_v1, -inf }
 0x54b   : > { %v5300_v22 = vmul.f32 1.442695, %v5130_v49 }
 0x54c   : > { %v4835_v63 = vpop.xlane.xlu0 %4834 }
 0x54d   : > { %15304 = vpow2.f32 %v5300_v22  ;;  %v5131_v57 = vsub.f32 %v17611_v36, %v4835_v63  ;;  %v17795_v36 = vld [vmem:[%s20213_s13] sm:$0xff]  ;;  %v17894_v22 = vadd.f32 %v17808_v15, %v17001_v5 }
 0x54e   : > { %v17799_v46 = vadd.f32 %v17795_v36, %v17047_v54  ;;  %v17817_v54 = vld [vmem:[%s20213_s13 + $0x10] sm:$0xff]  ;;  %v17862_v53 = vadd.f32 %v17795_v36, %v17165_v33  ;;  %v4773_v33 = vsel %vm490_vm0, %v17858_v55, -inf  ;;  %v17882_v11 = vadd.f32 %v17795_v36, %v17007_v8 }
 0x54f   : > { %v5302_v26 = vmul.f32 1.442695, %v5131_v57  ;;  %v17821_v56 = vadd.f32 %v17817_v54, %v17055_v45  ;;  %v17838_v45 = vadd.f32 %v17795_v36, %v17069_v62  ;;  %v17850_v28 = vadd.f32 %v17817_v54, %v17082_v42 }
 0x550   : > { %v4752_v34 = vsel %vm490_vm0, %v17799_v46, -inf  ;;  %v4761_v62 = vsel %vm490_vm0, %v17834_v6, -inf  ;;  %v4767_v42 = vsel %vm490_vm0, %v17846_v20, -inf  ;;  %v17874_v9 = vadd.f32 %v17817_v54, %v17181_v35 }
 0x551   : > { %15306 = vpow2.f32 %v5302_v26  ;;  %v4758_v48 = vsel %vm490_vm0, %v17821_v56, -inf  ;;  %v4764_v60 = vsel %vm490_vm0, %v17838_v45, -inf  ;;  %v4770_v17 = vsel %vm490_vm0, %v17850_v28, -inf  ;;  %v20473_v26 = vld [vmem:[#allocation8_spill] sm:$0xff] }
 0x552   : > { %v17782_v37 = vpop.eup %15300  ;;  %v4788_v40 = vsel %vm490_vm0, %v17862_v53, -inf  ;;  %v4791_v35 = vsel %vm490_vm0, %v17870_v16, -inf  ;;  %v4794_v49 = vsel %vm490_vm0, %v17874_v9, -inf  ;;  %v17898_v8 = vadd.f32 %v17817_v54, %v17017_v19 }
 0x553   : > { %v17784_v43 = vpop.eup %15302  ;;  %v5595_v14 = vsel %vm490_vm0, %v17782_v37, 0.0  ;;  %v4704_v63 = vsel %vm490_vm0, %v17882_v11, -inf  ;;  %v17906_v57 = vadd.f32 %v17830_v38, %v17013_v12  ;;  %v17910_v5 = vadd.f32 %v17795_v36, %v20473_v26 }
 0x554   : > { %5596 = vadd.xlane.f32.xlu1 %v5595_v14  ;;  %v5592_v7 = vsel %vm490_vm0, %v17784_v43, 0.0  ;;  %v4707_v19 = vsel %vm490_vm0, %v17894_v22, -inf  ;;  %v4710_v14 = vsel %vm490_vm0, %v17898_v8, -inf }
 0x555   : > { %5593 = vadd.xlane.f32.xlu0 %v5592_v7  ;;  %v20474_v7 = vld [vmem:[#allocation7_spill] sm:$0xff] }
 0x557   : > { %v17790_v25 = vpop.eup %15304 }
 0x558   : > { %v5598_v29 = vsel %vm490_vm0, %v17790_v25, 0.0 }
 0x559   : > { %5599 = vadd.xlane.f32.xlu0 %v5598_v29  ;;  %v17918_v29 = vadd.f32 %v17808_v15, %v20474_v7  ;;  %v20481_v7 = vld [vmem:[#allocation21_spill] sm:$0xff] }
 0x55b   : > { %v17803_v4 = vpop.eup %15306 }
 0x55c   : > { %v5601_v27 = vsel %vm490_vm0, %v17803_v4, 0.0 }
 0x55d   : > { %4753 = vmax.xlane.f32.xlu0 %v4752_v34  ;;  %5602 = vadd.xlane.f32.xlu1 %v5601_v27  ;;  %v20475_v34 = vld [vmem:[#allocation10_spill] sm:$0xff]  ;;  %v4713_v27 = vsel %vm490_vm0, %v17906_v57, -inf }
 0x55e   : > { %v17922_v12 = vadd.f32 %v17817_v54, %v20475_v34  ;;  %v17958_v34 = vadd.f32 %v17795_v36, %v20481_v7 }
 0x561   : > { %4759 = vmax.xlane.f32.xlu0 %v4758_v48  ;;  %4756 = vmax.xlane.f32.xlu1 %v4755_v0  ;;  %v4716_v48 = vsel %vm490_vm0, %v17910_v5, -inf  ;;  %v20476_v0 = vld [vmem:[#allocation9_spill] sm:$0xff] }
 0x565   : > { %4762 = vmax.xlane.f32.xlu1 %v4761_v62  ;;  %4765 = vmax.xlane.f32.xlu0 %v4764_v60  ;;  %v17930_v62 = vadd.f32 %v17830_v38, %v20476_v0  ;;  %v20477_v60 = vld [vmem:[#allocation12_spill] sm:$0xff]  ;;  %v20482_v0 = vld [vmem:[#allocation19_spill] sm:$0xff] }
 0x569   : > { %4768 = vmax.xlane.f32.xlu1 %v4767_v42  ;;  %4771 = vmax.xlane.f32.xlu0 %v4770_v17  ;;  %v17934_v42 = vadd.f32 %v17795_v36, %v20477_v60  ;;  %v4719_v17 = vsel %vm490_vm0, %v17918_v29, -inf  ;;  %v17966_v60 = vadd.f32 %v17808_v15, %v20482_v0  ;;  %v20486_v0 = vld [vmem:[#allocation15_spill] sm:$0xff] }
 0x56b   : > { %v4740_v26 = vsel %vm490_vm0, %v17934_v42, -inf }
 0x56d   : > { %4774 = vmax.xlane.f32.xlu1 %v4773_v33  ;;  %4789 = vmax.xlane.f32.xlu0 %v4788_v40  ;;  %v4722_v33 = vsel %vm490_vm0, %v17922_v12, -inf  ;;  %v20478_v40 = vld [vmem:[#allocation11_spill] sm:$0xff] }
 0x571   : > { %4792 = vmax.xlane.f32.xlu1 %v4791_v35  ;;  %4795 = vmax.xlane.f32.xlu0 %v4794_v49  ;;  %v17942_v35 = vadd.f32 %v17808_v15, %v20478_v40  ;;  %v20479_v49 = vld [vmem:[#allocation14_spill] sm:$0xff] }
 0x575   : > { %4798 = vmax.xlane.f32.xlu1 %v4797_v24  ;;  %4705 = vmax.xlane.f32.xlu0 %v4704_v63  ;;  %v17946_v24 = vadd.f32 %v17817_v54, %v20479_v49  ;;  %v4725_v63 = vsel %vm490_vm0, %v17930_v62, -inf  ;;  %v4800_v49 = vsel %vm490_vm0, %v17958_v34, -inf }
 0x579   : > { %4708 = vmax.xlane.f32.xlu1 %v4707_v19  ;;  %4711 = vmax.xlane.f32.xlu0 %v4710_v14  ;;  %v20480_v19 = vld [vmem:[#allocation13_spill] sm:$0xff] }
 0x57a   : > { %v17954_v14 = vadd.f32 %v17830_v38, %v20480_v19  ;;  %v20485_v19 = vld [vmem:[#allocation23_spill] sm:$0xff] }
 0x57b   : > { %v17982_v7 = vadd.f32 %v17830_v38, %v20485_v19 }
 0x57c   : > { %v4749_v40 = vsel %vm490_vm0, %v17954_v14, -inf }
 0x57d   : > { %4714 = vmax.xlane.f32.xlu1 %v4713_v27  ;;  %4717 = vmax.xlane.f32.xlu0 %v4716_v48  ;;  %v4743_v27 = vsel %vm490_vm0, %v17942_v35, -inf  ;;  %v4746_v48 = vsel %vm490_vm0, %v17946_v24, -inf }
 0x581   : > { %4720 = vmax.xlane.f32.xlu1 %v4719_v17  ;;  %4723 = vmax.xlane.f32.xlu0 %v4722_v33  ;;  %v20483_v17 = vld [vmem:[#allocation25_spill] sm:$0xff] }
 0x582   : > { %v17970_v33 = vadd.f32 %v17817_v54, %v20483_v17  ;;  %v17990_v17 = vadd.f32 %v17808_v15, %v20486_v0 }
 0x585   : > { %4726 = vmax.xlane.f32.xlu1 %v4725_v63  ;;  %4741 = vmax.xlane.f32.xlu0 %v4740_v26  ;;  %v20484_v63 = vld [vmem:[#allocation16_spill] sm:$0xff] }
 0x586   : > { %v17978_v26 = vadd.f32 %v17795_v36, %v20484_v63  ;;  %v4809_v63 = vsel %vm490_vm0, %v17982_v7, -inf }
 0x588   : > { %v4812_v19 = vsel %vm490_vm0, %v17978_v26, -inf }
 0x589   : > { %4744 = vmax.xlane.f32.xlu1 %v4743_v27  ;;  %4747 = vmax.xlane.f32.xlu0 %v4746_v48  ;;  %v4803_v27 = vsel %vm490_vm0, %v17966_v60, -inf  ;;  %v4806_v48 = vsel %vm490_vm0, %v17970_v33, -inf }
 0x58d   : > { %4750 = vmax.xlane.f32.xlu1 %v4749_v40  ;;  %4801 = vmax.xlane.f32.xlu0 %v4800_v49  ;;  %v20487_v40 = vld [vmem:[#allocation22_spill] sm:$0xff] }
 0x58e   : > { %v17994_v49 = vadd.f32 %v17817_v54, %v20487_v40  ;;  %v4815_v40 = vsel %vm490_vm0, %v17990_v17, -inf }
 0x590   : > { %v4818_v31 = vsel %vm490_vm0, %v17994_v49, -inf }
 0x591   : > { %4804 = vmax.xlane.f32.xlu1 %v4803_v27  ;;  %4807 = vmax.xlane.f32.xlu0 %v4806_v48  ;;  %v18002_v27 = vadd.f32 %v17830_v38, %v20488_v10  ;;  %v20489_v48 = vld [vmem:[#allocation29_spill] sm:$0xff] }
 0x592   : > { %v18006_v0 = vadd.f32 %v17795_v36, %v20489_v48 }
 0x593   : > { %v4821_v48 = vsel %vm490_vm0, %v18002_v27, -inf }
 0x594   : > { %v4836_v41 = vsel %vm490_vm0, %v18006_v0, -inf }
 0x595   : > { %4810 = vmax.xlane.f32.xlu1 %v4809_v63  ;;  %4813 = vmax.xlane.f32.xlu0 %v4812_v19  ;;  %v18014_v63 = vadd.f32 %v17808_v15, %v20490_v44  ;;  %v20492_v19 = vld [vmem:[#allocation32_spill] sm:$0xff] }
 0x596   : > { %v18018_v10 = vadd.f32 %v17817_v54, %v20492_v19 }
 0x597   : > { %20491 = vst [vmem:[#allocation8_spill] sm:$0xff] %v18014_v63  ;;  %v4839_v19 = vsel %vm490_vm0, %v18014_v63, -inf }
 0x598   : > { %20493 = vst [vmem:[#allocation7_spill] sm:$0xff] %v18018_v10  ;;  %v4842_v61 = vsel %vm490_vm0, %v18018_v10, -inf }
 0x599   : > { %4816 = vmax.xlane.f32.xlu1 %v4815_v40  ;;  %4819 = vmax.xlane.f32.xlu0 %v4818_v31  ;;  %v18026_v40 = vadd.f32 %v17830_v38, %v20494_v47  ;;  %v20496_v31 = vld [vmem:[#allocation44_spill] sm:$0xff] }
 0x59a   : > { %v18030_v44 = vadd.f32 %v17795_v36, %v20496_v31 }
 0x59b   : > { %20495 = vst [vmem:[#allocation10_spill] sm:$0xff] %v18026_v40  ;;  %v4845_v31 = vsel %vm490_vm0, %v18026_v40, -inf  ;;  %v20506_v40 = vld [vmem:[#allocation37_spill] sm:$0xff] }
 0x59c   : > { %20497 = vst [vmem:[#allocation9_spill] sm:$0xff] %v18030_v44  ;;  %v4848_v58 = vsel %vm490_vm0, %v18030_v44, -inf }
 0x59d   : > { %4822 = vmax.xlane.f32.xlu1 %v4821_v48  ;;  %4837 = vmax.xlane.f32.xlu0 %v4836_v41  ;;  %v18038_v48 = vadd.f32 %v17808_v15, %v20498_v50  ;;  %v20500_v41 = vld [vmem:[#allocation46_spill] sm:$0xff] }
 0x59e   : > { %v18042_v47 = vadd.f32 %v17817_v54, %v20500_v41 }
 0x59f   : > { %20499 = vst [vmem:[#allocation12_spill] sm:$0xff] %v18038_v48  ;;  %v4851_v41 = vsel %vm490_vm0, %v18038_v48, -inf  ;;  %v20510_v48 = vld [vmem:[#allocation41_spill] sm:$0xff] }
 0x5a0   : > { %20501 = vst [vmem:[#allocation11_spill] sm:$0xff] %v18042_v47  ;;  %v4854_v18 = vsel %vm490_vm0, %v18042_v47, -inf }
 0x5a1   : > { %4840 = vmax.xlane.f32.xlu1 %v4839_v19  ;;  %4843 = vmax.xlane.f32.xlu0 %v4842_v61  ;;  %v18050_v19 = vadd.f32 %v17795_v36, %v20502_v13  ;;  %v20504_v61 = vld [vmem:[#allocation45_spill] sm:$0xff] }
 0x5a2   : > { %v18054_v50 = vadd.f32 %v17830_v38, %v20504_v61 }
 0x5a3   : > { %20503 = vst [vmem:[#allocation14_spill] sm:$0xff] %v18050_v19  ;;  %v4860_v44 = vsel %vm490_vm0, %v18050_v19, -inf }
 0x5a4   : > { %20505 = vst [vmem:[#allocation13_spill] sm:$0xff] %v18054_v50  ;;  %v4857_v61 = vsel %vm490_vm0, %v18054_v50, -inf  ;;  %v20514_v50 = vld [vmem:[#allocation47_spill] sm:$0xff] }
 0x5a5   : > { %4846 = vmax.xlane.f32.xlu1 %v4845_v31  ;;  %4849 = vmax.xlane.f32.xlu0 %v4848_v58  ;;  %v18062_v31 = vadd.f32 %v17808_v15, %v20506_v40  ;;  %v20508_v58 = vld [vmem:[#allocation43_spill] sm:$0xff] }
 0x5a6   : > { %v18066_v13 = vadd.f32 %v17817_v54, %v20508_v58 }
 0x5a7   : > { %20507 = vst [vmem:[#allocation21_spill] sm:$0xff] %v18062_v31  ;;  %v4863_v58 = vsel %vm490_vm0, %v18062_v31, -inf }
 0x5a8   : > { %20509 = vst [vmem:[#allocation19_spill] sm:$0xff] %v18066_v13  ;;  %v4866_v47 = vsel %vm490_vm0, %v18066_v13, -inf }
 0x5a9   : > { %4852 = vmax.xlane.f32.xlu1 %v4851_v41  ;;  %4855 = vmax.xlane.f32.xlu0 %v4854_v18  ;;  %v18074_v41 = vadd.f32 %v17830_v38, %v20510_v48  ;;  %v20512_v18 = vld [vmem:[#allocation48_spill] sm:$0xff] }
 0x5aa   : > { %v18078_v40 = vadd.f32 %v17795_v36, %v20512_v18  ;;  %v20516_v36 = vld [vmem:[#allocation52_spill] sm:$0xff] }
 0x5ab   : > { %20511 = vst [vmem:[#allocation25_spill] sm:$0xff] %v18074_v41  ;;  %v18094_v18 = vadd.f32 %v17817_v54, %v20516_v36 }
 0x5ac   : > { %20513 = vst [vmem:[#allocation16_spill] sm:$0xff] %v18078_v40  ;;  %v4884_v48 = vsel %vm490_vm0, %v18078_v40, -inf }
 0x5ad   : > { %4858 = vmax.xlane.f32.xlu1 %v4857_v61  ;;  %4861 = vmax.xlane.f32.xlu0 %v4860_v44  ;;  %v18086_v61 = vadd.f32 %v17808_v15, %v20514_v50  ;;  %v4869_v44 = vsel %vm490_vm0, %v18074_v41, -inf  ;;  %20517 = vst [vmem:[#allocation15_spill] sm:$0xff] %v18094_v18  ;;  %v4890_v50 = vsel %vm490_vm0, %v18094_v18, -inf }
 0x5af   : > { %20515 = vst [vmem:[#allocation23_spill] sm:$0xff] %v18086_v61 }
 0x5b1   : > { %4864 = vmax.xlane.f32.xlu1 %v4863_v58  ;;  %4867 = vmax.xlane.f32.xlu0 %v4866_v47  ;;  %v4887_v58 = vsel %vm490_vm0, %v18086_v61, -inf  ;;  %v20518_v47 = vld [vmem:[#allocation50_spill] sm:$0xff] }
 0x5b2   : > { %v18100_v15 = vadd.f32 %v17830_v38, %v20518_v47 }
 0x5b4   : > { %20519 = vst [vmem:[#allocation22_spill] sm:$0xff] %v18100_v15 }
 0x5b5   : > { %4870 = vmax.xlane.f32.xlu1 %v4869_v44  ;;  %4885 = vmax.xlane.f32.xlu0 %v4884_v48  ;;  %v4893_v44 = vsel %vm490_vm0, %v18100_v15, -inf }
 0x5b9   : > { %4888 = vmax.xlane.f32.xlu0 %v4887_v58 }
 0x5bd   : > { %4891 = vmax.xlane.f32.xlu0 %v4890_v50 }
 0x5c1   : > { %4894 = vmax.xlane.f32.xlu0 %v4893_v44 }
 0x5e1   : > { %v18106_v54 = vpop.xlane.xlu1 %5596 }
 0x5e2   : > { %v5594_v48 = vpop.xlane.xlu0 %5593 }
 0x5e3   : > { %15308 = vrcp.f32 %v5594_v48 }
 0x5e6   : > { %v18108_v36 = vpop.xlane.xlu0 %5599 }
 0x5e8   : > { %v13244_v61 = vpop.f32.mrb[72].mxu0  ;;  %v13276_v58 = vpop.f32.mrb[96].mxu1 }
 0x5e9   : > { %v6322_v40 = vpop.f32.mrb[73].mxu0  ;;  %v6472_v41 = vpop.f32.mrb[97].mxu1 }
 0x5ea   : > { %v18110_v38 = vpack.c.bf16 %v13244_v61, %v6322_v40  ;;  %v18112_v47 = vpack.c.bf16 %v13276_v58, %v6472_v41  ;;  %v18114_v18 = vpop.xlane.xlu1 %5602  ;;  %v4754_v50 = vpop.xlane.xlu0 %4753 }
 0x5eb   : > { %v5104_v15 = vsub.f32 %v17799_v46, %v4754_v50 }
 0x5ec   : > { %20520 = vst [vmem:[#allocation20_spill] sm:$0xff] %v18110_v38  ;;  %v13247_v44 = vpop.f32.mrb[74].mxu0  ;;  %v13279_v13 = vpop.f32.mrb[98].mxu1 }
 0x5ed   : > { %v15309_v48 = vpop.eup %15308  ;;  %v5248_v31 = vmul.f32 1.442695, %v5104_v15  ;;  %v6332_v19 = vpop.f32.mrb[75].mxu0 }
 0x5ee   : > { %v6482_v52 = vpop.f32.mrb[99].mxu1  ;;  %v18117_v2 = vpack.c.bf16 %v13247_v44, %v6332_v19  ;;  %v4757_v63 = vpop.xlane.xlu1 %4756  ;;  %v6024_v41 = vmul.f32 %v15309_v48, %v17784_v43 }
 0x5ef   : > { %v18119_v10 = vpack.c.bf16 %v13279_v13, %v6482_v52  ;;  %v4760_v40 = vpop.xlane.xlu0 %4759  ;;  %15310 = vpow2.f32 %v5248_v31  ;;  %v5105_v61 = vsub.f32 %v17812_v3, %v4757_v63 }
 0x5f0   : > { %v5106_v58 = vsub.f32 %v17821_v56, %v4760_v40  ;;  %13460 = vmatprep.mubr.msk.f32.mxu1 %vm490_vm0, %v6024_v41 }
 0x5f1   : > { %v5250_v46 = vmul.f32 1.442695, %v5105_v61 }
 0x5f2   : > { %v5252_v50 = vmul.f32 1.442695, %v5106_v58  ;;  %v4763_v15 = vpop.xlane.xlu1 %4762 }
 0x5f3   : > { %v4766_v38 = vpop.xlane.xlu0 %4765  ;;  %15312 = vpow2.f32 %v5250_v46  ;;  %v5107_v19 = vsub.f32 %v17834_v6, %v4763_v15 }
 0x5f4   : > { %v5108_v52 = vsub.f32 %v17838_v45, %v4766_v38  ;;  %15314 = vpow2.f32 %v5252_v50 }
 0x5f5   : > { %v5254_v13 = vmul.f32 1.442695, %v5107_v19 }
 0x5f6   : > { %v5256_v44 = vmul.f32 1.442695, %v5108_v52  ;;  %v4769_v43 = vpop.xlane.xlu1 %4768 }
 0x5f7   : > { %v4772_v31 = vpop.xlane.xlu0 %4771  ;;  %v5109_v3 = vsub.f32 %v17846_v20, %v4769_v43 }
 0x5f8   : > { %v5110_v56 = vsub.f32 %v17850_v28, %v4772_v31  ;;  %15316 = vpow2.f32 %v5256_v44 }
 0x5f9   : > { %v18129_v63 = vpop.eup %15310  ;;  %15318 = vpow2.f32 %v5254_v13  ;;  %v5258_v48 = vmul.f32 1.442695, %v5109_v3 }
 0x5fa   : > { %v5260_v40 = vmul.f32 1.442695, %v5110_v56  ;;  %v4775_v41 = vpop.xlane.xlu1 %4774  ;;  %v5520_v6 = vsel %vm490_vm0, %v18129_v63, 0.0 }
 0x5fb   : > { %v4790_v61 = vpop.xlane.xlu0 %4789  ;;  %v5111_v45 = vsub.f32 %v17858_v55, %v4775_v41  ;;  %5521 = vadd.xlane.f32.xlu1 %v5520_v6 }
 0x5fc   : > { %v5116_v38 = vsub.f32 %v17862_v53, %v4790_v61  ;;  %15320 = vpow2.f32 %v5260_v40 }
 0x5fd   : > { %v18135_v20 = vpop.eup %15312  ;;  %15322 = vpow2.f32 %v5258_v48  ;;  %v5262_v28 = vmul.f32 1.442695, %v5111_v45 }
 0x5fe   : > { %v5272_v58 = vmul.f32 1.442695, %v5116_v38  ;;  %v4793_v46 = vpop.xlane.xlu1 %4792  ;;  %v5523_v15 = vsel %vm490_vm0, %v18135_v20, 0.0  ;;  %v18139_v19 = vpop.eup %15314 }
 0x5ff   : > { %v4796_v50 = vpop.xlane.xlu0 %4795  ;;  %v5117_v52 = vsub.f32 %v17870_v16, %v4793_v46  ;;  %5524 = vadd.xlane.f32.xlu1 %v5523_v15  ;;  %v5526_v40 = vsel %vm490_vm0, %v18139_v19, 0.0 }
 0x600   : > { %v5118_v55 = vsub.f32 %v17874_v9, %v4796_v50  ;;  %15324 = vpow2.f32 %v5272_v58  ;;  %v13402_v53 = vpop.f32.mrb[104].mxu1 }
 0x601   : > { %15326 = vpow2.f32 %v5262_v28  ;;  %v5274_v13 = vmul.f32 1.442695, %v5117_v52  ;;  %v7338_v43 = vpop.f32.mrb[105].mxu1 }
 0x602   : > { %v5276_v44 = vmul.f32 1.442695, %v5118_v55  ;;  %v18143_v31 = vpop.eup %15316  ;;  %v18145_v3 = vpack.c.bf16 %v13402_v53, %v7338_v43  ;;  %v4799_v56 = vpop.xlane.xlu1 %4798 }
 0x603   : > { %v4706_v48 = vpop.xlane.xlu0 %4705  ;;  %v18149_v41 = vpop.eup %15318  ;;  %v5119_v16 = vsub.f32 %v17886_v1, %v4799_v56  ;;  %5527 = vadd.xlane.f32.xlu1 %v5526_v40  ;;  %v5532_v61 = vsel %vm490_vm0, %v18143_v31, 0.0 }
 0x604   : > { %v5088_v9 = vsub.f32 %v17882_v11, %v4706_v48  ;;  %15328 = vpow2.f32 %v5276_v44  ;;  %5533 = vadd.xlane.f32.xlu0 %v5532_v61  ;;  %v13405_v6 = vpop.f32.mrb[106].mxu1  ;;  %v5529_v11 = vsel %vm490_vm0, %v18149_v41, 0.0 }
 0x605   : > { %15330 = vpow2.f32 %v5274_v13  ;;  %v5278_v45 = vmul.f32 1.442695, %v5119_v16  ;;  %v7348_v28 = vpop.f32.mrb[107].mxu1 }
 0x606   : > { %v5216_v38 = vmul.f32 1.442695, %v5088_v9  ;;  %v18155_v58 = vpop.eup %15320  ;;  %v18157_v46 = vpack.c.bf16 %v13405_v6, %v7348_v28  ;;  %v4709_v50 = vpop.xlane.xlu1 %4708 }
 0x607   : > { %v4712_v15 = vpop.xlane.xlu0 %4711  ;;  %v18161_v1 = vpop.eup %15322  ;;  %v5089_v52 = vsub.f32 %v17894_v22, %v4709_v50  ;;  %5530 = vadd.xlane.f32.xlu1 %v5529_v11  ;;  %v5538_v53 = vsel %vm490_vm0, %v18155_v58, 0.0 }
 0x608   : > { %v5090_v55 = vsub.f32 %v17898_v8, %v4712_v15  ;;  %15332 = vpow2.f32 %v5216_v38  ;;  %5539 = vadd.xlane.f32.xlu0 %v5538_v53  ;;  %v13408_v13 = vpop.f32.mrb[108].mxu1  ;;  %v5535_v22 = vsel %vm490_vm0, %v18161_v1, 0.0 }
 0x609   : > { %15334 = vpow2.f32 %v5278_v45  ;;  %v5218_v44 = vmul.f32 1.442695, %v5089_v52  ;;  %v7358_v56 = vpop.f32.mrb[109].mxu1 }
 0x60a   : > { %v5220_v43 = vmul.f32 1.442695, %v5090_v55  ;;  %v18167_v48 = vpop.eup %15324  ;;  %v18169_v40 = vpack.c.bf16 %v13408_v13, %v7358_v56  ;;  %v4715_v16 = vpop.xlane.xlu1 %4714  ;;  %15336 = vrcp.f32 %v18106_v54 }
 0x60b   : > { %v4718_v9 = vpop.xlane.xlu0 %4717  ;;  %v18173_v8 = vpop.eup %15326  ;;  %v5091_v61 = vsub.f32 %v17906_v57, %v4715_v16  ;;  %5536 = vadd.xlane.f32.xlu1 %v5535_v22  ;;  %v5556_v45 = vsel %vm490_vm0, %v18167_v48, 0.0 }
 0x60c   : > { %v5092_v6 = vsub.f32 %v17910_v5, %v4718_v9  ;;  %15338 = vpow2.f32 %v5220_v43  ;;  %5557 = vadd.xlane.f32.xlu0 %v5556_v45  ;;  %v13411_v38 = vpop.f32.mrb[110].mxu1  ;;  %v5541_v5 = vsel %vm490_vm0, %v18173_v8, 0.0 }
 0x60d   : > { %15340 = vpow2.f32 %v5218_v44  ;;  %v5222_v28 = vmul.f32 1.442695, %v5091_v61  ;;  %v7368_v15 = vpop.f32.mrb[111].mxu1 }
 0x60e   : > { %v5224_v50 = vmul.f32 1.442695, %v5092_v6  ;;  %v18180_v11 = vpop.eup %15328  ;;  %15342 = vrcp.f32 %v18108_v36  ;;  %v18183_v54 = vpack.c.bf16 %v13411_v38, %v7368_v15  ;;  %v4721_v57 = vpop.xlane.xlu1 %4720 }
 0x60f   : > { %v4724_v52 = vpop.xlane.xlu0 %4723  ;;  %v18187_v55 = vpop.eup %15330  ;;  %15344 = vrcp.f32 %v18114_v18  ;;  %v5093_v53 = vsub.f32 %v17918_v29, %v4721_v57  ;;  %5542 = vadd.xlane.f32.xlu1 %v5541_v5  ;;  %v5562_v44 = vsel %vm490_vm0, %v18180_v11, 0.0 }
 0x610   : > { %v5094_v13 = vsub.f32 %v17922_v12, %v4724_v52  ;;  %15346 = vpow2.f32 %v5224_v50  ;;  %5563 = vadd.xlane.f32.xlu0 %v5562_v44  ;;  %v13414_v36 = vpop.f32.mrb[112].mxu1  ;;  %v5559_v29 = vsel %vm490_vm0, %v18187_v55, 0.0  ;;  %v11783_v50 = vld [vmem:[%s20202_s2 + $0x68] sm:$0xff] }
 0x611   : > { %15348 = vpow2.f32 %v5222_v28  ;;  %v5226_v43 = vmul.f32 1.442695, %v5093_v53  ;;  %v7378_v16 = vpop.f32.mrb[113].mxu1  ;;  %v11782_v28 = vld [vmem:[%s20202_s2 + $0x60] sm:$0xff] }
 0x612   : > { %v5228_v56 = vmul.f32 1.442695, %v5094_v13  ;;  %v18194_v9 = vpop.eup %15332  ;;  %v14504_v22 = vpack.c.bf16 %v13414_v36, %v7378_v16  ;;  %v4727_v61 = vpop.xlane.xlu1 %4726  ;;  %v14520_v16 = vpack.c.bf16 %v11783_v50, %v11782_v28 }
 0x613   : > { %v4742_v18 = vpop.xlane.xlu0 %4741  ;;  %v18198_v12 = vpop.eup %15334  ;;  %v5095_v6 = vsub.f32 %v17930_v62, %v4727_v61  ;;  %5560 = vadd.xlane.f32.xlu1 %v5559_v29  ;;  %v5472_v38 = vsel %vm490_vm0, %v18194_v9, 0.0  ;;  %v11785_v29 = vld [vmem:[%s20202_s2 + $0x78] sm:$0xff] }
 0x614   : > { %v5100_v45 = vsub.f32 %v17934_v42, %v4742_v18  ;;  %15350 = vpow2.f32 %v5228_v56  ;;  %5473 = vadd.xlane.f32.xlu0 %v5472_v38  ;;  %v13417_v15 = vpop.f32.mrb[114].mxu1  ;;  %14505 = vmatprep.subr.bf16.mxu1 %v14504_v22  ;;  %v15337_v57 = vpop.eup %15336  ;;  %v5565_v36 = vsel %vm490_vm0, %v18198_v12, 0.0 }
 0x615   : > { %15352 = vpow2.f32 %v5226_v43  ;;  %v5230_v62 = vmul.f32 1.442695, %v5095_v6  ;;  %v7388_v52 = vpop.f32.mrb[115].mxu1  ;;  %14507 = vmatpush3.bf16.msra.mxu1 %v14504_v22  ;;  %v11784_v22 = vld [vmem:[%s20202_s2 + $0x70] sm:$0xff] }
 0x616   : > { %v5240_v42 = vmul.f32 1.442695, %v5100_v45  ;;  %v18210_v5 = vpop.eup %15338  ;;  %v14508_v53 = vpack.c.bf16 %v13417_v15, %v7388_v52  ;;  %v4745_v13 = vpop.xlane.xlu1 %4744  ;;  %v6025_v15 = vmul.f32 %v15337_v57, %v17782_v37 }
 0x617   : > { %v4748_v44 = vpop.xlane.xlu0 %4747  ;;  %v18214_v61 = vpop.eup %15340  ;;  %v5101_v56 = vsub.f32 %v17942_v35, %v4745_v13  ;;  %5566 = vadd.xlane.f32.xlu1 %v5565_v36  ;;  %v5478_v43 = vsel %vm490_vm0, %v18210_v5, 0.0  ;;  %v14524_v36 = vpack.c.bf16 %v11785_v29, %v11784_v22 }
 0x618   : > { %v5102_v18 = vsub.f32 %v17946_v24, %v4748_v44  ;;  %v15343_v6 = vpop.eup %15342  ;;  %15354 = vpow2.f32 %v5240_v42  ;;  %5479 = vadd.xlane.f32.xlu0 %v5478_v43  ;;  %v13420_v45 = vpop.f32.mrb[116].mxu1  ;;  %14509 = vmatprep.subr.bf16.mxu1 %v14508_v53  ;;  %v5475_v42 = vsel %vm490_vm0, %v18214_v61, 0.0 }
 0x619   : > { %v15345_v35 = vpop.eup %15344  ;;  %15356 = vpow2.f32 %v5230_v62  ;;  %v5242_v24 = vmul.f32 1.442695, %v5101_v56  ;;  %v7398_v28 = vpop.f32.mrb[117].mxu1  ;;  %14511 = vmatpush3.bf16.msra.mxu1 %v14508_v53  ;;  %v6026_v37 = vmul.f32 %v15343_v6, %v17790_v25 }
 0x61a   : > { %v5244_v38 = vmul.f32 1.442695, %v5102_v18  ;;  %v18226_v50 = vpop.eup %15346  ;;  %v18229_v52 = vpack.c.bf16 %v13420_v45, %v7398_v28  ;;  %v4751_v13 = vpop.xlane.xlu1 %4750  ;;  %14521 = vmatprep.subr.bf16.mxu1 %v14520_v16  ;;  %v6027_v6 = vmul.f32 %v15345_v35, %v17803_v4 }
 0x61b   : > { %v4802_v44 = vpop.xlane.xlu0 %4801  ;;  %v18233_v43 = vpop.eup %15348  ;;  %v5103_v62 = vsub.f32 %v17954_v14, %v4751_v13  ;;  %5476 = vadd.xlane.f32.xlu1 %v5475_v42  ;;  %v5484_v53 = vsel %vm490_vm0, %v18226_v50, 0.0 }
 0x61c   : > { %v5120_v56 = vsub.f32 %v17958_v34, %v4802_v44  ;;  %15358 = vpow2.f32 %v5244_v38  ;;  %5485 = vadd.xlane.f32.xlu0 %v5484_v53  ;;  %v13423_v57 = vpop.f32.mrb[118].mxu1  ;;  %13461 = vmatmul.mubr.msk.f32.vlgmr.msra.gmra.mrb[100].mxu1 %vm490_vm0, %v6025_v15  ;;  %v5481_v25 = vsel %vm490_vm0, %v18233_v43, 0.0 }
 0x61d   : > { %15360 = vpow2.f32 %v5242_v24  ;;  %v5246_v18 = vmul.f32 1.442695, %v5103_v62  ;;  %v7408_v29 = vpop.f32.mrb[119].mxu1  ;;  %13463 = vmatprep.mubr.msk.f32.mxu1 %vm490_vm0, %v6026_v37  ;;  %14523 = vmatpush3.bf16.msra.mxu1 %v14520_v16 }
 0x61e   : > { %v5280_v22 = vmul.f32 1.442695, %v5120_v56  ;;  %v18242_v14 = vpop.eup %15350  ;;  %v18244_v34 = vpack.c.bf16 %v13423_v57, %v7408_v29  ;;  %v4805_v45 = vpop.xlane.xlu1 %4804  ;;  %14525 = vmatprep.subr.bf16.mxu1 %v14524_v36 }
 0x61f   : > { %v4808_v28 = vpop.xlane.xlu0 %4807  ;;  %v18249_v38 = vpop.eup %15352  ;;  %v5121_v24 = vsub.f32 %v17966_v60, %v4805_v45  ;;  %5482 = vadd.xlane.f32.xlu1 %v5481_v25  ;;  %v5490_v16 = vsel %vm490_vm0, %v18242_v14, 0.0 }
 0x620   : > { %v5122_v15 = vsub.f32 %v17970_v33, %v4808_v28  ;;  %15362 = vpow2.f32 %v5280_v22  ;;  %5491 = vadd.xlane.f32.xlu0 %v5490_v16  ;;  %13464 = vmatmul.mubr.msk.f32.gmra.mrb[102].mxu1 %vm490_vm0, %v6027_v6  ;;  %v5487_v33 = vsel %vm490_vm0, %v18249_v38, 0.0 }
 0x621   : > { %15364 = vpow2.f32 %v5246_v18  ;;  %v5282_v13 = vmul.f32 1.442695, %v5121_v24  ;;  %14527 = vmatpush3.bf16.msra.mxu1 %v14524_v36  ;;  %13488 = vmatprep.mubr.msk.f32.mxu1 %vm490_vm0, %v17323_v21  ;;  %v20559_v21 = vld [vmem:[#allocation49_spill] sm:$0xff] }
 0x622   : > { %v5284_v44 = vmul.f32 1.442695, %v5122_v15  ;;  %v18258_v4 = vpop.eup %15354  ;;  %v4811_v60 = vpop.xlane.xlu1 %4810 }
 0x623   : > { %v4814_v35 = vpop.xlane.xlu0 %4813  ;;  %v18262_v42 = vpop.eup %15356  ;;  %v5123_v62 = vsub.f32 %v17982_v7, %v4811_v60  ;;  %5488 = vadd.xlane.f32.xlu1 %v5487_v33  ;;  %v5508_v36 = vsel %vm490_vm0, %v18258_v4, 0.0 }
 0x624   : > { %v5124_v56 = vsub.f32 %v17978_v26, %v4814_v35  ;;  %15366 = vpow2.f32 %v5284_v44  ;;  %5509 = vadd.xlane.f32.xlu0 %v5508_v36  ;;  %13489 = vmatmul.mubr.msk.f32.vlgmr.msra.gmra.mrb[120].mxu1 %vm490_vm0, %v17325_v51  ;;  %v5493_v26 = vsel %vm490_vm0, %v18262_v42, 0.0 }
 0x625   : > { %15368 = vpow2.f32 %v5282_v13  ;;  %v5286_v53 = vmul.f32 1.442695, %v5123_v62  ;;  %13491 = vmatprep.mubr.msk.f32.mxu1 %vm490_vm0, %v17353_v30 }
 0x626   : > { %v5288_v37 = vmul.f32 1.442695, %v5124_v56  ;;  %v18272_v57 = vpop.eup %15358  ;;  %v4817_v7 = vpop.xlane.xlu1 %4816 }
 0x627   : > { %v4820_v18 = vpop.xlane.xlu0 %4819  ;;  %v18276_v22 = vpop.eup %15360  ;;  %v5125_v29 = vsub.f32 %v17990_v17, %v4817_v7  ;;  %5494 = vadd.xlane.f32.xlu1 %v5493_v26  ;;  %v5514_v28 = vsel %vm490_vm0, %v18272_v57, 0.0  ;;  %v20522_v7 = vld [vmem:[#allocation7_spill] sm:$0xff] }
 0x628   : > { %v5126_v45 = vsub.f32 %v17994_v49, %v4820_v18  ;;  %15370 = vpow2.f32 %v5288_v37  ;;  %5515 = vadd.xlane.f32.xlu0 %v5514_v28  ;;  %13492 = vmatmul.mubr.msk.f32.gmra.mrb[122].mxu1 %vm490_vm0, %v17359_v32  ;;  %v5511_v49 = vsel %vm490_vm0, %v18276_v22, 0.0 }
 0x629   : > { %15372 = vpow2.f32 %v5286_v53  ;;  %v5290_v25 = vmul.f32 1.442695, %v5125_v29  ;;  %13494 = vmatprep.mubr.msk.f32.mxu1 %vm490_vm0, %v17369_v59  ;;  %v20521_v53 = vld [vmem:[#allocation8_spill] sm:$0xff]  ;;  %v20523_v29 = vld [vmem:[#allocation34_spill] sm:$0xff] }
 0x62a   : > { %v5292_v6 = vmul.f32 1.442695, %v5126_v45  ;;  %v18286_v24 = vpop.eup %15362  ;;  %v4823_v17 = vpop.xlane.xlu1 %4822 }
 0x62b   : > { %v4838_v15 = vpop.xlane.xlu0 %4837  ;;  %v18290_v16 = vpop.eup %15364  ;;  %v5127_v13 = vsub.f32 %v18002_v27, %v4823_v17  ;;  %5512 = vadd.xlane.f32.xlu1 %v5511_v49  ;;  %v5568_v60 = vsel %vm490_vm0, %v18286_v24, 0.0 }
 0x62c   : > { %v5132_v44 = vsub.f32 %v18006_v0, %v4838_v15  ;;  %15374 = vpow2.f32 %v5292_v6  ;;  %5569 = vadd.xlane.f32.xlu0 %v5568_v60  ;;  %13495 = vmatmul.mubr.msk.f32.gmra.mrb[124].mxu1 %vm490_vm0, %v17377_v39  ;;  %v5517_v0 = vsel %vm490_vm0, %v18290_v16, 0.0 }
 0x62d   : > { %15376 = vpow2.f32 %v5290_v25  ;;  %v5294_v35 = vmul.f32 1.442695, %v5127_v13  ;;  %13497 = vmatprep.mubr.msk.f32.mxu1 %vm490_vm0, %v17393_v23  ;;  %v20524_v25 = vld [vmem:[#allocation35_spill] sm:$0xff] }
 0x62e   : > { %v5304_v33 = vmul.f32 1.442695, %v5132_v44  ;;  %v18300_v62 = vpop.eup %15366  ;;  %v4841_v27 = vpop.xlane.xlu1 %4840  ;;  %v20525_v44 = vld [vmem:[#allocation10_spill] sm:$0xff] }
 0x62f   : > { %v4844_v56 = vpop.xlane.xlu0 %4843  ;;  %v18304_v36 = vpop.eup %15368  ;;  %v5133_v37 = vsub.f32 %v20521_v53, %v4841_v27  ;;  %5518 = vadd.xlane.f32.xlu1 %v5517_v0  ;;  %v5574_v26 = vsel %vm490_vm0, %v18300_v62, 0.0 }
 0x630   : > { %v5134_v18 = vsub.f32 %v20522_v7, %v4844_v56  ;;  %15378 = vpow2.f32 %v5304_v33  ;;  %5575 = vadd.xlane.f32.xlu0 %v5574_v26  ;;  %13498 = vmatmul.mubr.msk.f32.gmra.mrb[126].mxu1 %vm490_vm0, %v20523_v29  ;;  %v5571_v49 = vsel %vm490_vm0, %v18304_v36, 0.0  ;;  %v20526_v33 = vld [vmem:[#allocation9_spill] sm:$0xff]  ;;  %v20527_v56 = vld [vmem:[#allocation36_spill] sm:$0xff] }
 0x631   : > { %15380 = vpow2.f32 %v5294_v35  ;;  %v5306_v45 = vmul.f32 1.442695, %v5133_v37  ;;  %13500 = vmatprep.mubr.msk.f32.mxu1 %vm490_vm0, %v20524_v25  ;;  %v20528_v37 = vld [vmem:[#allocation39_spill] sm:$0xff] }
 0x632   : > { %v5308_v28 = vmul.f32 1.442695, %v5134_v18  ;;  %v18314_v6 = vpop.eup %15370  ;;  %v4847_v17 = vpop.xlane.xlu1 %4846 }
 0x633   : > { %v4850_v15 = vpop.xlane.xlu0 %4849  ;;  %v18318_v13 = vpop.eup %15372  ;;  %v5135_v60 = vsub.f32 %v20525_v44, %v4847_v17  ;;  %5572 = vadd.xlane.f32.xlu1 %v5571_v49  ;;  %v5580_v35 = vsel %vm490_vm0, %v18314_v6, 0.0  ;;  %v20530_v44 = vld [vmem:[#allocation11_spill] sm:$0xff] }
 0x634   : > { %v5136_v27 = vsub.f32 %v20526_v33, %v4850_v15  ;;  %15382 = vpow2.f32 %v5308_v28  ;;  %5581 = vadd.xlane.f32.xlu0 %v5580_v35  ;;  %13501 = vmatmul.mubr.msk.f32.gmra.mrb[128].mxu1 %vm490_vm0, %v20527_v56  ;;  %v5577_v17 = vsel %vm490_vm0, %v18318_v13, 0.0  ;;  %v20529_v28 = vld [vmem:[#allocation12_spill] sm:$0xff] }
 0x635   : > { %15384 = vpow2.f32 %v5306_v45  ;;  %v5310_v0 = vmul.f32 1.442695, %v5135_v60  ;;  %13503 = vmatprep.mubr.msk.f32.mxu1 %vm490_vm0, %v20528_v37  ;;  %v20531_v60 = vld [vmem:[#allocation40_spill] sm:$0xff]  ;;  %v20532_v37 = vld [vmem:[#allocation127_spill] sm:$0xff] }
 0x636   : > { %v5312_v53 = vmul.f32 1.442695, %v5136_v27  ;;  %v18328_v7 = vpop.eup %15374  ;;  %v4853_v18 = vpop.xlane.xlu1 %4852 }
 0x637   : > { %v4856_v26 = vpop.xlane.xlu0 %4855  ;;  %v18332_v15 = vpop.eup %15376  ;;  %v5137_v49 = vsub.f32 %v20529_v28, %v4853_v18  ;;  %5578 = vadd.xlane.f32.xlu1 %v5577_v17  ;;  %v5586_v45 = vsel %vm490_vm0, %v18328_v7, 0.0 }
 0x638   : > { %v5138_v33 = vsub.f32 %v20530_v44, %v4856_v26  ;;  %15386 = vpow2.f32 %v5312_v53  ;;  %5587 = vadd.xlane.f32.xlu0 %v5586_v45  ;;  %13504 = vmatmul.mubr.msk.f32.gmra.mrb[130].mxu1 %vm490_vm0, %v20531_v60  ;;  %v5583_v26 = vsel %vm490_vm0, %v18332_v15, 0.0  ;;  %v20533_v53 = vld [vmem:[#allocation13_spill] sm:$0xff]  ;;  %v20534_v45 = vld [vmem:[#allocation14_spill] sm:$0xff] }
 0x639   : > { %15388 = vpow2.f32 %v5310_v0  ;;  %v5314_v27 = vmul.f32 1.442695, %v5137_v49  ;;  %13506 = vmatprep.mubr.msk.f32.mxu1 %vm490_vm0, %v20532_v37  ;;  %v20535_v49 = vld [vmem:[#allocation125_spill] sm:$0xff]  ;;  %v20536_v60 = vld [vmem:[#allocation126_spill] sm:$0xff] }
 0x63a   : > { %v5316_v35 = vmul.f32 1.442695, %v5138_v33  ;;  %v18342_v56 = vpop.eup %15378  ;;  %v4859_v18 = vpop.xlane.xlu1 %4858 }
 0x63b   : > { %v4862_v28 = vpop.xlane.xlu0 %4861  ;;  %v18346_v17 = vpop.eup %15380  ;;  %v5139_v44 = vsub.f32 %v20533_v53, %v4859_v18  ;;  %5584 = vadd.xlane.f32.xlu1 %v5583_v26  ;;  %v5604_v0 = vsel %vm490_vm0, %v18342_v56, 0.0 }
 0x63c   : > { %v5140_v25 = vsub.f32 %v20534_v45, %v4862_v28  ;;  %15390 = vpow2.f32 %v5316_v35  ;;  %5605 = vadd.xlane.f32.xlu0 %v5604_v0  ;;  %13507 = vmatmul.mubr.msk.f32.gmra.mrb[132].mxu1 %vm490_vm0, %v20535_v49  ;;  %v5589_v28 = vsel %vm490_vm0, %v18346_v17, 0.0  ;;  %v20537_v35 = vld [vmem:[#allocation21_spill] sm:$0xff]  ;;  %v20538_v0 = vld [vmem:[#allocation19_spill] sm:$0xff] }
 0x63d   : > { %15392 = vpow2.f32 %v5314_v27  ;;  %v5318_v33 = vmul.f32 1.442695, %v5139_v44  ;;  %13509 = vmatprep.mubr.msk.f32.mxu1 %vm490_vm0, %v20536_v60  ;;  %v20539_v27 = vld [vmem:[#allocation128_spill] sm:$0xff] }
 0x63e   : > { %v5320_v37 = vmul.f32 1.442695, %v5140_v25  ;;  %v18356_v29 = vpop.eup %15382  ;;  %v4865_v18 = vpop.xlane.xlu1 %4864 }
 0x63f   : > { %v4868_v53 = vpop.xlane.xlu0 %4867  ;;  %v18360_v26 = vpop.eup %15384  ;;  %v5141_v45 = vsub.f32 %v20537_v35, %v4865_v18  ;;  %5590 = vadd.xlane.f32.xlu1 %v5589_v28  ;;  %v5610_v25 = vsel %vm490_vm0, %v18356_v29, 0.0  ;;  %v20540_v28 = vld [vmem:[#allocation25_spill] sm:$0xff] }
 0x640   : > { %v5142_v23 = vsub.f32 %v20538_v0, %v4868_v53  ;;  %15394 = vpow2.f32 %v5320_v37  ;;  %5611 = vadd.xlane.f32.xlu0 %v5610_v25  ;;  %13510 = vmatmul.mubr.msk.f32.gmra.mrb[134].mxu1 %vm490_vm0, %v20539_v27  ;;  %v5607_v18 = vsel %vm490_vm0, %v18360_v26, 0.0  ;;  %v20541_v0 = vld [vmem:[#allocation16_spill] sm:$0xff] }
 0x641   : > { %15396 = vpow2.f32 %v5318_v33  ;;  %v5322_v44 = vmul.f32 1.442695, %v5141_v45 }
 0x642   : > { %v5324_v60 = vmul.f32 1.442695, %v5142_v23  ;;  %v18368_v49 = vpop.eup %15386  ;;  %v4871_v39 = vpop.xlane.xlu1 %4870 }
 0x643   : > { %v4886_v59 = vpop.xlane.xlu0 %4885  ;;  %v18372_v53 = vpop.eup %15388  ;;  %v5143_v35 = vsub.f32 %v20540_v28, %v4871_v39  ;;  %5608 = vadd.xlane.f32.xlu1 %v5607_v18  ;;  %v5616_v25 = vsel %vm490_vm0, %v18368_v49, 0.0  ;;  %v20544_v39 = vld [vmem:[#allocation23_spill] sm:$0xff] }
 0x644   : > { %v5148_v37 = vsub.f32 %v20541_v0, %v4886_v59  ;;  %15398 = vpow2.f32 %v5324_v60  ;;  %5617 = vadd.xlane.f32.xlu0 %v5616_v25  ;;  %v5613_v32 = vsel %vm490_vm0, %v18372_v53, 0.0 }
 0x645   : > { %15400 = vpow2.f32 %v5322_v44  ;;  %v5326_v23 = vmul.f32 1.442695, %v5143_v35 }
 0x646   : > { %v5336_v33 = vmul.f32 1.442695, %v5148_v37  ;;  %v18378_v45 = vpop.eup %15390  ;;  %v20547_v37 = vld [vmem:[#allocation15_spill] sm:$0xff] }
 0x647   : > { %20542 = vst [vmem:[#allocation29_spill] sm:$0xff] %v18378_v45  ;;  %v4889_v27 = vpop.xlane.xlu0 %4888  ;;  %v18382_v30 = vpop.eup %15392  ;;  %5614 = vadd.xlane.f32.xlu1 %v5613_v32  ;;  %v5622_v59 = vsel %vm490_vm0, %v18378_v45, 0.0  ;;  %v20568_v45 = vld [vmem:[#allocation69_spill] sm:$0xff] }
 0x648   : > { %20543 = vst [vmem:[#allocation28_spill] sm:$0xff] %v18382_v30  ;;  %v5149_v28 = vsub.f32 %v20544_v39, %v4889_v27  ;;  %15402 = vpow2.f32 %v5336_v33  ;;  %5623 = vadd.xlane.f32.xlu0 %v5622_v59  ;;  %v5619_v35 = vsel %vm490_vm0, %v18382_v30, 0.0  ;;  %v20550_v59 = vld [vmem:[#allocation22_spill] sm:$0xff] }
 0x649   : > { %15404 = vpow2.f32 %v5326_v23 }
 0x64a   : > { %v5338_v60 = vmul.f32 1.442695, %v5149_v28  ;;  %v18387_v44 = vpop.eup %15394 }
 0x64b   : > { %20545 = vst [vmem:[#allocation32_spill] sm:$0xff] %v18387_v44  ;;  %v4892_v18 = vpop.xlane.xlu0 %4891  ;;  %v18391_v0 = vpop.eup %15396  ;;  %5620 = vadd.xlane.f32.xlu1 %v5619_v35  ;;  %v5628_v32 = vsel %vm490_vm0, %v18387_v44, 0.0 }
 0x64c   : > { %20546 = vst [vmem:[#allocation31_spill] sm:$0xff] %v18391_v0  ;;  %v5150_v25 = vsub.f32 %v20547_v37, %v4892_v18  ;;  %5629 = vadd.xlane.f32.xlu0 %v5628_v32  ;;  %15406 = vpow2.f32 %v5338_v60  ;;  %v5625_v39 = vsel %vm490_vm0, %v18391_v0, 0.0  ;;  %v20566_v0 = vld [vmem:[#allocation70_spill] sm:$0xff] }
 0x64e   : > { %v5340_v27 = vmul.f32 1.442695, %v5150_v25  ;;  %v18396_v33 = vpop.eup %15398 }
 0x64f   : > { %20548 = vst [vmem:[#allocation44_spill] sm:$0xff] %v18396_v33  ;;  %v4895_v23 = vpop.xlane.xlu0 %4894  ;;  %v18400_v28 = vpop.eup %15400  ;;  %5626 = vadd.xlane.f32.xlu1 %v5625_v39  ;;  %v5634_v18 = vsel %vm490_vm0, %v18396_v33, 0.0  ;;  %v18422_v39 = vld [vmem:[%s20213_s13] sm:$0xff] }
 0x650   : > { %20549 = vst [vmem:[#allocation42_spill] sm:$0xff] %v18400_v28  ;;  %15408 = vpow2.f32 %v5340_v27  ;;  %v5151_v51 = vsub.f32 %v20550_v59, %v4895_v23  ;;  %5635 = vadd.xlane.f32.xlu0 %v5634_v18  ;;  %v5631_v60 = vsel %vm490_vm0, %v18400_v28, 0.0  ;;  %20555 = vst [vmem:[#allocation43_spill] sm:$0xff] %v18422_v39  ;;  %v20556_v59 = vld [vmem:[#allocation51_spill] sm:$0xff] }
 0x651   : > { %v18426_v18 = vadd.f32 %v18422_v39, %v20556_v59  ;;  %v18446_v59 = vld [vmem:[%s20213_s13 + $0x10] sm:$0xff]  ;;  %v20564_v28 = vld [vmem:[#allocation67_spill] sm:$0xff] }
 0x652   : > { %v5342_v35 = vmul.f32 1.442695, %v5151_v51  ;;  %v18405_v37 = vpop.eup %15402  ;;  %20560 = vst [vmem:[#allocation47_spill] sm:$0xff] %v18446_v59 }
 0x653   : > { %20551 = vst [vmem:[#allocation46_spill] sm:$0xff] %v18405_v37  ;;  %v18409_v25 = vpop.eup %15404  ;;  %5632 = vadd.xlane.f32.xlu1 %v5631_v60  ;;  %v5652_v32 = vsel %vm490_vm0, %v18405_v37, 0.0 }
 0x654   : > { %20552 = vst [vmem:[#allocation38_spill] sm:$0xff] %v18409_v25  ;;  %15410 = vpow2.f32 %v5342_v35  ;;  %5653 = vadd.xlane.f32.xlu0 %v5652_v32  ;;  %v5637_v27 = vsel %vm490_vm0, %v18409_v25, 0.0  ;;  %v20563_v25 = vld [vmem:[#allocation53_spill] sm:$0xff] }
 0x656   : > { %v18415_v23 = vpop.eup %15406 }
 0x657   : > { %20553 = vst [vmem:[#allocation45_spill] sm:$0xff] %v18415_v23  ;;  %5638 = vadd.xlane.f32.xlu1 %v5637_v27  ;;  %v5655_v35 = vsel %vm490_vm0, %v18415_v23, 0.0  ;;  %v18437_v27 = vld [vmem:[%s20213_s13 + $0x8] sm:$0xff]  ;;  %v20561_v23 = vld [vmem:[#allocation54_spill] sm:$0xff] }
 0x658   : > { %20558 = vst [vmem:[#allocation48_spill] sm:$0xff] %v18437_v27  ;;  %v18441_v37 = vadd.f32 %v18437_v27, %v20559_v21  ;;  %v18459_v21 = vld [vmem:[%s20213_s13 + $0x18] sm:$0xff] }
 0x659   : > { %20562 = vst [vmem:[#allocation52_spill] sm:$0xff] %v18459_v21  ;;  %v18463_v33 = vadd.f32 %v18459_v21, %v20563_v25  ;;  %v18479_v25 = vadd.f32 %v18446_v59, %v20566_v0 }
 0x65a   : > { %v18417_v51 = vpop.eup %15408 }
 0x65b   : > { %20554 = vst [vmem:[#allocation37_spill] sm:$0xff] %v18417_v51  ;;  %v5658_v60 = vsel %vm490_vm0, %v18417_v51, 0.0  ;;  %5656 = vadd.xlane.f32.xlu1 %v5655_v35  ;;  %v18450_v35 = vadd.f32 %v18446_v59, %v20561_v23  ;;  %v18467_v23 = vadd.f32 %v18422_v39, %v20564_v28  ;;  %20567 = vst [vmem:[#allocation50_spill] sm:$0xff] %v18479_v25  ;;  %v4881_v39 = vsel %vm490_vm0, %v18463_v33, -inf }
 0x65c   : > { %5659 = vadd.xlane.f32.xlu0 %v5658_v60  ;;  %v4872_v60 = vsel %vm490_vm0, %v18426_v18, -inf }
 0x65d   : > { %v4878_v44 = vsel %vm490_vm0, %v18450_v35, -inf  ;;  %v4920_v28 = vsel %vm490_vm0, %v18467_v23, -inf }
 0x65e   : > { %v18432_v32 = vpop.eup %15410 }
 0x65f   : > { %20557 = vst [vmem:[#allocation41_spill] sm:$0xff] %v18432_v32  ;;  %v5661_v51 = vsel %vm490_vm0, %v18432_v32, 0.0 }
 0x660   : > { %4873 = vmax.xlane.f32.xlu0 %v4872_v60  ;;  %5662 = vadd.xlane.f32.xlu1 %v5661_v51  ;;  %v4875_v60 = vsel %vm490_vm0, %v18441_v37, -inf  ;;  %v20565_v51 = vld [vmem:[#allocation65_spill] sm:$0xff] }
 0x661   : > { %v18475_v32 = vadd.f32 %v18437_v27, %v20565_v51 }
 0x663   : > { %v4923_v51 = vsel %vm490_vm0, %v18475_v32, -inf }
 0x664   : > { %4879 = vmax.xlane.f32.xlu0 %v4878_v44  ;;  %4876 = vmax.xlane.f32.xlu1 %v4875_v60  ;;  %v18487_v44 = vadd.f32 %v18459_v21, %v20568_v45  ;;  %v4926_v60 = vsel %vm490_vm0, %v18479_v25, -inf }
 0x666   : > { %v4929_v0 = vsel %vm490_vm0, %v18487_v44, -inf }
 0x668   : > { %4921 = vmax.xlane.f32.xlu0 %v4920_v28  ;;  %4882 = vmax.xlane.f32.xlu1 %v4881_v39 }
 0x66c   : > { %4927 = vmax.xlane.f32.xlu0 %v4926_v60  ;;  %4924 = vmax.xlane.f32.xlu1 %v4923_v51 }
 0x670   : > { %4930 = vmax.xlane.f32.xlu1 %v4929_v0 }
 0x688   : > { %v5522_v59 = vpop.xlane.xlu1 %5521 }
 0x689   : > { %15412 = vrcp.f32 %v5522_v59 }
 0x68c   : > { %v5525_v28 = vpop.xlane.xlu1 %5524 }
 0x68d   : > { %15414 = vrcp.f32 %v5525_v28 }
 0x690   : > { %v5528_v39 = vpop.xlane.xlu1 %5527 }
 0x691   : > { %15416 = vrcp.f32 %v5528_v39  ;;  %v5534_v45 = vpop.xlane.xlu0 %5533  ;;  %v20569_v39 = vld [vmem:[#allocation121_spill] sm:$0xff] }
 0x692   : > { %15418 = vrcp.f32 %v5534_v45  ;;  %v20570_v45 = vld [vmem:[#allocation123_spill] sm:$0xff] }
 0x693   : > { %v15413_v21 = vpop.eup %15412 }
 0x694   : > { %v5531_v27 = vpop.xlane.xlu1 %5530  ;;  %v6000_v30 = vmul.f32 %v15413_v21, %v18129_v63 }
 0x695   : > { %15420 = vrcp.f32 %v5531_v27  ;;  %v5540_v25 = vpop.xlane.xlu0 %5539 }
 0x696   : > { %13288 = vmatprep.mubr.msk.f32.mxu0 %vm490_vm0, %v6000_v30  ;;  %15422 = vrcp.f32 %v5540_v25 }
 0x697   : > { %v15415_v60 = vpop.eup %15414 }
 0x698   : > { %v6001_v51 = vmul.f32 %v15415_v60, %v18135_v20  ;;  %v5537_v0 = vpop.xlane.xlu1 %5536 }
 0x699   : > { %15424 = vrcp.f32 %v5537_v0  ;;  %v5558_v59 = vpop.xlane.xlu0 %5557 }
 0x69a   : > { %13289 = vmatmul.mubr.msk.f32.vlgmr.msra.gmra.mrb[76].mxu0 %vm490_vm0, %v6001_v51  ;;  %15426 = vrcp.f32 %v5558_v59 }
 0x69b   : > { %v15417_v28 = vpop.eup %15416  ;;  %14427 = vmatpush3.bf16.msra.mxu0 %v20569_v39 }
 0x69c   : > { %14429 = vmatprep.subr.bf16.mxu0 %v20570_v45  ;;  %v5543_v63 = vpop.xlane.xlu1 %5542  ;;  %v6002_v27 = vmul.f32 %v15417_v28, %v18139_v19  ;;  %v15419_v21 = vpop.eup %15418 }
 0x69d   : > { %15428 = vrcp.f32 %v5543_v63  ;;  %v5564_v30 = vpop.xlane.xlu0 %5563  ;;  %v6004_v0 = vmul.f32 %v15419_v21, %v18143_v31 }
 0x69e   : > { %13291 = vmatprep.mubr.msk.f32.mxu0 %vm490_vm0, %v6002_v27  ;;  %15430 = vrcp.f32 %v5564_v30 }
 0x69f   : > { %v15421_v20 = vpop.eup %15420  ;;  %14431 = vmatpush3.bf16.msra.mxu0 %v20570_v45 }
 0x6a0   : > { %14441 = vmatprep.subr.bf16.mxu0 %v18112_v47  ;;  %v5561_v25 = vpop.xlane.xlu1 %5560  ;;  %v6003_v60 = vmul.f32 %v15421_v20, %v18149_v41  ;;  %v15423_v59 = vpop.eup %15422 }
 0x6a1   : > { %15432 = vrcp.f32 %v5561_v25  ;;  %v5474_v51 = vpop.xlane.xlu0 %5473  ;;  %v6006_v63 = vmul.f32 %v15423_v59, %v18155_v58  ;;  %v20571_v25 = vld [vmem:[#allocation119_spill] sm:$0xff] }
 0x6a2   : > { %13292 = vmatmul.mubr.msk.f32.gmra.mrb[78].mxu0 %vm490_vm0, %v6003_v60  ;;  %15434 = vrcp.f32 %v5474_v51 }
 0x6a3   : > { %v15425_v19 = vpop.eup %15424  ;;  %13302 = vmatprep.mubr.msk.f32.mxu0 %vm490_vm0, %v6004_v0 }
 0x6a4   : > { %v6005_v28 = vmul.f32 %v15425_v19, %v18161_v1  ;;  %v5567_v39 = vpop.xlane.xlu1 %5566  ;;  %v15427_v27 = vpop.eup %15426 }
 0x6a5   : > { %15436 = vrcp.f32 %v5567_v39  ;;  %v5480_v45 = vpop.xlane.xlu0 %5479  ;;  %v6012_v21 = vmul.f32 %v15427_v27, %v18167_v48 }
 0x6a6   : > { %13303 = vmatmul.mubr.msk.f32.vlgmr.msra.gmra.mrb[80].mxu0 %vm490_vm0, %v6005_v28  ;;  %15438 = vrcp.f32 %v5480_v45 }
 0x6a7   : > { %v15429_v41 = vpop.eup %15428  ;;  %14443 = vmatpush3.bf16.msra.mxu0 %v18112_v47  ;;  %13305 = vmatprep.mubr.msk.f32.mxu0 %vm490_vm0, %v6006_v63  ;;  %v20573_v63 = vld [vmem:[#allocation122_spill] sm:$0xff] }
 0x6a8   : > { %14445 = vmatprep.subr.bf16.mxu0 %v18119_v10  ;;  %v5477_v31 = vpop.xlane.xlu1 %5476  ;;  %v6007_v1 = vmul.f32 %v15429_v41, %v18173_v8  ;;  %v15431_v20 = vpop.eup %15430 }
 0x6a9   : > { %15440 = vrcp.f32 %v5477_v31  ;;  %v5486_v30 = vpop.xlane.xlu0 %5485  ;;  %v6014_v51 = vmul.f32 %v15431_v20, %v18180_v11 }
 0x6aa   : > { %13306 = vmatmul.mubr.msk.f32.gmra.mrb[82].mxu0 %vm490_vm0, %v6007_v1  ;;  %15442 = vrcp.f32 %v5486_v30  ;;  %v20574_v1 = vld [vmem:[#allocation124_spill] sm:$0xff] }
 0x6ab   : > { %v15433_v58 = vpop.eup %15432  ;;  %14447 = vmatpush3.bf16.msra.mxu0 %v18119_v10  ;;  %13330 = vmatprep.mubr.msk.f32.mxu0 %vm490_vm0, %v6012_v21  ;;  %v20572_v10 = vld [vmem:[#allocation120_spill] sm:$0xff] }
 0x6ac   : > { %v6013_v47 = vmul.f32 %v15433_v58, %v18187_v55  ;;  %14449 = vmatprep.subr.bf16.mxu0 %v20571_v25  ;;  %v5483_v60 = vpop.xlane.xlu1 %5482  ;;  %v15435_v0 = vpop.eup %15434 }
 0x6ad   : > { %15444 = vrcp.f32 %v5483_v60  ;;  %v5492_v8 = vpop.xlane.xlu0 %5491  ;;  %v5984_v28 = vmul.f32 %v15435_v0, %v18194_v9 }
 0x6ae   : > { %13331 = vmatmul.mubr.msk.f32.vlgmr.msra.gmra.mrb[84].mxu0 %vm490_vm0, %v6013_v47  ;;  %15446 = vrcp.f32 %v5492_v8 }
 0x6af   : > { %v15437_v48 = vpop.eup %15436  ;;  %14451 = vmatpush3.bf16.msra.mxu0 %v20571_v25  ;;  %13333 = vmatprep.mubr.msk.f32.mxu0 %vm490_vm0, %v6014_v51  ;;  %v20575_v25 = vld [vmem:[#allocation20_spill] sm:$0xff] }
 0x6b0   : > { %14453 = vmatprep.subr.bf16.mxu0 %v20572_v10  ;;  %v5489_v55 = vpop.xlane.xlu1 %5488  ;;  %v6015_v59 = vmul.f32 %v15437_v48, %v18198_v12  ;;  %v15439_v39 = vpop.eup %15438 }
 0x6b1   : > { %15448 = vrcp.f32 %v5489_v55  ;;  %v5510_v19 = vpop.xlane.xlu0 %5509  ;;  %v5986_v41 = vmul.f32 %v15439_v39, %v18210_v5 }
 0x6b2   : > { %13334 = vmatmul.mubr.msk.f32.gmra.mrb[86].mxu0 %vm490_vm0, %v6015_v59  ;;  %15450 = vrcp.f32 %v5510_v19 }
 0x6b3   : > { %v15441_v11 = vpop.eup %15440  ;;  %14455 = vmatpush3.bf16.msra.mxu0 %v20572_v10  ;;  %13344 = vmatprep.mubr.msk.f32.mxu0 %vm490_vm0, %v5984_v28 }
 0x6b4   : > { %v5985_v45 = vmul.f32 %v15441_v11, %v18214_v61  ;;  %14457 = vmatprep.subr.bf16.mxu0 %v20573_v63  ;;  %v5495_v27 = vpop.xlane.xlu1 %5494  ;;  %v15443_v31 = vpop.eup %15442 }
 0x6b5   : > { %15452 = vrcp.f32 %v5495_v27  ;;  %v5516_v12 = vpop.xlane.xlu0 %5515  ;;  %v5988_v20 = vmul.f32 %v15443_v31, %v18226_v50 }
 0x6b6   : > { %13345 = vmatmul.mubr.msk.f32.vlgmr.msra.gmra.mrb[76].mxu0 %vm490_vm0, %v5985_v45  ;;  %15454 = vrcp.f32 %v5516_v12 }
 0x6b7   : > { %v15445_v9 = vpop.eup %15444  ;;  %14459 = vmatpush3.bf16.msra.mxu0 %v20573_v63  ;;  %13347 = vmatprep.mubr.msk.f32.mxu0 %vm490_vm0, %v5986_v41 }
 0x6b8   : > { %14461 = vmatprep.subr.bf16.mxu0 %v20574_v1  ;;  %v5513_v61 = vpop.xlane.xlu1 %5512  ;;  %v5987_v30 = vmul.f32 %v15445_v9, %v18233_v43  ;;  %v15447_v58 = vpop.eup %15446 }
 0x6b9   : > { %15456 = vrcp.f32 %v5513_v61  ;;  %v5570_v21 = vpop.xlane.xlu0 %5569  ;;  %v5990_v8 = vmul.f32 %v15447_v58, %v18242_v14 }
 0x6ba   : > { %13348 = vmatmul.mubr.msk.f32.gmra.mrb[78].mxu0 %vm490_vm0, %v5987_v30  ;;  %15458 = vrcp.f32 %v5570_v21 }
 0x6bb   : > { %v15449_v5 = vpop.eup %15448  ;;  %14463 = vmatpush3.bf16.msra.mxu0 %v20574_v1  ;;  %13358 = vmatprep.mubr.msk.f32.mxu0 %vm490_vm0, %v5988_v20 }
 0x6bc   : > { %v5989_v47 = vmul.f32 %v15449_v5, %v18249_v38  ;;  %14473 = vmatprep.subr.bf16.mxu0 %v20575_v25  ;;  %v5519_v60 = vpop.xlane.xlu1 %5518  ;;  %v15451_v51 = vpop.eup %15450 }
 0x6bd   : > { %15460 = vrcp.f32 %v5519_v60  ;;  %v5576_v43 = vpop.xlane.xlu0 %5575  ;;  %v5996_v10 = vmul.f32 %v15451_v51, %v18258_v4 }
 0x6be   : > { %13359 = vmatmul.mubr.msk.f32.vlgmr.msra.gmra.mrb[80].mxu0 %vm490_vm0, %v5989_v47  ;;  %15462 = vrcp.f32 %v5576_v43 }
 0x6bf   : > { %v15453_v50 = vpop.eup %15452  ;;  %14475 = vmatpush3.bf16.msra.mxu0 %v20575_v25  ;;  %13361 = vmatprep.mubr.msk.f32.mxu0 %vm490_vm0, %v5990_v8 }
 0x6c0   : > { %14477 = vmatprep.subr.bf16.mxu0 %v18117_v2  ;;  %v5573_v38 = vpop.xlane.xlu1 %5572  ;;  %v5991_v0 = vmul.f32 %v15453_v50, %v18262_v42  ;;  %v15455_v55 = vpop.eup %15454 }
 0x6c1   : > { %15464 = vrcp.f32 %v5573_v38  ;;  %v5582_v48 = vpop.xlane.xlu0 %5581  ;;  %v5998_v28 = vmul.f32 %v15455_v55, %v18272_v57 }
 0x6c2   : > { %13362 = vmatmul.mubr.msk.f32.gmra.mrb[82].mxu0 %vm490_vm0, %v5991_v0  ;;  %15466 = vrcp.f32 %v5582_v48 }
 0x6c3   : > { %v15457_v14 = vpop.eup %15456  ;;  %14479 = vmatpush3.bf16.msra.mxu0 %v18117_v2  ;;  %13386 = vmatprep.mubr.msk.f32.mxu0 %vm490_vm0, %v5996_v10 }
 0x6c4   : > { %v5997_v59 = vmul.f32 %v15457_v14, %v18276_v22  ;;  %14489 = vmatprep.subr.bf16.mxu0 %v18145_v3  ;;  %v5579_v19 = vpop.xlane.xlu1 %5578  ;;  %v15459_v39 = vpop.eup %15458 }
 0x6c5   : > { %15468 = vrcp.f32 %v5579_v19  ;;  %v5588_v42 = vpop.xlane.xlu0 %5587  ;;  %v6016_v45 = vmul.f32 %v15459_v39, %v18286_v24 }
 0x6c6   : > { %13387 = vmatmul.mubr.msk.f32.vlgmr.msra.gmra.mrb[84].mxu0 %vm490_vm0, %v5997_v59  ;;  %15470 = vrcp.f32 %v5588_v42 }
 0x6c7   : > { %v15461_v4 = vpop.eup %15460  ;;  %14491 = vmatpush3.bf16.msra.mxu0 %v18145_v3  ;;  %13389 = vmatprep.mubr.msk.f32.mxu0 %vm490_vm0, %v5998_v28 }
 0x6c8   : > { %14493 = vmatprep.subr.bf16.mxu0 %v18157_v46  ;;  %v5585_v2 = vpop.xlane.xlu1 %5584  ;;  %v5999_v22 = vmul.f32 %v15461_v4, %v18290_v16  ;;  %v15463_v63 = vpop.eup %15462 }
 0x6c9   : > { %15472 = vrcp.f32 %v5585_v2  ;;  %v5606_v11 = vpop.xlane.xlu0 %5605  ;;  %v6018_v12 = vmul.f32 %v15463_v63, %v18300_v62 }
 0x6ca   : > { %13390 = vmatmul.mubr.msk.f32.gmra.mrb[86].mxu0 %vm490_vm0, %v5999_v22  ;;  %15474 = vrcp.f32 %v5606_v11 }
 0x6cb   : > { %v15465_v57 = vpop.eup %15464  ;;  %14495 = vmatpush3.bf16.msra.mxu0 %v18157_v46  ;;  %13432 = vmatprep.mubr.msk.f32.mxu0 %vm490_vm0, %v6016_v45  ;;  %v20576_v45 = vld [vmem:[#allocation50_spill] sm:$0xff] }
 0x6cc   : > { %v6017_v3 = vmul.f32 %v15465_v57, %v18304_v36  ;;  %14497 = vmatprep.subr.bf16.mxu0 %v18169_v40  ;;  %v5591_v27 = vpop.xlane.xlu1 %5590  ;;  %v15467_v41 = vpop.eup %15466 }
 0x6cd   : > { %15476 = vrcp.f32 %v5591_v27  ;;  %v5612_v16 = vpop.xlane.xlu0 %5611  ;;  %v6020_v9 = vmul.f32 %v15467_v41, %v18314_v6 }
 0x6ce   : > { %13433 = vmatmul.mubr.msk.f32.vlgmr.msra.gmra.mrb[76].mxu0 %vm490_vm0, %v6017_v3  ;;  %15478 = vrcp.f32 %v5612_v16 }
 0x6cf   : > { %v15469_v24 = vpop.eup %15468  ;;  %14499 = vmatpush3.bf16.msra.mxu0 %v18169_v40  ;;  %13435 = vmatprep.mubr.msk.f32.mxu0 %vm490_vm0, %v6018_v12 }
 0x6d0   : > { %14501 = vmatprep.subr.bf16.mxu0 %v18183_v54  ;;  %v5609_v46 = vpop.xlane.xlu1 %5608  ;;  %v6019_v36 = vmul.f32 %v15469_v24, %v18318_v13  ;;  %v15471_v1 = vpop.eup %15470 }
 0x6d1   : > { %15480 = vrcp.f32 %v5609_v46  ;;  %v5618_v31 = vpop.xlane.xlu0 %5617  ;;  %v6022_v30 = vmul.f32 %v15471_v1, %v18328_v7 }
 0x6d2   : > { %13436 = vmatmul.mubr.msk.f32.gmra.mrb[78].mxu0 %vm490_vm0, %v6019_v36  ;;  %15482 = vrcp.f32 %v5618_v31 }
 0x6d3   : > { %v15473_v62 = vpop.eup %15472  ;;  %14503 = vmatpush3.bf16.msra.mxu0 %v18183_v54  ;;  %13446 = vmatprep.mubr.msk.f32.mxu0 %vm490_vm0, %v6020_v9 }
 0x6d4   : > { %v6021_v40 = vmul.f32 %v15473_v62, %v18332_v15  ;;  %14513 = vmatprep.subr.bf16.mxu0 %v18229_v52  ;;  %v5615_v61 = vpop.xlane.xlu1 %5614  ;;  %v15475_v21 = vpop.eup %15474 }
 0x6d5   : > { %15484 = vrcp.f32 %v5615_v61  ;;  %v5624_v13 = vpop.xlane.xlu0 %5623  ;;  %v6028_v58 = vmul.f32 %v15475_v21, %v18342_v56 }
 0x6d6   : > { %13447 = vmatmul.mubr.msk.f32.vlgmr.msra.gmra.mrb[80].mxu0 %vm490_vm0, %v6021_v40 }
 0x6d7   : > { %v15477_v6 = vpop.eup %15476  ;;  %14515 = vmatpush3.bf16.msra.mxu0 %v18229_v52  ;;  %13449 = vmatprep.mubr.msk.f32.mxu0 %vm490_vm0, %v6022_v30 }
 0x6d8   : > { %14517 = vmatprep.subr.bf16.mxu0 %v18244_v34  ;;  %v5621_v54 = vpop.xlane.xlu1 %5620  ;;  %v6023_v15 = vmul.f32 %v15477_v6, %v18346_v17  ;;  %v15479_v5 = vpop.eup %15478 }
 0x6d9   : > { %v5630_v20 = vpop.xlane.xlu0 %5629  ;;  %v6030_v25 = vmul.f32 %v15479_v5, %v18356_v29  ;;  %v20578_v5 = vld [vmem:[#allocation29_spill] sm:$0xff] }
 0x6da   : > { %13450 = vmatmul.mubr.msk.f32.gmra.mrb[82].mxu0 %vm490_vm0, %v6023_v15 }
 0x6db   : > { %v15481_v7 = vpop.eup %15480  ;;  %14519 = vmatpush3.bf16.msra.mxu0 %v18244_v34  ;;  %13474 = vmatprep.mubr.msk.f32.mxu0 %vm490_vm0, %v6028_v58 }
 0x6dc   : > { %v6029_v52 = vmul.f32 %v15481_v7, %v18360_v26  ;;  %v5627_v47 = vpop.xlane.xlu1 %5626  ;;  %v15483_v60 = vpop.eup %15482 }
 0x6dd   : > { %v5636_v43 = vpop.xlane.xlu0 %5635  ;;  %v6032_v51 = vmul.f32 %v15483_v60, %v18368_v49 }
 0x6de   : > { %13475 = vmatmul.mubr.msk.f32.vlgmr.msra.gmra.mrb[84].mxu0 %vm490_vm0, %v6029_v52 }
 0x6df   : > { %v15485_v17 = vpop.eup %15484  ;;  %13477 = vmatprep.mubr.msk.f32.mxu0 %vm490_vm0, %v6030_v25 }
 0x6e0   : > { %v5633_v56 = vpop.xlane.xlu1 %5632  ;;  %v6031_v8 = vmul.f32 %v15485_v17, %v18372_v53 }
 0x6e1   : > { %v18600_v34 = vpop.xlane.xlu0 %5653 }
 0x6e2   : > { %13478 = vmatmul.mubr.msk.f32.gmra.mrb[86].mxu0 %vm490_vm0, %v6031_v8  ;;  %v20579_v8 = vld [vmem:[#allocation31_spill] sm:$0xff] }
 0x6e3   : > { %13520 = vmatprep.mubr.msk.f32.mxu0 %vm490_vm0, %v6032_v51 }
 0x6e4   : > { %v5639_v26 = vpop.xlane.xlu1 %5638 }
 0x6e8   : > { %v18602_v29 = vpop.xlane.xlu1 %5656 }
 0x6e9   : > { %v18604_v50 = vpop.xlane.xlu0 %5659 }
 0x6ed   : > { %v18606_v38 = vpop.xlane.xlu1 %5662  ;;  %v4874_v0 = vpop.xlane.xlu0 %4873 }
 0x6ee   : > { %v5144_v48 = vsub.f32 %v18426_v18, %v4874_v0  ;;  %v20580_v0 = vld [vmem:[#allocation32_spill] sm:$0xff] }
 0x6f0   : > { %v5328_v10 = vmul.f32 1.442695, %v5144_v48 }
 0x6f1   : > { %v4877_v53 = vpop.xlane.xlu1 %4876  ;;  %v4880_v55 = vpop.xlane.xlu0 %4879 }
 0x6f2   : > { %15486 = vpow2.f32 %v5328_v10  ;;  %v5145_v49 = vsub.f32 %v18441_v37, %v4877_v53  ;;  %v5146_v14 = vsub.f32 %v18450_v35, %v4880_v55 }
 0x6f3   : > { %15488 = vrcp.f32 %v5624_v13 }
 0x6f4   : > { %v5330_v59 = vmul.f32 1.442695, %v5145_v49  ;;  %v5332_v19 = vmul.f32 1.442695, %v5146_v14  ;;  %15490 = vrcp.f32 %v5621_v54  ;;  %v20577_v54 = vld [vmem:[#allocation28_spill] sm:$0xff]  ;;  %v20581_v49 = vld [vmem:[#allocation83_spill] sm:$0xff] }
 0x6f5   : > { %v4883_v42 = vpop.xlane.xlu1 %4882  ;;  %v4922_v28 = vpop.xlane.xlu0 %4921  ;;  %v20582_v14 = vld [vmem:[#allocation43_spill] sm:$0xff] }
 0x6f6   : > { %15492 = vpow2.f32 %v5330_v59  ;;  %v5147_v39 = vsub.f32 %v18463_v33, %v4883_v42  ;;  %v5160_v4 = vsub.f32 %v18467_v23, %v4922_v28  ;;  %v18652_v59 = vadd.f32 %v20582_v14, %v20581_v49  ;;  %v20599_v49 = vld [vmem:[#allocation26_spill] sm:$0xff] }
 0x6f7   : > { %15494 = vpow2.f32 %v5332_v19  ;;  %v13490_v22 = vpop.f32.mrb[120].mxu1 }
 0x6f8   : > { %15496 = vrcp.f32 %v5630_v20  ;;  %v5334_v18 = vmul.f32 1.442695, %v5147_v39  ;;  %v5360_v2 = vmul.f32 1.442695, %v5160_v4  ;;  %v7892_v57 = vpop.f32.mrb[121].mxu1  ;;  %v20583_v39 = vld [vmem:[#allocation42_spill] sm:$0xff] }
 0x6f9   : > { %15498 = vrcp.f32 %v5627_v47  ;;  %v4925_v37 = vpop.xlane.xlu1 %4924  ;;  %v4928_v11 = vpop.xlane.xlu0 %4927  ;;  %v14528_v3 = vpack.c.bf16 %v13490_v22, %v7892_v57  ;;  %v20584_v22 = vld [vmem:[#allocation44_spill] sm:$0xff] }
 0x6fa   : > { %15500 = vpow2.f32 %v5334_v18  ;;  %v5161_v35 = vsub.f32 %v18475_v32, %v4925_v37  ;;  %v5162_v63 = vsub.f32 %v20576_v45, %v4928_v11  ;;  %v20586_v45 = vld [vmem:[#allocation48_spill] sm:$0xff] }
 0x6fb   : > { %15502 = vpow2.f32 %v5360_v2  ;;  %v13493_v16 = vpop.f32.mrb[122].mxu1  ;;  %14529 = vmatprep.subr.bf16.mxu0 %v14528_v3 }
 0x6fc   : > { %v18615_v27 = vpop.eup %15486  ;;  %15504 = vrcp.f32 %v5636_v43  ;;  %v5362_v33 = vmul.f32 1.442695, %v5161_v35  ;;  %v5364_v23 = vmul.f32 1.442695, %v5162_v63  ;;  %v7902_v41 = vpop.f32.mrb[123].mxu1  ;;  %14531 = vmatpush3.bf16.msra.mxu0 %v14528_v3  ;;  %v20585_v35 = vld [vmem:[#allocation81_spill] sm:$0xff] }
 0x6fd   : > { %15506 = vrcp.f32 %v5633_v56  ;;  %v4931_v12 = vpop.xlane.xlu1 %4930  ;;  %v5640_v24 = vsel %vm490_vm0, %v18615_v27, 0.0  ;;  %v15489_v46 = vpop.eup %15488  ;;  %v14532_v36 = vpack.c.bf16 %v13493_v16, %v7902_v41  ;;  %v18663_v63 = vadd.f32 %v20586_v45, %v20585_v35  ;;  %v20609_v35 = vld [vmem:[#allocation125_spill] sm:$0xff] }
 0x6fe   : > { %15508 = vpow2.f32 %v5362_v33  ;;  %v5163_v32 = vsub.f32 %v18487_v44, %v4931_v12  ;;  %5641 = vadd.xlane.f32.xlu0 %v5640_v24  ;;  %v15491_v31 = vpop.eup %15490  ;;  %v6034_v7 = vmul.f32 %v15489_v46, %v20578_v5  ;;  %v20587_v33 = vld [vmem:[#allocation86_spill] sm:$0xff]  ;;  %v4968_v41 = vsel %vm490_vm0, %v18652_v59, -inf }
 0x6ff   : > { %15510 = vpow2.f32 %v5364_v23  ;;  %v13496_v62 = vpop.f32.mrb[124].mxu1  ;;  %14533 = vmatprep.subr.bf16.mxu0 %v14532_v36  ;;  %v6033_v15 = vmul.f32 %v15491_v31, %v20577_v54  ;;  %v20588_v23 = vld [vmem:[#allocation47_spill] sm:$0xff] }
 0x700   : > { %v18620_v9 = vpop.eup %15492  ;;  %v5366_v1 = vmul.f32 1.442695, %v5163_v32  ;;  %15512 = vrcp.f32 %v5639_v26  ;;  %v7912_v61 = vpop.f32.mrb[125].mxu1  ;;  %14535 = vmatpush3.bf16.msra.mxu0 %v14532_v36  ;;  %v18671_v16 = vadd.f32 %v20588_v23, %v20587_v33  ;;  %v20590_v32 = vld [vmem:[#allocation46_spill] sm:$0xff] }
 0x701   : > { %v18622_v40 = vpop.eup %15494  ;;  %v5643_v13 = vsel %vm490_vm0, %v18620_v9, 0.0  ;;  %v14536_v44 = vpack.c.bf16 %v13496_v62, %v7912_v61 }
 0x702   : > { %v15497_v30 = vpop.eup %15496  ;;  %15514 = vpow2.f32 %v5366_v1  ;;  %5644 = vadd.xlane.f32.xlu1 %v5643_v13  ;;  %v5646_v21 = vsel %vm490_vm0, %v18622_v40, 0.0  ;;  %v20592_v1 = vld [vmem:[#allocation52_spill] sm:$0xff]  ;;  %v4971_v13 = vsel %vm490_vm0, %v18663_v63, -inf }
 0x703   : > { %v15499_v6 = vpop.eup %15498  ;;  %15516 = vrcp.f32 %v18600_v34  ;;  %5647 = vadd.xlane.f32.xlu0 %v5646_v21  ;;  %v13499_v58 = vpop.f32.mrb[126].mxu1  ;;  %14537 = vmatprep.subr.bf16.mxu0 %v14536_v44  ;;  %v6036_v48 = vmul.f32 %v15497_v30, %v20580_v0  ;;  %v4974_v30 = vsel %vm490_vm0, %v18671_v16, -inf }
 0x704   : > { %v18630_v20 = vpop.eup %15500  ;;  %13521 = vmatmul.mubr.msk.f32.vlgmr.msra.gmra.mrb[76].mxu0 %vm490_vm0, %v6033_v15  ;;  %v7922_v47 = vpop.f32.mrb[127].mxu1  ;;  %v6035_v51 = vmul.f32 %v15499_v6, %v20579_v8  ;;  %15518 = vrcp.f32 %v18602_v29  ;;  %v20589_v29 = vld [vmem:[#allocation38_spill] sm:$0xff]  ;;  %v20594_v8 = vld [vmem:[#allocation37_spill] sm:$0xff] }
 0x705   : > { %v18633_v52 = vpop.eup %15502  ;;  %v5649_v25 = vsel %vm490_vm0, %v18630_v20, 0.0  ;;  %v14540_v43 = vpack.c.bf16 %v13499_v58, %v7922_v47  ;;  %13523 = vmatprep.mubr.msk.f32.mxu0 %vm490_vm0, %v6034_v7  ;;  %14539 = vmatpush3.bf16.msra.mxu0 %v14536_v44  ;;  %15520 = vrcp.f32 %v18604_v50  ;;  %v20591_v50 = vld [vmem:[#allocation85_spill] sm:$0xff]  ;;  %v11819_v44 = vld [vmem:[%s20202_s2 + $0x88] sm:$0xff]  ;;  %v11821_v47 = vld [vmem:[%s20202_s2 + $0x98] sm:$0xff] }
 0x706   : > { %v15505_v60 = vpop.eup %15504  ;;  %v5688_v17 = vsel %vm490_vm0, %v18633_v52, 0.0  ;;  %5650 = vadd.xlane.f32.xlu1 %v5649_v25  ;;  %15522 = vrcp.f32 %v18606_v38  ;;  %v18683_v62 = vadd.f32 %v20592_v1, %v20591_v50  ;;  %v11818_v38 = vld [vmem:[%s20202_s2 + $0x80] sm:$0xff]  ;;  %v11820_v7 = vld [vmem:[%s20202_s2 + $0x90] sm:$0xff] }
 0x707   : > { %v15507_v56 = vpop.eup %15506  ;;  %5689 = vadd.xlane.f32.xlu0 %v5688_v17  ;;  %v13502_v26 = vpop.f32.mrb[128].mxu1  ;;  %14541 = vmatprep.subr.bf16.mxu0 %v14540_v43  ;;  %v6038_v37 = vmul.f32 %v15505_v60, %v20584_v22  ;;  %v14560_v58 = vpack.c.bf16 %v11819_v44, %v11818_v38  ;;  %v20593_v60 = vld [vmem:[#allocation45_spill] sm:$0xff]  ;;  %v14564_v17 = vpack.c.bf16 %v11821_v47, %v11820_v7  ;;  %v20606_v22 = vld [vmem:[#allocation39_spill] sm:$0xff] }
 0x708   : > { %v18642_v34 = vpop.eup %15508  ;;  %13524 = vmatmul.mubr.msk.f32.gmra.mrb[78].mxu0 %vm490_vm0, %v6035_v51  ;;  %v7932_v53 = vpop.f32.mrb[129].mxu1  ;;  %v6037_v4 = vmul.f32 %v15507_v56, %v20583_v39  ;;  %v4977_v15 = vsel %vm490_vm0, %v18683_v62, -inf  ;;  %v20603_v39 = vld [vmem:[#allocation34_spill] sm:$0xff] }
 0x709   : > { %v18645_v10 = vpop.eup %15510  ;;  %v5691_v55 = vsel %vm490_vm0, %v18642_v34, 0.0  ;;  %v14544_v19 = vpack.c.bf16 %v13502_v26, %v7932_v53  ;;  %14543 = vmatpush3.bf16.msra.mxu0 %v14540_v43  ;;  %13534 = vmatprep.mubr.msk.f32.mxu0 %vm490_vm0, %v6036_v48  ;;  %v20595_v26 = vld [vmem:[#allocation41_spill] sm:$0xff]  ;;  %v20597_v53 = vld [vmem:[#allocation18_spill] sm:$0xff] }
 0x70a   : > { %v5694_v42 = vsel %vm490_vm0, %v18645_v10, 0.0  ;;  %v15513_v28 = vpop.eup %15512  ;;  %5692 = vadd.xlane.f32.xlu1 %v5691_v55  ;;  %v20596_v48 = vld [vmem:[#allocation17_spill] sm:$0xff]  ;;  %v20598_v55 = vld [vmem:[#allocation24_spill] sm:$0xff] }
 0x70b   : > { %5695 = vadd.xlane.f32.xlu0 %v5694_v42  ;;  %v13505_v2 = vpop.f32.mrb[130].mxu1  ;;  %14545 = vmatprep.subr.bf16.mxu1 %v14544_v19  ;;  %v6039_v24 = vmul.f32 %v15513_v28, %v20589_v29  ;;  %v20601_v42 = vld [vmem:[#allocation30_spill] sm:$0xff]  ;;  %v20602_v28 = vld [vmem:[#allocation33_spill] sm:$0xff] }
 0x70c   : > { %v18658_v18 = vpop.eup %15514  ;;  %13535 = vmatmul.mubr.msk.f32.vlgmr.msra.gmra.mrb[80].mxu0 %vm490_vm0, %v6037_v4  ;;  %v7942_v57 = vpop.f32.mrb[131].mxu1  ;;  %14547 = vmatpush3.bf16.msra.mxu1 %v14544_v19  ;;  %v20600_v19 = vld [vmem:[#allocation27_spill] sm:$0xff] }
 0x70d   : > { %v15517_v11 = vpop.eup %15516  ;;  %v5697_v3 = vsel %vm490_vm0, %v18658_v18, 0.0  ;;  %v14548_v12 = vpack.c.bf16 %v13505_v2, %v7942_v57  ;;  %13537 = vmatprep.mubr.msk.f32.mxu0 %vm490_vm0, %v6038_v37  ;;  %v20604_v4 = vld [vmem:[#allocation35_spill] sm:$0xff]  ;;  %v20605_v2 = vld [vmem:[#allocation36_spill] sm:$0xff]  ;;  %v20610_v57 = vld [vmem:[#allocation126_spill] sm:$0xff] }
 0x70e   : > { %5698 = vadd.xlane.f32.xlu1 %v5697_v3  ;;  %v6044_v36 = vmul.f32 %v15517_v11, %v20590_v32  ;;  %v15519_v5 = vpop.eup %15518  ;;  %v20607_v37 = vld [vmem:[#allocation40_spill] sm:$0xff]  ;;  %v20608_v11 = vld [vmem:[#allocation127_spill] sm:$0xff] }
 0x70f   : > { %4969 = vmax.xlane.f32.xlu0 %v4968_v41  ;;  %v13508_v46 = vpop.f32.mrb[132].mxu1  ;;  %14549 = vmatprep.subr.bf16.mxu1 %v14548_v12  ;;  %v15521_v25 = vpop.eup %15520  ;;  %v6045_v43 = vmul.f32 %v15519_v5, %v20593_v60  ;;  %v20611_v3 = vld [vmem:[#allocation128_spill] sm:$0xff] }
 0x710   : > { %13538 = vmatmul.mubr.msk.f32.gmra.mrb[82].mxu0 %vm490_vm0, %v6039_v24  ;;  %v7952_v31 = vpop.f32.mrb[133].mxu1  ;;  %14551 = vmatpush3.bf16.msra.mxu1 %v14548_v12  ;;  %v15523_v56 = vpop.eup %15522  ;;  %v6046_v51 = vmul.f32 %v15521_v25, %v20594_v8 }
 0x711   : > { %v14552_v61 = vpack.c.bf16 %v13508_v46, %v7952_v31  ;;  %13562 = vmatprep.mubr.msk.f32.mxu0 %vm490_vm0, %v6044_v36  ;;  %v6047_v0 = vmul.f32 %v15523_v56, %v20595_v26  ;;  %v20612_v56 = vld [vmem:[#allocation99_spill] sm:$0xff]  ;;  %v20613_v26 = vld [vmem:[#allocation97_spill] sm:$0xff] }
 0x712   : > { %4972 = vmax.xlane.f32.xlu1 %v4971_v13  ;;  %v18774_v8 = vadd.f32 %v20582_v14, %v20612_v56 }
 0x713   : > { %4975 = vmax.xlane.f32.xlu0 %v4974_v30  ;;  %v13511_v21 = vpop.f32.mrb[134].mxu1  ;;  %14553 = vmatprep.subr.bf16.mxu0 %v14552_v61 }
 0x714   : > { %v7962_v6 = vpop.f32.mrb[135].mxu1  ;;  %14555 = vmatpush3.bf16.msra.mxu0 %v14552_v61  ;;  %v5016_v14 = vsel %vm490_vm0, %v18774_v8, -inf }
 0x715   : > { %v14556_v54 = vpack.c.bf16 %v13511_v21, %v7962_v6 }
 0x716   : > { %4978 = vmax.xlane.f32.xlu1 %v4977_v15 }
 0x717   : > { %14557 = vmatprep.subr.bf16.mxu0 %v14556_v54 }
 0x718   : > { %14559 = vmatpush3.bf16.msra.mxu0 %v14556_v54 }
 0x719   : > { %14561 = vmatprep.subr.bf16.mxu0 %v14560_v58 }
 0x71b   : > { %13563 = vmatmul.mubr.msk.f32.vlgmr.msra.gmra.mrb[84].mxu0 %vm490_vm0, %v6045_v43 }
 0x71c   : > { %13565 = vmatprep.mubr.msk.f32.mxu0 %vm490_vm0, %v6046_v51  ;;  %14563 = vmatpush3.bf16.msra.mxu0 %v14560_v58 }
 0x71d   : > { %14565 = vmatprep.subr.bf16.mxu0 %v14564_v17 }
 0x71f   : > { %13566 = vmatmul.mubr.msk.f32.gmra.mrb[86].mxu0 %vm490_vm0, %v6047_v0  ;;  %v18782_v0 = vadd.f32 %v20586_v45, %v20613_v26 }
 0x720   : > { %14567 = vmatpush3.bf16.msra.mxu0 %v14564_v17  ;;  %13576 = vmatprep.mubr.msk.f32.mxu0 %vm490_vm0, %v20596_v48 }
 0x721   : > { %v5019_v45 = vsel %vm490_vm0, %v18782_v0, -inf }
 0x723   : > { %13577 = vmatmul.mubr.msk.f32.vlgmr.msra.gmra.mrb[88].mxu0 %vm490_vm0, %v20597_v53 }
 0x724   : > { %13579 = vmatprep.mubr.msk.f32.mxu0 %vm490_vm0, %v20598_v55 }
 0x727   : > { %13580 = vmatmul.mubr.msk.f32.gmra.mrb[90].mxu0 %vm490_vm0, %v20599_v49 }
 0x728   : > { %13582 = vmatprep.mubr.msk.f32.mxu0 %vm490_vm0, %v20600_v19 }
 0x72b   : > { %13583 = vmatmul.mubr.msk.f32.gmra.mrb[92].mxu0 %vm490_vm0, %v20601_v42 }
 0x72c   : > { %13585 = vmatprep.mubr.msk.f32.mxu0 %vm490_vm0, %v20602_v28 }
 0x72f   : > { %13586 = vmatmul.mubr.msk.f32.gmra.mrb[94].mxu0 %vm490_vm0, %v20603_v39 }
 0x730   : > { %13588 = vmatprep.mubr.msk.f32.mxu0 %vm490_vm0, %v20604_v4 }
 0x733   : > { %13589 = vmatmul.mubr.msk.f32.gmra.mrb[96].mxu0 %vm490_vm0, %v20605_v2 }
 0x734   : > { %13591 = vmatprep.mubr.msk.f32.mxu0 %vm490_vm0, %v20606_v22 }
 0x737   : > { %13592 = vmatmul.mubr.msk.f32.gmra.mrb[98].mxu0 %vm490_vm0, %v20607_v37 }
 0x738   : > { %13594 = vmatprep.mubr.msk.f32.mxu0 %vm490_vm0, %v20608_v11 }
 0x73b   : > { %13595 = vmatmul.mubr.msk.f32.gmra.mrb[100].mxu0 %vm490_vm0, %v20609_v35 }
 0x73c   : > { %13597 = vmatprep.mubr.msk.f32.mxu0 %vm490_vm0, %v20610_v57 }
 0x73f   : > { %13598 = vmatmul.mubr.msk.f32.gmra.mrb[102].mxu0 %vm490_vm0, %v20611_v3 }
 0x78b   : > { %v5642_v33 = vpop.xlane.xlu0 %5641 }
 0x78c   : > { %15524 = vrcp.f32 %v5642_v33 }
 0x78f   : > { %v5645_v12 = vpop.xlane.xlu1 %5644 }
 0x790   : > { %15526 = vrcp.f32 %v5645_v12  ;;  %v5648_v41 = vpop.xlane.xlu0 %5647  ;;  %v20614_v12 = vld [vmem:[#allocation102_spill] sm:$0xff] }
 0x791   : > { %15528 = vrcp.f32 %v5648_v41  ;;  %v18788_v41 = vadd.f32 %v20588_v23, %v20614_v12 }
 0x793   : > { %v5651_v29 = vpop.xlane.xlu1 %5650 }
 0x794   : > { %v5690_v24 = vpop.xlane.xlu0 %5689  ;;  %15530 = vrcp.f32 %v5651_v29  ;;  %v20615_v29 = vld [vmem:[#allocation101_spill] sm:$0xff] }
 0x795   : > { %15532 = vrcp.f32 %v5690_v24  ;;  %v18794_v24 = vadd.f32 %v20592_v1, %v20615_v29 }
 0x796   : > { %v15525_v46 = vpop.eup %15524 }
 0x797   : > { %v6040_v32 = vmul.f32 %v15525_v46, %v18615_v27  ;;  %v18743_v36 = vpop.xlane.xlu1 %5692  ;;  %v5022_v46 = vsel %vm490_vm0, %v18788_v41, -inf  ;;  %v5025_v23 = vsel %vm490_vm0, %v18794_v24, -inf }
 0x798   : > { %v18745_v31 = vpop.xlane.xlu0 %5695 }
 0x799   : > { %13548 = vmatprep.mubr.msk.f32.mxu1 %vm490_vm0, %v6040_v32 }
 0x79a   : > { %v15527_v50 = vpop.eup %15526 }
 0x79b   : > { %v15529_v61 = vpop.eup %15528  ;;  %v6041_v13 = vmul.f32 %v15527_v50, %v18620_v9  ;;  %v18749_v30 = vpop.xlane.xlu1 %5698 }
 0x79c   : > { %v4970_v38 = vpop.xlane.xlu0 %4969  ;;  %v6042_v44 = vmul.f32 %v15529_v61, %v18622_v40 }
 0x79d   : > { %v5176_v21 = vsub.f32 %v18652_v59, %v4970_v38  ;;  %13549 = vmatmul.mubr.msk.f32.vlgmr.msra.gmra.mrb[100].mxu1 %vm490_vm0, %v6041_v13 }
 0x79e   : > { %13551 = vmatprep.mubr.msk.f32.mxu1 %vm490_vm0, %v6042_v44  ;;  %v15531_v27 = vpop.eup %15530 }
 0x79f   : > { %v5392_v6 = vmul.f32 1.442695, %v5176_v21  ;;  %v15533_v54 = vpop.eup %15532  ;;  %v4973_v15 = vpop.xlane.xlu1 %4972  ;;  %v6043_v5 = vmul.f32 %v15531_v27, %v18630_v20 }
 0x7a0   : > { %v4976_v58 = vpop.xlane.xlu0 %4975  ;;  %v5177_v9 = vsub.f32 %v18663_v63, %v4973_v15  ;;  %v6056_v40 = vmul.f32 %v15533_v54, %v18633_v52 }
 0x7a1   : > { %15534 = vpow2.f32 %v5392_v6  ;;  %v5178_v7 = vsub.f32 %v18671_v16, %v4976_v58  ;;  %13552 = vmatmul.mubr.msk.f32.gmra.mrb[102].mxu1 %vm490_vm0, %v6043_v5 }
 0x7a2   : > { %v5394_v59 = vmul.f32 1.442695, %v5177_v9  ;;  %13636 = vmatprep.mubr.msk.f32.mxu1 %vm490_vm0, %v6056_v40  ;;  %v11855_v40 = vld [vmem:[%s20202_s2 + $0xa8] sm:$0xff] }
 0x7a3   : > { %v5396_v47 = vmul.f32 1.442695, %v5178_v7  ;;  %v4979_v25 = vpop.xlane.xlu1 %4978  ;;  %v11854_v7 = vld [vmem:[%s20202_s2 + $0xa0] sm:$0xff] }
 0x7a4   : > { %15536 = vpow2.f32 %v5394_v59  ;;  %v5179_v60 = vsub.f32 %v18683_v62, %v4979_v25 }
 0x7a5   : > { %15538 = vpow2.f32 %v5396_v47  ;;  %v14600_v47 = vpack.c.bf16 %v11855_v40, %v11854_v7 }
 0x7a6   : > { %v5398_v43 = vmul.f32 1.442695, %v5179_v60  ;;  %v11857_v60 = vld [vmem:[%s20202_s2 + $0xb8] sm:$0xff] }
 0x7a8   : > { %15540 = vpow2.f32 %v5398_v43 }
 0x7a9   : > { %15542 = vrcp.f32 %v18743_v36 }
 0x7aa   : > { %15544 = vrcp.f32 %v18745_v31 }
 0x7ab   : > { %v18762_v20 = vpop.eup %15534  ;;  %15546 = vrcp.f32 %v18749_v30  ;;  %v11856_v30 = vld [vmem:[%s20202_s2 + $0xb0] sm:$0xff] }
 0x7ac   : > { %v5736_v63 = vsel %vm490_vm0, %v18762_v20, 0.0  ;;  %v14604_v26 = vpack.c.bf16 %v11857_v60, %v11856_v30  ;;  %v20625_v30 = vld [vmem:[#allocation57_spill] sm:$0xff] }
 0x7ad   : > { %5737 = vadd.xlane.f32.xlu0 %v5736_v63 }
 0x7ae   : > { %v18766_v52 = vpop.eup %15536 }
 0x7af   : > { %v18768_v16 = vpop.eup %15538  ;;  %v5739_v17 = vsel %vm490_vm0, %v18766_v52, 0.0 }
 0x7b0   : > { %5740 = vadd.xlane.f32.xlu1 %v5739_v17  ;;  %v5742_v62 = vsel %vm490_vm0, %v18768_v16, 0.0 }
 0x7b1   : > { %5743 = vadd.xlane.f32.xlu0 %v5742_v62 }
 0x7b2   : > { %v18778_v51 = vpop.eup %15540 }
 0x7b3   : > { %v5745_v33 = vsel %vm490_vm0, %v18778_v51, 0.0  ;;  %v15543_v25 = vpop.eup %15542 }
 0x7b4   : > { %5746 = vadd.xlane.f32.xlu1 %v5745_v33  ;;  %v15545_v43 = vpop.eup %15544  ;;  %v6057_v56 = vmul.f32 %v15543_v25, %v18642_v34  ;;  %v18902_v25 = vld [vmem:[%s20213_s13 + $0x8] sm:$0xff] }
 0x7b5   : > { %5017 = vmax.xlane.f32.xlu0 %v5016_v14  ;;  %v15547_v33 = vpop.eup %15546  ;;  %v6058_v12 = vmul.f32 %v15545_v43, %v18645_v10  ;;  %v18906_v60 = vadd.f32 %v18902_v25, %v20625_v30 }
 0x7b8   : > { %5020 = vmax.xlane.f32.xlu1 %v5019_v45 }
 0x7b9   : > { %5023 = vmax.xlane.f32.xlu0 %v5022_v46  ;;  %v6059_v46 = vmul.f32 %v15547_v33, %v18658_v18  ;;  %v18924_v33 = vld [vmem:[%s20213_s13 + $0x18] sm:$0xff] }
 0x7bc   : > { %5026 = vmax.xlane.f32.xlu1 %v5025_v23 }
 0x7f6   : > { %v13578_v32 = vpop.f32.mrb[88].mxu0 }
 0x7f7   : > { %v8446_v50 = vpop.f32.mrb[89].mxu0 }
 0x7f8   : > { %v14568_v61 = vpack.c.bf16 %v13578_v32, %v8446_v50 }
 0x7fa   : > { %v13581_v13 = vpop.f32.mrb[90].mxu0  ;;  %14569 = vmatprep.subr.bf16.mxu0 %v14568_v61 }
 0x7fb   : > { %v8456_v38 = vpop.f32.mrb[91].mxu0  ;;  %14571 = vmatpush3.bf16.msra.mxu0 %v14568_v61 }
 0x7fc   : > { %v14572_v1 = vpack.c.bf16 %v13581_v13, %v8456_v38 }
 0x7fe   : > { %v13584_v44 = vpop.f32.mrb[92].mxu0  ;;  %14573 = vmatprep.subr.bf16.mxu0 %v14572_v1 }
 0x7ff   : > { %v8466_v21 = vpop.f32.mrb[93].mxu0  ;;  %14575 = vmatpush3.bf16.msra.mxu0 %v14572_v1 }
 0x800   : > { %v18802_v27 = vpack.c.bf16 %v13584_v44, %v8466_v21 }
 0x802   : > { %20616 = vst [vmem:[#allocation8_spill] sm:$0xff] %v18802_v27  ;;  %v13587_v6 = vpop.f32.mrb[94].mxu0  ;;  %14577 = vmatprep.subr.bf16.mxu0 %v18802_v27 }
 0x803   : > { %v8476_v54 = vpop.f32.mrb[95].mxu0 }
 0x804   : > { %v18807_v15 = vpack.c.bf16 %v13587_v6, %v8476_v54 }
 0x806   : > { %20617 = vst [vmem:[#allocation7_spill] sm:$0xff] %v18807_v15  ;;  %v13590_v58 = vpop.f32.mrb[96].mxu0 }
 0x807   : > { %v8486_v5 = vpop.f32.mrb[97].mxu0 }
 0x808   : > { %v14584_v9 = vpack.c.bf16 %v13590_v58, %v8486_v5 }
 0x80a   : > { %v13593_v59 = vpop.f32.mrb[98].mxu0  ;;  %14585 = vmatprep.subr.bf16.mxu1 %v14584_v9 }
 0x80b   : > { %v8496_v36 = vpop.f32.mrb[99].mxu0  ;;  %14587 = vmatpush3.bf16.msra.mxu1 %v14584_v9 }
 0x80c   : > { %v14588_v31 = vpack.c.bf16 %v13593_v59, %v8496_v36  ;;  %v20623_v59 = vld [vmem:[#allocation59_spill] sm:$0xff] }
 0x80e   : > { %v13596_v63 = vpop.f32.mrb[100].mxu0  ;;  %14589 = vmatprep.subr.bf16.mxu1 %v14588_v31 }
 0x80f   : > { %v8506_v17 = vpop.f32.mrb[101].mxu0  ;;  %14591 = vmatpush3.bf16.msra.mxu1 %v14588_v31 }
 0x810   : > { %v18823_v62 = vpack.c.bf16 %v13596_v63, %v8506_v17  ;;  %14601 = vmatprep.subr.bf16.mxu1 %v14600_v47  ;;  %v18913_v63 = vld [vmem:[%s20213_s13 + $0x10] sm:$0xff]  ;;  %v20626_v17 = vld [vmem:[#allocation62_spill] sm:$0xff] }
 0x812   : > { %20618 = vst [vmem:[#allocation10_spill] sm:$0xff] %v18823_v62  ;;  %v13599_v14 = vpop.f32.mrb[102].mxu0  ;;  %13637 = vmatmul.mubr.msk.f32.vlgmr.msra.gmra.mrb[100].mxu1 %vm490_vm0, %v6057_v56  ;;  %v18917_v56 = vadd.f32 %v18913_v63, %v20626_v17 }
 0x813   : > { %v8516_v29 = vpop.f32.mrb[103].mxu0  ;;  %13639 = vmatprep.mubr.msk.f32.mxu1 %vm490_vm0, %v6058_v12  ;;  %14603 = vmatpush3.bf16.msra.mxu1 %v14600_v47  ;;  %v20627_v12 = vld [vmem:[#allocation61_spill] sm:$0xff] }
 0x814   : > { %v18828_v45 = vpack.c.bf16 %v13599_v14, %v8516_v29  ;;  %14605 = vmatprep.subr.bf16.mxu1 %v14604_v26  ;;  %v18928_v14 = vadd.f32 %v18924_v33, %v20627_v12  ;;  %v4899_v29 = vsel %vm490_vm0, %v18906_v60, -inf  ;;  %v20636_v12 = vld [vmem:[#allocation75_spill] sm:$0xff] }
 0x816   : > { %20619 = vst [vmem:[#allocation9_spill] sm:$0xff] %v18828_v45  ;;  %13640 = vmatmul.mubr.msk.f32.gmra.mrb[102].mxu1 %vm490_vm0, %v6059_v46  ;;  %v20628_v46 = vld [vmem:[#allocation56_spill] sm:$0xff] }
 0x817   : > { %14607 = vmatpush3.bf16.msra.mxu1 %v14604_v26  ;;  %13664 = vmatprep.mubr.msk.f32.mxu1 %vm490_vm0, %v20596_v48 }
 0x81a   : > { %13665 = vmatmul.mubr.msk.f32.vlgmr.msra.gmra.mrb[136].mxu1 %vm490_vm0, %v20597_v53 }
 0x81b   : > { %13667 = vmatprep.mubr.msk.f32.mxu1 %vm490_vm0, %v20598_v55 }
 0x81e   : > { %13668 = vmatmul.mubr.msk.f32.gmra.mrb[138].mxu1 %vm490_vm0, %v20599_v49 }
 0x81f   : > { %13670 = vmatprep.mubr.msk.f32.mxu1 %vm490_vm0, %v20600_v19 }
 0x822   : > { %13671 = vmatmul.mubr.msk.f32.gmra.mrb[140].mxu1 %vm490_vm0, %v20601_v42 }
 0x823   : > { %13673 = vmatprep.mubr.msk.f32.mxu1 %vm490_vm0, %v20602_v28 }
 0x826   : > { %13674 = vmatmul.mubr.msk.f32.gmra.mrb[142].mxu1 %vm490_vm0, %v20603_v39 }
 0x827   : > { %13676 = vmatprep.mubr.msk.f32.mxu1 %vm490_vm0, %v20604_v4 }
 0x82a   : > { %13677 = vmatmul.mubr.msk.f32.gmra.mrb[144].mxu1 %vm490_vm0, %v20605_v2 }
 0x82b   : > { %13679 = vmatprep.mubr.msk.f32.mxu1 %vm490_vm0, %v20606_v22 }
 0x82e   : > { %13680 = vmatmul.mubr.msk.f32.gmra.mrb[146].mxu1 %vm490_vm0, %v20607_v37 }
 0x82f   : > { %13682 = vmatprep.mubr.msk.f32.mxu1 %vm490_vm0, %v20608_v11 }
 0x832   : > { %13683 = vmatmul.mubr.msk.f32.gmra.mrb[148].mxu1 %vm490_vm0, %v20609_v35 }
 0x833   : > { %13685 = vmatprep.mubr.msk.f32.mxu1 %vm490_vm0, %v20610_v57 }
 0x836   : > { %13686 = vmatmul.mubr.msk.f32.gmra.mrb[150].mxu1 %vm490_vm0, %v20611_v3 }
 0x83a   : > { %v5738_v34 = vpop.xlane.xlu0 %5737 }
 0x83b   : > { %15548 = vrcp.f32 %v5738_v34 }
 0x83d   : > { %v18864_v10 = vpop.xlane.xlu1 %5740 }
 0x83e   : > { %v18866_v18 = vpop.xlane.xlu0 %5743 }
 0x841   : > { %v18868_v23 = vpop.xlane.xlu1 %5746 }
 0x842   : > { %v5018_v32 = vpop.xlane.xlu0 %5017 }
 0x843   : > { %v5192_v50 = vsub.f32 %v18774_v8, %v5018_v32  ;;  %v4902_v32 = vsel %vm490_vm0, %v18917_v56, -inf }
 0x845   : > { %v15549_v61 = vpop.eup %15548  ;;  %v5424_v13 = vmul.f32 1.442695, %v5192_v50  ;;  %v5021_v38 = vpop.xlane.xlu1 %5020  ;;  %v20629_v50 = vld [vmem:[#allocation55_spill] sm:$0xff] }
 0x846   : > { %v6072_v1 = vmul.f32 %v15549_v61, %v18762_v20  ;;  %v5193_v44 = vsub.f32 %v18782_v0, %v5021_v38  ;;  %v5024_v21 = vpop.xlane.xlu0 %5023  ;;  %v18940_v61 = vadd.f32 %v18902_v25, %v20629_v50  ;;  %v20630_v38 = vld [vmem:[#allocation60_spill] sm:$0xff] }
 0x847   : > { %15550 = vpow2.f32 %v5424_v13  ;;  %v5194_v6 = vsub.f32 %v18788_v41, %v5024_v21  ;;  %v4905_v13 = vsel %vm490_vm0, %v18928_v14, -inf  ;;  %v20631_v21 = vld [vmem:[#allocation58_spill] sm:$0xff] }
 0x848   : > { %13724 = vmatprep.mubr.msk.f32.mxu1 %vm490_vm0, %v6072_v1  ;;  %v5426_v54 = vmul.f32 1.442695, %v5193_v44  ;;  %v18946_v1 = vadd.f32 %v18913_v63, %v20630_v38  ;;  %v20638_v38 = vld [vmem:[#allocation78_spill] sm:$0xff] }
 0x849   : > { %v5428_v58 = vmul.f32 1.442695, %v5194_v6  ;;  %v5027_v5 = vpop.xlane.xlu1 %5026  ;;  %v18952_v6 = vadd.f32 %v18924_v33, %v20631_v21 }
 0x84a   : > { %15552 = vpow2.f32 %v5426_v54  ;;  %v5195_v9 = vsub.f32 %v18794_v24, %v5027_v5  ;;  %v18889_v24 = vld [vmem:[%s20213_s13] sm:$0xff]  ;;  %v4911_v54 = vsel %vm490_vm0, %v18940_v61, -inf }
 0x84b   : > { %15554 = vpow2.f32 %v5428_v58  ;;  %v18893_v36 = vadd.f32 %v18889_v24, %v20623_v59  ;;  %v18934_v34 = vadd.f32 %v18889_v24, %v20628_v46  ;;  %v20632_v58 = vld [vmem:[#allocation64_spill] sm:$0xff] }
 0x84c   : > { %v5430_v8 = vmul.f32 1.442695, %v5195_v9  ;;  %v18958_v5 = vadd.f32 %v18889_v24, %v20632_v58  ;;  %v4914_v9 = vsel %vm490_vm0, %v18946_v1, -inf  ;;  %v20634_v59 = vld [vmem:[#allocation68_spill] sm:$0xff] }
 0x84d   : > { %v4896_v26 = vsel %vm490_vm0, %v18893_v36, -inf  ;;  %v4908_v44 = vsel %vm490_vm0, %v18934_v34, -inf }
 0x84e   : > { %15556 = vpow2.f32 %v5430_v8  ;;  %v20633_v8 = vld [vmem:[#allocation63_spill] sm:$0xff]  ;;  %v4932_v30 = vsel %vm490_vm0, %v18958_v5, -inf }
 0x851   : > { %v18876_v7 = vpop.eup %15550 }
 0x852   : > { %20620 = vst [vmem:[#allocation12_spill] sm:$0xff] %v18876_v7  ;;  %v5784_v20 = vsel %vm490_vm0, %v18876_v7, 0.0 }
 0x853   : > { %5785 = vadd.xlane.f32.xlu0 %v5784_v20  ;;  %v18964_v20 = vadd.f32 %v18902_v25, %v20633_v8  ;;  %v20640_v8 = vld [vmem:[#allocation72_spill] sm:$0xff] }
 0x854   : > { %v18880_v0 = vpop.eup %15552 }
 0x855   : > { %20621 = vst [vmem:[#allocation11_spill] sm:$0xff] %v18880_v0  ;;  %v18882_v41 = vpop.eup %15554  ;;  %v5787_v40 = vsel %vm490_vm0, %v18880_v0, 0.0 }
 0x856   : > { %20622 = vst [vmem:[#allocation13_spill] sm:$0xff] %v18882_v41  ;;  %5788 = vadd.xlane.f32.xlu1 %v5787_v40  ;;  %v5790_v31 = vsel %vm490_vm0, %v18882_v41, 0.0  ;;  %v4917_v40 = vsel %vm490_vm0, %v18952_v6, -inf }
 0x857   : > { %5791 = vadd.xlane.f32.xlu0 %v5790_v31  ;;  %v18970_v31 = vadd.f32 %v18913_v63, %v20634_v59 }
 0x858   : > { %v18897_v47 = vpop.eup %15556 }
 0x859   : > { %20624 = vst [vmem:[#allocation14_spill] sm:$0xff] %v18897_v47  ;;  %v5793_v43 = vsel %vm490_vm0, %v18897_v47, 0.0  ;;  %v4938_v46 = vsel %vm490_vm0, %v18970_v31, -inf }
 0x85a   : > { %5794 = vadd.xlane.f32.xlu1 %v5793_v43  ;;  %v20635_v43 = vld [vmem:[#allocation66_spill] sm:$0xff] }
 0x85b   : > { %4897 = vmax.xlane.f32.xlu0 %v4896_v26  ;;  %v18976_v17 = vadd.f32 %v18924_v33, %v20635_v43  ;;  %v4935_v26 = vsel %vm490_vm0, %v18964_v20, -inf }
 0x85e   : > { %4900 = vmax.xlane.f32.xlu1 %v4899_v29  ;;  %v18982_v29 = vadd.f32 %v18889_v24, %v20636_v12  ;;  %v20642_v12 = vld [vmem:[#allocation76_spill] sm:$0xff] }
 0x85f   : > { %4903 = vmax.xlane.f32.xlu0 %v4902_v32  ;;  %v20637_v32 = vld [vmem:[#allocation73_spill] sm:$0xff] }
 0x860   : > { %v18988_v50 = vadd.f32 %v18902_v25, %v20637_v32  ;;  %v4944_v21 = vsel %vm490_vm0, %v18982_v29, -inf }
 0x862   : > { %4906 = vmax.xlane.f32.xlu1 %v4905_v13  ;;  %v4941_v13 = vsel %vm490_vm0, %v18976_v17, -inf }
 0x863   : > { %4909 = vmax.xlane.f32.xlu0 %v4908_v44  ;;  %v18994_v44 = vadd.f32 %v18913_v63, %v20638_v38 }
 0x865   : > { %v4950_v59 = vsel %vm490_vm0, %v18994_v44, -inf }
 0x866   : > { %4912 = vmax.xlane.f32.xlu1 %v4911_v54  ;;  %v20639_v54 = vld [vmem:[#allocation77_spill] sm:$0xff] }
 0x867   : > { %4915 = vmax.xlane.f32.xlu0 %v4914_v9  ;;  %v19000_v58 = vadd.f32 %v18924_v33, %v20639_v54  ;;  %v4947_v9 = vsel %vm490_vm0, %v18988_v50, -inf  ;;  %v20644_v54 = vld [vmem:[#allocation80_spill] sm:$0xff] }
 0x86a   : > { %4918 = vmax.xlane.f32.xlu1 %v4917_v40  ;;  %v19006_v40 = vadd.f32 %v18889_v24, %v20640_v8 }
 0x86b   : > { %4933 = vmax.xlane.f32.xlu0 %v4932_v30  ;;  %v20641_v30 = vld [vmem:[#allocation71_spill] sm:$0xff] }
 0x86c   : > { %v19012_v43 = vadd.f32 %v18902_v25, %v20641_v30  ;;  %v4956_v32 = vsel %vm490_vm0, %v19006_v40, -inf }
 0x86e   : > { %4936 = vmax.xlane.f32.xlu1 %v4935_v26  ;;  %v4953_v26 = vsel %vm490_vm0, %v19000_v58, -inf }
 0x86f   : > { %4939 = vmax.xlane.f32.xlu0 %v4938_v46  ;;  %v19018_v46 = vadd.f32 %v18913_v63, %v20642_v12  ;;  %v20646_v12 = vld [vmem:[#allocation84_spill] sm:$0xff] }
 0x871   : > { %v4962_v8 = vsel %vm490_vm0, %v19018_v46, -inf }
 0x872   : > { %4942 = vmax.xlane.f32.xlu1 %v4941_v13  ;;  %v20643_v13 = vld [vmem:[#allocation74_spill] sm:$0xff] }
 0x873   : > { %4945 = vmax.xlane.f32.xlu0 %v4944_v21  ;;  %v19024_v38 = vadd.f32 %v18924_v33, %v20643_v13  ;;  %v4959_v21 = vsel %vm490_vm0, %v19012_v43, -inf }
 0x876   : > { %4948 = vmax.xlane.f32.xlu1 %v4947_v9  ;;  %v19030_v9 = vadd.f32 %v18889_v24, %v20644_v54 }
 0x877   : > { %4951 = vmax.xlane.f32.xlu0 %v4950_v59  ;;  %v20645_v59 = vld [vmem:[#allocation79_spill] sm:$0xff] }
 0x878   : > { %v19036_v30 = vadd.f32 %v18902_v25, %v20645_v59  ;;  %v4980_v13 = vsel %vm490_vm0, %v19030_v9, -inf  ;;  %v20648_v59 = vld [vmem:[#allocation91_spill] sm:$0xff] }
 0x879   : > { %v19054_v47 = vadd.f32 %v18889_v24, %v20648_v59 }
 0x87a   : > { %4954 = vmax.xlane.f32.xlu1 %v4953_v26  ;;  %v4965_v26 = vsel %vm490_vm0, %v19024_v38, -inf }
 0x87b   : > { %4957 = vmax.xlane.f32.xlu0 %v4956_v32  ;;  %v19042_v32 = vadd.f32 %v18913_v63, %v20646_v12  ;;  %v4992_v59 = vsel %vm490_vm0, %v19054_v47, -inf }
 0x87d   : > { %v4986_v12 = vsel %vm490_vm0, %v19042_v32, -inf }
 0x87e   : > { %4960 = vmax.xlane.f32.xlu1 %v4959_v21  ;;  %v20647_v21 = vld [vmem:[#allocation82_spill] sm:$0xff] }
 0x87f   : > { %4963 = vmax.xlane.f32.xlu0 %v4962_v8  ;;  %v19048_v54 = vadd.f32 %v18924_v33, %v20647_v21  ;;  %v4983_v8 = vsel %vm490_vm0, %v19036_v30, -inf  ;;  %v20650_v21 = vld [vmem:[#allocation94_spill] sm:$0xff] }
 0x880   : > { %v19066_v0 = vadd.f32 %v18913_v63, %v20650_v21 }
 0x882   : > { %4966 = vmax.xlane.f32.xlu1 %v4965_v26  ;;  %v20649_v26 = vld [vmem:[#allocation89_spill] sm:$0xff]  ;;  %v4998_v21 = vsel %vm490_vm0, %v19066_v0, -inf }
 0x883   : > { %4981 = vmax.xlane.f32.xlu0 %v4980_v13  ;;  %v19060_v41 = vadd.f32 %v18902_v25, %v20649_v26  ;;  %v4989_v13 = vsel %vm490_vm0, %v19048_v54, -inf  ;;  %v20653_v26 = vld [vmem:[#allocation88_spill] sm:$0xff] }
 0x884   : > { %v19078_v62 = vadd.f32 %v18889_v24, %v20653_v26 }
 0x886   : > { %4984 = vmax.xlane.f32.xlu1 %v4983_v8  ;;  %v20651_v8 = vld [vmem:[#allocation93_spill] sm:$0xff]  ;;  %v5004_v26 = vsel %vm490_vm0, %v19078_v62, -inf }
 0x887   : > { %4987 = vmax.xlane.f32.xlu0 %v4986_v12  ;;  %v19072_v45 = vadd.f32 %v18924_v33, %v20651_v8  ;;  %v4995_v12 = vsel %vm490_vm0, %v19060_v41, -inf  ;;  %v20656_v8 = vld [vmem:[#allocation92_spill] sm:$0xff] }
 0x888   : > { %v19090_v27 = vadd.f32 %v18913_v63, %v20656_v8 }
 0x889   : > { %20652 = vst [vmem:[#allocation21_spill] sm:$0xff] %v19072_v45 }
 0x88a   : > { %4990 = vmax.xlane.f32.xlu1 %v4989_v13  ;;  %v20654_v13 = vld [vmem:[#allocation87_spill] sm:$0xff]  ;;  %v5010_v8 = vsel %vm490_vm0, %v19090_v27, -inf }
 0x88b   : > { %4993 = vmax.xlane.f32.xlu0 %v4992_v59  ;;  %v19084_v15 = vadd.f32 %v18902_v25, %v20654_v13  ;;  %v5001_v59 = vsel %vm490_vm0, %v19072_v45, -inf  ;;  %v20659_v13 = vld [vmem:[#allocation96_spill] sm:$0xff] }
 0x88c   : > { %v19102_v7 = vadd.f32 %v18889_v24, %v20659_v13 }
 0x88d   : > { %20655 = vst [vmem:[#allocation19_spill] sm:$0xff] %v19084_v15 }
 0x88e   : > { %4996 = vmax.xlane.f32.xlu1 %v4995_v12  ;;  %v20657_v12 = vld [vmem:[#allocation90_spill] sm:$0xff]  ;;  %20660 = vst [vmem:[#allocation16_spill] sm:$0xff] %v19102_v7  ;;  %v5028_v13 = vsel %vm490_vm0, %v19102_v7, -inf }
 0x88f   : > { %4999 = vmax.xlane.f32.xlu0 %v4998_v21  ;;  %v19096_v3 = vadd.f32 %v18924_v33, %v20657_v12  ;;  %v5007_v21 = vsel %vm490_vm0, %v19084_v15, -inf  ;;  %v20663_v12 = vld [vmem:[#allocation100_spill] sm:$0xff] }
 0x890   : > { %v19114_v35 = vadd.f32 %v18913_v63, %v20663_v12 }
 0x891   : > { %20658 = vst [vmem:[#allocation25_spill] sm:$0xff] %v19096_v3 }
 0x892   : > { %5002 = vmax.xlane.f32.xlu1 %v5001_v59  ;;  %v20661_v59 = vld [vmem:[#allocation95_spill] sm:$0xff]  ;;  %20664 = vst [vmem:[#allocation15_spill] sm:$0xff] %v19114_v35  ;;  %v5034_v12 = vsel %vm490_vm0, %v19114_v35, -inf }
 0x893   : > { %5005 = vmax.xlane.f32.xlu0 %v5004_v26  ;;  %v19108_v57 = vadd.f32 %v18902_v25, %v20661_v59  ;;  %v5013_v26 = vsel %vm490_vm0, %v19096_v3, -inf  ;;  %v20667_v59 = vld [vmem:[#allocation107_spill] sm:$0xff] }
 0x894   : > { %v19126_v11 = vadd.f32 %v18889_v24, %v20667_v59 }
 0x895   : > { %20662 = vst [vmem:[#allocation23_spill] sm:$0xff] %v19108_v57 }
 0x896   : > { %5008 = vmax.xlane.f32.xlu1 %v5007_v21  ;;  %v20665_v21 = vld [vmem:[#allocation98_spill] sm:$0xff]  ;;  %20668 = vst [vmem:[#allocation51_spill] sm:$0xff] %v19126_v11  ;;  %v5040_v59 = vsel %vm490_vm0, %v19126_v11, -inf }
 0x897   : > { %5011 = vmax.xlane.f32.xlu0 %v5010_v8  ;;  %v19120_v15 = vadd.f32 %v18924_v33, %v20665_v21  ;;  %v5031_v8 = vsel %vm490_vm0, %v19108_v57, -inf  ;;  %v20671_v21 = vld [vmem:[#allocation110_spill] sm:$0xff] }
 0x898   : > { %v19138_v7 = vadd.f32 %v18913_v63, %v20671_v21 }
 0x899   : > { %20666 = vst [vmem:[#allocation22_spill] sm:$0xff] %v19120_v15 }
 0x89a   : > { %5014 = vmax.xlane.f32.xlu1 %v5013_v26  ;;  %v20669_v26 = vld [vmem:[#allocation105_spill] sm:$0xff]  ;;  %20672 = vst [vmem:[#allocation54_spill] sm:$0xff] %v19138_v7  ;;  %v5046_v21 = vsel %vm490_vm0, %v19138_v7, -inf }
 0x89b   : > { %5029 = vmax.xlane.f32.xlu0 %v5028_v13  ;;  %v19132_v3 = vadd.f32 %v18902_v25, %v20669_v26  ;;  %v5037_v13 = vsel %vm490_vm0, %v19120_v15, -inf  ;;  %v20675_v26 = vld [vmem:[#allocation104_spill] sm:$0xff] }
 0x89c   : > { %v19150_v35 = vadd.f32 %v18889_v24, %v20675_v26 }
 0x89d   : > { %20670 = vst [vmem:[#allocation49_spill] sm:$0xff] %v19132_v3 }
 0x89e   : > { %5032 = vmax.xlane.f32.xlu1 %v5031_v8  ;;  %v20673_v8 = vld [vmem:[#allocation109_spill] sm:$0xff]  ;;  %20676 = vst [vmem:[#allocation67_spill] sm:$0xff] %v19150_v35  ;;  %v5052_v26 = vsel %vm490_vm0, %v19150_v35, -inf }
 0x89f   : > { %5035 = vmax.xlane.f32.xlu0 %v5034_v12  ;;  %v19144_v57 = vadd.f32 %v18924_v33, %v20673_v8  ;;  %v5043_v12 = vsel %vm490_vm0, %v19132_v3, -inf  ;;  %v20679_v8 = vld [vmem:[#allocation108_spill] sm:$0xff] }
 0x8a0   : > { %v19162_v11 = vadd.f32 %v18913_v63, %v20679_v8 }
 0x8a1   : > { %20674 = vst [vmem:[#allocation53_spill] sm:$0xff] %v19144_v57 }
 0x8a2   : > { %5038 = vmax.xlane.f32.xlu1 %v5037_v13  ;;  %v20677_v13 = vld [vmem:[#allocation103_spill] sm:$0xff]  ;;  %20680 = vst [vmem:[#allocation70_spill] sm:$0xff] %v19162_v11  ;;  %v5058_v8 = vsel %vm490_vm0, %v19162_v11, -inf }
 0x8a3   : > { %5041 = vmax.xlane.f32.xlu0 %v5040_v59  ;;  %v19156_v15 = vadd.f32 %v18902_v25, %v20677_v13  ;;  %v5049_v59 = vsel %vm490_vm0, %v19144_v57, -inf  ;;  %v20683_v13 = vld [vmem:[#allocation115_spill] sm:$0xff] }
 0x8a4   : > { %v19174_v7 = vadd.f32 %v18889_v24, %v20683_v13 }
 0x8a5   : > { %20678 = vst [vmem:[#allocation65_spill] sm:$0xff] %v19156_v15 }
 0x8a6   : > { %5044 = vmax.xlane.f32.xlu1 %v5043_v12  ;;  %v20681_v12 = vld [vmem:[#allocation106_spill] sm:$0xff]  ;;  %20684 = vst [vmem:[#allocation121_spill] sm:$0xff] %v19174_v7 }
 0x8a7   : > { %5047 = vmax.xlane.f32.xlu0 %v5046_v21  ;;  %v19168_v3 = vadd.f32 %v18924_v33, %v20681_v12  ;;  %v5055_v21 = vsel %vm490_vm0, %v19156_v15, -inf  ;;  %v5064_v12 = vsel %vm490_vm0, %v19174_v7, -inf  ;;  %v20687_v15 = vld [vmem:[#allocation118_spill] sm:$0xff] }
 0x8a8   : > { %v19188_v13 = vadd.f32 %v18913_v63, %v20687_v15 }
 0x8a9   : > { %20682 = vst [vmem:[#allocation69_spill] sm:$0xff] %v19168_v3 }
 0x8aa   : > { %5050 = vmax.xlane.f32.xlu1 %v5049_v59  ;;  %v5061_v59 = vsel %vm490_vm0, %v19168_v3, -inf  ;;  %20688 = vst [vmem:[#allocation119_spill] sm:$0xff] %v19188_v13 }
 0x8ab   : > { %5053 = vmax.xlane.f32.xlu0 %v5052_v26  ;;  %v20685_v26 = vld [vmem:[#allocation113_spill] sm:$0xff] }
 0x8ac   : > { %v19182_v57 = vadd.f32 %v18902_v25, %v20685_v26  ;;  %v5070_v26 = vsel %vm490_vm0, %v19188_v13, -inf }
 0x8ae   : > { %5056 = vmax.xlane.f32.xlu1 %v5055_v21  ;;  %20686 = vst [vmem:[#allocation123_spill] sm:$0xff] %v19182_v57  ;;  %v5067_v21 = vsel %vm490_vm0, %v19182_v57, -inf }
 0x8af   : > { %5059 = vmax.xlane.f32.xlu0 %v5058_v8  ;;  %v20689_v8 = vld [vmem:[#allocation117_spill] sm:$0xff] }
 0x8b0   : > { %v19194_v3 = vadd.f32 %v18924_v33, %v20689_v8  ;;  %v20695_v8 = vld [vmem:[#allocation116_spill] sm:$0xff] }
 0x8b1   : > { %v19212_v13 = vadd.f32 %v18913_v63, %v20695_v8 }
 0x8b2   : > { %5062 = vmax.xlane.f32.xlu1 %v5061_v59  ;;  %20690 = vst [vmem:[#allocation120_spill] sm:$0xff] %v19194_v3  ;;  %v20691_v59 = vld [vmem:[#allocation112_spill] sm:$0xff]  ;;  %v5073_v15 = vsel %vm490_vm0, %v19194_v3, -inf }
 0x8b3   : > { %5065 = vmax.xlane.f32.xlu0 %v5064_v12  ;;  %v19200_v7 = vadd.f32 %v18889_v24, %v20691_v59  ;;  %v20693_v12 = vld [vmem:[#allocation111_spill] sm:$0xff]  ;;  %20696 = vst [vmem:[#allocation20_spill] sm:$0xff] %v19212_v13 }
 0x8b4   : > { %v19206_v57 = vadd.f32 %v18902_v25, %v20693_v12  ;;  %v5082_v25 = vsel %vm490_vm0, %v19212_v13, -inf }
 0x8b5   : > { %20692 = vst [vmem:[#allocation122_spill] sm:$0xff] %v19200_v7 }
 0x8b6   : > { %20694 = vst [vmem:[#allocation124_spill] sm:$0xff] %v19206_v57  ;;  %v5079_v24 = vsel %vm490_vm0, %v19206_v57, -inf }
 0x8b7   : > { %5068 = vmax.xlane.f32.xlu0 %v5067_v21  ;;  %v5076_v21 = vsel %vm490_vm0, %v19200_v7, -inf }
 0x8bb   : > { %5071 = vmax.xlane.f32.xlu0 %v5070_v26  ;;  %v20697_v26 = vld [vmem:[#allocation114_spill] sm:$0xff] }
 0x8bc   : > { %v19218_v59 = vadd.f32 %v18924_v33, %v20697_v26 }
 0x8be   : > { %20698 = vst [vmem:[#allocation50_spill] sm:$0xff] %v19218_v59 }
 0x8bf   : > { %5074 = vmax.xlane.f32.xlu0 %v5073_v15  ;;  %v5085_v15 = vsel %vm490_vm0, %v19218_v59, -inf }
 0x8c3   : > { %5077 = vmax.xlane.f32.xlu0 %v5076_v21 }
 0x8c7   : > { %5080 = vmax.xlane.f32.xlu0 %v5079_v24 }
 0x8cb   : > { %5083 = vmax.xlane.f32.xlu0 %v5082_v25 }
 0x8cf   : > { %5086 = vmax.xlane.f32.xlu0 %v5085_v15 }
 0x8e0   : > { %v19224_v12 = vpop.xlane.xlu0 %5785 }
 0x8e3   : > { %v19226_v63 = vpop.xlane.xlu1 %5788 }
 0x8e4   : > { %20699 = vst [vmem:[#allocation28_spill] sm:$0xff] %v19226_v63  ;;  %v19228_v21 = vpop.xlane.xlu0 %5791 }
 0x8e5   : > { %20700 = vst [vmem:[#allocation29_spill] sm:$0xff] %v19228_v21 }
 0x8e7   : > { %v19230_v8 = vpop.xlane.xlu1 %5794 }
 0x8e8   : > { %20701 = vst [vmem:[#allocation31_spill] sm:$0xff] %v19230_v8  ;;  %v4898_v24 = vpop.xlane.xlu0 %4897 }
 0x8e9   : > { %v5152_v33 = vsub.f32 %v18893_v36, %v4898_v24 }
 0x8eb   : > { %v5344_v26 = vmul.f32 1.442695, %v5152_v33  ;;  %v4901_v57 = vpop.xlane.xlu1 %4900 }
 0x8ec   : > { %v5153_v13 = vsub.f32 %v18906_v60, %v4901_v57  ;;  %v4904_v25 = vpop.xlane.xlu0 %4903 }
 0x8ed   : > { %15558 = vpow2.f32 %v5344_v26  ;;  %v5154_v59 = vsub.f32 %v18917_v56, %v4904_v25  ;;  %v13666_v15 = vpop.f32.mrb[136].mxu1 }
 0x8ee   : > { %v5346_v7 = vmul.f32 1.442695, %v5153_v13  ;;  %v9000_v3 = vpop.f32.mrb[137].mxu1 }
 0x8ef   : > { %v5348_v11 = vmul.f32 1.442695, %v5154_v59  ;;  %v4907_v63 = vpop.xlane.xlu1 %4906  ;;  %v19235_v35 = vpack.c.bf16 %v13666_v15, %v9000_v3 }
 0x8f0   : > { %15560 = vpow2.f32 %v5346_v7  ;;  %v5155_v8 = vsub.f32 %v18928_v14, %v4907_v63  ;;  %v4910_v21 = vpop.xlane.xlu0 %4909 }
 0x8f1   : > { %v13669_v36 = vpop.f32.mrb[138].mxu1  ;;  %v5156_v24 = vsub.f32 %v18934_v34, %v4910_v21  ;;  %15562 = vpow2.f32 %v5348_v11 }
 0x8f2   : > { %v9010_v33 = vpop.f32.mrb[139].mxu1  ;;  %v5350_v57 = vmul.f32 1.442695, %v5155_v8 }
 0x8f3   : > { %v4913_v60 = vpop.xlane.xlu1 %4912  ;;  %v19239_v26 = vpack.c.bf16 %v13669_v36, %v9010_v33  ;;  %v5352_v25 = vmul.f32 1.442695, %v5156_v24 }
 0x8f4   : > { %v4916_v56 = vpop.xlane.xlu0 %4915  ;;  %15564 = vpow2.f32 %v5350_v57  ;;  %v5157_v3 = vsub.f32 %v18940_v61, %v4913_v60 }
 0x8f5   : > { %v13672_v13 = vpop.f32.mrb[140].mxu1  ;;  %15566 = vrcp.f32 %v18864_v10  ;;  %v5158_v15 = vsub.f32 %v18946_v1, %v4916_v56 }
 0x8f6   : > { %v9020_v59 = vpop.f32.mrb[141].mxu1  ;;  %15568 = vpow2.f32 %v5352_v25  ;;  %v5354_v61 = vmul.f32 1.442695, %v5157_v3 }
 0x8f7   : > { %v19241_v45 = vpop.eup %15558  ;;  %v4919_v7 = vpop.xlane.xlu1 %4918  ;;  %v19244_v14 = vpack.c.bf16 %v13672_v13, %v9020_v59  ;;  %15570 = vrcp.f32 %v18866_v18  ;;  %v5356_v1 = vmul.f32 1.442695, %v5158_v15  ;;  %v11890_v18 = vld [vmem:[%s20202_s2 + $0xc0] sm:$0xff] }
 0x8f8   : > { %v4934_v63 = vpop.xlane.xlu0 %4933  ;;  %v5664_v11 = vsel %vm490_vm0, %v19241_v45, 0.0  ;;  %v5159_v59 = vsub.f32 %v18952_v6, %v4919_v7 }
 0x8f9   : > { %v5164_v34 = vsub.f32 %v18958_v5, %v4934_v63  ;;  %5665 = vadd.xlane.f32.xlu1 %v5664_v11  ;;  %v13675_v21 = vpop.f32.mrb[142].mxu1 }
 0x8fa   : > { %v19250_v8 = vpop.eup %15560  ;;  %v9030_v36 = vpop.f32.mrb[143].mxu1 }
 0x8fb   : > { %v5368_v24 = vmul.f32 1.442695, %v5164_v34  ;;  %v4937_v33 = vpop.xlane.xlu1 %4936  ;;  %v19253_v57 = vpack.c.bf16 %v13675_v21, %v9030_v36  ;;  %v5667_v60 = vsel %vm490_vm0, %v19250_v8, 0.0  ;;  %v19258_v5 = vpop.eup %15562 }
 0x8fc   : > { %v4940_v10 = vpop.xlane.xlu0 %4939  ;;  %v5165_v15 = vsub.f32 %v18964_v20, %v4937_v33  ;;  %v11892_v33 = vld [vmem:[%s20202_s2 + $0xd0] sm:$0xff] }
 0x8fd   : > { %20702 = vst [vmem:[#allocation32_spill] sm:$0xff] %v19253_v57  ;;  %15572 = vpow2.f32 %v5368_v24  ;;  %v5166_v13 = vsub.f32 %v18970_v31, %v4940_v10  ;;  %5668 = vadd.xlane.f32.xlu1 %v5667_v60  ;;  %v13678_v25 = vpop.f32.mrb[144].mxu1  ;;  %v11891_v31 = vld [vmem:[%s20202_s2 + $0xc8] sm:$0xff]  ;;  %v5358_v60 = vmul.f32 1.442695, %v5159_v59 }
 0x8fe   : > { %15574 = vrcp.f32 %v18868_v23  ;;  %v9040_v56 = vpop.f32.mrb[145].mxu1  ;;  %v5670_v23 = vsel %vm490_vm0, %v19258_v5, 0.0  ;;  %v19271_v21 = vpop.eup %15564 }
 0x8ff   : > { %15576 = vpow2.f32 %v5354_v61  ;;  %v5372_v3 = vmul.f32 1.442695, %v5166_v13  ;;  %v4943_v63 = vpop.xlane.xlu1 %4942  ;;  %v14624_v11 = vpack.c.bf16 %v13678_v25, %v9040_v56  ;;  %v14640_v61 = vpack.c.bf16 %v11891_v31, %v11890_v18  ;;  %v15567_v24 = vpop.eup %15566 }
 0x900   : > { %v4946_v34 = vpop.xlane.xlu0 %4945  ;;  %v19275_v56 = vpop.eup %15568 }
 0x901   : > { %15578 = vpow2.f32 %v5372_v3  ;;  %v5168_v6 = vsub.f32 %v18982_v29, %v4946_v34  ;;  %5671 = vadd.xlane.f32.xlu1 %v5670_v23  ;;  %v13681_v7 = vpop.f32.mrb[146].mxu1  ;;  %14625 = vmatprep.subr.bf16.mxu1 %v14624_v11  ;;  %v5673_v29 = vsel %vm490_vm0, %v19271_v21, 0.0  ;;  %v15571_v59 = vpop.eup %15570 }
 0x902   : > { %v9050_v36 = vpop.f32.mrb[147].mxu1  ;;  %14627 = vmatpush3.bf16.msra.mxu1 %v14624_v11  ;;  %15580 = vpow2.f32 %v5356_v1  ;;  %v11893_v1 = vld [vmem:[%s20202_s2 + $0xd8] sm:$0xff]  ;;  %v5370_v11 = vmul.f32 1.442695, %v5165_v15 }
 0x903   : > { %v5376_v10 = vmul.f32 1.442695, %v5168_v6  ;;  %v4949_v13 = vpop.xlane.xlu1 %4948  ;;  %v14628_v25 = vpack.c.bf16 %v13681_v7, %v9050_v36  ;;  %v6073_v7 = vmul.f32 %v15567_v24, %v18766_v52 }
 0x904   : > { %v4952_v57 = vpop.xlane.xlu0 %4951 }
 0x905   : > { %15582 = vpow2.f32 %v5376_v10  ;;  %v5170_v3 = vsub.f32 %v18994_v44, %v4952_v57  ;;  %5674 = vadd.xlane.f32.xlu1 %v5673_v29  ;;  %v13684_v20 = vpop.f32.mrb[148].mxu1  ;;  %14629 = vmatprep.subr.bf16.mxu1 %v14628_v25  ;;  %v5167_v44 = vsub.f32 %v18976_v17, %v4943_v63  ;;  %v5676_v10 = vsel %vm490_vm0, %v19275_v56, 0.0 }
 0x906   : > { %v9060_v18 = vpop.f32.mrb[149].mxu1  ;;  %14631 = vmatpush3.bf16.msra.mxu1 %v14628_v25  ;;  %15584 = vpow2.f32 %v5358_v60  ;;  %v14644_v25 = vpack.c.bf16 %v11893_v1, %v11892_v33  ;;  %v6074_v60 = vmul.f32 %v15571_v59, %v18768_v16 }
 0x907   : > { %v19286_v31 = vpop.eup %15572  ;;  %v5380_v57 = vmul.f32 1.442695, %v5170_v3  ;;  %v4955_v34 = vpop.xlane.xlu1 %4954  ;;  %v19289_v23 = vpack.c.bf16 %v13684_v20, %v9060_v18  ;;  %14641 = vmatprep.subr.bf16.mxu1 %v14640_v61  ;;  %v5374_v3 = vmul.f32 1.442695, %v5167_v44  ;;  %v5169_v20 = vsub.f32 %v18988_v50, %v4949_v13 }
 0x908   : > { %v15575_v6 = vpop.eup %15574  ;;  %v4958_v36 = vpop.xlane.xlu0 %4957  ;;  %v5700_v15 = vsel %vm490_vm0, %v19286_v31, 0.0 }
 0x909   : > { %v19296_v29 = vpop.eup %15576  ;;  %15586 = vpow2.f32 %v5380_v57  ;;  %v5172_v17 = vsub.f32 %v19006_v40, %v4958_v36  ;;  %5677 = vadd.xlane.f32.xlu1 %v5676_v10  ;;  %5701 = vadd.xlane.f32.xlu0 %v5700_v15  ;;  %v13687_v63 = vpop.f32.mrb[150].mxu1  ;;  %v5378_v13 = vmul.f32 1.442695, %v5169_v20  ;;  %v5171_v57 = vsub.f32 %v19000_v58, %v4955_v34 }
 0x90a   : > { %15588 = vpow2.f32 %v5370_v11  ;;  %13725 = vmatmul.mubr.msk.f32.vlgmr.msra.gmra.mrb[100].mxu1 %vm490_vm0, %v6073_v7  ;;  %v9070_v52 = vpop.f32.mrb[151].mxu1  ;;  %v5679_v16 = vsel %vm490_vm0, %v19296_v29, 0.0  ;;  %v6075_v11 = vmul.f32 %v15575_v6, %v18778_v51 }
 0x90b   : > { %v19301_v24 = vpop.eup %15578  ;;  %v5384_v33 = vmul.f32 1.442695, %v5172_v17  ;;  %v4961_v1 = vpop.xlane.xlu1 %4960  ;;  %v19304_v18 = vpack.c.bf16 %v13687_v63, %v9070_v52  ;;  %13727 = vmatprep.mubr.msk.f32.mxu1 %vm490_vm0, %v6074_v60  ;;  %14643 = vmatpush3.bf16.msra.mxu1 %v14640_v61  ;;  %v5382_v34 = vmul.f32 1.442695, %v5171_v57 }
 0x90c   : > { %v4964_v40 = vpop.xlane.xlu0 %4963  ;;  %v5706_v59 = vsel %vm490_vm0, %v19301_v24, 0.0  ;;  %14645 = vmatprep.subr.bf16.mxu1 %v14644_v25  ;;  %v19312_v44 = vpop.eup %15580 }
 0x90d   : > { %15590 = vpow2.f32 %v5384_v33  ;;  %v5174_v50 = vsub.f32 %v19018_v46, %v4964_v40  ;;  %5680 = vadd.xlane.f32.xlu1 %v5679_v16  ;;  %5707 = vadd.xlane.f32.xlu0 %v5706_v59  ;;  %v5682_v46 = vsel %vm490_vm0, %v19312_v44, 0.0 }
 0x90e   : > { %13728 = vmatmul.mubr.msk.f32.gmra.mrb[102].mxu1 %vm490_vm0, %v6075_v11  ;;  %15592 = vpow2.f32 %v5374_v3 }
 0x90f   : > { %v19316_v61 = vpop.eup %15582  ;;  %v5388_v7 = vmul.f32 1.442695, %v5174_v50  ;;  %v4967_v36 = vpop.xlane.xlu1 %4966  ;;  %14647 = vmatpush3.bf16.msra.mxu1 %v14644_v25  ;;  %13752 = vmatprep.mubr.msk.f32.mxu1 %vm490_vm0, %v20596_v48  ;;  %v5173_v25 = vsub.f32 %v19012_v43, %v4961_v1 }
 0x910   : > { %v4982_v51 = vpop.xlane.xlu0 %4981  ;;  %v5712_v6 = vsel %vm490_vm0, %v19316_v61, 0.0  ;;  %v19325_v10 = vpop.eup %15584  ;;  %v5175_v1 = vsub.f32 %v19024_v38, %v4967_v36 }
 0x911   : > { %15594 = vpow2.f32 %v5388_v7  ;;  %v5180_v15 = vsub.f32 %v19030_v9, %v4982_v51  ;;  %5683 = vadd.xlane.f32.xlu1 %v5682_v46  ;;  %5713 = vadd.xlane.f32.xlu0 %v5712_v6  ;;  %v5685_v9 = vsel %vm490_vm0, %v19325_v10, 0.0  ;;  %v5386_v33 = vmul.f32 1.442695, %v5173_v25 }
 0x912   : > { %13753 = vmatmul.mubr.msk.f32.vlgmr.msra.gmra.mrb[152].mxu1 %vm490_vm0, %v20597_v53  ;;  %15596 = vpow2.f32 %v5378_v13  ;;  %v5390_v57 = vmul.f32 1.442695, %v5175_v1 }
 0x913   : > { %v19330_v58 = vpop.eup %15586  ;;  %v5400_v17 = vmul.f32 1.442695, %v5180_v15  ;;  %v4985_v63 = vpop.xlane.xlu1 %4984  ;;  %13755 = vmatprep.mubr.msk.f32.mxu1 %vm490_vm0, %v20598_v55 }
 0x914   : > { %v19335_v60 = vpop.eup %15588  ;;  %v4988_v52 = vpop.xlane.xlu0 %4987  ;;  %v5718_v3 = vsel %vm490_vm0, %v19330_v58, 0.0  ;;  %v5181_v7 = vsub.f32 %v19036_v30, %v4985_v63 }
 0x915   : > { %15598 = vpow2.f32 %v5400_v17  ;;  %v5182_v20 = vsub.f32 %v19042_v32, %v4988_v52  ;;  %5686 = vadd.xlane.f32.xlu1 %v5685_v9  ;;  %5719 = vadd.xlane.f32.xlu0 %v5718_v3  ;;  %v5703_v32 = vsel %vm490_vm0, %v19335_v60, 0.0 }
 0x916   : > { %13756 = vmatmul.mubr.msk.f32.gmra.mrb[154].mxu1 %vm490_vm0, %v20599_v49  ;;  %15600 = vpow2.f32 %v5382_v34  ;;  %v5402_v25 = vmul.f32 1.442695, %v5181_v7  ;;  %v20703_v7 = vld [vmem:[#allocation21_spill] sm:$0xff] }
 0x917   : > { %v19344_v43 = vpop.eup %15590  ;;  %v5404_v40 = vmul.f32 1.442695, %v5182_v20  ;;  %v4991_v16 = vpop.xlane.xlu1 %4990  ;;  %13758 = vmatprep.mubr.msk.f32.mxu1 %vm490_vm0, %v20600_v19 }
 0x918   : > { %v4994_v59 = vpop.xlane.xlu0 %4993  ;;  %v5724_v11 = vsel %vm490_vm0, %v19344_v43, 0.0  ;;  %v19353_v50 = vpop.eup %15592  ;;  %v5183_v17 = vsub.f32 %v19048_v54, %v4991_v16 }
 0x919   : > { %15602 = vpow2.f32 %v5404_v40  ;;  %v5184_v13 = vsub.f32 %v19054_v47, %v4994_v59  ;;  %5704 = vadd.xlane.f32.xlu1 %v5703_v32  ;;  %5725 = vadd.xlane.f32.xlu0 %v5724_v11  ;;  %v5709_v47 = vsel %vm490_vm0, %v19353_v50, 0.0 }
 0x91a   : > { %13759 = vmatmul.mubr.msk.f32.gmra.mrb[156].mxu1 %vm490_vm0, %v20601_v42  ;;  %15604 = vpow2.f32 %v5386_v33 }
 0x91b   : > { %v19358_v38 = vpop.eup %15594  ;;  %v5408_v36 = vmul.f32 1.442695, %v5184_v13  ;;  %v4997_v51 = vpop.xlane.xlu1 %4996  ;;  %13761 = vmatprep.mubr.msk.f32.mxu1 %vm490_vm0, %v20602_v28 }
 0x91c   : > { %v5000_v46 = vpop.xlane.xlu0 %4999  ;;  %v5730_v6 = vsel %vm490_vm0, %v19358_v38, 0.0  ;;  %v19367_v15 = vpop.eup %15596  ;;  %v5185_v1 = vsub.f32 %v19060_v41, %v4997_v51 }
 0x91d   : > { %15606 = vpow2.f32 %v5408_v36  ;;  %v5186_v34 = vsub.f32 %v19066_v0, %v5000_v46  ;;  %5710 = vadd.xlane.f32.xlu1 %v5709_v47  ;;  %5731 = vadd.xlane.f32.xlu0 %v5730_v6  ;;  %v5715_v0 = vsel %vm490_vm0, %v19367_v15, 0.0  ;;  %v20704_v47 = vld [vmem:[#allocation127_spill] sm:$0xff] }
 0x91e   : > { %13762 = vmatmul.mubr.msk.f32.gmra.mrb[158].mxu1 %vm490_vm0, %v20603_v39  ;;  %15608 = vpow2.f32 %v5390_v57  ;;  %v5410_v57 = vmul.f32 1.442695, %v5185_v1 }
 0x91f   : > { %v19372_v30 = vpop.eup %15598  ;;  %v5412_v63 = vmul.f32 1.442695, %v5186_v34  ;;  %v5003_v52 = vpop.xlane.xlu1 %5002  ;;  %13764 = vmatprep.mubr.msk.f32.mxu1 %vm490_vm0, %v20604_v4  ;;  %15610 = vrcp.f32 %v19224_v12  ;;  %v5406_v12 = vmul.f32 1.442695, %v5183_v17  ;;  %v20705_v17 = vld [vmem:[#allocation16_spill] sm:$0xff] }
 0x920   : > { %v5006_v9 = vpop.xlane.xlu0 %5005  ;;  %v5748_v3 = vsel %vm490_vm0, %v19372_v30, 0.0  ;;  %v19382_v20 = vpop.eup %15600  ;;  %v5187_v36 = vsub.f32 %v20703_v7, %v5003_v52 }
 0x921   : > { %15612 = vpow2.f32 %v5412_v63  ;;  %v5188_v33 = vsub.f32 %v19078_v62, %v5006_v9  ;;  %5716 = vadd.xlane.f32.xlu1 %v5715_v0  ;;  %5749 = vadd.xlane.f32.xlu0 %v5748_v3  ;;  %v5721_v62 = vsel %vm490_vm0, %v19382_v20, 0.0  ;;  %v20706_v9 = vld [vmem:[#allocation125_spill] sm:$0xff] }
 0x922   : > { %13765 = vmatmul.mubr.msk.f32.gmra.mrb[160].mxu1 %vm490_vm0, %v20605_v2  ;;  %15614 = vpow2.f32 %v5402_v25  ;;  %v5414_v3 = vmul.f32 1.442695, %v5187_v36 }
 0x923   : > { %v19387_v54 = vpop.eup %15602  ;;  %v5416_v40 = vmul.f32 1.442695, %v5188_v33  ;;  %v5009_v16 = vpop.xlane.xlu1 %5008  ;;  %13767 = vmatprep.mubr.msk.f32.mxu1 %vm490_vm0, %v20606_v22  ;;  %v20707_v33 = vld [vmem:[#allocation19_spill] sm:$0xff] }
 0x924   : > { %v5012_v59 = vpop.xlane.xlu0 %5011  ;;  %v5754_v32 = vsel %vm490_vm0, %v19387_v54, 0.0  ;;  %v19396_v11 = vpop.eup %15604 }
 0x925   : > { %15616 = vpow2.f32 %v5416_v40  ;;  %v5190_v13 = vsub.f32 %v19090_v27, %v5012_v59  ;;  %5722 = vadd.xlane.f32.xlu1 %v5721_v62  ;;  %5755 = vadd.xlane.f32.xlu0 %v5754_v32  ;;  %v5727_v27 = vsel %vm490_vm0, %v19396_v11, 0.0  ;;  %v20708_v59 = vld [vmem:[#allocation126_spill] sm:$0xff] }
 0x926   : > { %13768 = vmatmul.mubr.msk.f32.gmra.mrb[162].mxu1 %vm490_vm0, %v20607_v37  ;;  %15618 = vpow2.f32 %v5406_v12  ;;  %v5189_v12 = vsub.f32 %v20707_v33, %v5009_v16  ;;  %v20710_v16 = vld [vmem:[#allocation12_spill] sm:$0xff] }
 0x927   : > { %v19401_v41 = vpop.eup %15606  ;;  %v5420_v51 = vmul.f32 1.442695, %v5190_v13  ;;  %v5015_v46 = vpop.xlane.xlu1 %5014  ;;  %13770 = vmatprep.mubr.msk.f32.mxu1 %vm490_vm0, %v20704_v47 }
 0x928   : > { %v5030_v6 = vpop.xlane.xlu0 %5029  ;;  %v5760_v34 = vsel %vm490_vm0, %v19401_v41, 0.0  ;;  %v19410_v25 = vpop.eup %15608 }
 0x929   : > { %15620 = vpow2.f32 %v5420_v51  ;;  %v5196_v63 = vsub.f32 %v20705_v17, %v5030_v6  ;;  %5728 = vadd.xlane.f32.xlu1 %v5727_v27  ;;  %5761 = vadd.xlane.f32.xlu0 %v5760_v34  ;;  %v15611_v52 = vpop.eup %15610  ;;  %v5733_v32 = vsel %vm490_vm0, %v19410_v25, 0.0  ;;  %v20709_v51 = vld [vmem:[#allocation15_spill] sm:$0xff]  ;;  %v20711_v6 = vld [vmem:[#allocation128_spill] sm:$0xff]  ;;  %v5418_v34 = vmul.f32 1.442695, %v5189_v12  ;;  %v20712_v17 = vld [vmem:[#allocation25_spill] sm:$0xff] }
 0x92a   : > { %13771 = vmatmul.mubr.msk.f32.gmra.mrb[164].mxu1 %vm490_vm0, %v20706_v9  ;;  %15622 = vpow2.f32 %v5410_v57  ;;  %v6088_v36 = vmul.f32 %v15611_v52, %v20710_v16  ;;  %v20714_v12 = vld [vmem:[#allocation23_spill] sm:$0xff] }
 0x92b   : > { %v19415_v0 = vpop.eup %15612  ;;  %v5432_v1 = vmul.f32 1.442695, %v5196_v63  ;;  %v5033_v40 = vpop.xlane.xlu1 %5032  ;;  %13773 = vmatprep.mubr.msk.f32.mxu1 %vm490_vm0, %v20708_v59  ;;  %v5191_v63 = vsub.f32 %v20712_v17, %v5015_v46 }
 0x92c   : > { %v5036_v62 = vpop.xlane.xlu0 %5035  ;;  %v5766_v13 = vsel %vm490_vm0, %v19415_v0, 0.0  ;;  %v19424_v7 = vpop.eup %15614 }
 0x92d   : > { %15624 = vpow2.f32 %v5432_v1  ;;  %v5198_v57 = vsub.f32 %v20709_v51, %v5036_v62  ;;  %5734 = vadd.xlane.f32.xlu1 %v5733_v32  ;;  %5767 = vadd.xlane.f32.xlu0 %v5766_v13  ;;  %v5751_v62 = vsel %vm490_vm0, %v19424_v7, 0.0  ;;  %v20713_v13 = vld [vmem:[#allocation51_spill] sm:$0xff]  ;;  %v5422_v46 = vmul.f32 1.442695, %v5191_v63  ;;  %v20716_v63 = vld [vmem:[#allocation22_spill] sm:$0xff] }
 0x92e   : > { %13774 = vmatmul.mubr.msk.f32.gmra.mrb[166].mxu1 %vm490_vm0, %v20711_v6  ;;  %15626 = vpow2.f32 %v5414_v3 }
 0x92f   : > { %v19430_v27 = vpop.eup %15616  ;;  %v5436_v33 = vmul.f32 1.442695, %v5198_v57  ;;  %v5039_v59 = vpop.xlane.xlu1 %5038  ;;  %13812 = vmatprep.mubr.msk.f32.mxu1 %vm490_vm0, %v6088_v36  ;;  %v5197_v57 = vsub.f32 %v20714_v12, %v5033_v40 }
 0x930   : > { %v5042_v1 = vpop.xlane.xlu0 %5041  ;;  %v5772_v52 = vsel %vm490_vm0, %v19430_v27, 0.0  ;;  %v19438_v32 = vpop.eup %15618 }
 0x931   : > { %15628 = vpow2.f32 %v5436_v33  ;;  %v5200_v51 = vsub.f32 %v20713_v13, %v5042_v1  ;;  %5752 = vadd.xlane.f32.xlu1 %v5751_v62  ;;  %5773 = vadd.xlane.f32.xlu0 %v5772_v52  ;;  %v5757_v6 = vsel %vm490_vm0, %v19438_v32, 0.0  ;;  %v20715_v1 = vld [vmem:[#allocation54_spill] sm:$0xff]  ;;  %v5434_v40 = vmul.f32 1.442695, %v5197_v57  ;;  %v20718_v57 = vld [vmem:[#allocation49_spill] sm:$0xff] }
 0x932   : > { %15630 = vpow2.f32 %v5418_v34  ;;  %v5199_v52 = vsub.f32 %v20716_v63, %v5039_v59 }
 0x933   : > { %v19441_v3 = vpop.eup %15620  ;;  %v5440_v16 = vmul.f32 1.442695, %v5200_v51  ;;  %v5045_v36 = vpop.xlane.xlu1 %5044 }
 0x934   : > { %v5048_v17 = vpop.xlane.xlu0 %5047  ;;  %v5778_v9 = vsel %vm490_vm0, %v19441_v3, 0.0  ;;  %v19448_v33 = vpop.eup %15622  ;;  %v5438_v59 = vmul.f32 1.442695, %v5199_v52  ;;  %v20720_v52 = vld [vmem:[#allocation53_spill] sm:$0xff] }
 0x935   : > { %15632 = vpow2.f32 %v5440_v16  ;;  %v5202_v62 = vsub.f32 %v20715_v1, %v5048_v17  ;;  %5758 = vadd.xlane.f32.xlu1 %v5757_v6  ;;  %5779 = vadd.xlane.f32.xlu0 %v5778_v9  ;;  %v5763_v47 = vsel %vm490_vm0, %v19448_v33, 0.0  ;;  %v20717_v6 = vld [vmem:[#allocation67_spill] sm:$0xff]  ;;  %v5201_v17 = vsub.f32 %v20718_v57, %v5045_v36 }
 0x936   : > { %15634 = vpow2.f32 %v5422_v46 }
 0x937   : > { %v19451_v34 = vpop.eup %15624  ;;  %v5444_v13 = vmul.f32 1.442695, %v5202_v62  ;;  %v5051_v51 = vpop.xlane.xlu1 %5050  ;;  %v5442_v36 = vmul.f32 1.442695, %v5201_v17 }
 0x938   : > { %v5054_v12 = vpop.xlane.xlu0 %5053  ;;  %v5796_v37 = vsel %vm490_vm0, %v19451_v34, 0.0  ;;  %v19458_v16 = vpop.eup %15626 }
 0x939   : > { %15636 = vpow2.f32 %v5444_v13  ;;  %v5204_v9 = vsub.f32 %v20717_v6, %v5054_v12  ;;  %5764 = vadd.xlane.f32.xlu1 %v5763_v47  ;;  %5797 = vadd.xlane.f32.xlu0 %v5796_v37  ;;  %v5769_v63 = vsel %vm490_vm0, %v19458_v16, 0.0  ;;  %v20719_v13 = vld [vmem:[#allocation70_spill] sm:$0xff]  ;;  %v5203_v12 = vsub.f32 %v20720_v52, %v5051_v51  ;;  %v20723_v51 = vld [vmem:[#allocation65_spill] sm:$0xff] }
 0x93a   : > { %15638 = vpow2.f32 %v5434_v40 }
 0x93b   : > { %v19461_v46 = vpop.eup %15628  ;;  %v5448_v1 = vmul.f32 1.442695, %v5204_v9  ;;  %v5057_v37 = vpop.xlane.xlu1 %5056 }
 0x93c   : > { %v5060_v62 = vpop.xlane.xlu0 %5059  ;;  %v5802_v22 = vsel %vm490_vm0, %v19461_v46, 0.0  ;;  %v19468_v2 = vpop.eup %15630  ;;  %v5205_v17 = vsub.f32 %v20723_v51, %v5057_v37  ;;  %v20726_v51 = vld [vmem:[#allocation119_spill] sm:$0xff] }
 0x93d   : > { %15640 = vpow2.f32 %v5448_v1  ;;  %v5206_v47 = vsub.f32 %v20719_v13, %v5060_v62  ;;  %5770 = vadd.xlane.f32.xlu1 %v5769_v63  ;;  %5803 = vadd.xlane.f32.xlu0 %v5802_v22  ;;  %v5775_v57 = vsel %vm490_vm0, %v19468_v2, 0.0  ;;  %v20721_v62 = vld [vmem:[#allocation121_spill] sm:$0xff] }
 0x93e   : > { %15642 = vpow2.f32 %v5438_v59  ;;  %v5446_v59 = vmul.f32 1.442695, %v5203_v12  ;;  %v20725_v12 = vld [vmem:[#allocation69_spill] sm:$0xff] }
 0x93f   : > { %v19471_v40 = vpop.eup %15632  ;;  %v5452_v6 = vmul.f32 1.442695, %v5206_v47  ;;  %v5063_v47 = vpop.xlane.xlu1 %5062 }
 0x940   : > { %v5066_v9 = vpop.xlane.xlu0 %5065  ;;  %v5808_v4 = vsel %vm490_vm0, %v19471_v40, 0.0  ;;  %v19478_v1 = vpop.eup %15634  ;;  %v5207_v37 = vsub.f32 %v20725_v12, %v5063_v47 }
 0x941   : > { %15644 = vpow2.f32 %v5452_v6  ;;  %v5208_v22 = vsub.f32 %v20721_v62, %v5066_v9  ;;  %5776 = vadd.xlane.f32.xlu1 %v5775_v57  ;;  %5809 = vadd.xlane.f32.xlu0 %v5808_v4  ;;  %v5781_v39 = vsel %vm490_vm0, %v19478_v1, 0.0 }
 0x942   : > { %15646 = vpow2.f32 %v5442_v36  ;;  %v5450_v36 = vmul.f32 1.442695, %v5205_v17 }
 0x943   : > { %v19481_v63 = vpop.eup %15636  ;;  %v5456_v13 = vmul.f32 1.442695, %v5208_v22 }
 0x944   : > { %20722 = vst [vmem:[#allocation83_spill] sm:$0xff] %v19481_v63  ;;  %v5069_v52 = vpop.xlane.xlu0 %5068  ;;  %v5814_v28 = vsel %vm490_vm0, %v19481_v63, 0.0  ;;  %v19488_v6 = vpop.eup %15638 }
 0x945   : > { %15648 = vpow2.f32 %v5456_v13  ;;  %5782 = vadd.xlane.f32.xlu1 %v5781_v39  ;;  %5815 = vadd.xlane.f32.xlu0 %v5814_v28  ;;  %v5799_v57 = vsel %vm490_vm0, %v19488_v6, 0.0  ;;  %v5454_v39 = vmul.f32 1.442695, %v5207_v37  ;;  %v20731_v37 = vld [vmem:[#allocation120_spill] sm:$0xff] }
 0x946   : > { %15650 = vpow2.f32 %v5446_v59  ;;  %v20728_v59 = vld [vmem:[#allocation123_spill] sm:$0xff] }
 0x947   : > { %v19490_v4 = vpop.eup %15640  ;;  %15652 = vpow2.f32 %v5450_v36  ;;  %v5209_v17 = vsub.f32 %v20728_v59, %v5069_v52  ;;  %v20732_v59 = vld [vmem:[#allocation122_spill] sm:$0xff] }
 0x948   : > { %20724 = vst [vmem:[#allocation43_spill] sm:$0xff] %v19490_v4  ;;  %v5072_v9 = vpop.xlane.xlu0 %5071  ;;  %v5820_v62 = vsel %vm490_vm0, %v19490_v4, 0.0  ;;  %v19497_v22 = vpop.eup %15642 }
 0x949   : > { %v5210_v63 = vsub.f32 %v20726_v51, %v5072_v9  ;;  %5800 = vadd.xlane.f32.xlu1 %v5799_v57  ;;  %5821 = vadd.xlane.f32.xlu0 %v5820_v62  ;;  %v5805_v12 = vsel %vm490_vm0, %v19497_v22, 0.0  ;;  %v5458_v36 = vmul.f32 1.442695, %v5209_v17 }
 0x94b   : > { %v19500_v28 = vpop.eup %15644  ;;  %v5460_v13 = vmul.f32 1.442695, %v5210_v63 }
 0x94c   : > { %20727 = vst [vmem:[#allocation42_spill] sm:$0xff] %v19500_v28  ;;  %v5075_v47 = vpop.xlane.xlu0 %5074  ;;  %v5826_v4 = vsel %vm490_vm0, %v19500_v28, 0.0  ;;  %v19507_v42 = vpop.eup %15646 }
 0x94d   : > { %20729 = vst [vmem:[#allocation44_spill] sm:$0xff] %v19507_v42  ;;  %15654 = vpow2.f32 %v5460_v13  ;;  %5806 = vadd.xlane.f32.xlu1 %v5805_v12  ;;  %5827 = vadd.xlane.f32.xlu0 %v5826_v4  ;;  %v5211_v57 = vsub.f32 %v20731_v37, %v5075_v47  ;;  %v5811_v63 = vsel %vm490_vm0, %v19507_v42, 0.0  ;;  %v20733_v12 = vld [vmem:[#allocation124_spill] sm:$0xff] }
 0x94e   : > { %15656 = vpow2.f32 %v5454_v39 }
 0x94f   : > { %v19509_v9 = vpop.eup %15648  ;;  %15658 = vpow2.f32 %v5458_v36  ;;  %v5462_v4 = vmul.f32 1.442695, %v5211_v57 }
 0x950   : > { %20730 = vst [vmem:[#allocation81_spill] sm:$0xff] %v19509_v9  ;;  %v5078_v52 = vpop.xlane.xlu0 %5077  ;;  %v5832_v62 = vsel %vm490_vm0, %v19509_v9, 0.0  ;;  %v19516_v51 = vpop.eup %15650 }
 0x951   : > { %v5212_v28 = vsub.f32 %v20732_v59, %v5078_v52  ;;  %5812 = vadd.xlane.f32.xlu1 %v5811_v63  ;;  %5833 = vadd.xlane.f32.xlu0 %v5832_v62  ;;  %v5817_v17 = vsel %vm490_vm0, %v19516_v51, 0.0  ;;  %v19521_v47 = vpop.eup %15652  ;;  %v20735_v63 = vld [vmem:[#allocation20_spill] sm:$0xff] }
 0x952   : > { %v5823_v36 = vsel %vm490_vm0, %v19521_v47, 0.0 }
 0x953   : > { %v5464_v13 = vmul.f32 1.442695, %v5212_v28 }
 0x954   : > { %v5081_v39 = vpop.xlane.xlu0 %5080 }
 0x955   : > { %15660 = vpow2.f32 %v5464_v13  ;;  %v5213_v37 = vsub.f32 %v20733_v12, %v5081_v39  ;;  %5818 = vadd.xlane.f32.xlu1 %v5817_v17  ;;  %v20736_v17 = vld [vmem:[#allocation50_spill] sm:$0xff] }
 0x956   : > { %15662 = vpow2.f32 %v5462_v4 }
 0x957   : > { %v19524_v42 = vpop.eup %15654  ;;  %v5466_v9 = vmul.f32 1.442695, %v5213_v37 }
 0x958   : > { %20734 = vst [vmem:[#allocation48_spill] sm:$0xff] %v19524_v42  ;;  %v5084_v52 = vpop.xlane.xlu0 %5083  ;;  %v5838_v28 = vsel %vm490_vm0, %v19524_v42, 0.0  ;;  %v19530_v57 = vpop.eup %15656 }
 0x959   : > { %v5214_v62 = vsub.f32 %v20735_v63, %v5084_v52  ;;  %5824 = vadd.xlane.f32.xlu1 %v5823_v36  ;;  %5839 = vadd.xlane.f32.xlu0 %v5838_v28  ;;  %15664 = vpow2.f32 %v5466_v9  ;;  %v5829_v4 = vsel %vm490_vm0, %v19530_v57, 0.0  ;;  %v19535_v39 = vpop.eup %15658 }
 0x95a   : > { %v5835_v52 = vsel %vm490_vm0, %v19535_v39, 0.0 }
 0x95b   : > { %v5468_v59 = vmul.f32 1.442695, %v5214_v62 }
 0x95c   : > { %v5087_v13 = vpop.xlane.xlu0 %5086 }
 0x95d   : > { %15666 = vpow2.f32 %v5468_v59  ;;  %v5215_v12 = vsub.f32 %v20736_v17, %v5087_v13  ;;  %5830 = vadd.xlane.f32.xlu1 %v5829_v4 }
 0x95f   : > { %v19538_v37 = vpop.eup %15660  ;;  %v5470_v42 = vmul.f32 1.442695, %v5215_v12 }
 0x960   : > { %v5844_v9 = vsel %vm490_vm0, %v19538_v37, 0.0  ;;  %v19544_v36 = vpop.eup %15662 }
 0x961   : > { %20737 = vst [vmem:[#allocation86_spill] sm:$0xff] %v19544_v36  ;;  %15668 = vpow2.f32 %v5470_v42  ;;  %5836 = vadd.xlane.f32.xlu1 %v5835_v52  ;;  %5845 = vadd.xlane.f32.xlu0 %v5844_v9  ;;  %v5841_v28 = vsel %vm490_vm0, %v19544_v36, 0.0 }
 0x963   : > { %v19548_v63 = vpop.eup %15664 }
 0x964   : > { %20738 = vst [vmem:[#allocation47_spill] sm:$0xff] %v19548_v63  ;;  %v5847_v59 = vsel %vm490_vm0, %v19548_v63, 0.0 }
 0x965   : > { %5842 = vadd.xlane.f32.xlu1 %v5841_v28 }
 0x967   : > { %v19550_v62 = vpop.eup %15666 }
 0x968   : > { %20739 = vst [vmem:[#allocation38_spill] sm:$0xff] %v19550_v62  ;;  %v5850_v13 = vsel %vm490_vm0, %v19550_v62, 0.0 }
 0x969   : > { %5848 = vadd.xlane.f32.xlu1 %v5847_v59  ;;  %5851 = vadd.xlane.f32.xlu0 %v5850_v13 }
 0x96b   : > { %v19556_v4 = vpop.eup %15668 }
 0x96c   : > { %20740 = vst [vmem:[#allocation46_spill] sm:$0xff] %v19556_v4  ;;  %v5853_v42 = vsel %vm490_vm0, %v19556_v4, 0.0 }
 0x96d   : > { %5854 = vadd.xlane.f32.xlu1 %v5853_v42 }
 0x986   : > { %v5666_v17 = vpop.xlane.xlu1 %5665 }
 0x987   : > { %15670 = vrcp.f32 %v5666_v17  ;;  %v20741_v17 = vld [vmem:[#allocation8_spill] sm:$0xff] }
 0x98a   : > { %v5669_v12 = vpop.xlane.xlu1 %5668 }
 0x98b   : > { %15672 = vrcp.f32 %v5669_v12  ;;  %v20742_v12 = vld [vmem:[#allocation7_spill] sm:$0xff] }
 0x98e   : > { %v5672_v52 = vpop.xlane.xlu1 %5671 }
 0x98f   : > { %15674 = vrcp.f32 %v5672_v52 }
 0x991   : > { %v15671_v9 = vpop.eup %15670 }
 0x992   : > { %v5675_v28 = vpop.xlane.xlu1 %5674  ;;  %v6048_v63 = vmul.f32 %v15671_v9, %v19241_v45 }
 0x993   : > { %15676 = vrcp.f32 %v5675_v28 }
 0x994   : > { %13608 = vmatprep.mubr.msk.f32.mxu0 %vm490_vm0, %v6048_v63 }
 0x995   : > { %v15673_v59 = vpop.eup %15672 }
 0x996   : > { %v6049_v13 = vmul.f32 %v15673_v59, %v19250_v8  ;;  %v5678_v62 = vpop.xlane.xlu1 %5677  ;;  %v5702_v36 = vpop.xlane.xlu0 %5701  ;;  %v20743_v8 = vld [vmem:[#allocation10_spill] sm:$0xff] }
 0x997   : > { %15678 = vrcp.f32 %v5678_v62 }
 0x998   : > { %13609 = vmatmul.mubr.msk.f32.vlgmr.msra.gmra.mrb[76].mxu0 %vm490_vm0, %v6049_v13 }
 0x999   : > { %v15675_v42 = vpop.eup %15674  ;;  %14579 = vmatpush3.bf16.msra.mxu0 %v20741_v17 }
 0x99a   : > { %14581 = vmatprep.subr.bf16.mxu0 %v20742_v12  ;;  %v5681_v52 = vpop.xlane.xlu1 %5680  ;;  %v5708_v4 = vpop.xlane.xlu0 %5707  ;;  %v6050_v45 = vmul.f32 %v15675_v42, %v19258_v5 }
 0x99b   : > { %15680 = vrcp.f32 %v5681_v52 }
 0x99c   : > { %13611 = vmatprep.mubr.msk.f32.mxu0 %vm490_vm0, %v6050_v45 }
 0x99d   : > { %v15677_v63 = vpop.eup %15676  ;;  %14583 = vmatpush3.bf16.msra.mxu0 %v20742_v12 }
 0x99e   : > { %14593 = vmatprep.subr.bf16.mxu0 %v20743_v8  ;;  %v5684_v62 = vpop.xlane.xlu1 %5683  ;;  %v5714_v9 = vpop.xlane.xlu0 %5713  ;;  %v6051_v28 = vmul.f32 %v15677_v63, %v19271_v21 }
 0x99f   : > { %15682 = vrcp.f32 %v5684_v62 }
 0x9a0   : > { %13612 = vmatmul.mubr.msk.f32.gmra.mrb[78].mxu0 %vm490_vm0, %v6051_v28  ;;  %15684 = vrcp.f32 %v5702_v36  ;;  %v20744_v36 = vld [vmem:[#allocation9_spill] sm:$0xff] }
 0x9a1   : > { %v15679_v59 = vpop.eup %15678 }
 0x9a2   : > { %v5687_v13 = vpop.xlane.xlu1 %5686  ;;  %v5720_v17 = vpop.xlane.xlu0 %5719  ;;  %v6052_v5 = vmul.f32 %v15679_v59, %v19275_v56 }
 0x9a3   : > { %15686 = vrcp.f32 %v5687_v13 }
 0x9a4   : > { %13622 = vmatprep.mubr.msk.f32.mxu0 %vm490_vm0, %v6052_v5  ;;  %15688 = vrcp.f32 %v5708_v4 }
 0x9a5   : > { %v15681_v42 = vpop.eup %15680 }
 0x9a6   : > { %v6053_v12 = vmul.f32 %v15681_v42, %v19296_v29  ;;  %v5705_v52 = vpop.xlane.xlu1 %5704  ;;  %v5726_v45 = vpop.xlane.xlu0 %5725 }
 0x9a7   : > { %15690 = vrcp.f32 %v5705_v52 }
 0x9a8   : > { %13623 = vmatmul.mubr.msk.f32.vlgmr.msra.gmra.mrb[80].mxu0 %vm490_vm0, %v6053_v12  ;;  %15692 = vrcp.f32 %v5714_v9 }
 0x9a9   : > { %v15683_v21 = vpop.eup %15682  ;;  %14595 = vmatpush3.bf16.msra.mxu0 %v20743_v8 }
 0x9aa   : > { %14597 = vmatprep.subr.bf16.mxu0 %v20744_v36  ;;  %v5711_v63 = vpop.xlane.xlu1 %5710  ;;  %v6054_v56 = vmul.f32 %v15683_v21, %v19312_v44  ;;  %v15685_v62 = vpop.eup %15684 }
 0x9ab   : > { %15694 = vrcp.f32 %v5711_v63  ;;  %v5732_v4 = vpop.xlane.xlu0 %5731  ;;  %v6060_v9 = vmul.f32 %v15685_v62, %v19286_v31 }
 0x9ac   : > { %13625 = vmatprep.mubr.msk.f32.mxu0 %vm490_vm0, %v6054_v56  ;;  %15696 = vrcp.f32 %v5720_v17 }
 0x9ad   : > { %v15687_v29 = vpop.eup %15686  ;;  %14599 = vmatpush3.bf16.msra.mxu0 %v20744_v36 }
 0x9ae   : > { %14609 = vmatprep.subr.bf16.mxu0 %v19235_v35  ;;  %v5717_v28 = vpop.xlane.xlu1 %5716  ;;  %v6055_v8 = vmul.f32 %v15687_v29, %v19325_v10  ;;  %v15689_v59 = vpop.eup %15688 }
 0x9af   : > { %15698 = vrcp.f32 %v5717_v28  ;;  %v5750_v42 = vpop.xlane.xlu0 %5749  ;;  %v6062_v17 = vmul.f32 %v15689_v59, %v19301_v24 }
 0x9b0   : > { %13626 = vmatmul.mubr.msk.f32.gmra.mrb[82].mxu0 %vm490_vm0, %v6055_v8  ;;  %15700 = vrcp.f32 %v5726_v45 }
 0x9b1   : > { %v15691_v44 = vpop.eup %15690  ;;  %13650 = vmatprep.mubr.msk.f32.mxu0 %vm490_vm0, %v6060_v9 }
 0x9b2   : > { %v6061_v13 = vmul.f32 %v15691_v44, %v19335_v60  ;;  %v5723_v5 = vpop.xlane.xlu1 %5722  ;;  %v15693_v12 = vpop.eup %15692 }
 0x9b3   : > { %15702 = vrcp.f32 %v5723_v5  ;;  %v6064_v52 = vmul.f32 %v15693_v12, %v19316_v61  ;;  %v5756_v21 = vpop.xlane.xlu0 %5755 }
 0x9b4   : > { %13651 = vmatmul.mubr.msk.f32.vlgmr.msra.gmra.mrb[84].mxu0 %vm490_vm0, %v6061_v13  ;;  %15704 = vrcp.f32 %v5732_v4 }
 0x9b5   : > { %v15695_v10 = vpop.eup %15694  ;;  %14611 = vmatpush3.bf16.msra.mxu0 %v19235_v35  ;;  %13653 = vmatprep.mubr.msk.f32.mxu0 %vm490_vm0, %v6062_v17 }
 0x9b6   : > { %14613 = vmatprep.subr.bf16.mxu0 %v19239_v26  ;;  %v5729_v31 = vpop.xlane.xlu1 %5728  ;;  %v6063_v60 = vmul.f32 %v15695_v10, %v19353_v50  ;;  %v15697_v45 = vpop.eup %15696 }
 0x9b7   : > { %15706 = vrcp.f32 %v5729_v31  ;;  %v6066_v50 = vmul.f32 %v15697_v45, %v19330_v58  ;;  %v5762_v62 = vpop.xlane.xlu0 %5761 }
 0x9b8   : > { %13654 = vmatmul.mubr.msk.f32.gmra.mrb[86].mxu0 %vm490_vm0, %v6063_v60  ;;  %15708 = vrcp.f32 %v5750_v42 }
 0x9b9   : > { %v15699_v24 = vpop.eup %15698  ;;  %14615 = vmatpush3.bf16.msra.mxu0 %v19239_v26  ;;  %13696 = vmatprep.mubr.msk.f32.mxu0 %vm490_vm0, %v6064_v52  ;;  %v20745_v26 = vld [vmem:[#allocation32_spill] sm:$0xff] }
 0x9ba   : > { %v6065_v35 = vmul.f32 %v15699_v24, %v19367_v15  ;;  %14617 = vmatprep.subr.bf16.mxu0 %v19244_v14  ;;  %v5735_v36 = vpop.xlane.xlu1 %5734  ;;  %v15701_v63 = vpop.eup %15700 }
 0x9bb   : > { %15710 = vrcp.f32 %v5735_v36  ;;  %v6068_v29 = vmul.f32 %v15701_v63, %v19344_v43  ;;  %v5768_v42 = vpop.xlane.xlu0 %5767 }
 0x9bc   : > { %13697 = vmatmul.mubr.msk.f32.vlgmr.msra.gmra.mrb[76].mxu0 %vm490_vm0, %v6065_v35  ;;  %15712 = vrcp.f32 %v5756_v21 }
 0x9bd   : > { %v15703_v61 = vpop.eup %15702  ;;  %14619 = vmatpush3.bf16.msra.mxu0 %v19244_v14  ;;  %13699 = vmatprep.mubr.msk.f32.mxu0 %vm490_vm0, %v6066_v50 }
 0x9be   : > { %14621 = vmatprep.subr.bf16.mxu0 %v20745_v26  ;;  %v5753_v56 = vpop.xlane.xlu1 %5752  ;;  %v6067_v15 = vmul.f32 %v15703_v61, %v19382_v20  ;;  %v15705_v4 = vpop.eup %15704 }
 0x9bf   : > { %15714 = vrcp.f32 %v5753_v56  ;;  %v6070_v20 = vmul.f32 %v15705_v4, %v19358_v38  ;;  %v20746_v4 = vld [vmem:[#allocation28_spill] sm:$0xff] }
 0x9c0   : > { %13700 = vmatmul.mubr.msk.f32.gmra.mrb[78].mxu0 %vm490_vm0, %v6067_v15  ;;  %15716 = vrcp.f32 %v5762_v62 }
 0x9c1   : > { %v15707_v58 = vpop.eup %15706  ;;  %14623 = vmatpush3.bf16.msra.mxu0 %v20745_v26  ;;  %13710 = vmatprep.mubr.msk.f32.mxu0 %vm490_vm0, %v6068_v29 }
 0x9c2   : > { %v6069_v14 = vmul.f32 %v15707_v58, %v19396_v11  ;;  %14633 = vmatprep.subr.bf16.mxu0 %v19289_v23  ;;  %v5759_v28 = vpop.xlane.xlu1 %5758  ;;  %v15709_v8 = vpop.eup %15708 }
 0x9c3   : > { %15718 = vrcp.f32 %v5759_v28  ;;  %v6076_v11 = vmul.f32 %v15709_v8, %v19372_v30 }
 0x9c4   : > { %13711 = vmatmul.mubr.msk.f32.vlgmr.msra.gmra.mrb[80].mxu0 %vm490_vm0, %v6069_v14  ;;  %v20747_v14 = vld [vmem:[#allocation29_spill] sm:$0xff] }
 0x9c5   : > { %v15711_v43 = vpop.eup %15710  ;;  %14635 = vmatpush3.bf16.msra.mxu0 %v19289_v23  ;;  %13713 = vmatprep.mubr.msk.f32.mxu0 %vm490_vm0, %v6070_v20 }
 0x9c6   : > { %14637 = vmatprep.subr.bf16.mxu0 %v19304_v18  ;;  %v6071_v9 = vmul.f32 %v15711_v43, %v19410_v25  ;;  %v15713_v59 = vpop.eup %15712 }
 0x9c7   : > { %v6078_v23 = vmul.f32 %v15713_v59, %v19387_v54 }
 0x9c8   : > { %13714 = vmatmul.mubr.msk.f32.gmra.mrb[82].mxu0 %vm490_vm0, %v6071_v9 }
 0x9c9   : > { %v15715_v44 = vpop.eup %15714  ;;  %14639 = vmatpush3.bf16.msra.mxu0 %v19304_v18  ;;  %13738 = vmatprep.mubr.msk.f32.mxu0 %vm490_vm0, %v6076_v11  ;;  %v5765_v18 = vpop.xlane.xlu1 %5764  ;;  %v20748_v11 = vld [vmem:[#allocation31_spill] sm:$0xff] }
 0x9ca   : > { %v6077_v38 = vmul.f32 %v15715_v44, %v19424_v7  ;;  %v15717_v13 = vpop.eup %15716  ;;  %v5774_v7 = vpop.xlane.xlu0 %5773  ;;  %15720 = vrcp.f32 %v5765_v18 }
 0x9cb   : > { %v6080_v25 = vmul.f32 %v15717_v13, %v19401_v41  ;;  %15722 = vrcp.f32 %v5768_v42 }
 0x9cc   : > { %13739 = vmatmul.mubr.msk.f32.vlgmr.msra.gmra.mrb[84].mxu0 %vm490_vm0, %v6077_v38 }
 0x9cd   : > { %v15719_v5 = vpop.eup %15718  ;;  %13741 = vmatprep.mubr.msk.f32.mxu0 %vm490_vm0, %v6078_v23  ;;  %v5771_v17 = vpop.xlane.xlu1 %5770 }
 0x9ce   : > { %v6079_v30 = vmul.f32 %v15719_v5, %v19438_v32  ;;  %v5780_v10 = vpop.xlane.xlu0 %5779  ;;  %15724 = vrcp.f32 %v5771_v17  ;;  %v11927_v5 = vld [vmem:[%s20202_s2 + $0xe8] sm:$0xff] }
 0x9cf   : > { %15726 = vrcp.f32 %v5774_v7 }
 0x9d0   : > { %13742 = vmatmul.mubr.msk.f32.gmra.mrb[86].mxu0 %vm490_vm0, %v6079_v30 }
 0x9d1   : > { %13784 = vmatprep.mubr.msk.f32.mxu0 %vm490_vm0, %v6080_v25  ;;  %v5777_v12 = vpop.xlane.xlu1 %5776 }
 0x9d2   : > { %15728 = vrcp.f32 %v5777_v12  ;;  %v5798_v21 = vpop.xlane.xlu0 %5797 }
 0x9d3   : > { %15730 = vrcp.f32 %v5780_v10  ;;  %v11928_v10 = vld [vmem:[%s20202_s2 + $0xf0] sm:$0xff] }
 0x9d4   : > { %v15721_v24 = vpop.eup %15720 }
 0x9d5   : > { %v5783_v45 = vpop.xlane.xlu1 %5782  ;;  %v15723_v36 = vpop.eup %15722  ;;  %v6081_v63 = vmul.f32 %v15721_v24, %v19448_v33 }
 0x9d6   : > { %15732 = vrcp.f32 %v5783_v45  ;;  %v6082_v15 = vmul.f32 %v15723_v36, %v19415_v0  ;;  %v5804_v9 = vpop.xlane.xlu0 %5803 }
 0x9d7   : > { %15734 = vrcp.f32 %v5798_v21  ;;  %v20750_v21 = vld [vmem:[#allocation13_spill] sm:$0xff] }
 0x9d8   : > { %v15725_v26 = vpop.eup %15724  ;;  %15736 = vrcp.f32 %v20746_v4 }
 0x9d9   : > { %v15727_v62 = vpop.eup %15726  ;;  %15738 = vrcp.f32 %v20747_v14  ;;  %v6083_v33 = vmul.f32 %v15725_v26, %v19458_v16  ;;  %v5801_v20 = vpop.xlane.xlu1 %5800  ;;  %v20751_v26 = vld [vmem:[#allocation14_spill] sm:$0xff] }
 0x9da   : > { %v6084_v0 = vmul.f32 %v15727_v62, %v19430_v27  ;;  %15740 = vrcp.f32 %v20748_v11  ;;  %v11926_v27 = vld [vmem:[%s20202_s2 + $0xe0] sm:$0xff] }
 0x9db   : > { %15742 = vrcp.f32 %v5801_v20  ;;  %v14680_v17 = vpack.c.bf16 %v11927_v5, %v11926_v27  ;;  %v20759_v20 = vld [vmem:[#allocation127_spill] sm:$0xff] }
 0x9dc   : > { %v15729_v28 = vpop.eup %15728  ;;  %15744 = vrcp.f32 %v5804_v9  ;;  %v20762_v9 = vld [vmem:[#allocation81_spill] sm:$0xff] }
 0x9dd   : > { %v15731_v43 = vpop.eup %15730  ;;  %v6085_v44 = vmul.f32 %v15729_v28, %v19468_v2  ;;  %v5807_v2 = vpop.xlane.xlu1 %5806  ;;  %v20757_v28 = vld [vmem:[#allocation39_spill] sm:$0xff] }
 0x9de   : > { %v6086_v13 = vmul.f32 %v15731_v43, %v19441_v3  ;;  %v5810_v3 = vpop.xlane.xlu0 %5809  ;;  %15746 = vrcp.f32 %v5807_v2  ;;  %v20761_v43 = vld [vmem:[#allocation126_spill] sm:$0xff] }
 0x9df   : > { %15748 = vrcp.f32 %v5810_v3 }
 0x9e0   : > { %v15733_v16 = vpop.eup %15732 }
 0x9e1   : > { %v15735_v30 = vpop.eup %15734  ;;  %v6087_v42 = vmul.f32 %v15733_v16, %v19478_v1 }
 0x9e2   : > { %v15737_v7 = vpop.eup %15736  ;;  %v6092_v12 = vmul.f32 %v15735_v30, %v19451_v34 }
 0x9e5   : > { %v13754_v54 = vpop.f32.mrb[152].mxu1 }
 0x9e6   : > { %v9554_v31 = vpop.f32.mrb[153].mxu1 }
 0x9e7   : > { %v14648_v60 = vpack.c.bf16 %v13754_v54, %v9554_v31  ;;  %v11929_v31 = vld [vmem:[%s20202_s2 + $0xf8] sm:$0xff] }
 0x9e9   : > { %v13757_v32 = vpop.f32.mrb[154].mxu1  ;;  %14649 = vmatprep.subr.bf16.mxu0 %v14648_v60 }
 0x9ea   : > { %v9564_v41 = vpop.f32.mrb[155].mxu1  ;;  %14651 = vmatpush3.bf16.msra.mxu0 %v14648_v60  ;;  %v15739_v60 = vpop.eup %15738 }
 0x9eb   : > { %v14652_v52 = vpack.c.bf16 %v13757_v32, %v9564_v41  ;;  %v20749_v41 = vld [vmem:[#allocation11_spill] sm:$0xff]  ;;  %v15741_v45 = vpop.eup %15740 }
 0x9ec   : > { %v6089_v34 = vmul.f32 %v15737_v7, %v20749_v41  ;;  %v20765_v41 = vld [vmem:[#allocation83_spill] sm:$0xff] }
 0x9ed   : > { %v13760_v35 = vpop.f32.mrb[156].mxu1  ;;  %14653 = vmatprep.subr.bf16.mxu0 %v14652_v52 }
 0x9ee   : > { %v9574_v50 = vpop.f32.mrb[157].mxu1  ;;  %14655 = vmatpush3.bf16.msra.mxu0 %v14652_v52  ;;  %v14684_v52 = vpack.c.bf16 %v11929_v31, %v11928_v10  ;;  %v20764_v10 = vld [vmem:[#allocation44_spill] sm:$0xff] }
 0x9ef   : > { %v14656_v61 = vpack.c.bf16 %v13760_v35, %v9574_v50  ;;  %v6090_v35 = vmul.f32 %v15739_v60, %v20750_v21  ;;  %v5816_v50 = vpop.xlane.xlu0 %5815 }
 0x9f1   : > { %v13763_v56 = vpop.f32.mrb[158].mxu1  ;;  %13785 = vmatmul.mubr.msk.f32.vlgmr.msra.gmra.mrb[76].mxu0 %vm490_vm0, %v6081_v63  ;;  %14657 = vmatprep.subr.bf16.mxu0 %v14656_v61 }
 0x9f2   : > { %v9584_v29 = vpop.f32.mrb[159].mxu1  ;;  %13787 = vmatprep.mubr.msk.f32.mxu0 %vm490_vm0, %v6082_v15  ;;  %14659 = vmatpush3.bf16.msra.mxu0 %v14656_v61  ;;  %v15743_v61 = vpop.eup %15742 }
 0x9f3   : > { %v14660_v58 = vpack.c.bf16 %v13763_v56, %v9584_v29  ;;  %v6091_v56 = vmul.f32 %v15741_v45, %v20751_v26  ;;  %v15745_v15 = vpop.eup %15744  ;;  %v6093_v62 = vmul.f32 %v15743_v61, %v19488_v6  ;;  %v5822_v14 = vpop.xlane.xlu0 %5821 }
 0x9f4   : > { %v15747_v29 = vpop.eup %15746  ;;  %v6094_v4 = vmul.f32 %v15745_v15, %v19461_v46  ;;  %v20753_v46 = vld [vmem:[#allocation33_spill] sm:$0xff] }
 0x9f5   : > { %v13766_v8 = vpop.f32.mrb[160].mxu1  ;;  %14661 = vmatprep.subr.bf16.mxu0 %v14660_v58  ;;  %13788 = vmatmul.mubr.msk.f32.gmra.mrb[78].mxu0 %vm490_vm0, %v6083_v33  ;;  %v6095_v6 = vmul.f32 %v15747_v29, %v19497_v22  ;;  %v20754_v22 = vld [vmem:[#allocation34_spill] sm:$0xff] }
 0x9f6   : > { %v9594_v59 = vpop.f32.mrb[161].mxu1  ;;  %14663 = vmatpush3.bf16.msra.mxu0 %v14660_v58  ;;  %13798 = vmatprep.mubr.msk.f32.mxu0 %vm490_vm0, %v6084_v0  ;;  %v15749_v58 = vpop.eup %15748  ;;  %v20760_v0 = vld [vmem:[#allocation125_spill] sm:$0xff] }
 0x9f7   : > { %v14664_v38 = vpack.c.bf16 %v13766_v8, %v9594_v59  ;;  %v6096_v33 = vmul.f32 %v15749_v58, %v19471_v40  ;;  %v20755_v40 = vld [vmem:[#allocation35_spill] sm:$0xff]  ;;  %v20763_v59 = vld [vmem:[#allocation128_spill] sm:$0xff] }
 0x9f9   : > { %v13769_v23 = vpop.f32.mrb[162].mxu1  ;;  %14665 = vmatprep.subr.bf16.mxu1 %v14664_v38  ;;  %13799 = vmatmul.mubr.msk.f32.vlgmr.msra.gmra.mrb[80].mxu0 %vm490_vm0, %v6085_v44  ;;  %v5813_v44 = vpop.xlane.xlu1 %5812 }
 0x9fa   : > { %v9604_v25 = vpop.f32.mrb[163].mxu1  ;;  %13801 = vmatprep.mubr.msk.f32.mxu0 %vm490_vm0, %v6086_v13  ;;  %14667 = vmatpush3.bf16.msra.mxu1 %v14664_v38 }
 0x9fb   : > { %v14668_v18 = vpack.c.bf16 %v13769_v23, %v9604_v25 }
 0x9fd   : > { %v13772_v54 = vpop.f32.mrb[164].mxu1  ;;  %14669 = vmatprep.subr.bf16.mxu1 %v14668_v18  ;;  %13802 = vmatmul.mubr.msk.f32.gmra.mrb[82].mxu0 %vm490_vm0, %v6087_v42  ;;  %v5819_v38 = vpop.xlane.xlu1 %5818 }
 0x9fe   : > { %v9614_v32 = vpop.f32.mrb[165].mxu1  ;;  %14671 = vmatpush3.bf16.msra.mxu1 %v14668_v18  ;;  %13826 = vmatprep.mubr.msk.f32.mxu0 %vm490_vm0, %v6092_v12 }
 0x9ff   : > { %v14672_v1 = vpack.c.bf16 %v13772_v54, %v9614_v32  ;;  %14681 = vmatprep.subr.bf16.mxu1 %v14680_v17 }
 0xa01   : > { %v13775_v24 = vpop.f32.mrb[166].mxu1  ;;  %14673 = vmatprep.subr.bf16.mxu0 %v14672_v1  ;;  %13813 = vmatmul.mubr.msk.f32.vlgmr.msra.gmra.mrb[100].mxu1 %vm490_vm0, %v6089_v34  ;;  %v5825_v16 = vpop.xlane.xlu1 %5824 }
 0xa02   : > { %v9624_v36 = vpop.f32.mrb[167].mxu1  ;;  %14675 = vmatpush3.bf16.msra.mxu0 %v14672_v1  ;;  %13815 = vmatprep.mubr.msk.f32.mxu1 %vm490_vm0, %v6090_v35 }
 0xa03   : > { %v14676_v63 = vpack.c.bf16 %v13775_v24, %v9624_v36  ;;  %14683 = vmatpush3.bf16.msra.mxu1 %v14680_v17 }
 0xa04   : > { %14685 = vmatprep.subr.bf16.mxu1 %v14684_v52 }
 0xa05   : > { %14677 = vmatprep.subr.bf16.mxu0 %v14676_v63  ;;  %13816 = vmatmul.mubr.msk.f32.gmra.mrb[102].mxu1 %vm490_vm0, %v6091_v56  ;;  %v5831_v23 = vpop.xlane.xlu1 %5830 }
 0xa06   : > { %14679 = vmatpush3.bf16.msra.mxu0 %v14676_v63  ;;  %13840 = vmatprep.mubr.msk.f32.mxu1 %vm490_vm0, %v20596_v48  ;;  %v5828_v48 = vpop.xlane.xlu0 %5827 }
 0xa07   : > { %14687 = vmatpush3.bf16.msra.mxu1 %v14684_v52 }
 0xa09   : > { %13827 = vmatmul.mubr.msk.f32.vlgmr.msra.gmra.mrb[84].mxu0 %vm490_vm0, %v6093_v62  ;;  %v5837_v25 = vpop.xlane.xlu1 %5836 }
 0xa0a   : > { %13841 = vmatmul.mubr.msk.f32.vlgmr.msra.gmra.mrb[168].mxu1 %vm490_vm0, %v20597_v53  ;;  %13829 = vmatprep.mubr.msk.f32.mxu0 %vm490_vm0, %v6094_v4  ;;  %v20752_v53 = vld [vmem:[#allocation30_spill] sm:$0xff] }
 0xa0b   : > { %13843 = vmatprep.mubr.msk.f32.mxu1 %vm490_vm0, %v20598_v55  ;;  %v5834_v55 = vpop.xlane.xlu0 %5833 }
 0xa0c   : > { %15750 = vrcp.f32 %v5834_v55 }
 0xa0d   : > { %13830 = vmatmul.mubr.msk.f32.gmra.mrb[86].mxu0 %vm490_vm0, %v6095_v6  ;;  %15752 = vrcp.f32 %v5813_v44  ;;  %v5843_v60 = vpop.xlane.xlu1 %5842 }
 0xa0e   : > { %13844 = vmatmul.mubr.msk.f32.gmra.mrb[170].mxu1 %vm490_vm0, %v20599_v49  ;;  %13872 = vmatprep.mubr.msk.f32.mxu0 %vm490_vm0, %v6096_v33  ;;  %v20756_v49 = vld [vmem:[#allocation36_spill] sm:$0xff]  ;;  %15754 = vrcp.f32 %v5816_v50  ;;  %v20766_v50 = vld [vmem:[#allocation43_spill] sm:$0xff] }
 0xa0f   : > { %13846 = vmatprep.mubr.msk.f32.mxu1 %vm490_vm0, %v20600_v19  ;;  %v20758_v19 = vld [vmem:[#allocation40_spill] sm:$0xff]  ;;  %15756 = vrcp.f32 %v5819_v38  ;;  %v5840_v30 = vpop.xlane.xlu0 %5839 }
 0xa10   : > { %15758 = vrcp.f32 %v5822_v14 }
 0xa11   : > { %15760 = vrcp.f32 %v5825_v16  ;;  %v5849_v26 = vpop.xlane.xlu1 %5848 }
 0xa12   : > { %13847 = vmatmul.mubr.msk.f32.gmra.mrb[172].mxu1 %vm490_vm0, %v20752_v53  ;;  %15762 = vrcp.f32 %v5828_v48 }
 0xa13   : > { %13849 = vmatprep.mubr.msk.f32.mxu1 %vm490_vm0, %v20753_v46  ;;  %v5846_v17 = vpop.xlane.xlu0 %5845  ;;  %15764 = vrcp.f32 %v5831_v23 }
 0xa14   : > { %15766 = vrcp.f32 %v5846_v17  ;;  %v15825_v17 = vld [vmem:[%s16037_s18] sm:$0xff] }
 0xa15   : > { %15768 = vrcp.f32 %v5837_v25  ;;  %v5855_v53 = vpop.xlane.xlu1 %5854 }
 0xa16   : > { %13850 = vmatmul.mubr.msk.f32.gmra.mrb[174].mxu1 %vm490_vm0, %v20754_v22  ;;  %v15751_v8 = vpop.eup %15750  ;;  %15770 = vrcp.f32 %v5840_v30 }
 0xa17   : > { %13852 = vmatprep.mubr.msk.f32.mxu1 %vm490_vm0, %v20755_v40  ;;  %v6104_v11 = vmul.f32 %v15751_v8, %v20762_v9  ;;  %v15753_v42 = vpop.eup %15752  ;;  %15772 = vrcp.f32 %v5843_v60  ;;  %v5852_v58 = vpop.xlane.xlu0 %5851 }
 0xa18   : > { %v15755_v7 = vpop.eup %15754  ;;  %v6097_v31 = vmul.f32 %v15753_v42, %v20764_v10  ;;  %15774 = vrcp.f32 %v5849_v26 }
 0xa19   : > { %v15757_v1 = vpop.eup %15756  ;;  %v6098_v34 = vmul.f32 %v15755_v7, %v20765_v41  ;;  %15776 = vrcp.f32 %v5852_v58  ;;  %v15827_v41 = vld [vmem:[%s16037_s18 + $0x10] sm:$0xff] }
 0xa1a   : > { %13853 = vmatmul.mubr.msk.f32.gmra.mrb[176].mxu1 %vm490_vm0, %v20756_v49  ;;  %v15759_v52 = vpop.eup %15758  ;;  %v6099_v35 = vmul.f32 %v15757_v1, %v19516_v51  ;;  %v20767_v51 = vld [vmem:[#allocation42_spill] sm:$0xff]  ;;  %15778 = vrcp.f32 %v5855_v53 }
 0xa1b   : > { %13855 = vmatprep.mubr.msk.f32.mxu1 %vm490_vm0, %v20757_v28  ;;  %v15761_v36 = vpop.eup %15760  ;;  %v6100_v63 = vmul.f32 %v15759_v52, %v20766_v50 }
 0xa1c   : > { %v15763_v61 = vpop.eup %15762  ;;  %v6101_v62 = vmul.f32 %v15761_v36, %v19521_v47 }
 0xa1d   : > { %v15765_v4 = vpop.eup %15764  ;;  %v6102_v14 = vmul.f32 %v15763_v61, %v20767_v51  ;;  %v15829_v61 = vld [vmem:[%s16037_s18 + $0x20] sm:$0xff] }
 0xa1e   : > { %13856 = vmatmul.mubr.msk.f32.gmra.mrb[178].mxu1 %vm490_vm0, %v20758_v19  ;;  %v15767_v6 = vpop.eup %15766  ;;  %v6103_v47 = vmul.f32 %v15765_v4, %v19530_v57  ;;  %v15830_v4 = vld [vmem:[%s16037_s18 + $0x38] sm:$0xff] }
 0xa1f   : > { %13858 = vmatprep.mubr.msk.f32.mxu1 %vm490_vm0, %v20759_v20  ;;  %v15769_v55 = vpop.eup %15768  ;;  %v6108_v22 = vmul.f32 %v15767_v6, %v19538_v37  ;;  %v15831_v6 = vld [vmem:[%s16037_s18 + $0x30] sm:$0xff] }
 0xa20   : > { %v15771_v40 = vpop.eup %15770  ;;  %v6105_v19 = vmul.f32 %v15769_v55, %v19535_v39  ;;  %v20770_v39 = vld [vmem:[#allocation47_spill] sm:$0xff]  ;;  %v15832_v55 = vld [vmem:[%s16037_s18 + $0x48] sm:$0xff] }
 0xa21   : > { %v15773_v8 = vpop.eup %15772 }
 0xa22   : > { %13859 = vmatmul.mubr.msk.f32.gmra.mrb[180].mxu1 %vm490_vm0, %v20760_v0  ;;  %v20768_v0 = vld [vmem:[#allocation48_spill] sm:$0xff]  ;;  %v15775_v44 = vpop.eup %15774 }
 0xa23   : > { %13861 = vmatprep.mubr.msk.f32.mxu1 %vm490_vm0, %v20761_v43  ;;  %v6106_v43 = vmul.f32 %v15771_v40, %v20768_v0  ;;  %v15777_v38 = vpop.eup %15776  ;;  %v6109_v16 = vmul.f32 %v15775_v44, %v20770_v39 }
 0xa24   : > { %v15779_v23 = vpop.eup %15778 }
 0xa26   : > { %13862 = vmatmul.mubr.msk.f32.gmra.mrb[182].mxu1 %vm490_vm0, %v20763_v59 }
 0xa27   : > { %13900 = vmatprep.mubr.msk.f32.mxu1 %vm490_vm0, %v6104_v11  ;;  %v20769_v11 = vld [vmem:[#allocation86_spill] sm:$0xff] }
 0xa28   : > { %v6107_v59 = vmul.f32 %v15773_v8, %v20769_v11 }
 0xadd   : > { %v13842_v13 = vpop.f32.mrb[168].mxu1 }
 0xade   : > { %v10108_v27 = vpop.f32.mrb[169].mxu1 }
 0xadf   : > { %v14688_v5 = vpack.c.bf16 %v13842_v13, %v10108_v27  ;;  %v20771_v13 = vld [vmem:[#allocation38_spill] sm:$0xff] }
 0xae0   : > { %v6110_v27 = vmul.f32 %v15777_v38, %v20771_v13  ;;  %v15836_v13 = vld [vmem:[%s16037_s18 + $0x68] sm:$0xff] }
 0xae1   : > { %v13845_v2 = vpop.f32.mrb[170].mxu1  ;;  %14689 = vmatprep.subr.bf16.mxu0 %v14688_v5 }
 0xae2   : > { %v10118_v18 = vpop.f32.mrb[171].mxu1  ;;  %14691 = vmatpush3.bf16.msra.mxu0 %v14688_v5  ;;  %v20772_v5 = vld [vmem:[#allocation46_spill] sm:$0xff] }
 0xae3   : > { %v14692_v3 = vpack.c.bf16 %v13845_v2, %v10118_v18  ;;  %v6111_v30 = vmul.f32 %v15779_v23, %v20772_v5  ;;  %v19739_v2 = vld [vmem:[%s20203_s3] ss:$0 sm:$0xff]  ;;  %v15824_v18 = vld [vmem:[%s16037_s18 + $0x8] sm:$0xff] }
 0xae5   : > { %v13848_v54 = vpop.f32.mrb[172].mxu1  ;;  %14693 = vmatprep.subr.bf16.mxu0 %v14692_v3 }
 0xae6   : > { %v10128_v12 = vpop.f32.mrb[173].mxu1  ;;  %14695 = vmatpush3.bf16.msra.mxu0 %v14692_v3 }
 0xae7   : > { %v14696_v32 = vpack.c.bf16 %v13848_v54, %v10128_v12 }
 0xae9   : > { %v13851_v45 = vpop.f32.mrb[174].mxu1  ;;  %13873 = vmatmul.mubr.msk.f32.vlgmr.msra.gmra.mrb[76].mxu0 %vm490_vm0, %v6097_v31  ;;  %14697 = vmatprep.subr.bf16.mxu0 %v14696_v32  ;;  %v15826_v31 = vld [vmem:[%s16037_s18 + $0x18] sm:$0xff] }
 0xaea   : > { %v10138_v24 = vpop.f32.mrb[175].mxu1  ;;  %13875 = vmatprep.mubr.msk.f32.mxu0 %vm490_vm0, %v6098_v34  ;;  %14699 = vmatpush3.bf16.msra.mxu0 %v14696_v32 }
 0xaeb   : > { %v14700_v21 = vpack.c.bf16 %v13851_v45, %v10138_v24 }
 0xaed   : > { %v13854_v56 = vpop.f32.mrb[176].mxu1  ;;  %13876 = vmatmul.mubr.msk.f32.gmra.mrb[78].mxu0 %vm490_vm0, %v6099_v35  ;;  %14701 = vmatprep.subr.bf16.mxu0 %v14700_v21  ;;  %v15828_v35 = vld [vmem:[%s16037_s18 + $0x28] sm:$0xff] }
 0xaee   : > { %v10148_v15 = vpop.f32.mrb[177].mxu1  ;;  %14703 = vmatpush3.bf16.msra.mxu0 %v14700_v21  ;;  %13886 = vmatprep.mubr.msk.f32.mxu0 %vm490_vm0, %v6100_v63 }
 0xaef   : > { %v14704_v29 = vpack.c.bf16 %v13854_v56, %v10148_v15 }
 0xaf1   : > { %v13857_v33 = vpop.f32.mrb[178].mxu1  ;;  %13887 = vmatmul.mubr.msk.f32.vlgmr.msra.gmra.mrb[80].mxu0 %vm490_vm0, %v6101_v62  ;;  %14705 = vmatprep.subr.bf16.mxu1 %v14704_v29 }
 0xaf2   : > { %v10158_v48 = vpop.f32.mrb[179].mxu1  ;;  %13889 = vmatprep.mubr.msk.f32.mxu0 %vm490_vm0, %v6102_v14  ;;  %14707 = vmatpush3.bf16.msra.mxu1 %v14704_v29 }
 0xaf3   : > { %v14708_v46 = vpack.c.bf16 %v13857_v33, %v10158_v48 }
 0xaf5   : > { %v13860_v49 = vpop.f32.mrb[180].mxu1  ;;  %13890 = vmatmul.mubr.msk.f32.gmra.mrb[82].mxu0 %vm490_vm0, %v6103_v47  ;;  %14709 = vmatprep.subr.bf16.mxu1 %v14708_v46 }
 0xaf6   : > { %v10168_v28 = vpop.f32.mrb[181].mxu1  ;;  %14711 = vmatpush3.bf16.msra.mxu1 %v14708_v46  ;;  %13914 = vmatprep.mubr.msk.f32.mxu0 %vm490_vm0, %v6108_v22 }
 0xaf7   : > { %v14712_v20 = vpack.c.bf16 %v13860_v49, %v10168_v28  ;;  %v15833_v28 = vld [vmem:[%s16037_s18 + $0x40] sm:$0xff] }
 0xaf9   : > { %v13863_v57 = vpop.f32.mrb[182].mxu1  ;;  %13901 = vmatmul.mubr.msk.f32.vlgmr.msra.gmra.mrb[100].mxu1 %vm490_vm0, %v6105_v19  ;;  %14713 = vmatprep.subr.bf16.mxu0 %v14712_v20 }
 0xafa   : > { %v10178_v37 = vpop.f32.mrb[183].mxu1  ;;  %13903 = vmatprep.mubr.msk.f32.mxu1 %vm490_vm0, %v6106_v43  ;;  %14715 = vmatpush3.bf16.msra.mxu0 %v14712_v20 }
 0xafb   : > { %v14716_v9 = vpack.c.bf16 %v13863_v57, %v10178_v37  ;;  %v15834_v57 = vld [vmem:[%s16037_s18 + $0x58] sm:$0xff] }
 0xafd   : > { %13904 = vmatmul.mubr.msk.f32.gmra.mrb[102].mxu1 %vm490_vm0, %v6107_v59  ;;  %14717 = vmatprep.subr.bf16.mxu0 %v14716_v9  ;;  %v15835_v59 = vld [vmem:[%s16037_s18 + $0x50] sm:$0xff] }
 0xafe   : > { %14719 = vmatpush3.bf16.msra.mxu0 %v14716_v9 }
 0xb01   : > { %13915 = vmatmul.mubr.msk.f32.vlgmr.msra.gmra.mrb[84].mxu0 %vm490_vm0, %v6109_v16 }
 0xb02   : > { %13917 = vmatprep.mubr.msk.f32.mxu0 %vm490_vm0, %v6110_v27 }
 0xb05   : > { %13918 = vmatmul.mubr.msk.f32.gmra.mrb[86].mxu0 %vm490_vm0, %v6111_v30 }
 0xbbc   : > { %v13874_v25 = vpop.f32.mrb[76].mxu0 }
 0xbbd   : > { %v10592_v3 = vadd.f32 %v15824_v18, %v13874_v25  ;;  %v10265_v42 = vpop.f32.mrb[77].mxu0  ;;  %v15837_v25 = vld [vmem:[%s16037_s18 + $0x60] sm:$0xff] }
 0xbbe   : > { %v10591_v7 = vadd.f32 %v15825_v17, %v10265_v42 }
 0xbbf   : > { %v19744_v54 = vadd.f32 %v19739_v2, %v10592_v3 }
 0xbc0   : > { %v19747_v12 = vadd.f32 %v19739_v2, %v10591_v7  ;;  %v13877_v10 = vpop.f32.mrb[78].mxu0 }
 0xbc1   : > { %v10594_v60 = vadd.f32 %v15826_v31, %v13877_v10  ;;  %v10275_v32 = vpop.f32.mrb[79].mxu0  ;;  %v10635_v1 = vsel %vm490_vm0, %v19744_v54, 0.0  ;;  %v15838_v10 = vld [vmem:[%s16037_s18 + $0x78] sm:$0xff] }
 0xbc2   : > { %v10593_v34 = vadd.f32 %v15827_v41, %v10275_v32  ;;  %10636 = vadd.xlane.f32.xlu1 %v10635_v1  ;;  %v10632_v52 = vsel %vm490_vm0, %v19747_v12, 0.0  ;;  %v15839_v1 = vld [vmem:[%s16037_s18 + $0x70] sm:$0xff]  ;;  %s20086_s18 = scalar_lea.vmem [#allocation2], %s11385_s20  ;;  %s15844_s20 = sshll.u32 %s15907_s15, 4  ;;  %s15845_s20 = int_to_ptr.vmem [resolvable:$false] %s15844_s20 }
 0xbc3   : > { %v19756_v45 = vadd.f32 %v19739_v2, %v10594_v60  ;;  %10633 = vadd.xlane.f32.xlu0 %v10632_v52  ;;  %s11319_s28 = sshll.u32 %s20086_s18, 4  ;;  %s15846_s27 = scalar_lea.vmem %s15845_s20, 4096  ;;  %s20150_s28 = int_to_ptr.vmem [resolvable:$true] %s11319_s28 }
 0xbc4   : > { %v19759_v24 = vadd.f32 %v19739_v2, %v10593_v34  ;;  %v13888_v21 = vpop.f32.mrb[80].mxu0  ;;  %s15840_s22 = scalar_lea.vmem %s20150_s28, 2048  ;;  %p15847_p0 = scmp.lt.s32.totalorder %s20150_s28, %s15845_s20 }
 0xbc5   : > { %v10596_v36 = vadd.f32 %v15828_v35, %v13888_v21  ;;  %v10362_v50 = vpop.f32.mrb[81].mxu0  ;;  %v10641_v63 = vsel %vm490_vm0, %v19756_v45, 0.0  ;;  %p15841_p11 = scmp.ne.s32.totalorder %s20150_s28, %s15840_s22  ;;  %p15848_p1 = scmp.lt.s32.totalorder %s15846_s27, %s15840_s22 }
 0xbc6   : > { %v10595_v26 = vadd.f32 %v15829_v61, %v10362_v50  ;;  %10642 = vadd.xlane.f32.xlu1 %v10641_v63  ;;  %v10638_v56 = vsel %vm490_vm0, %v19759_v24, 0.0 }
 0xbc7   : > { %v19768_v15 = vadd.f32 %v19739_v2, %v10596_v36  ;;  %10639 = vadd.xlane.f32.xlu0 %v10638_v56  ;;  %p15842_p12 = pnand %p15841_p11, %p16023_p5  ;;  %p15849_p2 = por %p15848_p1, %p15847_p0 }
 0xbc8   : > { %v19771_v62 = vadd.f32 %v19739_v2, %v10595_v26  ;;  %v13891_v29 = vpop.f32.mrb[82].mxu0 }
 0xbc9   : > { %v10598_v58 = vadd.f32 %v15830_v4, %v13891_v29  ;;  %v10372_v51 = vpop.f32.mrb[83].mxu0  ;;  %v10647_v14 = vsel %vm490_vm0, %v19768_v15, 0.0  ;;  %p15843_p13 = pneg %p15842_p12 }
 0xbca   : > { %v10597_v33 = vadd.f32 %v15831_v6, %v10372_v51  ;;  %10648 = vadd.xlane.f32.xlu1 %v10647_v14  ;;  %v10644_v48 = vsel %vm490_vm0, %v19771_v62, 0.0 }
 0xbcb   : > { %v19780_v53 = vadd.f32 %v19739_v2, %v10598_v58  ;;  %10645 = vadd.xlane.f32.xlu0 %v10644_v48  ;;  %p15850_p3 = pnand %p15849_p2, %p15843_p13 }
 0xbcc   : > { %v19783_v46 = vadd.f32 %v19739_v2, %v10597_v33  ;;  %v13902_v47 = vpop.f32.mrb[100].mxu1 }
 0xbcd   : > { %v10600_v22 = vadd.f32 %v15832_v55, %v13902_v47  ;;  %v10459_v40 = vpop.f32.mrb[101].mxu1  ;;  %v10653_v49 = vsel %vm490_vm0, %v19780_v53, 0.0 }
 0xbce   : > { %v10599_v19 = vadd.f32 %v15833_v28, %v10459_v40  ;;  %10654 = vadd.xlane.f32.xlu1 %v10653_v49  ;;  %v10650_v20 = vsel %vm490_vm0, %v19783_v46, 0.0 }
 0xbcf   : > { %v19792_v8 = vadd.f32 %v19739_v2, %v10600_v22  ;;  %10651 = vadd.xlane.f32.xlu0 %v10650_v20 }
 0xbd0   : > { %v19795_v0 = vadd.f32 %v19739_v2, %v10599_v19  ;;  %v13905_v43 = vpop.f32.mrb[102].mxu1 }
 0xbd1   : > { %v10602_v37 = vadd.f32 %v15834_v57, %v13905_v43  ;;  %v10469_v9 = vpop.f32.mrb[103].mxu1  ;;  %v10659_v11 = vsel %vm490_vm0, %v19792_v8, 0.0 }
 0xbd2   : > { %v10601_v44 = vadd.f32 %v15835_v59, %v10469_v9  ;;  %10660 = vadd.xlane.f32.xlu1 %v10659_v11  ;;  %v10656_v38 = vsel %vm490_vm0, %v19795_v0, 0.0 }
 0xbd3   : > { %v19804_v39 = vadd.f32 %v19739_v2, %v10602_v37  ;;  %10657 = vadd.xlane.f32.xlu0 %v10656_v38 }
 0xbd4   : > { %v19807_v16 = vadd.f32 %v19739_v2, %v10601_v44  ;;  %v13916_v23 = vpop.f32.mrb[84].mxu0 }
 0xbd5   : > { %v10604_v27 = vadd.f32 %v15836_v13, %v13916_v23  ;;  %v10556_v5 = vpop.f32.mrb[85].mxu0  ;;  %v10665_v30 = vsel %vm490_vm0, %v19804_v39, 0.0 }
 0xbd6   : > { %v10603_v18 = vadd.f32 %v15837_v25, %v10556_v5  ;;  %10666 = vadd.xlane.f32.xlu1 %v10665_v30  ;;  %v10662_v3 = vsel %vm490_vm0, %v19807_v16, 0.0 }
 0xbd7   : > { %v19816_v42 = vadd.f32 %v19739_v2, %v10604_v27  ;;  %10663 = vadd.xlane.f32.xlu0 %v10662_v3 }
 0xbd8   : > { %v19819_v17 = vadd.f32 %v19739_v2, %v10603_v18  ;;  %v13919_v7 = vpop.f32.mrb[86].mxu0 }
 0xbd9   : > { %v10606_v31 = vadd.f32 %v15838_v10, %v13919_v7  ;;  %v10566_v60 = vpop.f32.mrb[87].mxu0  ;;  %v10671_v32 = vsel %vm490_vm0, %v19816_v42, 0.0 }
 0xbda   : > { %v10605_v41 = vadd.f32 %v15839_v1, %v10566_v60  ;;  %10672 = vadd.xlane.f32.xlu1 %v10671_v32  ;;  %v10668_v34 = vsel %vm490_vm0, %v19819_v17, 0.0 }
 0xbdb   : > { %v19828_v52 = vadd.f32 %v19739_v2, %v10606_v31  ;;  %10669 = vadd.xlane.f32.xlu0 %v10668_v34 }
 0xbdc   : > { %v19831_v21 = vadd.f32 %v19739_v2, %v10605_v41 }
 0xbdd   : > { %v10677_v35 = vsel %vm490_vm0, %v19828_v52, 0.0 }
 0xbde   : > { %10678 = vadd.xlane.f32.xlu1 %v10677_v35  ;;  %v10674_v36 = vsel %vm490_vm0, %v19831_v21, 0.0 }
 0xbdf   : > { %10675 = vadd.xlane.f32.xlu0 %v10674_v36 }
 0xc4f   : > { %v10637_v50 = vpop.xlane.xlu1 %10636 }
 0xc50   : > { %v10681_v63 = vmul.f32 0.03125, %v10637_v50  ;;  %v10634_v61 = vpop.xlane.xlu0 %10633 }
 0xc51   : > { %v10680_v26 = vmul.f32 0.03125, %v10634_v61 }
 0xc52   : > { %v19838_v56 = vsub.f32 %v19744_v54, %v10681_v63 }
 0xc53   : > { %v19841_v29 = vsub.f32 %v19747_v12, %v10680_v26  ;;  %v10643_v2 = vpop.xlane.xlu1 %10642 }
 0xc54   : > { %v10683_v4 = vmul.f32 0.03125, %v10643_v2  ;;  %v10640_v58 = vpop.xlane.xlu0 %10639  ;;  %v10713_v51 = vmul.f32 %v19838_v56, %v19838_v56 }
 0xc55   : > { %v10682_v14 = vmul.f32 0.03125, %v10640_v58  ;;  %v10712_v6 = vmul.f32 %v19841_v29, %v19841_v29 }
 0xc56   : > { %v19848_v33 = vsub.f32 %v19756_v45, %v10683_v4  ;;  %v10731_v48 = vsel %vm490_vm0, %v10713_v51, 0.0 }
 0xc57   : > { %v19852_v47 = vsub.f32 %v19759_v24, %v10682_v14  ;;  %v10649_v55 = vpop.xlane.xlu1 %10648  ;;  %10732 = vadd.xlane.f32.xlu1 %v10731_v48  ;;  %v10728_v22 = vsel %vm490_vm0, %v10712_v6, 0.0 }
 0xc58   : > { %v10685_v40 = vmul.f32 0.03125, %v10649_v55  ;;  %10729 = vadd.xlane.f32.xlu0 %v10728_v22  ;;  %v10646_v49 = vpop.xlane.xlu0 %10645  ;;  %v10715_v28 = vmul.f32 %v19848_v33, %v19848_v33 }
 0xc59   : > { %v10684_v19 = vmul.f32 0.03125, %v10646_v49  ;;  %v10714_v20 = vmul.f32 %v19852_v47, %v19852_v47 }
 0xc5a   : > { %v19860_v43 = vsub.f32 %v19768_v15, %v10685_v40  ;;  %v10737_v57 = vsel %vm490_vm0, %v10715_v28, 0.0 }
 0xc5b   : > { %v19864_v37 = vsub.f32 %v19771_v62, %v10684_v19  ;;  %v10655_v9 = vpop.xlane.xlu1 %10654  ;;  %10738 = vadd.xlane.f32.xlu1 %v10737_v57  ;;  %v10734_v11 = vsel %vm490_vm0, %v10714_v20, 0.0 }
 0xc5c   : > { %v10687_v59 = vmul.f32 0.03125, %v10655_v9  ;;  %10735 = vadd.xlane.f32.xlu0 %v10734_v11  ;;  %v10652_v44 = vpop.xlane.xlu0 %10651  ;;  %v10717_v38 = vmul.f32 %v19860_v43, %v19860_v43 }
 0xc5d   : > { %v10686_v23 = vmul.f32 0.03125, %v10652_v44  ;;  %v10716_v13 = vmul.f32 %v19864_v37, %v19864_v37 }
 0xc5e   : > { %v19872_v27 = vsub.f32 %v19780_v53, %v10687_v59  ;;  %v10743_v5 = vsel %vm490_vm0, %v10717_v38, 0.0 }
 0xc5f   : > { %v19876_v30 = vsub.f32 %v19783_v46, %v10686_v23  ;;  %v10661_v25 = vpop.xlane.xlu1 %10660  ;;  %10744 = vadd.xlane.f32.xlu1 %v10743_v5  ;;  %v10740_v18 = vsel %vm490_vm0, %v10716_v13, 0.0 }
 0xc60   : > { %v10689_v3 = vmul.f32 0.03125, %v10661_v25  ;;  %10741 = vadd.xlane.f32.xlu0 %v10740_v18  ;;  %v10658_v7 = vpop.xlane.xlu0 %10657  ;;  %v10719_v10 = vmul.f32 %v19872_v27, %v19872_v27 }
 0xc61   : > { %v10688_v31 = vmul.f32 0.03125, %v10658_v7  ;;  %v10718_v60 = vmul.f32 %v19876_v30, %v19876_v30 }
 0xc62   : > { %v19884_v32 = vsub.f32 %v19792_v8, %v10689_v3  ;;  %v10749_v1 = vsel %vm490_vm0, %v10719_v10, 0.0 }
 0xc63   : > { %v19888_v41 = vsub.f32 %v19795_v0, %v10688_v31  ;;  %v10667_v34 = vpop.xlane.xlu1 %10666  ;;  %10750 = vadd.xlane.f32.xlu1 %v10749_v1  ;;  %v10746_v35 = vsel %vm490_vm0, %v10718_v60, 0.0  ;;  %v10884_v31 = vld [vmem:[%s20208_s8] sm:$0xff]  ;;  %v10885_v60 = vld [vmem:[%s20208_s8 + $0x8] sm:$0xff] }
 0xc64   : > { %v10691_v36 = vmul.f32 0.03125, %v10667_v34  ;;  %10747 = vadd.xlane.f32.xlu0 %v10746_v35  ;;  %v10664_v50 = vpop.xlane.xlu0 %10663  ;;  %v10721_v63 = vmul.f32 %v19884_v32, %v19884_v32  ;;  %v14720_v1 = vpack.c.bf16 %v10885_v60, %v10884_v31  ;;  %v10886_v34 = vld [vmem:[%s20208_s8 + $0x10] sm:$0xff]  ;;  %v10887_v35 = vld [vmem:[%s20208_s8 + $0x18] sm:$0xff]  ;;  %v19957_v31 = vld [vmem:[%s20206_s6] ss:$0 sm:$0xff] }
 0xc65   : > { %v10690_v61 = vmul.f32 0.03125, %v10664_v50  ;;  %v10720_v26 = vmul.f32 %v19888_v41, %v19888_v41  ;;  %v11104_v50 = vld [vmem:[%s20210_s10] sm:$0xff] }
 0xc66   : > { %v19896_v2 = vsub.f32 %v19804_v39, %v10691_v36  ;;  %v10755_v4 = vsel %vm490_vm0, %v10721_v63, 0.0  ;;  %14721 = vmatprep.subr.bf16.mxu0 %v14720_v1  ;;  %v14724_v36 = vpack.c.bf16 %v10887_v35, %v10886_v34  ;;  %v11105_v63 = vld [vmem:[%s20210_s10 + $0x8] sm:$0xff] }
 0xc67   : > { %v19900_v58 = vsub.f32 %v19807_v16, %v10690_v61  ;;  %v10673_v51 = vpop.xlane.xlu1 %10672  ;;  %10756 = vadd.xlane.f32.xlu1 %v10755_v4  ;;  %v10752_v14 = vsel %vm490_vm0, %v10720_v26, 0.0  ;;  %14723 = vmatpush3.bf16.msra.mxu0 %v14720_v1  ;;  %v19951_v61 = vpack.c.bf16 %v11105_v63, %v11104_v50 }
 0xc68   : > { %v10693_v6 = vmul.f32 0.03125, %v10673_v51  ;;  %10753 = vadd.xlane.f32.xlu0 %v10752_v14  ;;  %v10670_v48 = vpop.xlane.xlu0 %10669  ;;  %v10723_v55 = vmul.f32 %v19896_v2, %v19896_v2  ;;  %14725 = vmatprep.subr.bf16.mxu0 %v14724_v36 }
 0xc69   : > { %v10692_v22 = vmul.f32 0.03125, %v10670_v48  ;;  %v10722_v40 = vmul.f32 %v19900_v58, %v19900_v58 }
 0xc6a   : > { %v19908_v49 = vsub.f32 %v19816_v42, %v10693_v6  ;;  %v10761_v28 = vsel %vm490_vm0, %v10723_v55, 0.0 }
 0xc6b   : > { %v19912_v19 = vsub.f32 %v19819_v17, %v10692_v22  ;;  %10762 = vadd.xlane.f32.xlu1 %v10761_v28  ;;  %v10679_v20 = vpop.xlane.xlu1 %10678  ;;  %v10758_v57 = vsel %vm490_vm0, %v10722_v40, 0.0  ;;  %14727 = vmatpush3.bf16.msra.mxu0 %v14724_v36 }
 0xc6c   : > { %v10695_v9 = vmul.f32 0.03125, %v10679_v20  ;;  %10759 = vadd.xlane.f32.xlu0 %v10758_v57  ;;  %v10676_v11 = vpop.xlane.xlu0 %10675  ;;  %v10725_v59 = vmul.f32 %v19908_v49, %v19908_v49  ;;  %14729 = vmatprep.subr.bf16.mxu0 %v19951_v61 }
 0xc6d   : > { %v10694_v44 = vmul.f32 0.03125, %v10676_v11  ;;  %v10724_v38 = vmul.f32 %v19912_v19, %v19912_v19 }
 0xc6e   : > { %v19920_v23 = vsub.f32 %v19828_v52, %v10695_v9  ;;  %v10767_v13 = vsel %vm490_vm0, %v10725_v59, 0.0 }
 0xc6f   : > { %v19924_v5 = vsub.f32 %v19831_v21, %v10694_v44  ;;  %10768 = vadd.xlane.f32.xlu1 %v10767_v13  ;;  %v10764_v25 = vsel %vm490_vm0, %v10724_v38, 0.0 }
 0xc70   : > { %10765 = vadd.xlane.f32.xlu0 %v10764_v25  ;;  %v10727_v18 = vmul.f32 %v19920_v23, %v19920_v23 }
 0xc71   : > { %v10726_v3 = vmul.f32 %v19924_v5, %v19924_v5 }
 0xc72   : > { %v10773_v7 = vsel %vm490_vm0, %v10727_v18, 0.0 }
 0xc73   : > { %10774 = vadd.xlane.f32.xlu1 %v10773_v7  ;;  %v10770_v10 = vsel %vm490_vm0, %v10726_v3, 0.0 }
 0xc74   : > { %10771 = vadd.xlane.f32.xlu0 %v10770_v10 }
 0xce4   : > { %v10733_v26 = vpop.xlane.xlu1 %10732 }
 0xce5   : > { %v10777_v4 = vmul.f32 0.03125, %v10733_v26  ;;  %v10730_v51 = vpop.xlane.xlu0 %10729 }
 0xce6   : > { %v10776_v14 = vmul.f32 0.03125, %v10730_v51  ;;  %v11107_v51 = vld [vmem:[%s20210_s10 + $0x18] sm:$0xff] }
 0xce7   : > { %v10793_v6 = vadd.f32 1e-05, %v10777_v4  ;;  %v11106_v4 = vld [vmem:[%s20210_s10 + $0x10] sm:$0xff] }
 0xce8   : > { %v10792_v48 = vadd.f32 1e-05, %v10776_v14  ;;  %v10739_v55 = vpop.xlane.xlu1 %10738  ;;  %v19970_v14 = vld [vmem:[%s20207_s7] ss:$0 sm:$0xff] }
 0xce9   : > { %15780 = vrsqrt.f32 %v10793_v6  ;;  %v10779_v22 = vmul.f32 0.03125, %v10739_v55  ;;  %v10736_v40 = vpop.xlane.xlu0 %10735 }
 0xcea   : > { %15782 = vrsqrt.f32 %v10792_v48  ;;  %v10778_v28 = vmul.f32 0.03125, %v10736_v40 }
 0xceb   : > { %v10795_v20 = vadd.f32 1e-05, %v10779_v22 }
 0xcec   : > { %v10794_v57 = vadd.f32 1e-05, %v10778_v28  ;;  %v10745_v9 = vpop.xlane.xlu1 %10744 }
 0xced   : > { %15784 = vrsqrt.f32 %v10795_v20  ;;  %v10781_v11 = vmul.f32 0.03125, %v10745_v9  ;;  %v10742_v59 = vpop.xlane.xlu0 %10741 }
 0xcee   : > { %15786 = vrsqrt.f32 %v10794_v57  ;;  %v10780_v44 = vmul.f32 0.03125, %v10742_v59  ;;  %v14732_v57 = vpack.c.bf16 %v11107_v51, %v11106_v4  ;;  %v11110_v4 = vld [vmem:[%s20210_s10 + $0x30] sm:$0xff]  ;;  %v11111_v51 = vld [vmem:[%s20210_s10 + $0x38] sm:$0xff] }
 0xcef   : > { %v10797_v38 = vadd.f32 1e-05, %v10781_v11 }
 0xcf0   : > { %v10796_v13 = vadd.f32 1e-05, %v10780_v44  ;;  %v10751_v25 = vpop.xlane.xlu1 %10750 }
 0xcf1   : > { %15788 = vrsqrt.f32 %v10797_v38  ;;  %v10783_v18 = vmul.f32 0.03125, %v10751_v25  ;;  %v10748_v3 = vpop.xlane.xlu0 %10747  ;;  %v11108_v38 = vld [vmem:[%s20210_s10 + $0x20] sm:$0xff] }
 0xcf2   : > { %15790 = vrsqrt.f32 %v10796_v13  ;;  %v10782_v7 = vmul.f32 0.03125, %v10748_v3  ;;  %v11109_v13 = vld [vmem:[%s20210_s10 + $0x28] sm:$0xff] }
 0xcf3   : > { %v15781_v10 = vpop.eup %15780  ;;  %v10799_v60 = vadd.f32 1e-05, %v10783_v18 }
 0xcf4   : > { %v15783_v1 = vpop.eup %15782  ;;  %v10825_v34 = vmul.f32 %v15781_v10, %v19838_v56  ;;  %v10798_v35 = vadd.f32 1e-05, %v10782_v7  ;;  %v10757_v36 = vpop.xlane.xlu1 %10756 }
 0xcf5   : > { %15792 = vrsqrt.f32 %v10799_v60  ;;  %v10785_v50 = vmul.f32 0.03125, %v10757_v36  ;;  %v10754_v63 = vpop.xlane.xlu0 %10753  ;;  %v10824_v26 = vmul.f32 %v15783_v1, %v19841_v29 }
 0xcf6   : > { %v10847_v56 = vmul.f32 %v19957_v31, %v10825_v34  ;;  %15794 = vrsqrt.f32 %v10798_v35  ;;  %v10784_v6 = vmul.f32 0.03125, %v10754_v63  ;;  %v14736_v35 = vpack.c.bf16 %v11109_v13, %v11108_v38 }
 0xcf7   : > { %v15785_v48 = vpop.eup %15784  ;;  %v10801_v55 = vadd.f32 1e-05, %v10785_v50  ;;  %v10846_v29 = vmul.f32 %v19957_v31, %v10824_v26 }
 0xcf8   : > { %v15787_v22 = vpop.eup %15786  ;;  %v10800_v40 = vadd.f32 1e-05, %v10784_v6  ;;  %v10763_v28 = vpop.xlane.xlu1 %10762  ;;  %v10827_v20 = vmul.f32 %v15785_v48, %v19848_v33  ;;  %v10869_v25 = vadd.f32 %v19970_v14, %v10847_v56 }
 0xcf9   : > { %15796 = vrsqrt.f32 %v10801_v55  ;;  %v10787_v9 = vmul.f32 0.03125, %v10763_v28  ;;  %v10760_v11 = vpop.xlane.xlu0 %10759  ;;  %v10868_v59 = vadd.f32 %v19970_v14, %v10846_v29  ;;  %v10826_v44 = vmul.f32 %v15787_v22, %v19852_v47 }
 0xcfa   : > { %15798 = vrsqrt.f32 %v10800_v40  ;;  %v10786_v33 = vmul.f32 0.03125, %v10760_v11  ;;  %v10849_v18 = vmul.f32 %v19957_v31, %v10827_v20  ;;  %v14740_v28 = vpack.c.bf16 %v11111_v51, %v11110_v4 }
 0xcfb   : > { %v15789_v3 = vpop.eup %15788  ;;  %v10803_v7 = vadd.f32 1e-05, %v10787_v9  ;;  %13928 = vmatprep.mubr.msk.f32.mxu0 %vm490_vm0, %v10868_v59  ;;  %v10848_v47 = vmul.f32 %v19957_v31, %v10826_v44 }
 0xcfc   : > { %v15791_v10 = vpop.eup %15790  ;;  %v10802_v60 = vadd.f32 1e-05, %v10786_v33  ;;  %v10769_v1 = vpop.xlane.xlu1 %10768  ;;  %13929 = vmatmul.mubr.msk.f32.vlgmr.msra.gmra.mrb[104].mxu0 %vm490_vm0, %v10869_v25  ;;  %v10829_v34 = vmul.f32 %v15789_v3, %v19860_v43  ;;  %v10871_v56 = vadd.f32 %v19970_v14, %v10849_v18  ;;  %v11112_v18 = vld [vmem:[%s20210_s10 + $0x40] sm:$0xff] }
 0xcfd   : > { %15800 = vrsqrt.f32 %v10803_v7  ;;  %v10789_v36 = vmul.f32 0.03125, %v10769_v1  ;;  %v10766_v50 = vpop.xlane.xlu0 %10765  ;;  %v10870_v63 = vadd.f32 %v19970_v14, %v10848_v47  ;;  %v10828_v26 = vmul.f32 %v15791_v10, %v19864_v37  ;;  %14731 = vmatpush3.bf16.msra.mxu0 %v19951_v61 }
 0xcfe   : > { %15802 = vrsqrt.f32 %v10802_v60  ;;  %v10788_v43 = vmul.f32 0.03125, %v10766_v50  ;;  %v10851_v6 = vmul.f32 %v19957_v31, %v10829_v34  ;;  %14733 = vmatprep.subr.bf16.mxu0 %v14732_v57 }
 0xcff   : > { %v15793_v48 = vpop.eup %15792  ;;  %v10805_v55 = vadd.f32 1e-05, %v10789_v36  ;;  %13931 = vmatprep.mubr.msk.f32.mxu0 %vm490_vm0, %v10870_v63  ;;  %v10850_v37 = vmul.f32 %v19957_v31, %v10828_v26 }
 0xd00   : > { %v15795_v61 = vpop.eup %15794  ;;  %v10804_v29 = vadd.f32 1e-05, %v10788_v43  ;;  %v10775_v22 = vpop.xlane.xlu1 %10774  ;;  %13932 = vmatmul.mubr.msk.f32.gmra.mrb[106].mxu0 %vm490_vm0, %v10871_v56  ;;  %v10831_v40 = vmul.f32 %v15793_v48, %v19872_v27  ;;  %v10873_v38 = vadd.f32 %v19970_v14, %v10851_v6 }
 0xd01   : > { %15804 = vrsqrt.f32 %v10805_v55  ;;  %v10791_v20 = vmul.f32 0.03125, %v10775_v22  ;;  %v10772_v9 = vpop.xlane.xlu0 %10771  ;;  %v10872_v11 = vadd.f32 %v19970_v14, %v10850_v37  ;;  %v10830_v59 = vmul.f32 %v15795_v61, %v19876_v30  ;;  %14735 = vmatpush3.bf16.msra.mxu0 %v14732_v57  ;;  %v11113_v30 = vld [vmem:[%s20210_s10 + $0x48] sm:$0xff] }
 0xd02   : > { %15806 = vrsqrt.f32 %v10804_v29  ;;  %v10790_v44 = vmul.f32 0.03125, %v10772_v9  ;;  %v10853_v13 = vmul.f32 %v19957_v31, %v10831_v40  ;;  %14737 = vmatprep.subr.bf16.mxu0 %v14736_v35  ;;  %v14744_v34 = vpack.c.bf16 %v11113_v30, %v11112_v18 }
 0xd03   : > { %v15797_v25 = vpop.eup %15796  ;;  %v10807_v33 = vadd.f32 1e-05, %v10791_v20  ;;  %13934 = vmatprep.mubr.msk.f32.mxu0 %vm490_vm0, %v10872_v11  ;;  %v10852_v27 = vmul.f32 %v19957_v31, %v10830_v59 }
 0xd04   : > { %v15799_v57 = vpop.eup %15798  ;;  %v10806_v3 = vadd.f32 1e-05, %v10790_v44  ;;  %13935 = vmatmul.mubr.msk.f32.gmra.mrb[108].mxu0 %vm490_vm0, %v10873_v38  ;;  %v10833_v7 = vmul.f32 %v15797_v25, %v19884_v32  ;;  %v10875_v60 = vadd.f32 %v19970_v14, %v10853_v13  ;;  %v11114_v32 = vld [vmem:[%s20210_s10 + $0x50] sm:$0xff] }
 0xd05   : > { %15808 = vrsqrt.f32 %v10807_v33  ;;  %v10874_v47 = vadd.f32 %v19970_v14, %v10852_v27  ;;  %v10832_v10 = vmul.f32 %v15799_v57, %v19888_v41  ;;  %14739 = vmatpush3.bf16.msra.mxu0 %v14736_v35  ;;  %v11115_v41 = vld [vmem:[%s20210_s10 + $0x58] sm:$0xff]  ;;  %v11965_v27 = vld [vmem:[%s20209_s9] ss:$0 sm:$0xff] }
 0xd06   : > { %15810 = vrsqrt.f32 %v10806_v3  ;;  %v10855_v1 = vmul.f32 %v19957_v31, %v10833_v7  ;;  %14741 = vmatprep.subr.bf16.mxu0 %v14740_v28  ;;  %v14748_v56 = vpack.c.bf16 %v11115_v41, %v11114_v32  ;;  %v11119_v33 = vld [vmem:[%s20210_s10 + $0x78] sm:$0xff] }
 0xd07   : > { %v15801_v36 = vpop.eup %15800  ;;  %13937 = vmatprep.mubr.msk.f32.mxu0 %vm490_vm0, %v10874_v47  ;;  %v10854_v50 = vmul.f32 %v19957_v31, %v10832_v10 }
 0xd08   : > { %v15803_v35 = vpop.eup %15802  ;;  %13938 = vmatmul.mubr.msk.f32.gmra.mrb[110].mxu0 %vm490_vm0, %v10875_v60  ;;  %v10835_v63 = vmul.f32 %v15801_v36, %v19896_v2  ;;  %v10877_v51 = vadd.f32 %v19970_v14, %v10855_v1  ;;  %v11116_v2 = vld [vmem:[%s20210_s10 + $0x60] sm:$0xff] }
 0xd09   : > { %v10876_v26 = vadd.f32 %v19970_v14, %v10854_v50  ;;  %v10834_v4 = vmul.f32 %v15803_v35, %v19900_v58  ;;  %14743 = vmatpush3.bf16.msra.mxu0 %v14740_v28  ;;  %v11117_v58 = vld [vmem:[%s20210_s10 + $0x68] sm:$0xff] }
 0xd0a   : > { %v10857_v43 = vmul.f32 %v19957_v31, %v10835_v63  ;;  %14745 = vmatprep.subr.bf16.mxu0 %v14744_v34  ;;  %v14752_v28 = vpack.c.bf16 %v11117_v58, %v11116_v2 }
 0xd0b   : > { %v15805_v6 = vpop.eup %15804  ;;  %13940 = vmatprep.mubr.msk.f32.mxu0 %vm490_vm0, %v10876_v26  ;;  %v10856_v48 = vmul.f32 %v19957_v31, %v10834_v4 }
 0xd0c   : > { %v15807_v55 = vpop.eup %15806  ;;  %13941 = vmatmul.mubr.msk.f32.gmra.mrb[112].mxu0 %vm490_vm0, %v10877_v51  ;;  %v10837_v37 = vmul.f32 %v15805_v6, %v19908_v49  ;;  %v10879_v22 = vadd.f32 %v19970_v14, %v10857_v43 }
 0xd0d   : > { %v10878_v61 = vadd.f32 %v19970_v14, %v10856_v48  ;;  %v10836_v29 = vmul.f32 %v15807_v55, %v19912_v19  ;;  %14747 = vmatpush3.bf16.msra.mxu0 %v14744_v34 }
 0xd0e   : > { %v10859_v40 = vmul.f32 %v19957_v31, %v10837_v37  ;;  %14749 = vmatprep.subr.bf16.mxu0 %v14748_v56 }
 0xd0f   : > { %v15809_v20 = vpop.eup %15808  ;;  %13943 = vmatprep.mubr.msk.f32.mxu0 %vm490_vm0, %v10878_v61  ;;  %v10858_v9 = vmul.f32 %v19957_v31, %v10836_v29 }
 0xd10   : > { %v15811_v11 = vpop.eup %15810  ;;  %13944 = vmatmul.mubr.msk.f32.gmra.mrb[114].mxu0 %vm490_vm0, %v10879_v22  ;;  %v10839_v49 = vmul.f32 %v15809_v20, %v19920_v23  ;;  %v10881_v44 = vadd.f32 %v19970_v14, %v10859_v40 }
 0xd11   : > { %v10880_v59 = vadd.f32 %v19970_v14, %v10858_v9  ;;  %v10838_v19 = vmul.f32 %v15811_v11, %v19924_v5  ;;  %14751 = vmatpush3.bf16.msra.mxu0 %v14748_v56  ;;  %v11118_v5 = vld [vmem:[%s20210_s10 + $0x70] sm:$0xff] }
 0xd12   : > { %v10861_v38 = vmul.f32 %v19957_v31, %v10839_v49  ;;  %14753 = vmatprep.subr.bf16.mxu0 %v14752_v28 }
 0xd13   : > { %13946 = vmatprep.mubr.msk.f32.mxu0 %vm490_vm0, %v10880_v59  ;;  %v10860_v13 = vmul.f32 %v19957_v31, %v10838_v19  ;;  %v14756_v31 = vpack.c.bf16 %v11119_v33, %v11118_v5 }
 0xd14   : > { %13947 = vmatmul.mubr.msk.f32.gmra.mrb[116].mxu0 %vm490_vm0, %v10881_v44  ;;  %v10883_v23 = vadd.f32 %v19970_v14, %v10861_v38 }
 0xd15   : > { %v10882_v25 = vadd.f32 %v19970_v14, %v10860_v13  ;;  %14755 = vmatpush3.bf16.msra.mxu0 %v14752_v28 }
 0xd16   : > { %14757 = vmatprep.subr.bf16.mxu0 %v14756_v31 }
 0xd17   : > { %13949 = vmatprep.mubr.msk.f32.mxu0 %vm490_vm0, %v10882_v25 }
 0xd18   : > { %13950 = vmatmul.mubr.msk.f32.gmra.mrb[118].mxu0 %vm490_vm0, %v10883_v23 }
 0xd19   : > { %14759 = vmatpush3.bf16.msra.mxu0 %v14756_v31 }
 0xdcf   : > { %v13930_v14 = vpop.f32.mrb[104].mxu0 }
 0xdd0   : > { %v11015_v18 = vadd.f32 %v13930_v14, %v11965_v27  ;;  %v11009_v30 = vpop.f32.mrb[105].mxu0 }
 0xdd1   : > { %v11010_v57 = vadd.f32 %v11965_v27, %v11009_v30 }
 0xdd2   : > { %v11089_v47 = vmax.f32 %v11015_v18, 0.0  ;;  %v20078_v18 = vld [vmem:[%s20211_s11] ss:$0 sm:$0xff] }
 0xdd3   : > { %v11088_v3 = vmax.f32 %v11010_v57, 0.0  ;;  %v13933_v7 = vpop.f32.mrb[106].mxu0 }
 0xdd4   : > { %v11025_v10 = vadd.f32 %v13933_v7, %v11965_v27  ;;  %v11019_v60 = vpop.f32.mrb[107].mxu0 }
 0xdd5   : > { %v11020_v1 = vadd.f32 %v11965_v27, %v11019_v60  ;;  %13984 = vmatprep.mubr.f32.mxu0 %v11088_v3 }
 0xdd6   : > { %13985 = vmatmul.mubr.f32.vlgmr.msra.gmra.mrb[120].mxu0 %v11089_v47  ;;  %v11091_v50 = vmax.f32 %v11025_v10, 0.0 }
 0xdd7   : > { %v11090_v34 = vmax.f32 %v11020_v1, 0.0  ;;  %v13936_v36 = vpop.f32.mrb[108].mxu0 }
 0xdd8   : > { %v11035_v32 = vadd.f32 %v13936_v36, %v11965_v27  ;;  %v11029_v41 = vpop.f32.mrb[109].mxu0 }
 0xdd9   : > { %v11030_v35 = vadd.f32 %v11965_v27, %v11029_v41  ;;  %13987 = vmatprep.mubr.f32.mxu0 %v11090_v34 }
 0xdda   : > { %13988 = vmatmul.mubr.f32.gmra.mrb[122].mxu0 %v11091_v50  ;;  %v11093_v4 = vmax.f32 %v11035_v32, 0.0 }
 0xddb   : > { %v11092_v63 = vmax.f32 %v11030_v35, 0.0  ;;  %v13939_v26 = vpop.f32.mrb[110].mxu0 }
 0xddc   : > { %v11045_v51 = vadd.f32 %v13939_v26, %v11965_v27  ;;  %v11039_v43 = vpop.f32.mrb[111].mxu0 }
 0xddd   : > { %v11040_v56 = vadd.f32 %v11965_v27, %v11039_v43  ;;  %13990 = vmatprep.mubr.f32.mxu0 %v11092_v63 }
 0xdde   : > { %13991 = vmatmul.mubr.f32.gmra.mrb[124].mxu0 %v11093_v4  ;;  %v11095_v2 = vmax.f32 %v11045_v51, 0.0 }
 0xddf   : > { %v11094_v6 = vmax.f32 %v11040_v56, 0.0  ;;  %v13942_v48 = vpop.f32.mrb[112].mxu0 }
 0xde0   : > { %v11055_v58 = vadd.f32 %v13942_v48, %v11965_v27  ;;  %v11049_v55 = vpop.f32.mrb[113].mxu0 }
 0xde1   : > { %v11050_v37 = vadd.f32 %v11965_v27, %v11049_v55  ;;  %13993 = vmatprep.mubr.f32.mxu0 %v11094_v6 }
 0xde2   : > { %13994 = vmatmul.mubr.f32.gmra.mrb[126].mxu0 %v11095_v2  ;;  %v11097_v22 = vmax.f32 %v11055_v58, 0.0 }
 0xde3   : > { %v11096_v61 = vmax.f32 %v11050_v37, 0.0  ;;  %v13945_v29 = vpop.f32.mrb[114].mxu0 }
 0xde4   : > { %v11065_v40 = vadd.f32 %v13945_v29, %v11965_v27  ;;  %v11059_v28 = vpop.f32.mrb[115].mxu0 }
 0xde5   : > { %v11060_v20 = vadd.f32 %v11965_v27, %v11059_v28  ;;  %13996 = vmatprep.mubr.f32.mxu0 %v11096_v61 }
 0xde6   : > { %13997 = vmatmul.mubr.f32.gmra.mrb[128].mxu0 %v11097_v22  ;;  %v11099_v49 = vmax.f32 %v11065_v40, 0.0 }
 0xde7   : > { %v11098_v9 = vmax.f32 %v11060_v20, 0.0  ;;  %v13948_v11 = vpop.f32.mrb[116].mxu0 }
 0xde8   : > { %v11075_v59 = vadd.f32 %v13948_v11, %v11965_v27  ;;  %v11069_v19 = vpop.f32.mrb[117].mxu0 }
 0xde9   : > { %v11070_v44 = vadd.f32 %v11965_v27, %v11069_v19  ;;  %13999 = vmatprep.mubr.f32.mxu0 %v11098_v9 }
 0xdea   : > { %14000 = vmatmul.mubr.f32.gmra.mrb[130].mxu0 %v11099_v49  ;;  %v11101_v25 = vmax.f32 %v11075_v59, 0.0 }
 0xdeb   : > { %v11100_v38 = vmax.f32 %v11070_v44, 0.0  ;;  %v13951_v13 = vpop.f32.mrb[118].mxu0 }
 0xdec   : > { %v11085_v23 = vadd.f32 %v13951_v13, %v11965_v27  ;;  %v11079_v5 = vpop.f32.mrb[119].mxu0 }
 0xded   : > { %v11080_v33 = vadd.f32 %v11965_v27, %v11079_v5  ;;  %14002 = vmatprep.mubr.f32.mxu0 %v11100_v38 }
 0xdee   : > { %14003 = vmatmul.mubr.f32.gmra.mrb[132].mxu0 %v11101_v25  ;;  %v11103_v14 = vmax.f32 %v11085_v23, 0.0 }
 0xdef   : > { %v11102_v31 = vmax.f32 %v11080_v33, 0.0 }
 0xdf1   : > { %14005 = vmatprep.mubr.f32.mxu0 %v11102_v31 }
 0xdf2   : > { %14006 = vmatmul.mubr.f32.gmra.mrb[134].mxu0 %v11103_v14 }
 0xea9   : > { %v13986_v30 = vpop.f32.mrb[120].mxu0 }
 0xeaa   : > { %v11199_v57 = vadd.f32 %v13986_v30, %v20078_v18  ;;  %v11193_v3 = vpop.f32.mrb[121].mxu0 }
 0xeab   : > { %v11194_v27 = vadd.f32 %v20078_v18, %v11193_v3 }
 0xeac   : > { %v11273_v7 = vadd.f32 %v11199_v57, %v19744_v54 }
 0xead   : > { %v11272_v47 = vadd.f32 %v11194_v27, %v19747_v12  ;;  %v13989_v10 = vpop.f32.mrb[122].mxu0 }
 0xeae   : > { %11289 = vst.msk [vmem:[%s20086_s18 + $0x8] sm:$0xff] %vm490_vm0, %v11273_v7  ;;  %v11209_v60 = vadd.f32 %v13989_v10, %v20078_v18  ;;  %v11203_v1 = vpop.f32.mrb[123].mxu0 }
 0xeaf   : > { %11288 = vst.msk [vmem:[%s20086_s18] sm:$0xff] %vm490_vm0, %v11272_v47  ;;  %v11204_v54 = vadd.f32 %v20078_v18, %v11203_v1 }
 0xeb0   : > { %v11275_v12 = vadd.f32 %v11209_v60, %v19756_v45 }
 0xeb1   : > { %v11274_v34 = vadd.f32 %v11204_v54, %v19759_v24  ;;  %v13992_v36 = vpop.f32.mrb[124].mxu0 }
 0xeb2   : > { %11291 = vst.msk [vmem:[%s20086_s18 + $0x18] sm:$0xff] %vm490_vm0, %v11275_v12  ;;  %v11219_v50 = vadd.f32 %v13992_v36, %v20078_v18  ;;  %v11213_v32 = vpop.f32.mrb[125].mxu0 }
 0xeb3   : > { %11290 = vst.msk [vmem:[%s20086_s18 + $0x10] sm:$0xff] %vm490_vm0, %v11274_v34  ;;  %v11214_v41 = vadd.f32 %v20078_v18, %v11213_v32 }
 0xeb4   : > { %v11277_v35 = vadd.f32 %v11219_v50, %v19768_v15 }
 0xeb5   : > { %v11276_v63 = vadd.f32 %v11214_v41, %v19771_v62  ;;  %v13995_v26 = vpop.f32.mrb[126].mxu0 }
 0xeb6   : > { %11293 = vst.msk [vmem:[%s20086_s18 + $0x28] sm:$0xff] %vm490_vm0, %v11277_v35  ;;  %v11229_v45 = vadd.f32 %v13995_v26, %v20078_v18  ;;  %v11223_v24 = vpop.f32.mrb[127].mxu0 }
 0xeb7   : > { %11292 = vst.msk [vmem:[%s20086_s18 + $0x20] sm:$0xff] %vm490_vm0, %v11276_v63  ;;  %v11224_v4 = vadd.f32 %v20078_v18, %v11223_v24 }
 0xeb8   : > { %v11279_v51 = vadd.f32 %v11229_v45, %v19780_v53 }
 0xeb9   : > { %v11278_v43 = vadd.f32 %v11224_v4, %v19783_v46  ;;  %v13998_v56 = vpop.f32.mrb[128].mxu0 }
 0xeba   : > { %11295 = vst.msk [vmem:[%s20086_s18 + $0x38] sm:$0xff] %vm490_vm0, %v11279_v51  ;;  %v11239_v15 = vadd.f32 %v13998_v56, %v20078_v18  ;;  %v11233_v62 = vpop.f32.mrb[129].mxu0 }
 0xebb   : > { %11294 = vst.msk [vmem:[%s20086_s18 + $0x30] sm:$0xff] %vm490_vm0, %v11278_v43  ;;  %v11234_v6 = vadd.f32 %v20078_v18, %v11233_v62 }
 0xebc   : > { %v11281_v48 = vadd.f32 %v11239_v15, %v19792_v8 }
 0xebd   : > { %v11280_v2 = vadd.f32 %v11234_v6, %v19795_v0  ;;  %v14001_v58 = vpop.f32.mrb[130].mxu0 }
 0xebe   : > { %11297 = vst.msk [vmem:[%s20086_s18 + $0x48] sm:$0xff] %vm490_vm0, %v11281_v48  ;;  %v11249_v53 = vadd.f32 %v14001_v58, %v20078_v18  ;;  %v11243_v46 = vpop.f32.mrb[131].mxu0 }
 0xebf   : > { %11296 = vst.msk [vmem:[%s20086_s18 + $0x40] sm:$0xff] %vm490_vm0, %v11280_v2  ;;  %v11244_v55 = vadd.f32 %v20078_v18, %v11243_v46 }
 0xec0   : > { %v11283_v37 = vadd.f32 %v11249_v53, %v19804_v39 }
 0xec1   : > { %v11282_v8 = vadd.f32 %v11244_v55, %v19807_v16  ;;  %v14004_v61 = vpop.f32.mrb[132].mxu0 }
 0xec2   : > { %11299 = vst.msk [vmem:[%s20086_s18 + $0x58] sm:$0xff] %vm490_vm0, %v11283_v37  ;;  %v11259_v0 = vadd.f32 %v14004_v61, %v20078_v18  ;;  %v11253_v29 = vpop.f32.mrb[133].mxu0 }
 0xec3   : > { %11298 = vst.msk [vmem:[%s20086_s18 + $0x50] sm:$0xff] %vm490_vm0, %v11282_v8  ;;  %v11254_v22 = vadd.f32 %v20078_v18, %v11253_v29 }
 0xec4   : > { %v11285_v40 = vadd.f32 %v11259_v0, %v19816_v42 }
 0xec5   : > { %v11284_v39 = vadd.f32 %v11254_v22, %v19819_v17  ;;  %v14007_v28 = vpop.f32.mrb[134].mxu0 }
 0xec6   : > { %11301 = vst.msk [vmem:[%s20086_s18 + $0x68] sm:$0xff] %vm490_vm0, %v11285_v40  ;;  %v11269_v16 = vadd.f32 %v14007_v28, %v20078_v18  ;;  %v11263_v20 = vpop.f32.mrb[135].mxu0 }
 0xec7   : > { %11300 = vst.msk [vmem:[%s20086_s18 + $0x60] sm:$0xff] %vm490_vm0, %v11284_v39  ;;  %v11264_v9 = vadd.f32 %v20078_v18, %v11263_v20 }
 0xec8   : > { %v11287_v11 = vadd.f32 %v11269_v16, %v19828_v52 }
 0xec9   : > { %v11286_v42 = vadd.f32 %v11264_v9, %v19831_v21 }
 0xeca   : > { %11303 = vst.msk [vmem:[%s20086_s18 + $0x78] sm:$0xff] %vm490_vm0, %v11287_v11 }
 0xecb   : > { %11302 = vst.msk [vmem:[%s20086_s18 + $0x70] sm:$0xff] %vm490_vm0, %v11286_v42 }
 0xecc   : > { %15853 = shalt.err (!%p15850_p3)
}
 0xecd   : > { %s15854_s0 = scalar_lea.hbm %s20148_s26, 2048  ;;  %s15858_s25 = scalar_lea.hbm %s20214_s14, 4096 }
 0xece   : > { %p15855_p4 = scmp.ne.s32.totalorder %s20148_s26, %s15854_s0  ;;  %p15859_p9 = scmp.lt.u32.totalorder %s20148_s26, %s20214_s14 }
 0xecf   : > { %p15860_p10 = scmp.lt.u32.totalorder %s15858_s25, %s15854_s0  ;;  %p15862_p12 = scmp.lt.u32.totalorder %s15854_s0, %s20148_s26 }
 0xed0   : > { %p15856_p7 = pnand %p15855_p4, %p16023_p5 }
 0xed1   : > { %p15861_p11 = por %p15860_p10, %p15859_p9 }
 0xed2   : > { %p15857_p8 = pneg %p15856_p7 }
 0xed3   : > { %p15863_p13 = por %p15862_p12, %p15861_p11 }
 0xed5   : > { %p15864_p0 = pnand %p15863_p13, %p15857_p8 }
 0xed7   : > { %15867 = shalt.err (!%p15864_p0)
}
 0xed8   : > { %s15908_s22 = smov 128   ;;  %s15909_s27 = smov 8  }
 0xed9   : > { %14872 = dma.vmem_to_hbm [thread:$0]  (%p16023_p5), %s20150_s28, 2048, %s20148_s26, %s20159_s17, %s15908_s22, %s15908_s22, %s15909_s27  }
 0xeda PF: > { %p14878_p1 = scmp.ge.s32.totalorder %s15902_s16, 2  ;;  %s11334_s18 = sand.u32 1, %s15890_s29  }
 0xedb   : > { %s11335_s0 = scalar_lea.sflag [#allocation3], %s11334_s18 }
 0xedc   : > { %p14875_p2 = pnand %p14878_p1, %p16027_p6 }
 0xede   : > { %15885 = dma.done.wait (!%p14875_p2), %s11335_s0, 2048  }
 0xedf   : > { %15887 = vsyncadd (!%p14875_p2), %s11335_s0, 4294965248  ;;  %s20773_s21 = sld [smem:[#allocation5_spill]]  ;;  %s20774_s15 = sld [smem:[#allocation6_spill]] }
 0xee0   : > { %p24_p3 = scmp.ge.s32.totalorder %s16010_s19, 4   ;;  %s20775_s29 = smov %s15894_s30 }
 0xee1   : > { %s20777_s16 = smov %s16010_s19 }
 0xee2   :  { %26 = sbr.rel (!%p24_p3) target bundleno = 5 (0x5), region = 125 }
 0xee5   : > { %s20776_s30 = smov %s20773_s21 }
 0xee9   :  { %11340 = vsyncpa [#allocation3], 1 }
 0xeea   :  { %11342 = vsyncpa [#allocation3 + $0x1], 1 }

</bundles_post_ra>
